<compile_context>
chip_gen: v6e
topology: v6e:2x2x1
jax: 0.10.0
libtpu: 0.0.40
codegen_flags: <defaults>
</compile_context>

<pallas_src>
import functools

import jax
import jax.numpy as jnp
from jax.experimental import pallas as pl
from jax.experimental.pallas import tpu as pltpu

EPS = 1e-5
LANE = 128
VMEM_BUDGET = 12 << 20        # conservative: fits v5e default scoped VMEM (16 MiB)
MAX_ROW_TILE = 64


# ----------------------------------------------------------------------------
# helpers
# ----------------------------------------------------------------------------
def _round_up(x, m):
    return (x + m - 1) // m * m


def _pad_last(x, target):
    pad = target - x.shape[-1]
    if pad == 0:
        return x
    widths = [(0, 0)] * (x.ndim - 1) + [(0, pad)]
    return jnp.pad(x, widths)


def _pick_tile(size, cap):
    t = max(1, min(size, cap))
    while size % t:
        t -= 1
    return t


def _auto_tile(size, per_row_bytes, fixed_bytes, budget=VMEM_BUDGET, max_rows=MAX_ROW_TILE):
    """Largest divisor of `size` whose per-step VMEM estimate stays under budget."""
    cap = (budget - fixed_bytes) // max(per_row_bytes, 1)
    cap = max(1, min(max_rows, int(cap), size))
    return _pick_tile(size, cap)


def _halo_row_tiles(x, th):
    """x: (N, H, W, C) -> (N, H//th, th+2, W+2, C) row tiles with a zero halo of 1."""
    n, h, w, c = x.shape
    xp = jnp.pad(x, ((0, 0), (1, 1), (1, 1), (0, 0)))
    tiles = [xp[:, i * th:i * th + th + 2] for i in range(h // th)]
    return jnp.stack(tiles, axis=1)


def _cost(flops, nbytes):
    return pl.CostEstimate(flops=int(flops), transcendentals=0,
                           bytes_accessed=int(nbytes))


def _parallel(n):
    return pltpu.CompilerParams(dimension_semantics=("parallel",) * n)


def _bn_affine(stats, count, gamma, beta):
    """Fold batch-stats BN into a per-channel (scale, shift) pair."""
    s = jnp.sum(stats, axis=(0, 1))                       # (2, C)
    mean = s[0] / count
    var = jnp.maximum(s[1] / count - mean * mean, 0.0)    # biased variance (train BN)
    scale = gamma * jax.lax.rsqrt(var + EPS)
    shift = beta - mean * scale
    return scale.reshape(1, -1), shift.reshape(1, -1)


# ----------------------------------------------------------------------------
# Kernel 1: ConvTranspose2d(kernel=2, stride=2).
# grid = (N, H/th, kh).  One MXU matmul [th*W, Cin] @ [Cin, 2*Cout] per step;
# columns are (kw, cout) so the output block (1, th, 1, W, 2*Cout) reshapes
# (for free, row-major) into the (2H, 2W, Cout) scatter in the wrapper.
# ----------------------------------------------------------------------------
def upsample_kernel(x_ref, w_ref, b_ref, o_ref):
    _, th, w, cin = x_ref.shape
    x2d = x_ref[...].reshape(th * w, cin)
    y = jnp.dot(x2d, w_ref[...], preferred_element_type=jnp.float32) + b_ref[...]
    o_ref[...] = y.reshape(1, th, 1, w, w_ref.shape[-1])


# ----------------------------------------------------------------------------
# Kernels 2/3: 3x3 conv (padding=1) on a halo'd row tile + per-tile BN statistics.
# ----------------------------------------------------------------------------
def _conv3x3_tile(x, w_ref):
    """x: (th+2, wo+2, cin) tile; w_ref: (3, 3, cin, cout) -> (th*wo, cout) fp32."""
    thp, wop, cin = x.shape
    th, wo = thp - 2, wop - 2
    cout = w_ref.shape[-1]
    acc = jnp.zeros((th * wo, cout), jnp.float32)
    for dy in range(3):
        for dx in range(3):
            patch = x[dy:dy + th, dx:dx + wo, :].reshape(th * wo, cin)
            acc = acc + jnp.dot(patch, w_ref[dy, dx],
                                preferred_element_type=jnp.float32)
    return acc


def _emit_conv_outputs(acc, th, wo, y_ref, stats_ref):
    y_ref[...] = acc.reshape(th, wo, acc.shape[-1])
    stats_ref[0:1, :] = jnp.sum(acc, axis=0, keepdims=True)
    stats_ref[1:2, :] = jnp.sum(acc * acc, axis=0, keepdims=True)


def conv1_kernel(xu_ref, xd_ref, wu_ref, wd_ref, b_ref, y_ref, stats_ref):
    # conv over cat([upsampled, down_x], channel) without materializing the concat:
    # the weight is split along its input-channel axis and the partial convs are summed.
    thp, wop, _ = xu_ref.shape
    th, wo = thp - 2, wop - 2
    acc = _conv3x3_tile(xu_ref[...], wu_ref)
    acc = acc + _conv3x3_tile(xd_ref[...], wd_ref)
    acc = acc + b_ref[...]
    _emit_conv_outputs(acc, th, wo, y_ref, stats_ref)


def conv2_kernel(x_ref, w_ref, b_ref, scale_ref, shift_ref, y_ref, stats_ref, *, ho):
    # Input is the *pre-BN* conv1 output: apply the folded BN affine + ReLU here, then
    # zero the spatial halo positions so the 3x3 conv sees proper zero padding.
    thp, wop, cin = x_ref.shape
    th, wo = thp - 2, wop - 2
    x = x_ref[...] * scale_ref[...].reshape(1, 1, cin) + shift_ref[...].reshape(1, 1, cin)
    x = jnp.maximum(x, 0.0)
    # 2-D validity mask (broadcast over channels): cheaper than a full 3-D iota.
    row = jax.lax.broadcasted_iota(jnp.int32, (thp, wop, 1), 0) + pl.program_id(1) * th
    col = jax.lax.broadcasted_iota(jnp.int32, (thp, wop, 1), 1)
    valid = (row >= 1) & (row <= ho) & (col >= 1) & (col <= wo)
    x = jnp.where(valid, x, 0.0)
    acc = _conv3x3_tile(x, w_ref) + b_ref[...]
    _emit_conv_outputs(acc, th, wo, y_ref, stats_ref)


def bn_relu_kernel(x_ref, scale_ref, shift_ref, o_ref):
    c = x_ref.shape[-1]
    o_ref[...] = jnp.maximum(
        x_ref[...] * scale_ref[...].reshape(1, 1, c)
        + shift_ref[...].reshape(1, 1, c), 0.0)


# ----------------------------------------------------------------------------
# Wrapper: parameter layout conversion + pallas_call plumbing.
# ----------------------------------------------------------------------------
def up_block_forward(up_x_nchw, down_x_nchw, params, *, up_row_tile=None, conv_row_tile=None):
    """Matches UpBlockForUNetWithResNet50.forward(up_x, down_x) with NCHW I/O."""
    up_x = jnp.transpose(up_x_nchw, (0, 2, 3, 1)).astype(jnp.float32)
    down_x = jnp.transpose(down_x_nchw, (0, 2, 3, 1)).astype(jnp.float32)

    N, H, W, cin_up = up_x.shape
    cup = params['upsample_w'].shape[1]             # transpose-conv out channels
    cdn = down_x.shape[-1]
    cout = params['c1_w'].shape[0]
    assert params['c1_w'].shape[1] == cup + cdn
    Ho, Wo = 2 * H, 2 * W

    cinp = _round_up(cin_up, LANE)
    cupp = _round_up(cup, LANE)
    cdnp = _round_up(cdn, LANE)
    coutp = _round_up(cout, LANE)

    # ---- 1. ConvTranspose2d(k=2, s=2) --------------------------------------
    x_up = _pad_last(up_x, cinp)
    wt = jnp.transpose(params['upsample_w'], (2, 0, 3, 1))        # (kh, Cin, kw, Cout)
    wt = jnp.pad(wt, ((0, 0), (0, cinp - cin_up), (0, 0), (0, cupp - cup)))
    wt = wt.reshape(2, cinp, 2 * cupp)                            # cols = (kw, cout)
    bt = jnp.tile(jnp.pad(params['upsample_b'], (0, cupp - cup)), 2).reshape(1, 2 * cupp)

    if up_row_tile is None:
        per_row = 4 * (W * cinp * 2 + W * 2 * cupp * 2)            # dbl-buffered in + out
        fixed = 4 * (cinp * 2 * cupp * 2 + 2 * cupp)               # weight tap + bias
        thu = _auto_tile(H, per_row, fixed)
    else:
        thu = _pick_tile(H, up_row_tile)
    ntu = H // thu
    u5 = pl.pallas_call(
        upsample_kernel,
        grid=(N, ntu, 2),
        in_specs=[
            pl.BlockSpec((1, thu, W, cinp), lambda n, i, kh: (n, i, 0, 0)),
            pl.BlockSpec((None, cinp, 2 * cupp), lambda n, i, kh: (kh, 0, 0)),
            pl.BlockSpec((1, 2 * cupp), lambda n, i, kh: (0, 0)),
        ],
        out_specs=pl.BlockSpec((1, thu, 1, W, 2 * cupp),
                               lambda n, i, kh: (n, i, kh, 0, 0)),
        out_shape=jax.ShapeDtypeStruct((N, H, 2, W, 2 * cupp), jnp.float32),
        compiler_params=_parallel(3),
        cost_estimate=_cost(2 * N * H * W * cinp * 4 * cupp,
                            4 * (N * H * W * cinp + 4 * cinp * cupp + N * Ho * Wo * cupp)),
    )(x_up, wt, bt)
    # (N, H, kh, W, (kw, cout)) -> (N, 2H, 2W, cout): pure row-major merge (free).
    u = u5.reshape(N, Ho, Wo, cupp)

    # ---- 2. conv_block_1: 3x3 conv over cat([u, down_x]) + BN statistics ----
    d = _pad_last(down_x, cdnp)
    w1 = jnp.transpose(params['c1_w'], (2, 3, 1, 0))              # (3, 3, Cin, Cout)
    w1u = jnp.pad(w1[:, :, :cup, :], ((0, 0), (0, 0), (0, cupp - cup), (0, coutp - cout)))
    w1d = jnp.pad(w1[:, :, cup:, :], ((0, 0), (0, 0), (0, cdnp - cdn), (0, coutp - cout)))
    b1 = jnp.pad(params['c1_b'], (0, coutp - cout)).reshape(1, coutp)

    if conv_row_tile is None:
        cin1 = cupp + cdnp
        per1 = 4 * ((Wo + 2) * cin1 * 2 + Wo * coutp * 3)          # in (x2 buf) + out + acc
        fix1 = 4 * (2 * (Wo + 2) * cin1 * 2 + 9 * cin1 * coutp * 2)
        per2 = 4 * ((Wo + 2) * coutp * 2 + Wo * coutp * 3)
        fix2 = 4 * (2 * (Wo + 2) * coutp * 2 + 9 * coutp * coutp * 2)
        thc = min(_auto_tile(Ho, per1, fix1), _auto_tile(Ho, per2, fix2))
    else:
        thc = _pick_tile(Ho, conv_row_tile)
    ntc = Ho // thc
    ut = _halo_row_tiles(u, thc)              # (N, ntc, thc+2, Wo+2, cupp)
    dt = _halo_row_tiles(d, thc)              # (N, ntc, thc+2, Wo+2, cdnp)

    conv1_flops = 2 * N * Ho * Wo * 9 * (cupp + cdnp) * coutp
    conv1_bytes = 4 * (ut.size + dt.size + w1u.size + w1d.size + N * Ho * Wo * coutp)
    y1, stats1 = pl.pallas_call(
        conv1_kernel,
        grid=(N, ntc),
        in_specs=[
            pl.BlockSpec((None, None, thc + 2, Wo + 2, cupp), lambda n, i: (n, i, 0, 0, 0)),
            pl.BlockSpec((None, None, thc + 2, Wo + 2, cdnp), lambda n, i: (n, i, 0, 0, 0)),
            pl.BlockSpec((3, 3, cupp, coutp), lambda n, i: (0, 0, 0, 0)),
            pl.BlockSpec((3, 3, cdnp, coutp), lambda n, i: (0, 0, 0, 0)),
            pl.BlockSpec((1, coutp), lambda n, i: (0, 0)),
        ],
        out_specs=[
            pl.BlockSpec((None, thc, Wo, coutp), lambda n, i: (n, i, 0, 0)),
            pl.BlockSpec((None, None, 2, coutp), lambda n, i: (n, i, 0, 0)),
        ],
        out_shape=[
            jax.ShapeDtypeStruct((N, Ho, Wo, coutp), jnp.float32),
            jax.ShapeDtypeStruct((N, ntc, 2, coutp), jnp.float32),
        ],
        compiler_params=_parallel(2),
        cost_estimate=_cost(conv1_flops, conv1_bytes),
    )(ut, dt, w1u, w1d, b1)

    g1 = jnp.pad(params['c1_g'], (0, coutp - cout))
    be1 = jnp.pad(params['c1_beta'], (0, coutp - cout))
    scale1, shift1 = _bn_affine(stats1, N * Ho * Wo, g1, be1)

    # ---- 3. conv_block_2: BN1+ReLU folded into the input path, 3x3 conv -----
    w2 = jnp.transpose(params['c2_w'], (2, 3, 1, 0))
    w2 = jnp.pad(w2, ((0, 0), (0, 0), (0, coutp - cout), (0, coutp - cout)))
    b2 = jnp.pad(params['c2_b'], (0, coutp - cout)).reshape(1, coutp)
    y1t = _halo_row_tiles(y1, thc)

    conv2_flops = 2 * N * Ho * Wo * 9 * coutp * coutp
    conv2_bytes = 4 * (y1t.size + w2.size + N * Ho * Wo * coutp)
    y2, stats2 = pl.pallas_call(
        functools.partial(conv2_kernel, ho=Ho),
        grid=(N, ntc),
        in_specs=[
            pl.BlockSpec((None, None, thc + 2, Wo + 2, coutp), lambda n, i: (n, i, 0, 0, 0)),
            pl.BlockSpec((3, 3, coutp, coutp), lambda n, i: (0, 0, 0, 0)),
            pl.BlockSpec((1, coutp), lambda n, i: (0, 0)),
            pl.BlockSpec((1, coutp), lambda n, i: (0, 0)),
            pl.BlockSpec((1, coutp), lambda n, i: (0, 0)),
        ],
        out_specs=[
            pl.BlockSpec((None, thc, Wo, coutp), lambda n, i: (n, i, 0, 0)),
            pl.BlockSpec((None, None, 2, coutp), lambda n, i: (n, i, 0, 0)),
        ],
        out_shape=[
            jax.ShapeDtypeStruct((N, Ho, Wo, coutp), jnp.float32),
            jax.ShapeDtypeStruct((N, ntc, 2, coutp), jnp.float32),
        ],
        compiler_params=_parallel(2),
        cost_estimate=_cost(conv2_flops, conv2_bytes),
    )(y1t, w2, b2, scale1, shift1)

    g2 = jnp.pad(params['c2_g'], (0, coutp - cout))
    be2 = jnp.pad(params['c2_beta'], (0, coutp - cout))
    scale2, shift2 = _bn_affine(stats2, N * Ho * Wo, g2, be2)

    # ---- 4. final BN2 + ReLU (element-wise, lane-dense, tiled) ---------------
    out_nhwc = pl.pallas_call(
        bn_relu_kernel,
        grid=(N, ntc),
        in_specs=[
            pl.BlockSpec((None, thc, Wo, coutp), lambda n, i: (n, i, 0, 0)),
            pl.BlockSpec((1, coutp), lambda n, i: (0, 0)),
            pl.BlockSpec((1, coutp), lambda n, i: (0, 0)),
        ],
        out_specs=pl.BlockSpec((None, thc, Wo, coutp), lambda n, i: (n, i, 0, 0)),
        out_shape=jax.ShapeDtypeStruct((N, Ho, Wo, coutp), jnp.float32),
        compiler_params=_parallel(2),
    )(y2, scale2, shift2)

    return jnp.transpose(out_nhwc[..., :cout], (0, 3, 1, 2))      # NHWC -> NCHW


# ----------------------------------------------------------------------------
# Pure-JAX reference (correctness check)
# ----------------------------------------------------------------------------
def reference(up_x_nchw, down_x_nchw, params):
    up_x = jnp.transpose(up_x_nchw, (0, 2, 3, 1))
    down_x = jnp.transpose(down_x_nchw, (0, 2, 3, 1))

    wt = params['upsample_w']  # [Cin, Cout, 2, 2]
    t = jnp.einsum('nijc,codk->nijdko', up_x, wt)
    N, H, W, _, _, Cout = t.shape
    y = jnp.transpose(t, (0, 1, 3, 2, 4, 5)).reshape(N, 2 * H, 2 * W, Cout)
    y = y + params['upsample_b']

    x = jnp.concatenate([y, down_x], axis=-1)

    def ref_block(x, w, b, g, beta):
        w_hwio = jnp.transpose(w, (2, 3, 1, 0))
        y = jax.lax.conv_general_dilated(
            x, w_hwio, (1, 1), 'SAME',
            dimension_numbers=('NHWC', 'HWIO', 'NHWC')) + b
        m = jnp.mean(y, axis=(0, 1, 2), keepdims=True)
        v = jnp.mean((y - m) ** 2, axis=(0, 1, 2), keepdims=True)
        y = (y - m) * jax.lax.rsqrt(v + EPS) * g + beta
        return jnp.maximum(y, 0.0)

    x = ref_block(x, params['c1_w'], params['c1_b'], params['c1_g'], params['c1_beta'])
    x = ref_block(x, params['c2_w'], params['c2_b'], params['c2_g'], params['c2_beta'])
    return jnp.transpose(x, (0, 3, 1, 2))


if __name__ == "__main__":
    key = jax.random.PRNGKey(0)
    B = 2
    in_ch, out_ch = 8, 4              # UpBlockForUNetWithResNet50(in_channels=8, out_channels=4)
    down_ch = in_ch - out_ch          # so that cat(out_ch + down_ch) == in_ch of conv_block_1
    H = W = 8                         # up_x spatial; output is 2H x 2W

    keys = jax.random.split(key, 12)
    params = {
        # nn.ConvTranspose2d(in_ch, out_ch, kernel_size=2, stride=2): weight [Cin, Cout, 2, 2]
        'upsample_w': 0.1 * jax.random.normal(keys[0], (in_ch, out_ch, 2, 2), jnp.float32),
        'upsample_b': 0.1 * jax.random.normal(keys[1], (out_ch,), jnp.float32),
        # ConvBlock 1: Conv2d(in_ch, out_ch, 3, padding=1) + BN(out_ch)
        'c1_w': 0.1 * jax.random.normal(keys[2], (out_ch, in_ch, 3, 3), jnp.float32),
        'c1_b': 0.1 * jax.random.normal(keys[3], (out_ch,), jnp.float32),
        'c1_g': 1.0 + 0.1 * jax.random.normal(keys[4], (out_ch,), jnp.float32),
        'c1_beta': 0.1 * jax.random.normal(keys[5], (out_ch,), jnp.float32),
        # ConvBlock 2: Conv2d(out_ch, out_ch, 3, padding=1) + BN(out_ch)
        'c2_w': 0.1 * jax.random.normal(keys[6], (out_ch, out_ch, 3, 3), jnp.float32),
        'c2_b': 0.1 * jax.random.normal(keys[7], (out_ch,), jnp.float32),
        'c2_g': 1.0 + 0.1 * jax.random.normal(keys[8], (out_ch,), jnp.float32),
        'c2_beta': 0.1 * jax.random.normal(keys[9], (out_ch,), jnp.float32),
    }

    up_x = jax.random.normal(keys[10], (B, in_ch, H, W), jnp.float32)
    down_x = jax.random.normal(keys[11], (B, down_ch, 2 * H, 2 * W), jnp.float32)

    fwd = jax.jit(up_block_forward)
    out = jax.block_until_ready(fwd(up_x, down_x, params))
    ref = reference(up_x, down_x, params)

    assert out.shape == (B, out_ch, 2 * H, 2 * W), out.shape
    assert jnp.allclose(out, ref, atol=2e-3, rtol=2e-3), float(jnp.max(jnp.abs(out - ref)))
    print("KERNEL_OK")
</pallas_src>

<mosaic_0001>
module attributes {stable_mosaic.version = 11 : i64} {
  func.func @upsample_kernel(%arg0: i32, %arg1: i32, %arg2: i32, %arg3: memref<1x8x8x128xf32, #tpu.memory_space<vmem>>, %arg4: memref<1x128x256xf32, #tpu.memory_space<vmem>>, %arg5: memref<1x256xf32, #tpu.memory_space<vmem>>, %arg6: memref<1x8x1x8x256xf32, #tpu.memory_space<vmem>>) attributes {dimension_semantics = [#tpu.dimension_semantics<parallel>, #tpu.dimension_semantics<parallel>, #tpu.dimension_semantics<parallel>], iteration_bounds = array<i64: 2, 1, 2>, scalar_prefetch = 0 : i64, scratch_operands = 0 : i64, tpu.core_type = #tpu.core_type<tc>, window_params = [{transform_indices = @transform_0, window_bounds = array<i64: 1, 8, 8, 128>}, {transform_indices = @transform_1, window_bounds = array<i64: 1, 128, 256>}, {pipeline_mode = #tpu.pipeline_mode<synchronous>, transform_indices = @transform_2, window_bounds = array<i64: 1, 256>}, {transform_indices = @transform_3, window_bounds = array<i64: 1, 8, 1, 8, 256>}]} {
    %c0 = arith.constant 0 : index
    %c0_0 = arith.constant 0 : index
    %c0_1 = arith.constant 0 : index
    %c0_2 = arith.constant 0 : index
    %0 = vector.load %arg3[%c0, %c0_0, %c0_1, %c0_2] : memref<1x8x8x128xf32, #tpu.memory_space<vmem>>, vector<1x8x8x128xf32>
    %1 = vector.shape_cast %0 : vector<1x8x8x128xf32> to vector<64x128xf32>
    %c0_3 = arith.constant 0 : index
    %c0_4 = arith.constant 0 : index
    %c0_5 = arith.constant 0 : index
    %2 = vector.load %arg4[%c0_3, %c0_4, %c0_5] : memref<1x128x256xf32, #tpu.memory_space<vmem>>, vector<1x128x256xf32>
    %3 = vector.shape_cast %2 : vector<1x128x256xf32> to vector<128x256xf32>
    %cst = arith.constant dense<0.000000e+00> : vector<64x256xf32>
    %4 = tpu.matmul %1, %3, %cst {dimension_numbers = #tpu.dot_dimension_numbers<[1], [0], [0], [1], [0, 0, 1, 1], [], []>} : vector<64x128xf32>, vector<128x256xf32>, vector<64x256xf32> -> vector<64x256xf32>
    %c0_6 = arith.constant 0 : index
    %c0_7 = arith.constant 0 : index
    %5 = vector.load %arg5[%c0_6, %c0_7] : memref<1x256xf32, #tpu.memory_space<vmem>>, vector<1x256xf32>
    %6 = vector.broadcast %5 : vector<1x256xf32> to vector<64x256xf32>
    %7 = arith.addf %4, %6 : vector<64x256xf32>
    %8 = vector.shape_cast %7 : vector<64x256xf32> to vector<1x8x1x8x256xf32>
    %c0_8 = arith.constant 0 : index
    %c0_9 = arith.constant 0 : index
    %c0_10 = arith.constant 0 : index
    %c0_11 = arith.constant 0 : index
    %c0_12 = arith.constant 0 : index
    %9 = vector.load %arg6[%c0_8, %c0_9, %c0_10, %c0_11, %c0_12] : memref<1x8x1x8x256xf32, #tpu.memory_space<vmem>>, vector<1x8x1x8x256xf32>
    tpu.vector_store %arg6[%c0_8, %c0_9, %c0_10, %c0_11, %c0_12], %8 {strides = array<i32>} : memref<1x8x1x8x256xf32, #tpu.memory_space<vmem>>, vector<1x8x1x8x256xf32>,
    return
  }
  func.func @transform_0(%arg0: i32, %arg1: i32, %arg2: i32) -> (i32, i32, i32, i32) {
    %c0_i32 = arith.constant 0 : i32
    %c0_i32_0 = arith.constant 0 : i32
    %c0_i32_1 = arith.constant 0 : i32
    return %arg0, %arg1, %c0_i32, %c0_i32_0 : i32, i32, i32, i32
  }
  func.func @transform_1(%arg0: i32, %arg1: i32, %arg2: i32) -> (i32, i32, i32) {
    %c0_i32 = arith.constant 0 : i32
    %c0_i32_0 = arith.constant 0 : i32
    %c0_i32_1 = arith.constant 0 : i32
    return %arg2, %c0_i32, %c0_i32_0 : i32, i32, i32
  }
  func.func @transform_2(%arg0: i32, %arg1: i32, %arg2: i32) -> (i32, i32) {
    %c0_i32 = arith.constant 0 : i32
    %c0_i32_0 = arith.constant 0 : i32
    %c0_i32_1 = arith.constant 0 : i32
    return %c0_i32, %c0_i32_0 : i32, i32
  }
  func.func @transform_3(%arg0: i32, %arg1: i32, %arg2: i32) -> (i32, i32, i32, i32, i32) {
    %c0_i32 = arith.constant 0 : i32
    %c0_i32_0 = arith.constant 0 : i32
    %c0_i32_1 = arith.constant 0 : i32
    return %arg0, %arg1, %arg2, %c0_i32, %c0_i32_0 : i32, i32, i32, i32, i32
  }
}

module attributes {stable_mosaic.version = 11 : i64} {
  func.func @conv1_kernel(%arg0: i32, %arg1: i32, %arg2: memref<1x1x18x18x128xf32, #tpu.memory_space<vmem>>, %arg3: memref<1x1x18x18x128xf32, #tpu.memory_space<vmem>>, %arg4: memref<3x3x128x128xf32, #tpu.memory_space<vmem>>, %arg5: memref<3x3x128x128xf32, #tpu.memory_space<vmem>>, %arg6: memref<1x128xf32, #tpu.memory_space<vmem>>, %arg7: memref<1x16x16x128xf32, #tpu.memory_space<vmem>>, %arg8: memref<1x1x2x128xf32, #tpu.memory_space<vmem>>) attributes {dimension_semantics = [#tpu.dimension_semantics<parallel>, #tpu.dimension_semantics<parallel>], iteration_bounds = array<i64: 2, 1>, scalar_prefetch = 0 : i64, scratch_operands = 0 : i64, tpu.core_type = #tpu.core_type<tc>, window_params = [{transform_indices = @transform_0, window_bounds = array<i64: 1, 1, 18, 18, 128>}, {transform_indices = @transform_1, window_bounds = array<i64: 1, 1, 18, 18, 128>}, {pipeline_mode = #tpu.pipeline_mode<synchronous>, transform_indices = @transform_2, window_bounds = array<i64: 3, 3, 128, 128>}, {pipeline_mode = #tpu.pipeline_mode<synchronous>, transform_indices = @transform_3, window_bounds = array<i64: 3, 3, 128, 128>}, {pipeline_mode = #tpu.pipeline_mode<synchronous>, transform_indices = @transform_4, window_bounds = array<i64: 1, 128>}, {transform_indices = @transform_5, window_bounds = array<i64: 1, 16, 16, 128>}, {transform_indices = @transform_6, window_bounds = array<i64: 1, 1, 2, 128>}]} {
    %c0 = arith.constant 0 : index
    %c0_0 = arith.constant 0 : index
    %c0_1 = arith.constant 0 : index
    %c0_2 = arith.constant 0 : index
    %c0_3 = arith.constant 0 : index
    %0 = vector.load %arg2[%c0, %c0_0, %c0_1, %c0_2, %c0_3] : memref<1x1x18x18x128xf32, #tpu.memory_space<vmem>>, vector<1x1x18x18x128xf32>
    %1 = vector.shape_cast %0 : vector<1x1x18x18x128xf32> to vector<18x18x128xf32>
    %cst = arith.constant 0.000000e+00 : f32
    %2 = vector.broadcast %cst : f32 to vector<256x128xf32>
    %3 = vector.extract_strided_slice %1 {offsets = [0, 0, 0], sizes = [16, 16, 128], strides = [1, 1, 1]} : vector<18x18x128xf32> to vector<16x16x128xf32>
    %4 = vector.shape_cast %3 : vector<16x16x128xf32> to vector<256x128xf32>
    %c0_4 = arith.constant 0 : index
    %c0_5 = arith.constant 0 : index
    %c0_6 = arith.constant 0 : index
    %c0_7 = arith.constant 0 : index
    %5 = vector.load %arg4[%c0_4, %c0_5, %c0_6, %c0_7] : memref<3x3x128x128xf32, #tpu.memory_space<vmem>>, vector<1x1x128x128xf32>
    %6 = vector.shape_cast %5 : vector<1x1x128x128xf32> to vector<128x128xf32>
    %cst_8 = arith.constant dense<0.000000e+00> : vector<256x128xf32>
    %7 = tpu.matmul %4, %6, %cst_8 {dimension_numbers = #tpu.dot_dimension_numbers<[1], [0], [0], [1], [0, 0, 1, 1], [], []>} : vector<256x128xf32>, vector<128x128xf32>, vector<256x128xf32> -> vector<256x128xf32>
    %8 = arith.addf %2, %7 : vector<256x128xf32>
    %9 = vector.extract_strided_slice %1 {offsets = [0, 1, 0], sizes = [16, 16, 128], strides = [1, 1, 1]} : vector<18x18x128xf32> to vector<16x16x128xf32>
    %10 = vector.shape_cast %9 : vector<16x16x128xf32> to vector<256x128xf32>
    %c0_9 = arith.constant 0 : index
    %c1 = arith.constant 1 : index
    %c0_10 = arith.constant 0 : index
    %c0_11 = arith.constant 0 : index
    %11 = vector.load %arg4[%c0_9, %c1, %c0_10, %c0_11] : memref<3x3x128x128xf32, #tpu.memory_space<vmem>>, vector<1x1x128x128xf32>
    %12 = vector.shape_cast %11 : vector<1x1x128x128xf32> to vector<128x128xf32>
    %cst_12 = arith.constant dense<0.000000e+00> : vector<256x128xf32>
    %13 = tpu.matmul %10, %12, %cst_12 {dimension_numbers = #tpu.dot_dimension_numbers<[1], [0], [0], [1], [0, 0, 1, 1], [], []>} : vector<256x128xf32>, vector<128x128xf32>, vector<256x128xf32> -> vector<256x128xf32>
    %14 = arith.addf %8, %13 : vector<256x128xf32>
    %15 = vector.extract_strided_slice %1 {offsets = [0, 2, 0], sizes = [16, 16, 128], strides = [1, 1, 1]} : vector<18x18x128xf32> to vector<16x16x128xf32>
    %16 = vector.shape_cast %15 : vector<16x16x128xf32> to vector<256x128xf32>
    %c0_13 = arith.constant 0 : index
    %c2 = arith.constant 2 : index
    %c0_14 = arith.constant 0 : index
    %c0_15 = arith.constant 0 : index
    %17 = vector.load %arg4[%c0_13, %c2, %c0_14, %c0_15] : memref<3x3x128x128xf32, #tpu.memory_space<vmem>>, vector<1x1x128x128xf32>
    %18 = vector.shape_cast %17 : vector<1x1x128x128xf32> to vector<128x128xf32>
    %cst_16 = arith.constant dense<0.000000e+00> : vector<256x128xf32>
    %19 = tpu.matmul %16, %18, %cst_16 {dimension_numbers = #tpu.dot_dimension_numbers<[1], [0], [0], [1], [0, 0, 1, 1], [], []>} : vector<256x128xf32>, vector<128x128xf32>, vector<256x128xf32> -> vector<256x128xf32>
    %20 = arith.addf %14, %19 : vector<256x128xf32>
    %21 = vector.extract_strided_slice %1 {offsets = [1, 0, 0], sizes = [16, 16, 128], strides = [1, 1, 1]} : vector<18x18x128xf32> to vector<16x16x128xf32>
    %22 = vector.shape_cast %21 : vector<16x16x128xf32> to vector<256x128xf32>
    %c1_17 = arith.constant 1 : index
    %c0_18 = arith.constant 0 : index
    %c0_19 = arith.constant 0 : index
    %c0_20 = arith.constant 0 : index
    %23 = vector.load %arg4[%c1_17, %c0_18, %c0_19, %c0_20] : memref<3x3x128x128xf32, #tpu.memory_space<vmem>>, vector<1x1x128x128xf32>
    %24 = vector.shape_cast %23 : vector<1x1x128x128xf32> to vector<128x128xf32>
    %cst_21 = arith.constant dense<0.000000e+00> : vector<256x128xf32>
    %25 = tpu.matmul %22, %24, %cst_21 {dimension_numbers = #tpu.dot_dimension_numbers<[1], [0], [0], [1], [0, 0, 1, 1], [], []>} : vector<256x128xf32>, vector<128x128xf32>, vector<256x128xf32> -> vector<256x128xf32>
    %26 = arith.addf %20, %25 : vector<256x128xf32>
    %27 = vector.extract_strided_slice %1 {offsets = [1, 1, 0], sizes = [16, 16, 128], strides = [1, 1, 1]} : vector<18x18x128xf32> to vector<16x16x128xf32>
    %28 = vector.shape_cast %27 : vector<16x16x128xf32> to vector<256x128xf32>
    %c1_22 = arith.constant 1 : index
    %c1_23 = arith.constant 1 : index
    %c0_24 = arith.constant 0 : index
    %c0_25 = arith.constant 0 : index
    %29 = vector.load %arg4[%c1_22, %c1_23, %c0_24, %c0_25] : memref<3x3x128x128xf32, #tpu.memory_space<vmem>>, vector<1x1x128x128xf32>
    %30 = vector.shape_cast %29 : vector<1x1x128x128xf32> to vector<128x128xf32>
    %cst_26 = arith.constant dense<0.000000e+00> : vector<256x128xf32>
    %31 = tpu.matmul %28, %30, %cst_26 {dimension_numbers = #tpu.dot_dimension_numbers<[1], [0], [0], [1], [0, 0, 1, 1], [], []>} : vector<256x128xf32>, vector<128x128xf32>, vector<256x128xf32> -> vector<256x128xf32>
    %32 = arith.addf %26, %31 : vector<256x128xf32>
    %33 = vector.extract_strided_slice %1 {offsets = [1, 2, 0], sizes = [16, 16, 128], strides = [1, 1, 1]} : vector<18x18x128xf32> to vector<16x16x128xf32>
    %34 = vector.shape_cast %33 : vector<16x16x128xf32> to vector<256x128xf32>
    %c1_27 = arith.constant 1 : index
    %c2_28 = arith.constant 2 : index
    %c0_29 = arith.constant 0 : index
    %c0_30 = arith.constant 0 : index
    %35 = vector.load %arg4[%c1_27, %c2_28, %c0_29, %c0_30] : memref<3x3x128x128xf32, #tpu.memory_space<vmem>>, vector<1x1x128x128xf32>
    %36 = vector.shape_cast %35 : vector<1x1x128x128xf32> to vector<128x128xf32>
    %cst_31 = arith.constant dense<0.000000e+00> : vector<256x128xf32>
    %37 = tpu.matmul %34, %36, %cst_31 {dimension_numbers = #tpu.dot_dimension_numbers<[1], [0], [0], [1], [0, 0, 1, 1], [], []>} : vector<256x128xf32>, vector<128x128xf32>, vector<256x128xf32> -> vector<256x128xf32>
    %38 = arith.addf %32, %37 : vector<256x128xf32>
    %39 = vector.extract_strided_slice %1 {offsets = [2, 0, 0], sizes = [16, 16, 128], strides = [1, 1, 1]} : vector<18x18x128xf32> to vector<16x16x128xf32>
    %40 = vector.shape_cast %39 : vector<16x16x128xf32> to vector<256x128xf32>
    %c2_32 = arith.constant 2 : index
    %c0_33 = arith.constant 0 : index
    %c0_34 = arith.constant 0 : index
    %c0_35 = arith.constant 0 : index
    %41 = vector.load %arg4[%c2_32, %c0_33, %c0_34, %c0_35] : memref<3x3x128x128xf32, #tpu.memory_space<vmem>>, vector<1x1x128x128xf32>
    %42 = vector.shape_cast %41 : vector<1x1x128x128xf32> to vector<128x128xf32>
    %cst_36 = arith.constant dense<0.000000e+00> : vector<256x128xf32>
    %43 = tpu.matmul %40, %42, %cst_36 {dimension_numbers = #tpu.dot_dimension_numbers<[1], [0], [0], [1], [0, 0, 1, 1], [], []>} : vector<256x128xf32>, vector<128x128xf32>, vector<256x128xf32> -> vector<256x128xf32>
    %44 = arith.addf %38, %43 : vector<256x128xf32>
    %45 = vector.extract_strided_slice %1 {offsets = [2, 1, 0], sizes = [16, 16, 128], strides = [1, 1, 1]} : vector<18x18x128xf32> to vector<16x16x128xf32>
    %46 = vector.shape_cast %45 : vector<16x16x128xf32> to vector<256x128xf32>
    %c2_37 = arith.constant 2 : index
    %c1_38 = arith.constant 1 : index
    %c0_39 = arith.constant 0 : index
    %c0_40 = arith.constant 0 : index
    %47 = vector.load %arg4[%c2_37, %c1_38, %c0_39, %c0_40] : memref<3x3x128x128xf32, #tpu.memory_space<vmem>>, vector<1x1x128x128xf32>
    %48 = vector.shape_cast %47 : vector<1x1x128x128xf32> to vector<128x128xf32>
    %cst_41 = arith.constant dense<0.000000e+00> : vector<256x128xf32>
    %49 = tpu.matmul %46, %48, %cst_41 {dimension_numbers = #tpu.dot_dimension_numbers<[1], [0], [0], [1], [0, 0, 1, 1], [], []>} : vector<256x128xf32>, vector<128x128xf32>, vector<256x128xf32> -> vector<256x128xf32>
    %50 = arith.addf %44, %49 : vector<256x128xf32>
    %51 = vector.extract_strided_slice %1 {offsets = [2, 2, 0], sizes = [16, 16, 128], strides = [1, 1, 1]} : vector<18x18x128xf32> to vector<16x16x128xf32>
    %52 = vector.shape_cast %51 : vector<16x16x128xf32> to vector<256x128xf32>
    %c2_42 = arith.constant 2 : index
    %c2_43 = arith.constant 2 : index
    %c0_44 = arith.constant 0 : index
    %c0_45 = arith.constant 0 : index
    %53 = vector.load %arg4[%c2_42, %c2_43, %c0_44, %c0_45] : memref<3x3x128x128xf32, #tpu.memory_space<vmem>>, vector<1x1x128x128xf32>
    %54 = vector.shape_cast %53 : vector<1x1x128x128xf32> to vector<128x128xf32>
    %cst_46 = arith.constant dense<0.000000e+00> : vector<256x128xf32>
    %55 = tpu.matmul %52, %54, %cst_46 {dimension_numbers = #tpu.dot_dimension_numbers<[1], [0], [0], [1], [0, 0, 1, 1], [], []>} : vector<256x128xf32>, vector<128x128xf32>, vector<256x128xf32> -> vector<256x128xf32>
    %56 = arith.addf %50, %55 : vector<256x128xf32>
    %c0_47 = arith.constant 0 : index
    %c0_48 = arith.constant 0 : index
    %c0_49 = arith.constant 0 : index
    %c0_50 = arith.constant 0 : index
    %c0_51 = arith.constant 0 : index
    %57 = vector.load %arg3[%c0_47, %c0_48, %c0_49, %c0_50, %c0_51] : memref<1x1x18x18x128xf32, #tpu.memory_space<vmem>>, vector<1x1x18x18x128xf32>
    %58 = vector.shape_cast %57 : vector<1x1x18x18x128xf32> to vector<18x18x128xf32>
    %cst_52 = arith.constant 0.000000e+00 : f32
    %59 = vector.broadcast %cst_52 : f32 to vector<256x128xf32>
    %60 = vector.extract_strided_slice %58 {offsets = [0, 0, 0], sizes = [16, 16, 128], strides = [1, 1, 1]} : vector<18x18x128xf32> to vector<16x16x128xf32>
    %61 = vector.shape_cast %60 : vector<16x16x128xf32> to vector<256x128xf32>
    %c0_53 = arith.constant 0 : index
    %c0_54 = arith.constant 0 : index
    %c0_55 = arith.constant 0 : index
    %c0_56 = arith.constant 0 : index
    %62 = vector.load %arg5[%c0_53, %c0_54, %c0_55, %c0_56] : memref<3x3x128x128xf32, #tpu.memory_space<vmem>>, vector<1x1x128x128xf32>
    %63 = vector.shape_cast %62 : vector<1x1x128x128xf32> to vector<128x128xf32>
    %cst_57 = arith.constant dense<0.000000e+00> : vector<256x128xf32>
    %64 = tpu.matmul %61, %63, %cst_57 {dimension_numbers = #tpu.dot_dimension_numbers<[1], [0], [0], [1], [0, 0, 1, 1], [], []>} : vector<256x128xf32>, vector<128x128xf32>, vector<256x128xf32> -> vector<256x128xf32>
    %65 = arith.addf %59, %64 : vector<256x128xf32>
    %66 = vector.extract_strided_slice %58 {offsets = [0, 1, 0], sizes = [16, 16, 128], strides = [1, 1, 1]} : vector<18x18x128xf32> to vector<16x16x128xf32>
    %67 = vector.shape_cast %66 : vector<16x16x128xf32> to vector<256x128xf32>
    %c0_58 = arith.constant 0 : index
    %c1_59 = arith.constant 1 : index
    %c0_60 = arith.constant 0 : index
    %c0_61 = arith.constant 0 : index
    %68 = vector.load %arg5[%c0_58, %c1_59, %c0_60, %c0_61] : memref<3x3x128x128xf32, #tpu.memory_space<vmem>>, vector<1x1x128x128xf32>
    %69 = vector.shape_cast %68 : vector<1x1x128x128xf32> to vector<128x128xf32>
    %cst_62 = arith.constant dense<0.000000e+00> : vector<256x128xf32>
    %70 = tpu.matmul %67, %69, %cst_62 {dimension_numbers = #tpu.dot_dimension_numbers<[1], [0], [0], [1], [0, 0, 1, 1], [], []>} : vector<256x128xf32>, vector<128x128xf32>, vector<256x128xf32> -> vector<256x128xf32>
    %71 = arith.addf %65, %70 : vector<256x128xf32>
    %72 = vector.extract_strided_slice %58 {offsets = [0, 2, 0], sizes = [16, 16, 128], strides = [1, 1, 1]} : vector<18x18x128xf32> to vector<16x16x128xf32>
    %73 = vector.shape_cast %72 : vector<16x16x128xf32> to vector<256x128xf32>
    %c0_63 = arith.constant 0 : index
    %c2_64 = arith.constant 2 : index
    %c0_65 = arith.constant 0 : index
    %c0_66 = arith.constant 0 : index
    %74 = vector.load %arg5[%c0_63, %c2_64, %c0_65, %c0_66] : memref<3x3x128x128xf32, #tpu.memory_space<vmem>>, vector<1x1x128x128xf32>
    %75 = vector.shape_cast %74 : vector<1x1x128x128xf32> to vector<128x128xf32>
    %cst_67 = arith.constant dense<0.000000e+00> : vector<256x128xf32>
    %76 = tpu.matmul %73, %75, %cst_67 {dimension_numbers = #tpu.dot_dimension_numbers<[1], [0], [0], [1], [0, 0, 1, 1], [], []>} : vector<256x128xf32>, vector<128x128xf32>, vector<256x128xf32> -> vector<256x128xf32>
    %77 = arith.addf %71, %76 : vector<256x128xf32>
    %78 = vector.extract_strided_slice %58 {offsets = [1, 0, 0], sizes = [16, 16, 128], strides = [1, 1, 1]} : vector<18x18x128xf32> to vector<16x16x128xf32>
    %79 = vector.shape_cast %78 : vector<16x16x128xf32> to vector<256x128xf32>
    %c1_68 = arith.constant 1 : index
    %c0_69 = arith.constant 0 : index
    %c0_70 = arith.constant 0 : index
    %c0_71 = arith.constant 0 : index
    %80 = vector.load %arg5[%c1_68, %c0_69, %c0_70, %c0_71] : memref<3x3x128x128xf32, #tpu.memory_space<vmem>>, vector<1x1x128x128xf32>
    %81 = vector.shape_cast %80 : vector<1x1x128x128xf32> to vector<128x128xf32>
    %cst_72 = arith.constant dense<0.000000e+00> : vector<256x128xf32>
    %82 = tpu.matmul %79, %81, %cst_72 {dimension_numbers = #tpu.dot_dimension_numbers<[1], [0], [0], [1], [0, 0, 1, 1], [], []>} : vector<256x128xf32>, vector<128x128xf32>, vector<256x128xf32> -> vector<256x128xf32>
    %83 = arith.addf %77, %82 : vector<256x128xf32>
    %84 = vector.extract_strided_slice %58 {offsets = [1, 1, 0], sizes = [16, 16, 128], strides = [1, 1, 1]} : vector<18x18x128xf32> to vector<16x16x128xf32>
    %85 = vector.shape_cast %84 : vector<16x16x128xf32> to vector<256x128xf32>
    %c1_73 = arith.constant 1 : index
    %c1_74 = arith.constant 1 : index
    %c0_75 = arith.constant 0 : index
    %c0_76 = arith.constant 0 : index
    %86 = vector.load %arg5[%c1_73, %c1_74, %c0_75, %c0_76] : memref<3x3x128x128xf32, #tpu.memory_space<vmem>>, vector<1x1x128x128xf32>
    %87 = vector.shape_cast %86 : vector<1x1x128x128xf32> to vector<128x128xf32>
    %cst_77 = arith.constant dense<0.000000e+00> : vector<256x128xf32>
    %88 = tpu.matmul %85, %87, %cst_77 {dimension_numbers = #tpu.dot_dimension_numbers<[1], [0], [0], [1], [0, 0, 1, 1], [], []>} : vector<256x128xf32>, vector<128x128xf32>, vector<256x128xf32> -> vector<256x128xf32>
    %89 = arith.addf %83, %88 : vector<256x128xf32>
    %90 = vector.extract_strided_slice %58 {offsets = [1, 2, 0], sizes = [16, 16, 128], strides = [1, 1, 1]} : vector<18x18x128xf32> to vector<16x16x128xf32>
    %91 = vector.shape_cast %90 : vector<16x16x128xf32> to vector<256x128xf32>
    %c1_78 = arith.constant 1 : index
    %c2_79 = arith.constant 2 : index
    %c0_80 = arith.constant 0 : index
    %c0_81 = arith.constant 0 : index
    %92 = vector.load %arg5[%c1_78, %c2_79, %c0_80, %c0_81] : memref<3x3x128x128xf32, #tpu.memory_space<vmem>>, vector<1x1x128x128xf32>
    %93 = vector.shape_cast %92 : vector<1x1x128x128xf32> to vector<128x128xf32>
    %cst_82 = arith.constant dense<0.000000e+00> : vector<256x128xf32>
    %94 = tpu.matmul %91, %93, %cst_82 {dimension_numbers = #tpu.dot_dimension_numbers<[1], [0], [0], [1], [0, 0, 1, 1], [], []>} : vector<256x128xf32>, vector<128x128xf32>, vector<256x128xf32> -> vector<256x128xf32>
    %95 = arith.addf %89, %94 : vector<256x128xf32>
    %96 = vector.extract_strided_slice %58 {offsets = [2, 0, 0], sizes = [16, 16, 128], strides = [1, 1, 1]} : vector<18x18x128xf32> to vector<16x16x128xf32>
    %97 = vector.shape_cast %96 : vector<16x16x128xf32> to vector<256x128xf32>
    %c2_83 = arith.constant 2 : index
    %c0_84 = arith.constant 0 : index
    %c0_85 = arith.constant 0 : index
    %c0_86 = arith.constant 0 : index
    %98 = vector.load %arg5[%c2_83, %c0_84, %c0_85, %c0_86] : memref<3x3x128x128xf32, #tpu.memory_space<vmem>>, vector<1x1x128x128xf32>
    %99 = vector.shape_cast %98 : vector<1x1x128x128xf32> to vector<128x128xf32>
    %cst_87 = arith.constant dense<0.000000e+00> : vector<256x128xf32>
    %100 = tpu.matmul %97, %99, %cst_87 {dimension_numbers = #tpu.dot_dimension_numbers<[1], [0], [0], [1], [0, 0, 1, 1], [], []>} : vector<256x128xf32>, vector<128x128xf32>, vector<256x128xf32> -> vector<256x128xf32>
    %101 = arith.addf %95, %100 : vector<256x128xf32>
    %102 = vector.extract_strided_slice %58 {offsets = [2, 1, 0], sizes = [16, 16, 128], strides = [1, 1, 1]} : vector<18x18x128xf32> to vector<16x16x128xf32>
    %103 = vector.shape_cast %102 : vector<16x16x128xf32> to vector<256x128xf32>
    %c2_88 = arith.constant 2 : index
    %c1_89 = arith.constant 1 : index
    %c0_90 = arith.constant 0 : index
    %c0_91 = arith.constant 0 : index
    %104 = vector.load %arg5[%c2_88, %c1_89, %c0_90, %c0_91] : memref<3x3x128x128xf32, #tpu.memory_space<vmem>>, vector<1x1x128x128xf32>
    %105 = vector.shape_cast %104 : vector<1x1x128x128xf32> to vector<128x128xf32>
    %cst_92 = arith.constant dense<0.000000e+00> : vector<256x128xf32>
    %106 = tpu.matmul %103, %105, %cst_92 {dimension_numbers = #tpu.dot_dimension_numbers<[1], [0], [0], [1], [0, 0, 1, 1], [], []>} : vector<256x128xf32>, vector<128x128xf32>, vector<256x128xf32> -> vector<256x128xf32>
    %107 = arith.addf %101, %106 : vector<256x128xf32>
    %108 = vector.extract_strided_slice %58 {offsets = [2, 2, 0], sizes = [16, 16, 128], strides = [1, 1, 1]} : vector<18x18x128xf32> to vector<16x16x128xf32>
    %109 = vector.shape_cast %108 : vector<16x16x128xf32> to vector<256x128xf32>
    %c2_93 = arith.constant 2 : index
    %c2_94 = arith.constant 2 : index
    %c0_95 = arith.constant 0 : index
    %c0_96 = arith.constant 0 : index
    %110 = vector.load %arg5[%c2_93, %c2_94, %c0_95, %c0_96] : memref<3x3x128x128xf32, #tpu.memory_space<vmem>>, vector<1x1x128x128xf32>
    %111 = vector.shape_cast %110 : vector<1x1x128x128xf32> to vector<128x128xf32>
    %cst_97 = arith.constant dense<0.000000e+00> : vector<256x128xf32>
    %112 = tpu.matmul %109, %111, %cst_97 {dimension_numbers = #tpu.dot_dimension_numbers<[1], [0], [0], [1], [0, 0, 1, 1], [], []>} : vector<256x128xf32>, vector<128x128xf32>, vector<256x128xf32> -> vector<256x128xf32>
    %113 = arith.addf %107, %112 : vector<256x128xf32>
    %114 = arith.addf %56, %113 : vector<256x128xf32>
    %c0_98 = arith.constant 0 : index
    %c0_99 = arith.constant 0 : index
    %115 = vector.load %arg6[%c0_98, %c0_99] : memref<1x128xf32, #tpu.memory_space<vmem>>, vector<1x128xf32>
    %116 = vector.broadcast %115 : vector<1x128xf32> to vector<256x128xf32>
    %117 = arith.addf %114, %116 : vector<256x128xf32>
    %118 = vector.shape_cast %117 : vector<256x128xf32> to vector<16x16x128xf32>
    %c0_100 = arith.constant 0 : index
    %c0_101 = arith.constant 0 : index
    %c0_102 = arith.constant 0 : index
    %c0_103 = arith.constant 0 : index
    %119 = vector.load %arg7[%c0_100, %c0_101, %c0_102, %c0_103] : memref<1x16x16x128xf32, #tpu.memory_space<vmem>>, vector<1x16x16x128xf32>
    %120 = vector.shape_cast %119 : vector<1x16x16x128xf32> to vector<16x16x128xf32>
    %121 = vector.shape_cast %118 : vector<16x16x128xf32> to vector<1x16x16x128xf32>
    tpu.vector_store %arg7[%c0_100, %c0_101, %c0_102, %c0_103], %121 {strides = array<i32>} : memref<1x16x16x128xf32, #tpu.memory_space<vmem>>, vector<1x16x16x128xf32>,
    %cst_104 = arith.constant dense<0.000000e+00> : vector<128xf32>
    %122 = vector.multi_reduction <add>, %117, %cst_104 [0] : vector<256x128xf32> to vector<128xf32>
    %123 = vector.shape_cast %122 : vector<128xf32> to vector<1x128xf32>
    %c0_105 = arith.constant 0 : index
    %c0_106 = arith.constant 0 : index
    %c0_107 = arith.constant 0 : index
    %c0_108 = arith.constant 0 : index
    %124 = vector.load %arg8[%c0_105, %c0_106, %c0_107, %c0_108] : memref<1x1x2x128xf32, #tpu.memory_space<vmem>>, vector<1x1x1x128xf32>
    %125 = vector.shape_cast %124 : vector<1x1x1x128xf32> to vector<1x128xf32>
    %126 = vector.shape_cast %123 : vector<1x128xf32> to vector<1x1x1x128xf32>
    tpu.vector_store %arg8[%c0_105, %c0_106, %c0_107, %c0_108], %126 {strides = array<i32>} : memref<1x1x2x128xf32, #tpu.memory_space<vmem>>, vector<1x1x1x128xf32>,
    %127 = arith.mulf %117, %117 : vector<256x128xf32>
    %cst_109 = arith.constant dense<0.000000e+00> : vector<128xf32>
    %128 = vector.multi_reduction <add>, %127, %cst_109 [0] : vector<256x128xf32> to vector<128xf32>
    %129 = vector.shape_cast %128 : vector<128xf32> to vector<1x128xf32>
    %c0_110 = arith.constant 0 : index
    %c0_111 = arith.constant 0 : index
    %c1_112 = arith.constant 1 : index
    %c0_113 = arith.constant 0 : index
    %130 = vector.load %arg8[%c0_110, %c0_111, %c1_112, %c0_113] : memref<1x1x2x128xf32, #tpu.memory_space<vmem>>, vector<1x1x1x128xf32>
    %131 = vector.shape_cast %130 : vector<1x1x1x128xf32> to vector<1x128xf32>
    %132 = vector.shape_cast %129 : vector<1x128xf32> to vector<1x1x1x128xf32>
    tpu.vector_store %arg8[%c0_110, %c0_111, %c1_112, %c0_113], %132 {strides = array<i32>} : memref<1x1x2x128xf32, #tpu.memory_space<vmem>>, vector<1x1x1x128xf32>,
    return
  }
  func.func @transform_0(%arg0: i32, %arg1: i32) -> (i32, i32, i32, i32, i32) {
    %c0_i32 = arith.constant 0 : i32
    %c0_i32_0 = arith.constant 0 : i32
    %c0_i32_1 = arith.constant 0 : i32
    %c0_i32_2 = arith.constant 0 : i32
    return %arg0, %arg1, %c0_i32, %c0_i32_0, %c0_i32_1 : i32, i32, i32, i32, i32
  }
  func.func @transform_1(%arg0: i32, %arg1: i32) -> (i32, i32, i32, i32, i32) {
    %c0_i32 = arith.constant 0 : i32
    %c0_i32_0 = arith.constant 0 : i32
    %c0_i32_1 = arith.constant 0 : i32
    %c0_i32_2 = arith.constant 0 : i32
    return %arg0, %arg1, %c0_i32, %c0_i32_0, %c0_i32_1 : i32, i32, i32, i32, i32
  }
  func.func @transform_2(%arg0: i32, %arg1: i32) -> (i32, i32, i32, i32) {
    %c0_i32 = arith.constant 0 : i32
    %c0_i32_0 = arith.constant 0 : i32
    %c0_i32_1 = arith.constant 0 : i32
    %c0_i32_2 = arith.constant 0 : i32
    %c0_i32_3 = arith.constant 0 : i32
    return %c0_i32, %c0_i32_0, %c0_i32_1, %c0_i32_2 : i32, i32, i32, i32
  }
  func.func @transform_3(%arg0: i32, %arg1: i32) -> (i32, i32, i32, i32) {
    %c0_i32 = arith.constant 0 : i32
    %c0_i32_0 = arith.constant 0 : i32
    %c0_i32_1 = arith.constant 0 : i32
    %c0_i32_2 = arith.constant 0 : i32
    %c0_i32_3 = arith.constant 0 : i32
    return %c0_i32, %c0_i32_0, %c0_i32_1, %c0_i32_2 : i32, i32, i32, i32
  }
  func.func @transform_4(%arg0: i32, %arg1: i32) -> (i32, i32) {
    %c0_i32 = arith.constant 0 : i32
    %c0_i32_0 = arith.constant 0 : i32
    %c0_i32_1 = arith.constant 0 : i32
    return %c0_i32, %c0_i32_0 : i32, i32
  }
  func.func @transform_5(%arg0: i32, %arg1: i32) -> (i32, i32, i32, i32) {
    %c0_i32 = arith.constant 0 : i32
    %c0_i32_0 = arith.constant 0 : i32
    %c0_i32_1 = arith.constant 0 : i32
    return %arg0, %arg1, %c0_i32, %c0_i32_0 : i32, i32, i32, i32
  }
  func.func @transform_6(%arg0: i32, %arg1: i32) -> (i32, i32, i32, i32) {
    %c0_i32 = arith.constant 0 : i32
    %c0_i32_0 = arith.constant 0 : i32
    %c0_i32_1 = arith.constant 0 : i32
    return %arg0, %arg1, %c0_i32, %c0_i32_0 : i32, i32, i32, i32
  }
}

module attributes {stable_mosaic.version = 11 : i64} {
  func.func @conv2_kernel(%arg0: i32, %arg1: i32, %arg2: memref<1x1x18x18x128xf32, #tpu.memory_space<vmem>>, %arg3: memref<3x3x128x128xf32, #tpu.memory_space<vmem>>, %arg4: memref<1x128xf32, #tpu.memory_space<vmem>>, %arg5: memref<1x128xf32, #tpu.memory_space<vmem>>, %arg6: memref<1x128xf32, #tpu.memory_space<vmem>>, %arg7: memref<1x16x16x128xf32, #tpu.memory_space<vmem>>, %arg8: memref<1x1x2x128xf32, #tpu.memory_space<vmem>>) attributes {dimension_semantics = [#tpu.dimension_semantics<parallel>, #tpu.dimension_semantics<parallel>], iteration_bounds = array<i64: 2, 1>, scalar_prefetch = 0 : i64, scratch_operands = 0 : i64, tpu.core_type = #tpu.core_type<tc>, window_params = [{transform_indices = @transform_0, window_bounds = array<i64: 1, 1, 18, 18, 128>}, {pipeline_mode = #tpu.pipeline_mode<synchronous>, transform_indices = @transform_1, window_bounds = array<i64: 3, 3, 128, 128>}, {pipeline_mode = #tpu.pipeline_mode<synchronous>, transform_indices = @transform_2, window_bounds = array<i64: 1, 128>}, {pipeline_mode = #tpu.pipeline_mode<synchronous>, transform_indices = @transform_3, window_bounds = array<i64: 1, 128>}, {pipeline_mode = #tpu.pipeline_mode<synchronous>, transform_indices = @transform_4, window_bounds = array<i64: 1, 128>}, {transform_indices = @transform_5, window_bounds = array<i64: 1, 16, 16, 128>}, {transform_indices = @transform_6, window_bounds = array<i64: 1, 1, 2, 128>}]} {
    %c0 = arith.constant 0 : index
    %c0_0 = arith.constant 0 : index
    %c0_1 = arith.constant 0 : index
    %c0_2 = arith.constant 0 : index
    %c0_3 = arith.constant 0 : index
    %0 = vector.load %arg2[%c0, %c0_0, %c0_1, %c0_2, %c0_3] : memref<1x1x18x18x128xf32, #tpu.memory_space<vmem>>, vector<1x1x18x18x128xf32>
    %1 = vector.shape_cast %0 : vector<1x1x18x18x128xf32> to vector<18x18x128xf32>
    %c0_4 = arith.constant 0 : index
    %c0_5 = arith.constant 0 : index
    %2 = vector.load %arg5[%c0_4, %c0_5] : memref<1x128xf32, #tpu.memory_space<vmem>>, vector<1x128xf32>
    %3 = vector.shape_cast %2 : vector<1x128xf32> to vector<1x1x128xf32>
    %4 = vector.broadcast %3 : vector<1x1x128xf32> to vector<18x18x128xf32>
    %5 = arith.mulf %1, %4 : vector<18x18x128xf32>
    %c0_6 = arith.constant 0 : index
    %c0_7 = arith.constant 0 : index
    %6 = vector.load %arg6[%c0_6, %c0_7] : memref<1x128xf32, #tpu.memory_space<vmem>>, vector<1x128xf32>
    %7 = vector.shape_cast %6 : vector<1x128xf32> to vector<1x1x128xf32>
    %8 = vector.broadcast %7 : vector<1x1x128xf32> to vector<18x18x128xf32>
    %9 = arith.addf %5, %8 : vector<18x18x128xf32>
    %cst = arith.constant 0.000000e+00 : f32
    %10 = vector.broadcast %cst : f32 to vector<18x18x128xf32>
    %11 = arith.maximumf %9, %10 : vector<18x18x128xf32>
    %12 = tpu.iota {dimensions = array<i32: 0>} : vector<18x18x1xi32>
    %c16_i32 = arith.constant 16 : i32
    %13 = arith.muli %arg1, %c16_i32 : i32
    %14 = vector.broadcast %13 : i32 to vector<18x18x1xi32>
    %15 = arith.addi %12, %14 : vector<18x18x1xi32>
    %16 = tpu.iota {dimensions = array<i32: 1>} : vector<18x18x1xi32>
    %c1_i32 = arith.constant 1 : i32
    %17 = vector.broadcast %c1_i32 : i32 to vector<18x18x1xi32>
    %18 = arith.cmpi sge, %15, %17 : vector<18x18x1xi32>
    %c16_i32_8 = arith.constant 16 : i32
    %19 = vector.broadcast %c16_i32_8 : i32 to vector<18x18x1xi32>
    %20 = arith.cmpi sle, %15, %19 : vector<18x18x1xi32>
    %21 = arith.andi %18, %20 : vector<18x18x1xi1>
    %c1_i32_9 = arith.constant 1 : i32
    %22 = vector.broadcast %c1_i32_9 : i32 to vector<18x18x1xi32>
    %23 = arith.cmpi sge, %16, %22 : vector<18x18x1xi32>
    %24 = arith.andi %21, %23 : vector<18x18x1xi1>
    %c16_i32_10 = arith.constant 16 : i32
    %25 = vector.broadcast %c16_i32_10 : i32 to vector<18x18x1xi32>
    %26 = arith.cmpi sle, %16, %25 : vector<18x18x1xi32>
    %27 = arith.andi %24, %26 : vector<18x18x1xi1>
    %cst_11 = arith.constant 0.000000e+00 : f32
    %28 = vector.shape_cast %27 : vector<18x18x1xi1> to vector<18x18x1xi1>
    %29 = vector.broadcast %28 : vector<18x18x1xi1> to vector<18x18x128xi1>
    %30 = vector.broadcast %cst_11 : f32 to vector<18x18x128xf32>
    %31 = arith.select %29, %11, %30 : vector<18x18x128xi1>, vector<18x18x128xf32>
    %cst_12 = arith.constant 0.000000e+00 : f32
    %32 = vector.broadcast %cst_12 : f32 to vector<256x128xf32>
    %33 = vector.extract_strided_slice %31 {offsets = [0, 0, 0], sizes = [16, 16, 128], strides = [1, 1, 1]} : vector<18x18x128xf32> to vector<16x16x128xf32>
    %34 = vector.shape_cast %33 : vector<16x16x128xf32> to vector<256x128xf32>
    %c0_13 = arith.constant 0 : index
    %c0_14 = arith.constant 0 : index
    %c0_15 = arith.constant 0 : index
    %c0_16 = arith.constant 0 : index
    %35 = vector.load %arg3[%c0_13, %c0_14, %c0_15, %c0_16] : memref<3x3x128x128xf32, #tpu.memory_space<vmem>>, vector<1x1x128x128xf32>
    %36 = vector.shape_cast %35 : vector<1x1x128x128xf32> to vector<128x128xf32>
    %cst_17 = arith.constant dense<0.000000e+00> : vector<256x128xf32>
    %37 = tpu.matmul %34, %36, %cst_17 {dimension_numbers = #tpu.dot_dimension_numbers<[1], [0], [0], [1], [0, 0, 1, 1], [], []>} : vector<256x128xf32>, vector<128x128xf32>, vector<256x128xf32> -> vector<256x128xf32>
    %38 = arith.addf %32, %37 : vector<256x128xf32>
    %39 = vector.extract_strided_slice %31 {offsets = [0, 1, 0], sizes = [16, 16, 128], strides = [1, 1, 1]} : vector<18x18x128xf32> to vector<16x16x128xf32>
    %40 = vector.shape_cast %39 : vector<16x16x128xf32> to vector<256x128xf32>
    %c0_18 = arith.constant 0 : index
    %c1 = arith.constant 1 : index
    %c0_19 = arith.constant 0 : index
    %c0_20 = arith.constant 0 : index
    %41 = vector.load %arg3[%c0_18, %c1, %c0_19, %c0_20] : memref<3x3x128x128xf32, #tpu.memory_space<vmem>>, vector<1x1x128x128xf32>
    %42 = vector.shape_cast %41 : vector<1x1x128x128xf32> to vector<128x128xf32>
    %cst_21 = arith.constant dense<0.000000e+00> : vector<256x128xf32>
    %43 = tpu.matmul %40, %42, %cst_21 {dimension_numbers = #tpu.dot_dimension_numbers<[1], [0], [0], [1], [0, 0, 1, 1], [], []>} : vector<256x128xf32>, vector<128x128xf32>, vector<256x128xf32> -> vector<256x128xf32>
    %44 = arith.addf %38, %43 : vector<256x128xf32>
    %45 = vector.extract_strided_slice %31 {offsets = [0, 2, 0], sizes = [16, 16, 128], strides = [1, 1, 1]} : vector<18x18x128xf32> to vector<16x16x128xf32>
    %46 = vector.shape_cast %45 : vector<16x16x128xf32> to vector<256x128xf32>
    %c0_22 = arith.constant 0 : index
    %c2 = arith.constant 2 : index
    %c0_23 = arith.constant 0 : index
    %c0_24 = arith.constant 0 : index
    %47 = vector.load %arg3[%c0_22, %c2, %c0_23, %c0_24] : memref<3x3x128x128xf32, #tpu.memory_space<vmem>>, vector<1x1x128x128xf32>
    %48 = vector.shape_cast %47 : vector<1x1x128x128xf32> to vector<128x128xf32>
    %cst_25 = arith.constant dense<0.000000e+00> : vector<256x128xf32>
    %49 = tpu.matmul %46, %48, %cst_25 {dimension_numbers = #tpu.dot_dimension_numbers<[1], [0], [0], [1], [0, 0, 1, 1], [], []>} : vector<256x128xf32>, vector<128x128xf32>, vector<256x128xf32> -> vector<256x128xf32>
    %50 = arith.addf %44, %49 : vector<256x128xf32>
    %51 = vector.extract_strided_slice %31 {offsets = [1, 0, 0], sizes = [16, 16, 128], strides = [1, 1, 1]} : vector<18x18x128xf32> to vector<16x16x128xf32>
    %52 = vector.shape_cast %51 : vector<16x16x128xf32> to vector<256x128xf32>
    %c1_26 = arith.constant 1 : index
    %c0_27 = arith.constant 0 : index
    %c0_28 = arith.constant 0 : index
    %c0_29 = arith.constant 0 : index
    %53 = vector.load %arg3[%c1_26, %c0_27, %c0_28, %c0_29] : memref<3x3x128x128xf32, #tpu.memory_space<vmem>>, vector<1x1x128x128xf32>
    %54 = vector.shape_cast %53 : vector<1x1x128x128xf32> to vector<128x128xf32>
    %cst_30 = arith.constant dense<0.000000e+00> : vector<256x128xf32>
    %55 = tpu.matmul %52, %54, %cst_30 {dimension_numbers = #tpu.dot_dimension_numbers<[1], [0], [0], [1], [0, 0, 1, 1], [], []>} : vector<256x128xf32>, vector<128x128xf32>, vector<256x128xf32> -> vector<256x128xf32>
    %56 = arith.addf %50, %55 : vector<256x128xf32>
    %57 = vector.extract_strided_slice %31 {offsets = [1, 1, 0], sizes = [16, 16, 128], strides = [1, 1, 1]} : vector<18x18x128xf32> to vector<16x16x128xf32>
    %58 = vector.shape_cast %57 : vector<16x16x128xf32> to vector<256x128xf32>
    %c1_31 = arith.constant 1 : index
    %c1_32 = arith.constant 1 : index
    %c0_33 = arith.constant 0 : index
    %c0_34 = arith.constant 0 : index
    %59 = vector.load %arg3[%c1_31, %c1_32, %c0_33, %c0_34] : memref<3x3x128x128xf32, #tpu.memory_space<vmem>>, vector<1x1x128x128xf32>
    %60 = vector.shape_cast %59 : vector<1x1x128x128xf32> to vector<128x128xf32>
    %cst_35 = arith.constant dense<0.000000e+00> : vector<256x128xf32>
    %61 = tpu.matmul %58, %60, %cst_35 {dimension_numbers = #tpu.dot_dimension_numbers<[1], [0], [0], [1], [0, 0, 1, 1], [], []>} : vector<256x128xf32>, vector<128x128xf32>, vector<256x128xf32> -> vector<256x128xf32>
    %62 = arith.addf %56, %61 : vector<256x128xf32>
    %63 = vector.extract_strided_slice %31 {offsets = [1, 2, 0], sizes = [16, 16, 128], strides = [1, 1, 1]} : vector<18x18x128xf32> to vector<16x16x128xf32>
    %64 = vector.shape_cast %63 : vector<16x16x128xf32> to vector<256x128xf32>
    %c1_36 = arith.constant 1 : index
    %c2_37 = arith.constant 2 : index
    %c0_38 = arith.constant 0 : index
    %c0_39 = arith.constant 0 : index
    %65 = vector.load %arg3[%c1_36, %c2_37, %c0_38, %c0_39] : memref<3x3x128x128xf32, #tpu.memory_space<vmem>>, vector<1x1x128x128xf32>
    %66 = vector.shape_cast %65 : vector<1x1x128x128xf32> to vector<128x128xf32>
    %cst_40 = arith.constant dense<0.000000e+00> : vector<256x128xf32>
    %67 = tpu.matmul %64, %66, %cst_40 {dimension_numbers = #tpu.dot_dimension_numbers<[1], [0], [0], [1], [0, 0, 1, 1], [], []>} : vector<256x128xf32>, vector<128x128xf32>, vector<256x128xf32> -> vector<256x128xf32>
    %68 = arith.addf %62, %67 : vector<256x128xf32>
    %69 = vector.extract_strided_slice %31 {offsets = [2, 0, 0], sizes = [16, 16, 128], strides = [1, 1, 1]} : vector<18x18x128xf32> to vector<16x16x128xf32>
    %70 = vector.shape_cast %69 : vector<16x16x128xf32> to vector<256x128xf32>
    %c2_41 = arith.constant 2 : index
    %c0_42 = arith.constant 0 : index
    %c0_43 = arith.constant 0 : index
    %c0_44 = arith.constant 0 : index
    %71 = vector.load %arg3[%c2_41, %c0_42, %c0_43, %c0_44] : memref<3x3x128x128xf32, #tpu.memory_space<vmem>>, vector<1x1x128x128xf32>
    %72 = vector.shape_cast %71 : vector<1x1x128x128xf32> to vector<128x128xf32>
    %cst_45 = arith.constant dense<0.000000e+00> : vector<256x128xf32>
    %73 = tpu.matmul %70, %72, %cst_45 {dimension_numbers = #tpu.dot_dimension_numbers<[1], [0], [0], [1], [0, 0, 1, 1], [], []>} : vector<256x128xf32>, vector<128x128xf32>, vector<256x128xf32> -> vector<256x128xf32>
    %74 = arith.addf %68, %73 : vector<256x128xf32>
    %75 = vector.extract_strided_slice %31 {offsets = [2, 1, 0], sizes = [16, 16, 128], strides = [1, 1, 1]} : vector<18x18x128xf32> to vector<16x16x128xf32>
    %76 = vector.shape_cast %75 : vector<16x16x128xf32> to vector<256x128xf32>
    %c2_46 = arith.constant 2 : index
    %c1_47 = arith.constant 1 : index
    %c0_48 = arith.constant 0 : index
    %c0_49 = arith.constant 0 : index
    %77 = vector.load %arg3[%c2_46, %c1_47, %c0_48, %c0_49] : memref<3x3x128x128xf32, #tpu.memory_space<vmem>>, vector<1x1x128x128xf32>
    %78 = vector.shape_cast %77 : vector<1x1x128x128xf32> to vector<128x128xf32>
    %cst_50 = arith.constant dense<0.000000e+00> : vector<256x128xf32>
    %79 = tpu.matmul %76, %78, %cst_50 {dimension_numbers = #tpu.dot_dimension_numbers<[1], [0], [0], [1], [0, 0, 1, 1], [], []>} : vector<256x128xf32>, vector<128x128xf32>, vector<256x128xf32> -> vector<256x128xf32>
    %80 = arith.addf %74, %79 : vector<256x128xf32>
    %81 = vector.extract_strided_slice %31 {offsets = [2, 2, 0], sizes = [16, 16, 128], strides = [1, 1, 1]} : vector<18x18x128xf32> to vector<16x16x128xf32>
    %82 = vector.shape_cast %81 : vector<16x16x128xf32> to vector<256x128xf32>
    %c2_51 = arith.constant 2 : index
    %c2_52 = arith.constant 2 : index
    %c0_53 = arith.constant 0 : index
    %c0_54 = arith.constant 0 : index
    %83 = vector.load %arg3[%c2_51, %c2_52, %c0_53, %c0_54] : memref<3x3x128x128xf32, #tpu.memory_space<vmem>>, vector<1x1x128x128xf32>
    %84 = vector.shape_cast %83 : vector<1x1x128x128xf32> to vector<128x128xf32>
    %cst_55 = arith.constant dense<0.000000e+00> : vector<256x128xf32>
    %85 = tpu.matmul %82, %84, %cst_55 {dimension_numbers = #tpu.dot_dimension_numbers<[1], [0], [0], [1], [0, 0, 1, 1], [], []>} : vector<256x128xf32>, vector<128x128xf32>, vector<256x128xf32> -> vector<256x128xf32>
    %86 = arith.addf %80, %85 : vector<256x128xf32>
    %c0_56 = arith.constant 0 : index
    %c0_57 = arith.constant 0 : index
    %87 = vector.load %arg4[%c0_56, %c0_57] : memref<1x128xf32, #tpu.memory_space<vmem>>, vector<1x128xf32>
    %88 = vector.broadcast %87 : vector<1x128xf32> to vector<256x128xf32>
    %89 = arith.addf %86, %88 : vector<256x128xf32>
    %90 = vector.shape_cast %89 : vector<256x128xf32> to vector<16x16x128xf32>
    %c0_58 = arith.constant 0 : index
    %c0_59 = arith.constant 0 : index
    %c0_60 = arith.constant 0 : index
    %c0_61 = arith.constant 0 : index
    %91 = vector.load %arg7[%c0_58, %c0_59, %c0_60, %c0_61] : memref<1x16x16x128xf32, #tpu.memory_space<vmem>>, vector<1x16x16x128xf32>
    %92 = vector.shape_cast %91 : vector<1x16x16x128xf32> to vector<16x16x128xf32>
    %93 = vector.shape_cast %90 : vector<16x16x128xf32> to vector<1x16x16x128xf32>
    tpu.vector_store %arg7[%c0_58, %c0_59, %c0_60, %c0_61], %93 {strides = array<i32>} : memref<1x16x16x128xf32, #tpu.memory_space<vmem>>, vector<1x16x16x128xf32>,
    %cst_62 = arith.constant dense<0.000000e+00> : vector<128xf32>
    %94 = vector.multi_reduction <add>, %89, %cst_62 [0] : vector<256x128xf32> to vector<128xf32>
    %95 = vector.shape_cast %94 : vector<128xf32> to vector<1x128xf32>
    %c0_63 = arith.constant 0 : index
    %c0_64 = arith.constant 0 : index
    %c0_65 = arith.constant 0 : index
    %c0_66 = arith.constant 0 : index
    %96 = vector.load %arg8[%c0_63, %c0_64, %c0_65, %c0_66] : memref<1x1x2x128xf32, #tpu.memory_space<vmem>>, vector<1x1x1x128xf32>
    %97 = vector.shape_cast %96 : vector<1x1x1x128xf32> to vector<1x128xf32>
    %98 = vector.shape_cast %95 : vector<1x128xf32> to vector<1x1x1x128xf32>
    tpu.vector_store %arg8[%c0_63, %c0_64, %c0_65, %c0_66], %98 {strides = array<i32>} : memref<1x1x2x128xf32, #tpu.memory_space<vmem>>, vector<1x1x1x128xf32>,
    %99 = arith.mulf %89, %89 : vector<256x128xf32>
    %cst_67 = arith.constant dense<0.000000e+00> : vector<128xf32>
    %100 = vector.multi_reduction <add>, %99, %cst_67 [0] : vector<256x128xf32> to vector<128xf32>
    %101 = vector.shape_cast %100 : vector<128xf32> to vector<1x128xf32>
    %c0_68 = arith.constant 0 : index
    %c0_69 = arith.constant 0 : index
    %c1_70 = arith.constant 1 : index
    %c0_71 = arith.constant 0 : index
    %102 = vector.load %arg8[%c0_68, %c0_69, %c1_70, %c0_71] : memref<1x1x2x128xf32, #tpu.memory_space<vmem>>, vector<1x1x1x128xf32>
    %103 = vector.shape_cast %102 : vector<1x1x1x128xf32> to vector<1x128xf32>
    %104 = vector.shape_cast %101 : vector<1x128xf32> to vector<1x1x1x128xf32>
    tpu.vector_store %arg8[%c0_68, %c0_69, %c1_70, %c0_71], %104 {strides = array<i32>} : memref<1x1x2x128xf32, #tpu.memory_space<vmem>>, vector<1x1x1x128xf32>,
    return
  }
  func.func @transform_0(%arg0: i32, %arg1: i32) -> (i32, i32, i32, i32, i32) {
    %c0_i32 = arith.constant 0 : i32
    %c0_i32_0 = arith.constant 0 : i32
    %c0_i32_1 = arith.constant 0 : i32
    %c0_i32_2 = arith.constant 0 : i32
    return %arg0, %arg1, %c0_i32, %c0_i32_0, %c0_i32_1 : i32, i32, i32, i32, i32
  }
  func.func @transform_1(%arg0: i32, %arg1: i32) -> (i32, i32, i32, i32) {
    %c0_i32 = arith.constant 0 : i32
    %c0_i32_0 = arith.constant 0 : i32
    %c0_i32_1 = arith.constant 0 : i32
    %c0_i32_2 = arith.constant 0 : i32
    %c0_i32_3 = arith.constant 0 : i32
    return %c0_i32, %c0_i32_0, %c0_i32_1, %c0_i32_2 : i32, i32, i32, i32
  }
  func.func @transform_2(%arg0: i32, %arg1: i32) -> (i32, i32) {
    %c0_i32 = arith.constant 0 : i32
    %c0_i32_0 = arith.constant 0 : i32
    %c0_i32_1 = arith.constant 0 : i32
    return %c0_i32, %c0_i32_0 : i32, i32
  }
  func.func @transform_3(%arg0: i32, %arg1: i32) -> (i32, i32) {
    %c0_i32 = arith.constant 0 : i32
    %c0_i32_0 = arith.constant 0 : i32
    %c0_i32_1 = arith.constant 0 : i32
    return %c0_i32, %c0_i32_0 : i32, i32
  }
  func.func @transform_4(%arg0: i32, %arg1: i32) -> (i32, i32) {
    %c0_i32 = arith.constant 0 : i32
    %c0_i32_0 = arith.constant 0 : i32
    %c0_i32_1 = arith.constant 0 : i32
    return %c0_i32, %c0_i32_0 : i32, i32
  }
  func.func @transform_5(%arg0: i32, %arg1: i32) -> (i32, i32, i32, i32) {
    %c0_i32 = arith.constant 0 : i32
    %c0_i32_0 = arith.constant 0 : i32
    %c0_i32_1 = arith.constant 0 : i32
    return %arg0, %arg1, %c0_i32, %c0_i32_0 : i32, i32, i32, i32
  }
  func.func @transform_6(%arg0: i32, %arg1: i32) -> (i32, i32, i32, i32) {
    %c0_i32 = arith.constant 0 : i32
    %c0_i32_0 = arith.constant 0 : i32
    %c0_i32_1 = arith.constant 0 : i32
    return %arg0, %arg1, %c0_i32, %c0_i32_0 : i32, i32, i32, i32
  }
}

module attributes {stable_mosaic.version = 11 : i64} {
  func.func @bn_relu_kernel(%arg0: i32, %arg1: i32, %arg2: memref<1x16x16x128xf32, #tpu.memory_space<vmem>>, %arg3: memref<1x128xf32, #tpu.memory_space<vmem>>, %arg4: memref<1x128xf32, #tpu.memory_space<vmem>>, %arg5: memref<1x16x16x128xf32, #tpu.memory_space<vmem>>) attributes {dimension_semantics = [#tpu.dimension_semantics<parallel>, #tpu.dimension_semantics<parallel>], iteration_bounds = array<i64: 2, 1>, scalar_prefetch = 0 : i64, scratch_operands = 0 : i64, tpu.core_type = #tpu.core_type<tc>, window_params = [{transform_indices = @transform_0, window_bounds = array<i64: 1, 16, 16, 128>}, {pipeline_mode = #tpu.pipeline_mode<synchronous>, transform_indices = @transform_1, window_bounds = array<i64: 1, 128>}, {pipeline_mode = #tpu.pipeline_mode<synchronous>, transform_indices = @transform_2, window_bounds = array<i64: 1, 128>}, {transform_indices = @transform_3, window_bounds = array<i64: 1, 16, 16, 128>}]} {
    %c0 = arith.constant 0 : index
    %c0_0 = arith.constant 0 : index
    %c0_1 = arith.constant 0 : index
    %c0_2 = arith.constant 0 : index
    %0 = vector.load %arg2[%c0, %c0_0, %c0_1, %c0_2] : memref<1x16x16x128xf32, #tpu.memory_space<vmem>>, vector<1x16x16x128xf32>
    %1 = vector.shape_cast %0 : vector<1x16x16x128xf32> to vector<16x16x128xf32>
    %c0_3 = arith.constant 0 : index
    %c0_4 = arith.constant 0 : index
    %2 = vector.load %arg3[%c0_3, %c0_4] : memref<1x128xf32, #tpu.memory_space<vmem>>, vector<1x128xf32>
    %3 = vector.shape_cast %2 : vector<1x128xf32> to vector<1x1x128xf32>
    %4 = vector.broadcast %3 : vector<1x1x128xf32> to vector<16x16x128xf32>
    %5 = arith.mulf %1, %4 : vector<16x16x128xf32>
    %c0_5 = arith.constant 0 : index
    %c0_6 = arith.constant 0 : index
    %6 = vector.load %arg4[%c0_5, %c0_6] : memref<1x128xf32, #tpu.memory_space<vmem>>, vector<1x128xf32>
    %7 = vector.shape_cast %6 : vector<1x128xf32> to vector<1x1x128xf32>
    %8 = vector.broadcast %7 : vector<1x1x128xf32> to vector<16x16x128xf32>
    %9 = arith.addf %5, %8 : vector<16x16x128xf32>
    %cst = arith.constant 0.000000e+00 : f32
    %10 = vector.broadcast %cst : f32 to vector<16x16x128xf32>
    %11 = arith.maximumf %9, %10 : vector<16x16x128xf32>
    %c0_7 = arith.constant 0 : index
    %c0_8 = arith.constant 0 : index
    %c0_9 = arith.constant 0 : index
    %c0_10 = arith.constant 0 : index
    %12 = vector.load %arg5[%c0_7, %c0_8, %c0_9, %c0_10] : memref<1x16x16x128xf32, #tpu.memory_space<vmem>>, vector<1x16x16x128xf32>
    %13 = vector.shape_cast %12 : vector<1x16x16x128xf32> to vector<16x16x128xf32>
    %14 = vector.shape_cast %11 : vector<16x16x128xf32> to vector<1x16x16x128xf32>
    tpu.vector_store %arg5[%c0_7, %c0_8, %c0_9, %c0_10], %14 {strides = array<i32>} : memref<1x16x16x128xf32, #tpu.memory_space<vmem>>, vector<1x16x16x128xf32>,
    return
  }
  func.func @transform_0(%arg0: i32, %arg1: i32) -> (i32, i32, i32, i32) {
    %c0_i32 = arith.constant 0 : i32
    %c0_i32_0 = arith.constant 0 : i32
    %c0_i32_1 = arith.constant 0 : i32
    return %arg0, %arg1, %c0_i32, %c0_i32_0 : i32, i32, i32, i32
  }
  func.func @transform_1(%arg0: i32, %arg1: i32) -> (i32, i32) {
    %c0_i32 = arith.constant 0 : i32
    %c0_i32_0 = arith.constant 0 : i32
    %c0_i32_1 = arith.constant 0 : i32
    return %c0_i32, %c0_i32_0 : i32, i32
  }
  func.func @transform_2(%arg0: i32, %arg1: i32) -> (i32, i32) {
    %c0_i32 = arith.constant 0 : i32
    %c0_i32_0 = arith.constant 0 : i32
    %c0_i32_1 = arith.constant 0 : i32
    return %c0_i32, %c0_i32_0 : i32, i32
  }
  func.func @transform_3(%arg0: i32, %arg1: i32) -> (i32, i32, i32, i32) {
    %c0_i32 = arith.constant 0 : i32
    %c0_i32_0 = arith.constant 0 : i32
    %c0_i32_1 = arith.constant 0 : i32
    return %arg0, %arg1, %c0_i32, %c0_i32_0 : i32, i32, i32, i32
  }
}

</mosaic_0001>

<bundles_post_ra>
// kernel: tile.8
= control target key start
LH: loop header
LB: loop body
LE: loop exit
PB: predicated region body
PF: predicated region fallthrough
CT: control target
= control target key end

     0   :  { %s22_s0 = inlined_call_operand.vmem [shape: f32[128], index: 0, kind: input, shape index: {}]   ;;  %s23_s1 = inlined_call_operand.vmem [shape: f32[2,128], index: 1, kind: output, shape index: {}]  }
   0x1   :  { %v4_v0 = vld [vmem:[%s22_s0] ss:$0 sm:$0xff] }
   0x2   :  { %5 = vst [vmem:[%s23_s1] sm:$0x3] %v4_v0 }

// kernel: up_block_forward.4
= control target key start
LH: loop header
LB: loop body
LE: loop exit
PB: predicated region body
PF: predicated region fallthrough
CT: control target
= control target key end

     0   :  { %s740_s12 = smov 0   ;;  %s742_s13 = smov 0   ;;  %s927_s0 = inlined_call_operand.vmem [shape: f32[2,8,8,128], index: 0, kind: input, shape index: {}]   ;;  %s928_s1 = inlined_call_operand.vmem [shape: f32[2,128,256], index: 1, kind: input, shape index: {}]   ;;  %s929_s2 = inlined_call_operand.vmem [shape: f32[1,256], index: 2, kind: input, shape index: {}]   ;;  %s930_s3 = inlined_call_operand.vmem [shape: f32[2,8,2,8,256], index: 3, kind: output, shape index: {}]  }
   0x1   :  { %s744_s14 = smov 0   ;;  %s746_s15 = smov 0  }
   0x2   :  { %s748_s16 = smov 0   ;;  %s750_s17 = smov 0  }
   0x3   :  { %s752_s18 = smov 0  }
   0x4 LB: > { %s25_s19 = sadd.s32 1, %s709_s16  ;;  %s32_s20 = sadd.s32 1, %s713_s17  ;;  %s717_s18 = sphi %s752_s18, %s13_s18   ;;  %s713_s17 = sphi %s750_s17, %s937_s17   ;;  %s709_s16 = sphi %s748_s16, %s936_s16   ;;  %s705_s15 = sphi %s746_s15, %s935_s15   ;;  %s701_s14 = sphi %s744_s14, %s934_s14   ;;  %s697_s13 = sphi %s742_s13, %s933_s13   ;;  %s693_s12 = sphi %s740_s12, %s932_s12  }
   0x5   : > { %p26_p0 = scmp.ge.s32.totalorder %s25_s19, 2  ;;  %s556_s21 = sadd.s32 4294967295, %s717_s18  }
   0x6   : > { %p128_p1 = scmp.ne.s32.totalorder %s697_s13, %s693_s12  ;;  %p129_p2 = scmp.eq.s32.totalorder %s556_s21, 3 }
   0x7   : > { %s939_s19 = smov (%p26_p0, %s25_s19), 0  ;;  %s941_s20 = smov (!%p26_p0, %s32_s20), %s713_s17 }
   0x8   : > { %s114_s22 = ssub.s32 %s709_s16, %s939_s19  ;;  %p34_p3 = scmp.ge.s32.totalorder %s941_s20, 2 }
   0x9   : > { %p560_p4 = scmp.ge.s32.totalorder %s717_s18, 1  ;;  %p786_p5 = por %p129_p2, %p128_p1 }
   0xa   : > { %p177_p6 = scmp.lt.s32.totalorder %s717_s18, 5  ;;  %s943_s20 = smov (%p34_p3, %s941_s20), 0 }
   0xb   : > { %s111_s24 = ssub.s32 %s713_s17, %s943_s20  ;;  %s118_s26 = sadd.s32 1, %s697_s13 }
   0xc   : > { %p178_p7 = pnand %p560_p4, %p177_p6  ;;  %s115_s25 = sor.u32 %s114_s22, %s111_s24 }
   0xd   : > { %p116_p8 = scmp.eq.s32.totalorder %s115_s25, 0  ;;  %p219_p9 = scmp.lt.s32.totalorder (!%p178_p7), %s701_s14, 1 }
   0xe   : > { %181 = sbr.rel (%p178_p7) target bundleno = 275 (0x113), region = 32  ;;  %p210_p10 = scmp.lt.s32.totalorder (!%p178_p7), %s705_s15, 1 }
   0xf   : > { %s797_s27 = scalar_select %p116_p8, %s697_s13, %s118_s26  }
  0x10   : > { %s206_s11 = sand.u32 (!%p178_p7), 1, %s693_s12  }
  0x11   : > { %s561_s24 = sshll.u32 (!%p178_p7), %s206_s11, 7 }
  0x12   : > { %s865_s25 = scalar_lea.vmem (!%p178_p7), [#allocation2], %s561_s24 }
  0x13   : > { %v719_v0 = vmov 0.0   ;;  %s220_s28 = scalar_select %p219_p9, %s701_s14, 1  ;;  %v267_v41 = vlaneseq  ;;  %v265_v44 = vld [vmem:[%s929_s2] sm:$0x3] }
  0x14   : > { %341 = vmatprep.mubr.f32.mxu0 %v719_v0  ;;  %365 = vmatprep.mubr.f32.mxu1 %v719_v0  ;;  %s211_s6 = scalar_select %p210_p10, %s705_s15, 1 }
  0x15   : > { %s573_s29 = sshll.u32 %s220_s28, 8  ;;  %v268_v42 = vshrl.u32 %v267_v41, 7  ;;  %s567_s12 = sshll.u32 (%p786_p5), %s701_s14, 1 }
  0x16   : > { %s806_s5 = scalar_lea.vmem %s928_s1, %s573_s29  ;;  %s572_s7 = sshll.u32 %s211_s6, 6 }
  0x17   : > { %v264_v1 = vld [vmem:[%s806_s5 + $0xf8] sm:$0xff]  ;;  %v263_v2 = vld [vmem:[%s806_s5 + $0xf0] sm:$0xff]  ;;  %v262_v3 = vld [vmem:[%s806_s5 + $0xe8] sm:$0xff]  ;;  %s843_s10 = scalar_lea.vmem %s927_s0, %s572_s7  ;;  %v269_v43 = vsub.s32 0, %v268_v42  ;;  %v273_v45 = vsub.s32 1, %v268_v42  ;;  %s568_s26 = sshll.u32 (%p786_p5), %s705_s15, 5 }
  0x18   : > { %277 = vmatprep.subr.mxu0 %v264_v1  ;;  %574 = vmatprep.subr.mxu1 %v264_v1  ;;  %v261_v4 = vld [vmem:[%s806_s5 + $0xe0] sm:$0xff]  ;;  %v260_v5 = vld [vmem:[%s806_s5 + $0xd8] sm:$0xff]  ;;  %v259_v6 = vld [vmem:[%s806_s5 + $0xd0] sm:$0xff]  ;;  %s418_s23 = sadd.s32 (%p786_p5), %s568_s26, %s567_s12 }
  0x19   : > { %278 = vmatpush1.msra.mxu0 %v263_v2  ;;  %590 = vmatpush1.msra.mxu1 %v263_v2  ;;  %v258_v7 = vld [vmem:[%s806_s5 + $0xc8] sm:$0xff]  ;;  %v257_v8 = vld [vmem:[%s806_s5 + $0xc0] sm:$0xff]  ;;  %v256_v9 = vld [vmem:[%s806_s5 + $0xb8] sm:$0xff]  ;;  %v270_v46 = vrot.slane %v265_v44, %v269_v43  ;;  %v274_v47 = vrot.slane %v265_v44, %v273_v45  ;;  %s569_s28 = sshll.u32 (%p786_p5), %s418_s23, 3 }
  0x1a   : > { %279 = vmatprep.subr.mxu0 %v262_v3  ;;  %575 = vmatprep.subr.mxu1 %v262_v3  ;;  %v255_v10 = vld [vmem:[%s806_s5 + $0xb0] sm:$0xff]  ;;  %v254_v11 = vld [vmem:[%s806_s5 + $0xa8] sm:$0xff]  ;;  %v253_v12 = vld [vmem:[%s806_s5 + $0xa0] sm:$0xff]  ;;  %s420_s4 = scalar_lea.vmem (%p786_p5), %s930_s3, %s569_s28 }
  0x1b   : > { %280 = vmatpush1.msra.mxu0 %v261_v4  ;;  %591 = vmatpush1.msra.mxu1 %v261_v4  ;;  %v252_v13 = vld [vmem:[%s806_s5 + $0x98] sm:$0xff]  ;;  %v251_v14 = vld [vmem:[%s806_s5 + $0x90] sm:$0xff]  ;;  %v250_v15 = vld [vmem:[%s806_s5 + $0x88] sm:$0xff] }
  0x1c   : > { %281 = vmatprep.subr.mxu0 %v260_v5  ;;  %576 = vmatprep.subr.mxu1 %v260_v5  ;;  %v249_v16 = vld [vmem:[%s806_s5 + $0x80] sm:$0xff]  ;;  %v248_v17 = vld [vmem:[%s806_s5 + $0x78] sm:$0xff]  ;;  %v247_v18 = vld [vmem:[%s806_s5 + $0x70] sm:$0xff] }
  0x1d   : > { %282 = vmatpush1.msra.mxu0 %v259_v6  ;;  %592 = vmatpush1.msra.mxu1 %v259_v6  ;;  %v246_v19 = vld [vmem:[%s806_s5 + $0x68] sm:$0xff]  ;;  %v245_v20 = vld [vmem:[%s806_s5 + $0x60] sm:$0xff]  ;;  %v244_v21 = vld [vmem:[%s806_s5 + $0x58] sm:$0xff] }
  0x1e   : > { %283 = vmatprep.subr.mxu0 %v258_v7  ;;  %577 = vmatprep.subr.mxu1 %v258_v7  ;;  %v243_v22 = vld [vmem:[%s806_s5 + $0x50] sm:$0xff]  ;;  %v242_v23 = vld [vmem:[%s806_s5 + $0x48] sm:$0xff]  ;;  %v241_v24 = vld [vmem:[%s806_s5 + $0x40] sm:$0xff] }
  0x1f   : > { %284 = vmatpush1.msra.mxu0 %v257_v8  ;;  %593 = vmatpush1.msra.mxu1 %v257_v8  ;;  %v240_v25 = vld [vmem:[%s806_s5 + $0x38] sm:$0xff]  ;;  %v239_v26 = vld [vmem:[%s806_s5 + $0x30] sm:$0xff]  ;;  %v238_v27 = vld [vmem:[%s806_s5 + $0x28] sm:$0xff] }
  0x20   : > { %285 = vmatprep.subr.mxu0 %v256_v9  ;;  %578 = vmatprep.subr.mxu1 %v256_v9  ;;  %v237_v28 = vld [vmem:[%s806_s5 + $0x20] sm:$0xff]  ;;  %v236_v29 = vld [vmem:[%s806_s5 + $0x18] sm:$0xff]  ;;  %v235_v30 = vld [vmem:[%s806_s5 + $0x10] sm:$0xff] }
  0x21   : > { %286 = vmatpush1.msra.mxu0 %v255_v10  ;;  %594 = vmatpush1.msra.mxu1 %v255_v10  ;;  %v234_v31 = vld [vmem:[%s806_s5 + $0x8] sm:$0xff]  ;;  %v233_v32 = vld [vmem:[%s806_s5] sm:$0xff]  ;;  %v227_v37 = vld [vmem:[%s843_s10 + $0x10] sm:$0xff] }
  0x22   : > { %287 = vmatprep.subr.mxu0 %v254_v11  ;;  %579 = vmatprep.subr.mxu1 %v254_v11  ;;  %v225_v33 = vld [vmem:[%s843_s10] sm:$0xff]  ;;  %v226_v35 = vld [vmem:[%s843_s10 + $0x8] sm:$0xff]  ;;  %v231_v38 = vld [vmem:[%s843_s10 + $0x30] sm:$0xff] }
  0x23   : > { %288 = vmatpush1.msra.mxu0 %v253_v12  ;;  %595 = vmatpush1.msra.mxu1 %v253_v12  ;;  %v229_v34 = vld [vmem:[%s843_s10 + $0x20] sm:$0xff]  ;;  %v230_v36 = vld [vmem:[%s843_s10 + $0x28] sm:$0xff]  ;;  %v228_v39 = vld [vmem:[%s843_s10 + $0x18] sm:$0xff] }
  0x24   : > { %289 = vmatprep.subr.mxu0 %v252_v13  ;;  %580 = vmatprep.subr.mxu1 %v252_v13  ;;  %v232_v40 = vld [vmem:[%s843_s10 + $0x38] sm:$0xff] }
  0x25   : > { %290 = vmatpush1.msra.mxu0 %v251_v14  ;;  %596 = vmatpush1.msra.mxu1 %v251_v14 }
  0x26   : > { %291 = vmatprep.subr.mxu0 %v250_v15  ;;  %581 = vmatprep.subr.mxu1 %v250_v15 }
  0x27   : > { %292 = vmatpush1.msra.mxu0 %v249_v16  ;;  %597 = vmatpush1.msra.mxu1 %v249_v16 }
  0x28   : > { %293 = vmatprep.subr.mxu0 %v248_v17  ;;  %582 = vmatprep.subr.mxu1 %v248_v17 }
  0x29   : > { %294 = vmatpush1.msra.mxu0 %v247_v18  ;;  %598 = vmatpush1.msra.mxu1 %v247_v18 }
  0x2a   : > { %295 = vmatprep.subr.mxu0 %v246_v19  ;;  %583 = vmatprep.subr.mxu1 %v246_v19 }
  0x2b   : > { %296 = vmatpush1.msra.mxu0 %v245_v20  ;;  %599 = vmatpush1.msra.mxu1 %v245_v20 }
  0x2c   : > { %297 = vmatprep.subr.mxu0 %v244_v21  ;;  %584 = vmatprep.subr.mxu1 %v244_v21 }
  0x2d   : > { %298 = vmatpush1.msra.mxu0 %v243_v22  ;;  %600 = vmatpush1.msra.mxu1 %v243_v22 }
  0x2e   : > { %299 = vmatprep.subr.mxu0 %v242_v23  ;;  %585 = vmatprep.subr.mxu1 %v242_v23 }
  0x2f   : > { %300 = vmatpush1.msra.mxu0 %v241_v24  ;;  %601 = vmatpush1.msra.mxu1 %v241_v24 }
  0x30   : > { %301 = vmatprep.subr.mxu0 %v240_v25  ;;  %586 = vmatprep.subr.mxu1 %v240_v25 }
  0x31   : > { %302 = vmatpush1.msra.mxu0 %v239_v26  ;;  %602 = vmatpush1.msra.mxu1 %v239_v26 }
  0x32   : > { %303 = vmatprep.subr.mxu0 %v238_v27  ;;  %587 = vmatprep.subr.mxu1 %v238_v27 }
  0x33   : > { %304 = vmatpush1.msra.mxu0 %v237_v28  ;;  %603 = vmatpush1.msra.mxu1 %v237_v28 }
  0x34   : > { %305 = vmatprep.subr.mxu0 %v236_v29  ;;  %588 = vmatprep.subr.mxu1 %v236_v29 }
  0x35   : > { %306 = vmatpush1.msra.mxu0 %v235_v30  ;;  %604 = vmatpush1.msra.mxu1 %v235_v30 }
  0x36   : > { %307 = vmatprep.subr.mxu0 %v234_v31  ;;  %589 = vmatprep.subr.mxu1 %v234_v31 }
  0x37   : > { %308 = vmatpush1.msra.mxu0 %v233_v32  ;;  %605 = vmatpush1.msra.mxu1 %v233_v32 }
  0x38   : > { %342 = vmatmul.mubr.f32.vlgmr.msra.gmra.mxu0 %v225_v33  ;;  %366 = vmatmul.mubr.f32.vlgmr.msra.gmra.mxu1 %v229_v34 }
  0x39   : > { %347 = vmatprep.mubr.f32.mxu0 %v719_v0  ;;  %371 = vmatprep.mubr.f32.mxu1 %v719_v0 }
  0x3c   : > { %348 = vmatmul.mubr.f32.gmra.mxu0 %v226_v35  ;;  %372 = vmatmul.mubr.f32.gmra.mxu1 %v230_v36 }
  0x3d   : > { %353 = vmatprep.mubr.f32.mxu0 %v719_v0  ;;  %377 = vmatprep.mubr.f32.mxu1 %v719_v0 }
  0x40   : > { %354 = vmatmul.mubr.f32.gmra.mxu0 %v227_v37  ;;  %378 = vmatmul.mubr.f32.gmra.mxu1 %v231_v38 }
  0x41   : > { %359 = vmatprep.mubr.f32.mxu0 %v719_v0  ;;  %383 = vmatprep.mubr.f32.mxu1 %v719_v0 }
  0x44   : > { %360 = vmatmul.mubr.f32.gmra.mxu0 %v228_v39  ;;  %384 = vmatmul.mubr.f32.gmra.mxu1 %v232_v40 }
  0xf8   : > { %v343_v48 = vpop.f32.mrf.mxu0  ;;  %v367_v49 = vpop.f32.mrf.mxu1 }
  0xf9   : > { %v344_v50 = vadd.f32 %v343_v48, %v270_v46  ;;  %v368_v51 = vadd.f32 %v367_v49, %v270_v46 }
  0xfa   : > { %v345_v52 = vpop.f32.mrf.mxu0  ;;  %v369_v53 = vpop.f32.mrf.mxu1 }
  0xfb   : > { %390 = vst [vmem:[%s865_s25] sm:$0xff] %v344_v50  ;;  %398 = vst [vmem:[%s865_s25 + $0x40] sm:$0xff] %v368_v51  ;;  %v346_v54 = vadd.f32 %v345_v52, %v274_v47  ;;  %v370_v55 = vadd.f32 %v369_v53, %v274_v47 }
  0xfc   : > { %v349_v56 = vpop.f32.mrf.mxu0  ;;  %v373_v57 = vpop.f32.mrf.mxu1 }
  0xfd   : > { %391 = vst [vmem:[%s865_s25 + $0x8] sm:$0xff] %v346_v54  ;;  %399 = vst [vmem:[%s865_s25 + $0x48] sm:$0xff] %v370_v55  ;;  %v350_v58 = vadd.f32 %v349_v56, %v270_v46  ;;  %v374_v59 = vadd.f32 %v373_v57, %v270_v46 }
  0xfe   : > { %v351_v60 = vpop.f32.mrf.mxu0  ;;  %v375_v61 = vpop.f32.mrf.mxu1 }
  0xff   : > { %392 = vst [vmem:[%s865_s25 + $0x10] sm:$0xff] %v350_v58  ;;  %400 = vst [vmem:[%s865_s25 + $0x50] sm:$0xff] %v374_v59  ;;  %v352_v62 = vadd.f32 %v351_v60, %v274_v47  ;;  %v376_v63 = vadd.f32 %v375_v61, %v274_v47 }
 0x100   : > { %v355_v0 = vpop.f32.mrf.mxu0  ;;  %v379_v1 = vpop.f32.mrf.mxu1 }
 0x101   : > { %393 = vst [vmem:[%s865_s25 + $0x18] sm:$0xff] %v352_v62  ;;  %401 = vst [vmem:[%s865_s25 + $0x58] sm:$0xff] %v376_v63  ;;  %v356_v2 = vadd.f32 %v355_v0, %v270_v46  ;;  %v380_v3 = vadd.f32 %v379_v1, %v270_v46 }
 0x102   : > { %v357_v4 = vpop.f32.mrf.mxu0  ;;  %v381_v5 = vpop.f32.mrf.mxu1  ;;  %v433_v16 = vld [vmem:[%s865_s25] sm:$0xff] (%p786_p5) }
 0x103   : > { %394 = vst [vmem:[%s865_s25 + $0x20] sm:$0xff] %v356_v2  ;;  %402 = vst [vmem:[%s865_s25 + $0x60] sm:$0xff] %v380_v3  ;;  %v358_v6 = vadd.f32 %v357_v4, %v274_v47  ;;  %v382_v7 = vadd.f32 %v381_v5, %v274_v47  ;;  %v449_v24 = vld [vmem:[%s865_s25 + $0x40] sm:$0xff] (%p786_p5) }
 0x104   : > { %v361_v8 = vpop.f32.mrf.mxu0  ;;  %v385_v9 = vpop.f32.mrf.mxu1  ;;  %v435_v17 = vld [vmem:[%s865_s25 + $0x8] sm:$0xff] (%p786_p5)  ;;  %434 = vst [vmem:[%s420_s4] sm:$0xff] (%p786_p5), %v433_v16  ;;  %450 = vst [vmem:[%s420_s4 + $0x80] sm:$0xff] (%p786_p5), %v449_v24 }
 0x105   : > { %395 = vst [vmem:[%s865_s25 + $0x28] sm:$0xff] %v358_v6  ;;  %403 = vst [vmem:[%s865_s25 + $0x68] sm:$0xff] %v382_v7  ;;  %v362_v10 = vadd.f32 %v361_v8, %v270_v46  ;;  %v386_v11 = vadd.f32 %v385_v9, %v270_v46  ;;  %412 = sbr.rel (!%p786_p5) target bundleno = 275 (0x113), region = 36  ;;  %v451_v25 = vld [vmem:[%s865_s25 + $0x48] sm:$0xff] (%p786_p5) }
 0x106   : > { %v363_v12 = vpop.f32.mrf.mxu0  ;;  %v387_v13 = vpop.f32.mrf.mxu1  ;;  %v437_v18 = vld [vmem:[%s865_s25 + $0x10] sm:$0xff] (%p786_p5)  ;;  %436 = vst [vmem:[%s420_s4 + $0x8] sm:$0xff] (%p786_p5), %v435_v17  ;;  %452 = vst [vmem:[%s420_s4 + $0x88] sm:$0xff] (%p786_p5), %v451_v25 }
 0x107   : > { %396 = vst [vmem:[%s865_s25 + $0x30] sm:$0xff] %v362_v10  ;;  %404 = vst [vmem:[%s865_s25 + $0x70] sm:$0xff] %v386_v11  ;;  %v364_v14 = vadd.f32 %v363_v12, %v274_v47  ;;  %v388_v15 = vadd.f32 %v387_v13, %v274_v47  ;;  %v453_v26 = vld [vmem:[%s865_s25 + $0x50] sm:$0xff] (%p786_p5) }
 0x108   : > { %v439_v19 = vld [vmem:[%s865_s25 + $0x18] sm:$0xff] (%p786_p5)  ;;  %438 = vst [vmem:[%s420_s4 + $0x20] sm:$0xff] (%p786_p5), %v437_v18  ;;  %454 = vst [vmem:[%s420_s4 + $0xa0] sm:$0xff] (%p786_p5), %v453_v26 }
 0x109   : > { %397 = vst [vmem:[%s865_s25 + $0x38] sm:$0xff] %v364_v14  ;;  %405 = vst [vmem:[%s865_s25 + $0x78] sm:$0xff] %v388_v15  ;;  %v455_v27 = vld [vmem:[%s865_s25 + $0x58] sm:$0xff] (%p786_p5) }
 0x10a   : > { %v441_v20 = vld [vmem:[%s865_s25 + $0x20] sm:$0xff]  ;;  %440 = vst [vmem:[%s420_s4 + $0x28] sm:$0xff] %v439_v19  ;;  %456 = vst [vmem:[%s420_s4 + $0xa8] sm:$0xff] %v455_v27 }
 0x10b   : > { %442 = vst [vmem:[%s420_s4 + $0x40] sm:$0xff] %v441_v20  ;;  %v457_v28 = vld [vmem:[%s865_s25 + $0x60] sm:$0xff] }
 0x10c   : > { %v443_v21 = vld [vmem:[%s865_s25 + $0x28] sm:$0xff]  ;;  %458 = vst [vmem:[%s420_s4 + $0xc0] sm:$0xff] %v457_v28 }
 0x10d   : > { %444 = vst [vmem:[%s420_s4 + $0x48] sm:$0xff] %v443_v21  ;;  %v459_v29 = vld [vmem:[%s865_s25 + $0x68] sm:$0xff] }
 0x10e   : > { %v445_v22 = vld [vmem:[%s865_s25 + $0x30] sm:$0xff]  ;;  %460 = vst [vmem:[%s420_s4 + $0xc8] sm:$0xff] %v459_v29 }
 0x10f   : > { %446 = vst [vmem:[%s420_s4 + $0x60] sm:$0xff] %v445_v22  ;;  %v461_v30 = vld [vmem:[%s865_s25 + $0x70] sm:$0xff] }
 0x110   : > { %v447_v23 = vld [vmem:[%s865_s25 + $0x38] sm:$0xff]  ;;  %462 = vst [vmem:[%s420_s4 + $0xe0] sm:$0xff] %v461_v30 }
 0x111   : > { %448 = vst [vmem:[%s420_s4 + $0x68] sm:$0xff] %v447_v23  ;;  %v463_v31 = vld [vmem:[%s865_s25 + $0x78] sm:$0xff] }
 0x112   : > { %464 = vst [vmem:[%s420_s4 + $0xe8] sm:$0xff] %v463_v31 }
 0x113 PF: > { %s13_s18 = sadd.s32 1, %s717_s18   ;;  %s932_s12 = smov %s697_s13 }
 0x114   : > { %p10_p11 = scmp.ge.s32.totalorder %s13_s18, 6   ;;  %s933_s13 = smov %s797_s27 }
 0x115   : > { %s934_s14 = smov %s709_s16  ;;  %s935_s15 = smov %s713_s17 }
 0x116   : > { %s936_s16 = smov %s939_s19  ;;  %s937_s17 = smov %s943_s20 }
 0x117   :  { %12 = sbr.rel (!%p10_p11) target bundleno = 4 (0x4), region = 88 }

// kernel: up_block_forward.7
= control target key start
LH: loop header
LB: loop body
LE: loop exit
PB: predicated region body
PF: predicated region fallthrough
CT: control target
= control target key end

     0   :  { %s568_s12 = smov 0   ;;  %s570_s13 = smov 0   ;;  %s743_s0 = inlined_call_operand.vmem [shape: f32[2,16,16,128], index: 0, kind: input, shape index: {}]   ;;  %s744_s1 = inlined_call_operand.vmem [shape: f32[1,128], index: 1, kind: input, shape index: {}]   ;;  %s745_s2 = inlined_call_operand.vmem [shape: f32[1,128], index: 2, kind: input, shape index: {}]   ;;  %s746_s3 = inlined_call_operand.vmem [shape: f32[2,16,16,128], index: 3, kind: output, shape index: {}]  }
   0x1   :  { %s572_s14 = smov 0  }
   0x2 LB: > { %s25_s15 = sadd.s32 1, %s542_s13  ;;  %p489_p0 = scmp.ge.s32.totalorder %s546_s14, 1  ;;  %s546_s14 = sphi %s572_s14, %s13_s14   ;;  %s542_s13 = sphi %s570_s13, %s748_s13   ;;  %s538_s12 = sphi %s568_s12, %s747_s12  }
   0x3   : > { %p27_p1 = scmp.ge.s32.totalorder %s25_s15, 2  ;;  %p159_p2 = scmp.lt.s32.totalorder %s546_s14, 3 }
   0x5   : > { %s750_s15 = smov (%p27_p1, %s25_s15), 0  ;;  %p160_p3 = pnand %p489_p0, %p159_p2 }
   0x6   : > { %p194_p4 = scmp.lt.s32.totalorder (!%p160_p3), %s538_s12, 1 }
   0x7   : > { %163 = sbr.rel (%p160_p3) target bundleno = 45 (0x2d), region = 32 }
   0xc   : > { %s752_s12 = smov (!%p194_p4, %s538_s12), 1  ;;  %v589_v0 = vld [vmem:[%s744_s1] ss:$0 sm:$0xff] }
   0xd   : > { %s498_s16 = sshll.u32 %s752_s12, 8  ;;  %v599_v1 = vld [vmem:[%s745_s2] ss:$0 sm:$0xff] }
   0xe   : > { %s594_s21 = scalar_lea.vmem %s743_s0, %s498_s16  ;;  %s622_s26 = scalar_lea.vmem %s746_s3, %s498_s16 }
   0xf   : > { %v215_v2 = vld [vmem:[%s594_s21] sm:$0xff]  ;;  %v216_v3 = vld [vmem:[%s594_s21 + $0x8] sm:$0xff]  ;;  %v217_v4 = vld [vmem:[%s594_s21 + $0x10] sm:$0xff] }
  0x10   : > { %v254_v5 = vmul.f32 %v589_v0, %v215_v2  ;;  %v255_v6 = vmul.f32 %v589_v0, %v216_v3  ;;  %v256_v7 = vmul.f32 %v589_v0, %v217_v4  ;;  %v218_v8 = vld [vmem:[%s594_s21 + $0x18] sm:$0xff]  ;;  %v219_v9 = vld [vmem:[%s594_s21 + $0x20] sm:$0xff]  ;;  %v220_v10 = vld [vmem:[%s594_s21 + $0x28] sm:$0xff] }
  0x11   : > { %v257_v11 = vmul.f32 %v589_v0, %v218_v8  ;;  %v258_v12 = vmul.f32 %v589_v0, %v219_v9  ;;  %v259_v13 = vmul.f32 %v589_v0, %v220_v10  ;;  %v221_v14 = vld [vmem:[%s594_s21 + $0x30] sm:$0xff]  ;;  %v222_v15 = vld [vmem:[%s594_s21 + $0x38] sm:$0xff]  ;;  %v223_v24 = vld [vmem:[%s594_s21 + $0x40] sm:$0xff] }
  0x12   : > { %v293_v16 = vadd.f32 %v599_v1, %v254_v5  ;;  %v294_v17 = vadd.f32 %v599_v1, %v255_v6  ;;  %v295_v18 = vadd.f32 %v599_v1, %v256_v7  ;;  %v260_v19 = vmul.f32 %v589_v0, %v221_v14  ;;  %v224_v25 = vld [vmem:[%s594_s21 + $0x48] sm:$0xff]  ;;  %v225_v26 = vld [vmem:[%s594_s21 + $0x50] sm:$0xff]  ;;  %v226_v31 = vld [vmem:[%s594_s21 + $0x58] sm:$0xff] }
  0x13   : > { %v296_v20 = vadd.f32 %v599_v1, %v257_v11  ;;  %v297_v21 = vadd.f32 %v599_v1, %v258_v12  ;;  %v298_v22 = vadd.f32 %v599_v1, %v259_v13  ;;  %v261_v23 = vmul.f32 %v589_v0, %v222_v15  ;;  %v227_v32 = vld [vmem:[%s594_s21 + $0x60] sm:$0xff]  ;;  %v228_v33 = vld [vmem:[%s594_s21 + $0x68] sm:$0xff]  ;;  %v229_v38 = vld [vmem:[%s594_s21 + $0x70] sm:$0xff] }
  0x14   : > { %v325_v27 = vmax.f32 %v293_v16, 0.0  ;;  %v326_v28 = vmax.f32 %v294_v17, 0.0  ;;  %v327_v29 = vmax.f32 %v295_v18, 0.0  ;;  %v299_v30 = vadd.f32 %v599_v1, %v260_v19  ;;  %v230_v43 = vld [vmem:[%s594_s21 + $0x78] sm:$0xff]  ;;  %v231_v56 = vld [vmem:[%s594_s21 + $0x80] sm:$0xff]  ;;  %v232_v57 = vld [vmem:[%s594_s21 + $0x88] sm:$0xff] }
  0x15   : > { %v328_v34 = vmax.f32 %v296_v20, 0.0  ;;  %v329_v35 = vmax.f32 %v297_v21, 0.0  ;;  %v330_v36 = vmax.f32 %v298_v22, 0.0  ;;  %v300_v37 = vadd.f32 %v599_v1, %v261_v23  ;;  %v233_v58 = vld [vmem:[%s594_s21 + $0x90] sm:$0xff]  ;;  %v234_v63 = vld [vmem:[%s594_s21 + $0x98] sm:$0xff]  ;;  %v235_v2 = vld [vmem:[%s594_s21 + $0xa0] sm:$0xff] }
  0x16   : > { %357 = vst [vmem:[%s622_s26] sm:$0xff] %v325_v27  ;;  %358 = vst [vmem:[%s622_s26 + $0x8] sm:$0xff] %v326_v28  ;;  %v331_v39 = vmax.f32 %v299_v30, 0.0  ;;  %v262_v40 = vmul.f32 %v589_v0, %v223_v24  ;;  %v263_v41 = vmul.f32 %v589_v0, %v224_v25  ;;  %v264_v42 = vmul.f32 %v589_v0, %v225_v26  ;;  %v236_v3 = vld [vmem:[%s594_s21 + $0xa8] sm:$0xff]  ;;  %v237_v8 = vld [vmem:[%s594_s21 + $0xb0] sm:$0xff] }
  0x17   : > { %359 = vst [vmem:[%s622_s26 + $0x10] sm:$0xff] %v327_v29  ;;  %360 = vst [vmem:[%s622_s26 + $0x18] sm:$0xff] %v328_v34  ;;  %v332_v44 = vmax.f32 %v300_v37, 0.0  ;;  %v265_v45 = vmul.f32 %v589_v0, %v226_v31  ;;  %v266_v46 = vmul.f32 %v589_v0, %v227_v32  ;;  %v267_v47 = vmul.f32 %v589_v0, %v228_v33  ;;  %v238_v13 = vld [vmem:[%s594_s21 + $0xb8] sm:$0xff]  ;;  %v239_v26 = vld [vmem:[%s594_s21 + $0xc0] sm:$0xff] }
  0x18   : > { %361 = vst [vmem:[%s622_s26 + $0x20] sm:$0xff] %v329_v35  ;;  %362 = vst [vmem:[%s622_s26 + $0x28] sm:$0xff] %v330_v36  ;;  %v301_v48 = vadd.f32 %v599_v1, %v262_v40  ;;  %v302_v49 = vadd.f32 %v599_v1, %v263_v41  ;;  %v303_v50 = vadd.f32 %v599_v1, %v264_v42  ;;  %v240_v27 = vld [vmem:[%s594_s21 + $0xc8] sm:$0xff]  ;;  %v241_v28 = vld [vmem:[%s594_s21 + $0xd0] sm:$0xff] }
  0x19   : > { %363 = vst [vmem:[%s622_s26 + $0x30] sm:$0xff] %v331_v39  ;;  %v268_v51 = vmul.f32 %v589_v0, %v229_v38  ;;  %364 = vst [vmem:[%s622_s26 + $0x38] sm:$0xff] %v332_v44  ;;  %v304_v52 = vadd.f32 %v599_v1, %v265_v45  ;;  %v305_v53 = vadd.f32 %v599_v1, %v266_v46  ;;  %v242_v33 = vld [vmem:[%s594_s21 + $0xd8] sm:$0xff]  ;;  %v243_v34 = vld [vmem:[%s594_s21 + $0xe0] sm:$0xff] }
  0x1a   : > { %v306_v54 = vadd.f32 %v599_v1, %v267_v47  ;;  %v269_v55 = vmul.f32 %v589_v0, %v230_v43  ;;  %v333_v59 = vmax.f32 %v301_v48, 0.0  ;;  %v334_v60 = vmax.f32 %v302_v49, 0.0  ;;  %v244_v35 = vld [vmem:[%s594_s21 + $0xe8] sm:$0xff]  ;;  %v245_v40 = vld [vmem:[%s594_s21 + $0xf0] sm:$0xff]  ;;  %v246_v45 = vld [vmem:[%s594_s21 + $0xf8] sm:$0xff] }
  0x1b   : > { %v335_v61 = vmax.f32 %v303_v50, 0.0  ;;  %v307_v62 = vadd.f32 %v599_v1, %v268_v51  ;;  %v336_v4 = vmax.f32 %v304_v52, 0.0  ;;  %v337_v5 = vmax.f32 %v305_v53, 0.0 }
  0x1c   : > { %v338_v6 = vmax.f32 %v306_v54, 0.0  ;;  %v308_v7 = vadd.f32 %v599_v1, %v269_v55  ;;  %365 = vst [vmem:[%s622_s26 + $0x40] sm:$0xff] %v333_v59  ;;  %366 = vst [vmem:[%s622_s26 + $0x48] sm:$0xff] %v334_v60  ;;  %v270_v10 = vmul.f32 %v589_v0, %v231_v56  ;;  %v271_v11 = vmul.f32 %v589_v0, %v232_v57 }
  0x1d   : > { %367 = vst [vmem:[%s622_s26 + $0x50] sm:$0xff] %v335_v61  ;;  %v339_v9 = vmax.f32 %v307_v62, 0.0  ;;  %v272_v12 = vmul.f32 %v589_v0, %v233_v58  ;;  %368 = vst [vmem:[%s622_s26 + $0x58] sm:$0xff] %v336_v4  ;;  %v273_v15 = vmul.f32 %v589_v0, %v234_v63  ;;  %v274_v16 = vmul.f32 %v589_v0, %v235_v2 }
  0x1e   : > { %369 = vst [vmem:[%s622_s26 + $0x60] sm:$0xff] %v337_v5  ;;  %370 = vst [vmem:[%s622_s26 + $0x68] sm:$0xff] %v338_v6  ;;  %v340_v14 = vmax.f32 %v308_v7, 0.0  ;;  %v275_v17 = vmul.f32 %v589_v0, %v236_v3  ;;  %v309_v18 = vadd.f32 %v599_v1, %v270_v10  ;;  %v310_v19 = vadd.f32 %v599_v1, %v271_v11 }
  0x1f   : > { %371 = vst [vmem:[%s622_s26 + $0x70] sm:$0xff] %v339_v9  ;;  %v311_v20 = vadd.f32 %v599_v1, %v272_v12  ;;  %v276_v21 = vmul.f32 %v589_v0, %v237_v8  ;;  %v312_v22 = vadd.f32 %v599_v1, %v273_v15  ;;  %v313_v23 = vadd.f32 %v599_v1, %v274_v16 }
  0x20   : > { %372 = vst [vmem:[%s622_s26 + $0x78] sm:$0xff] %v340_v14  ;;  %v314_v24 = vadd.f32 %v599_v1, %v275_v17  ;;  %v277_v25 = vmul.f32 %v589_v0, %v238_v13  ;;  %v341_v29 = vmax.f32 %v309_v18, 0.0  ;;  %v342_v30 = vmax.f32 %v310_v19, 0.0 }
  0x21   : > { %v343_v31 = vmax.f32 %v311_v20, 0.0  ;;  %v315_v32 = vadd.f32 %v599_v1, %v276_v21  ;;  %v344_v36 = vmax.f32 %v312_v22, 0.0  ;;  %v345_v37 = vmax.f32 %v313_v23, 0.0 }
  0x22   : > { %v346_v38 = vmax.f32 %v314_v24, 0.0  ;;  %v316_v39 = vadd.f32 %v599_v1, %v277_v25  ;;  %373 = vst [vmem:[%s622_s26 + $0x80] sm:$0xff] %v341_v29  ;;  %374 = vst [vmem:[%s622_s26 + $0x88] sm:$0xff] %v342_v30  ;;  %v278_v42 = vmul.f32 %v589_v0, %v239_v26  ;;  %v279_v43 = vmul.f32 %v589_v0, %v240_v27 }
  0x23   : > { %375 = vst [vmem:[%s622_s26 + $0x90] sm:$0xff] %v343_v31  ;;  %v347_v41 = vmax.f32 %v315_v32, 0.0  ;;  %v280_v44 = vmul.f32 %v589_v0, %v241_v28  ;;  %376 = vst [vmem:[%s622_s26 + $0x98] sm:$0xff] %v344_v36  ;;  %v281_v47 = vmul.f32 %v589_v0, %v242_v33  ;;  %v282_v48 = vmul.f32 %v589_v0, %v243_v34 }
  0x24   : > { %377 = vst [vmem:[%s622_s26 + $0xa0] sm:$0xff] %v345_v37  ;;  %378 = vst [vmem:[%s622_s26 + $0xa8] sm:$0xff] %v346_v38  ;;  %v348_v46 = vmax.f32 %v316_v39, 0.0  ;;  %v283_v49 = vmul.f32 %v589_v0, %v244_v35  ;;  %v317_v50 = vadd.f32 %v599_v1, %v278_v42  ;;  %v318_v51 = vadd.f32 %v599_v1, %v279_v43 }
  0x25   : > { %379 = vst [vmem:[%s622_s26 + $0xb0] sm:$0xff] %v347_v41  ;;  %v319_v52 = vadd.f32 %v599_v1, %v280_v44  ;;  %v284_v53 = vmul.f32 %v589_v0, %v245_v40  ;;  %v320_v54 = vadd.f32 %v599_v1, %v281_v47  ;;  %v321_v55 = vadd.f32 %v599_v1, %v282_v48 }
  0x26   : > { %380 = vst [vmem:[%s622_s26 + $0xb8] sm:$0xff] %v348_v46  ;;  %v322_v56 = vadd.f32 %v599_v1, %v283_v49  ;;  %v285_v57 = vmul.f32 %v589_v0, %v246_v45  ;;  %v349_v58 = vmax.f32 %v317_v50, 0.0  ;;  %v350_v59 = vmax.f32 %v318_v51, 0.0 }
  0x27   : > { %v351_v60 = vmax.f32 %v319_v52, 0.0  ;;  %v323_v61 = vadd.f32 %v599_v1, %v284_v53  ;;  %v352_v62 = vmax.f32 %v320_v54, 0.0  ;;  %v353_v63 = vmax.f32 %v321_v55, 0.0 }
  0x28   : > { %v354_v2 = vmax.f32 %v322_v56, 0.0  ;;  %v324_v3 = vadd.f32 %v599_v1, %v285_v57  ;;  %381 = vst [vmem:[%s622_s26 + $0xc0] sm:$0xff] %v349_v58  ;;  %382 = vst [vmem:[%s622_s26 + $0xc8] sm:$0xff] %v350_v59 }
  0x29   : > { %383 = vst [vmem:[%s622_s26 + $0xd0] sm:$0xff] %v351_v60  ;;  %v355_v4 = vmax.f32 %v323_v61, 0.0  ;;  %384 = vst [vmem:[%s622_s26 + $0xd8] sm:$0xff] %v352_v62 }
  0x2a   : > { %385 = vst [vmem:[%s622_s26 + $0xe0] sm:$0xff] %v353_v63  ;;  %386 = vst [vmem:[%s622_s26 + $0xe8] sm:$0xff] %v354_v2  ;;  %v356_v0 = vmax.f32 %v324_v3, 0.0 }
  0x2b   : > { %387 = vst [vmem:[%s622_s26 + $0xf0] sm:$0xff] %v355_v4 }
  0x2c   : > { %388 = vst [vmem:[%s622_s26 + $0xf8] sm:$0xff] %v356_v0 }
  0x2d PF: > { %s13_s14 = sadd.s32 1, %s546_s14   ;;  %s747_s12 = smov %s542_s13 }
  0x2e   : > { %p10_p5 = scmp.ge.s32.totalorder %s13_s14, 4   ;;  %s748_s13 = smov %s750_s15 }
  0x30   :  { %12 = sbr.rel (!%p10_p5) target bundleno = 2 (0x2), region = 62 }

// kernel: up_block_forward.6
= control target key start
LH: loop header
LB: loop body
LE: loop exit
PB: predicated region body
PF: predicated region fallthrough
CT: control target
= control target key end

     0   :  { %s5379_s21 = smov 0   ;;  %s5381_s22 = smov 0   ;;  %s7443_s0 = inlined_call_operand.vmem [shape: f32[2,1,18,18,128], index: 0, kind: input, shape index: {}]   ;;  %s7444_s1 = inlined_call_operand.vmem [shape: f32[3,3,128,128], index: 1, kind: input, shape index: {}]   ;;  %s7445_s2 = inlined_call_operand.vmem [shape: f32[1,128], index: 2, kind: input, shape index: {}]   ;;  %s7446_s3 = inlined_call_operand.vmem [shape: f32[1,128], index: 3, kind: input, shape index: {}]   ;;  %s7447_s4 = inlined_call_operand.vmem [shape: f32[1,128], index: 4, kind: input, shape index: {}]   ;;  %s7448_s5 = inlined_call_operand.vmem [shape: f32[2,16,16,128], index: 5, kind: output, shape index: {0}]   ;;  %s7449_s6 = inlined_call_operand.vmem [shape: f32[2,1,2,128], index: 6, kind: output, shape index: {1}]  }
   0x1   :  { %s5383_s23 = smov 0  }
   0x2 LB: > { %s29_s24 = sadd.s32 1, %s5337_s22  ;;  %p3922_p0 = scmp.ge.s32.totalorder %s5341_s23, 1  ;;  %s5341_s23 = sphi %s5383_s23, %s17_s23   ;;  %s5337_s22 = sphi %s5381_s22, %s7812_s22   ;;  %s5333_s21 = sphi %s5379_s21, %s7811_s21  }
   0x3   : > { %p31_p1 = scmp.ge.s32.totalorder %s29_s24, 2  ;;  %p237_p2 = scmp.lt.s32.totalorder %s5341_s23, 3 }
   0x5   : > { %s7814_s24 = smov (%p31_p1, %s29_s24), 0  ;;  %p238_p3 = pnand %p3922_p0, %p237_p2 }
   0x7   : > { %241 = sbr.rel (%p238_p3) target bundleno = 567 (0x237), region = 40 }
   0xc   : > { %v3944_v0 = vld [vmem:[%s7444_s1 + $0xf8] sm:$0xff]  ;;  %v3943_v1 = vld [vmem:[%s7444_s1 + $0xf0] sm:$0xff]  ;;  %p283_p4 = scmp.lt.s32.totalorder %s5333_s21, 1  ;;  %v559_v2 = vlaneseq  ;;  %v3942_v3 = vld [vmem:[%s7444_s1 + $0xe8] sm:$0xff]  ;;  %vm957_vm0 = vcmask 1046528   ;;  %vm1537_vm3 = vcmask 1045504  }
   0xd   : > { %5259 = vmatprep.subr.mxu1 %v3944_v0  ;;  %4539 = vmatprep.subr.mxu0 %v3944_v0  ;;  %v3941_v5 = vld [vmem:[%s7444_s1 + $0xe0] sm:$0xff]  ;;  %v3940_v7 = vld [vmem:[%s7444_s1 + $0xd8] sm:$0xff]  ;;  %v3939_v13 = vld [vmem:[%s7444_s1 + $0xd0] sm:$0xff] }
   0xe   : > { %5275 = vmatpush3.msra.mxu1 %v3944_v0  ;;  %4540 = vmatpush3.msra.mxu0 %v3944_v0  ;;  %s7816_s21 = smov (!%p283_p4, %s5333_s21), 1  ;;  %v5408_v4 = vshrl.u32 %v559_v2, 7  ;;  %v5417_v6 = vld [vmem:[%s7446_s3] ss:$0 sm:$0xff]  ;;  %v3938_v23 = vld [vmem:[%s7444_s1 + $0xc8] sm:$0xff]  ;;  %v3936_v40 = vld [vmem:[%s7444_s1 + $0xb8] sm:$0xff] }
   0xf   : > { %5260 = vmatprep.subr.mxu1 %v3943_v1  ;;  %4541 = vmatprep.subr.mxu0 %v3943_v1  ;;  %s5291_s9 = smul.u32 432, %s7816_s21  ;;  %v5430_v8 = vld [vmem:[%s7447_s4] ss:$0 sm:$0xff]  ;;  %v3935_v50 = vld [vmem:[%s7444_s1 + $0xb0] sm:$0xff]  ;;  %v3934_v63 = vld [vmem:[%s7444_s1 + $0xa8] sm:$0xff]  ;;  %s4106_s10 = sshll.u32 %s7816_s21, 8 }
  0x10   : > { %5276 = vmatpush3.msra.mxu1 %v3943_v1  ;;  %4542 = vmatpush3.msra.mxu0 %v3943_v1  ;;  %v5436_v12 = vadd.s32 16, %v5408_v4  ;;  %vm617_vm1 = vcmp.ge.s32.totalorder %v5408_v4, 1  ;;  %v3937_v31 = vld [vmem:[%s7444_s1 + $0xc0] sm:$0xff]  ;;  %s7283_s15 = scalar_lea.vmem %s7448_s5, %s4106_s10  ;;  %s3926_s17 = sshll.u32 %s7816_s21, 1 }
  0x11   : > { %5261 = vmatprep.subr.mxu1 %v3942_v3  ;;  %4543 = vmatprep.subr.mxu0 %v3942_v3  ;;  %s5425_s16 = scalar_lea.vmem %s7443_s0, %s5291_s9  ;;  %s309_s20 = scalar_lea.vmem %s7449_s6, %s3926_s17 }
  0x12   : > { %5277 = vmatpush3.msra.mxu1 %v3942_v3  ;;  %4544 = vmatpush3.msra.mxu0 %v3942_v3  ;;  %v334_v9 = vld [vmem:[%s5425_s16 + $0xc0] sm:$0xff]  ;;  %v335_v10 = vld [vmem:[%s5425_s16 + $0xc8] sm:$0xff]  ;;  %v336_v11 = vld [vmem:[%s5425_s16 + $0xd0] sm:$0x3]  ;;  %vm676_vm2 = vcmp.le.s32.totalorder %v5436_v12, 16 }
  0x13   : > { %5262 = vmatprep.subr.mxu1 %v3941_v5  ;;  %4545 = vmatprep.subr.mxu0 %v3941_v5  ;;  %v395_v14 = vmul.f32 %v5417_v6, %v334_v9  ;;  %v396_v15 = vmul.f32 %v5417_v6, %v335_v10  ;;  %v397_v16 = vmul.f32 %v5417_v6, %v336_v11  ;;  %v337_v17 = vld [vmem:[%s5425_s16 + $0xd8] sm:$0xff]  ;;  %v338_v18 = vld [vmem:[%s5425_s16 + $0xe0] sm:$0xff]  ;;  %v339_v27 = vld [vmem:[%s5425_s16 + $0xe8] sm:$0x3] }
  0x14   : > { %5278 = vmatpush3.msra.mxu1 %v3941_v5  ;;  %4546 = vmatpush3.msra.mxu0 %v3941_v5  ;;  %v398_v19 = vmul.f32 %v5417_v6, %v337_v17  ;;  %v399_v20 = vmul.f32 %v5417_v6, %v338_v18  ;;  %v313_v21 = vld [vmem:[%s5425_s16 + $0x18] sm:$0xff]  ;;  %v314_v22 = vld [vmem:[%s5425_s16 + $0x20] sm:$0xff]  ;;  %v400_v39 = vmul.f32 %v5417_v6, %v339_v27  ;;  %v315_v45 = vld [vmem:[%s5425_s16 + $0x28] sm:$0x3] }
  0x15   : > { %5263 = vmatprep.subr.mxu1 %v3940_v7  ;;  %4547 = vmatprep.subr.mxu0 %v3940_v7  ;;  %v456_v24 = vadd.f32 %v5430_v8, %v395_v14  ;;  %v457_v25 = vadd.f32 %v5430_v8, %v396_v15  ;;  %v458_v26 = vadd.f32 %v5430_v8, %v397_v16  ;;  %v340_v55 = vld [vmem:[%s5425_s16 + $0xf0] sm:$0xff]  ;;  %v341_v56 = vld [vmem:[%s5425_s16 + $0xf8] sm:$0xff]  ;;  %v342_v62 = vld [vmem:[%s5425_s16 + $0x100] sm:$0x3] }
  0x16   : > { %5279 = vmatpush3.msra.mxu1 %v3940_v7  ;;  %4548 = vmatpush3.msra.mxu0 %v3940_v7  ;;  %v459_v28 = vadd.f32 %v5430_v8, %v398_v19  ;;  %v460_v29 = vadd.f32 %v5430_v8, %v399_v20  ;;  %v374_v30 = vmul.f32 %v5417_v6, %v313_v21  ;;  %v316_v60 = vld [vmem:[%s5425_s16 + $0x30] sm:$0xff]  ;;  %v317_v61 = vld [vmem:[%s5425_s16 + $0x38] sm:$0xff]  ;;  %v3933_v11 = vld [vmem:[%s7444_s1 + $0xa0] sm:$0xff] }
  0x17   : > { %5264 = vmatprep.subr.mxu1 %v3939_v13  ;;  %4549 = vmatprep.subr.mxu0 %v3939_v13  ;;  %v5465_v32 = vmax.f32 %v456_v24, 0.0  ;;  %v5467_v33 = vmax.f32 %v457_v25, 0.0  ;;  %v512_v34 = vmax.f32 %v458_v26, 0.0  ;;  %v375_v35 = vmul.f32 %v5417_v6, %v314_v22  ;;  %v3932_v21 = vld [vmem:[%s7444_s1 + $0x98] sm:$0xff]  ;;  %v318_v25 = vld [vmem:[%s5425_s16 + $0x40] sm:$0x3] }
  0x18   : > { %5280 = vmatpush3.msra.mxu1 %v3939_v13  ;;  %4550 = vmatpush3.msra.mxu0 %v3939_v13  ;;  %v5470_v36 = vmax.f32 %v459_v28, 0.0  ;;  %v5472_v37 = vmax.f32 %v460_v29, 0.0  ;;  %v435_v38 = vadd.f32 %v5430_v8, %v374_v30  ;;  %v461_v54 = vadd.f32 %v5430_v8, %v400_v39  ;;  %v343_v26 = vld [vmem:[%s5425_s16 + $0x108] sm:$0xff] }
  0x19   : > { %5265 = vmatprep.subr.mxu1 %v3938_v23  ;;  %4551 = vmatprep.subr.mxu0 %v3938_v23  ;;  %v5482_v41 = vsel %vm617_vm1, %v5465_v32, 0.0  ;;  %v999_v42 = vrot.slane %v5467_v33, 1  ;;  %v5487_v43 = vsel %vm676_vm2, %v512_v34, 0.0  ;;  %v436_v44 = vadd.f32 %v5430_v8, %v375_v35 }
  0x1a   : > { %5281 = vmatpush3.msra.mxu1 %v3938_v23  ;;  %4552 = vmatpush3.msra.mxu0 %v3938_v23  ;;  %v998_v46 = vrot.slane %v5482_v41, 1  ;;  %v1001_v47 = vrot.slane %v5487_v43, 1  ;;  %v5496_v48 = vsel %vm617_vm1, %v5470_v36, 0.0  ;;  %v1004_v49 = vrot.slane %v5472_v37, 1 }
  0x1b   : > { %5266 = vmatprep.subr.mxu1 %v3937_v31  ;;  %4553 = vmatprep.subr.mxu0 %v3937_v31  ;;  %v1003_v51 = vrot.slane %v5496_v48, 1  ;;  %v5503_v52 = vmax.f32 %v435_v38, 0.0  ;;  %v5505_v53 = vmax.f32 %v436_v44, 0.0  ;;  %v376_v59 = vmul.f32 %v5417_v6, %v315_v45  ;;  %v344_v45 = vld [vmem:[%s5425_s16 + $0x110] sm:$0xff] }
  0x1c   : > { %5282 = vmatpush3.msra.mxu1 %v3937_v31  ;;  %4554 = vmatpush3.msra.mxu0 %v3937_v31  ;;  %v5511_v57 = vsel %vm957_vm0, %v998_v46, %v999_v42  ;;  %v5514_v58 = vsel %vm957_vm0, %v999_v42, %v1001_v47  ;;  %v515_v3 = vmax.f32 %v461_v54, 0.0  ;;  %v401_v9 = vmul.f32 %v5417_v6, %v340_v55  ;;  %v3931_v31 = vld [vmem:[%s7444_s1 + $0x90] sm:$0xff]  ;;  %v3930_v47 = vld [vmem:[%s7444_s1 + $0x88] sm:$0xff] }
  0x1d   : > { %5267 = vmatprep.subr.mxu1 %v3936_v40  ;;  %4555 = vmatprep.subr.mxu0 %v3936_v40  ;;  %7564 = vst [vmem:[#allocation2_spill] sm:$0xff] %v5511_v57  ;;  %7565 = vst [vmem:[#allocation3_spill] sm:$0xff] %v5514_v58  ;;  %v5524_v0 = vsel %vm957_vm0, %v1003_v51, %v1004_v49  ;;  %v5529_v1 = vsel %vm617_vm1, %v5503_v52, 0.0  ;;  %v964_v2 = vrot.slane %v5505_v53, 1  ;;  %v319_v55 = vld [vmem:[%s5425_s16 + $0x48] sm:$0xff] }
  0x1e   : > { %5283 = vmatpush3.msra.mxu1 %v3936_v40  ;;  %4556 = vmatpush3.msra.mxu0 %v3936_v40  ;;  %7566 = vst [vmem:[#allocation4_spill] sm:$0xff] %v5524_v0  ;;  %v963_v5 = vrot.slane %v5529_v1, 1  ;;  %v437_v7 = vadd.f32 %v5430_v8, %v376_v59  ;;  %v402_v10 = vmul.f32 %v5417_v6, %v341_v56  ;;  %v5541_v13 = vsel %vm676_vm2, %v515_v3, 0.0  ;;  %v320_v56 = vld [vmem:[%s5425_s16 + $0x50] sm:$0xff] }
  0x1f   : > { %5268 = vmatprep.subr.mxu1 %v3935_v50  ;;  %4557 = vmatprep.subr.mxu0 %v3935_v50  ;;  %v377_v14 = vmul.f32 %v5417_v6, %v316_v60  ;;  %v378_v15 = vmul.f32 %v5417_v6, %v317_v61  ;;  %v403_v16 = vmul.f32 %v5417_v6, %v342_v62  ;;  %v1006_v18 = vrot.slane %v5541_v13, 1 }
  0x20   : > { %5284 = vmatpush3.msra.mxu1 %v3935_v50  ;;  %4558 = vmatpush3.msra.mxu0 %v3935_v50  ;;  %v5547_v17 = vsel %vm957_vm0, %v963_v5, %v964_v2  ;;  %v491_v19 = vmax.f32 %v437_v7, 0.0  ;;  %v462_v20 = vadd.f32 %v5430_v8, %v401_v9  ;;  %v463_v22 = vadd.f32 %v5430_v8, %v402_v10 }
  0x21   : > { %5269 = vmatprep.subr.mxu1 %v3934_v63  ;;  %4559 = vmatprep.subr.mxu0 %v3934_v63  ;;  %7567 = vst [vmem:[#allocation5_spill] sm:$0xff] %v5547_v17  ;;  %v438_v23 = vadd.f32 %v5430_v8, %v377_v14  ;;  %v439_v24 = vadd.f32 %v5430_v8, %v378_v15  ;;  %v7450_v3 = vmov 0.0  }
  0x22   : > { %5285 = vmatpush3.msra.mxu1 %v3934_v63  ;;  %4560 = vmatpush3.msra.mxu0 %v3934_v63  ;;  %v5560_v27 = vsel %vm957_vm0, %v1004_v49, %v1006_v18  ;;  %v5564_v28 = vsel %vm676_vm2, %v491_v19, 0.0  ;;  %v5566_v29 = vmax.f32 %v462_v20, 0.0  ;;  %v464_v30 = vadd.f32 %v5430_v8, %v403_v16  ;;  %v345_v63 = vld [vmem:[%s5425_s16 + $0x118] sm:$0x3] }
  0x23   : > { %5270 = vmatprep.subr.mxu1 %v3933_v11  ;;  %4561 = vmatprep.subr.mxu0 %v3933_v11  ;;  %7568 = vst [vmem:[#allocation6_spill] sm:$0xff] %v5560_v27  ;;  %v966_v34 = vrot.slane %v5564_v28, 1  ;;  %v5573_v35 = vmax.f32 %v463_v22, 0.0  ;;  %v5575_v38 = vmax.f32 %v438_v23, 0.0  ;;  %v5577_v39 = vmax.f32 %v439_v24, 0.0  ;;  %v908_v23 = vld [vmem:[%s7444_s1 + $0x78] sm:$0xff] }
  0x24   : > { %7569 = vst [vmem:[#allocation7_spill] sm:$0xff] %v5566_v29  ;;  %5286 = vmatpush3.msra.mxu1 %v3933_v11  ;;  %4562 = vmatpush3.msra.mxu0 %v3933_v11  ;;  %v5582_v40 = vsel %vm617_vm1, %v5566_v29, 0.0  ;;  %v518_v42 = vmax.f32 %v464_v30, 0.0  ;;  %v379_v44 = vmul.f32 %v5417_v6, %v318_v25  ;;  %v404_v46 = vmul.f32 %v5417_v6, %v343_v26  ;;  %v321_v11 = vld [vmem:[%s5425_s16 + $0x58] sm:$0x3] }
  0x25   : > { %5271 = vmatprep.subr.mxu1 %v3932_v21  ;;  %4563 = vmatprep.subr.mxu0 %v3932_v21  ;;  %v5591_v49 = vsel %vm957_vm0, %v964_v2, %v966_v34  ;;  %v1008_v50 = vrot.slane %v5582_v40, 1  ;;  %v1009_v51 = vrot.slane %v5573_v35, 1  ;;  %v5598_v54 = vsel %vm617_vm1, %v5575_v38, 0.0  ;;  %v3929_v2 = vld [vmem:[%s7444_s1 + $0x80] sm:$0xff] }
  0x26   : > { %5287 = vmatpush3.msra.mxu1 %v3932_v21  ;;  %4564 = vmatpush3.msra.mxu0 %v3932_v21  ;;  %7570 = vst [vmem:[#allocation8_spill] sm:$0xff] %v5591_v49  ;;  %v968_v59 = vrot.slane %v5598_v54, 1  ;;  %v969_v60 = vrot.slane %v5577_v39, 1  ;;  %v5606_v61 = vsel %vm676_vm2, %v518_v42, 0.0  ;;  %v440_v62 = vadd.f32 %v5430_v8, %v379_v44 }
  0x27   : > { %5272 = vmatprep.subr.mxu1 %v3931_v31  ;;  %4565 = vmatprep.subr.mxu0 %v3931_v31  ;;  %v5614_v5 = vrot.slane %v7450_v3, 1  ;;  %v5617_v7 = vsel %vm957_vm0, %v1008_v50, %v1009_v51  ;;  %v405_v9 = vmul.f32 %v5417_v6, %v344_v45  ;;  %v465_v10 = vadd.f32 %v5430_v8, %v404_v46  ;;  %v347_v46 = vld [vmem:[%s5425_s16 + $0x128] sm:$0xff]  ;;  %v907_v50 = vld [vmem:[%s7444_s1 + $0x70] sm:$0xff]  ;;  %v349_v3 = vld [vmem:[%s5425_s16 + $0x138] sm:$0xff] }
  0x28   : > { %5288 = vmatpush3.msra.mxu1 %v3931_v31  ;;  %4566 = vmatpush3.msra.mxu0 %v3931_v31  ;;  %7572 = vst [vmem:[#allocation10_spill] sm:$0xff] %v5617_v7  ;;  %v1011_v14 = vrot.slane %v5606_v61, 1  ;;  %v494_v15 = vmax.f32 %v440_v62, 0.0  ;;  %v380_v16 = vmul.f32 %v5417_v6, %v319_v55  ;;  %v381_v18 = vmul.f32 %v5417_v6, %v320_v56  ;;  %v346_v31 = vld [vmem:[%s5425_s16 + $0x120] sm:$0xff] }
  0x29   : > { %7571 = vst [vmem:[#allocation9_spill] sm:$0xff] %v5614_v5  ;;  %5273 = vmatprep.subr.mxu1 %v3930_v47  ;;  %4567 = vmatprep.subr.mxu0 %v3930_v47  ;;  %v5628_v19 = vsel %vm957_vm0, %v968_v59, %v969_v60  ;;  %v466_v20 = vadd.f32 %v5430_v8, %v405_v9  ;;  %v5631_v21 = vmax.f32 %v465_v10, 0.0 }
  0x2a   : > { %5289 = vmatpush3.msra.mxu1 %v3930_v47  ;;  %4568 = vmatpush3.msra.mxu0 %v3930_v47  ;;  %7573 = vst [vmem:[#allocation11_spill] sm:$0xff] %v5628_v19  ;;  %v406_v22 = vmul.f32 %v5417_v6, %v345_v63  ;;  %v5639_v24 = vsel %vm676_vm2, %v494_v15, 0.0  ;;  %v441_v25 = vadd.f32 %v5430_v8, %v380_v16  ;;  %v3975_v47 = vld [vmem:[%s7444_s1 + $0x178] sm:$0xff] }
  0x2b   : > { %7574 = vst [vmem:[#allocation12_spill] sm:$0xff] %v5631_v21  ;;  %5274 = vmatprep.subr.mxu1 %v3929_v2  ;;  %4569 = vmatprep.subr.mxu0 %v3929_v2  ;;  %v442_v26 = vadd.f32 %v5430_v8, %v381_v18  ;;  %v382_v30 = vmul.f32 %v5417_v6, %v321_v11  ;;  %v971_v34 = vrot.slane %v5639_v24, 1  ;;  %v5647_v42 = vmax.f32 %v466_v20, 0.0  ;;  %v3974_v11 = vld [vmem:[%s7444_s1 + $0x170] sm:$0xff]  ;;  %v323_v20 = vld [vmem:[%s5425_s16 + $0x68] sm:$0xff] }
  0x2c   : > { %5290 = vmatpush3.msra.mxu1 %v3929_v2  ;;  %4595 = vmatprep.mubr.f32.mxu1 %v5511_v57  ;;  %v5652_v44 = vsel %vm617_vm1, %v5631_v21, 0.0  ;;  %v467_v45 = vadd.f32 %v5430_v8, %v406_v22  ;;  %v5664_v55 = vsel %vm957_vm0, %v1009_v51, %v1011_v14  ;;  %v5666_v56 = vmax.f32 %v441_v25, 0.0  ;;  %v322_v51 = vld [vmem:[%s5425_s16 + $0x60] sm:$0xff] }
  0x2d   : > { %7575 = vst [vmem:[#allocation13_spill] sm:$0xff] %v5647_v42  ;;  %4570 = vmatpush3.msra.mxu0 %v3929_v2  ;;  %4571 = vmatprep.mubr.f32.mxu0 %v5614_v5  ;;  %7576 = vst [vmem:[#allocation14_spill] sm:$0xff] %v5664_v55  ;;  %v5668_v59 = vmax.f32 %v442_v26, 0.0  ;;  %v443_v62 = vadd.f32 %v5430_v8, %v382_v30  ;;  %v1013_v63 = vrot.slane %v5652_v44, 1  ;;  %v1014_v2 = vrot.slane %v5647_v42, 1 }
  0x2e   : > { %4596 = vmatmul.mubr.f32.vlgmr.msra.gmra.mxu1 %v5514_v58  ;;  %4619 = vmatprep.subr.mxu1 %v908_v23  ;;  %v521_v9 = vmax.f32 %v467_v45, 0.0  ;;  %v407_v10 = vmul.f32 %v5417_v6, %v346_v31  ;;  %v5683_v14 = vsel %vm617_vm1, %v5666_v56, 0.0  ;;  %v408_v18 = vmul.f32 %v5417_v6, %v347_v46  ;;  %v348_v30 = vld [vmem:[%s5425_s16 + $0x130] sm:$0x3]  ;;  %v906_v31 = vld [vmem:[%s7444_s1 + $0x68] sm:$0xff] }
  0x2f   : > { %4572 = vmatmul.mubr.f32.vlgmr.msra.gmra.mxu0 %v5614_v5  ;;  %4620 = vmatpush3.msra.mxu1 %v908_v23  ;;  %v974_v15 = vrot.slane %v5668_v59, 1  ;;  %v497_v16 = vmax.f32 %v443_v62, 0.0  ;;  %v5691_v22 = vsel %vm957_vm0, %v969_v60, %v971_v34  ;;  %v973_v23 = vrot.slane %v5683_v14, 1  ;;  %v324_v62 = vld [vmem:[%s5425_s16 + $0x70] sm:$0x3]  ;;  %v350_v5 = vld [vmem:[%s5425_s16 + $0x140] sm:$0xff] }
  0x30   : > { %4699 = vmatprep.subr.mxu0 %v3975_v47  ;;  %4621 = vmatprep.subr.mxu1 %v907_v50  ;;  %7577 = vst [vmem:[#allocation15_spill] sm:$0xff] %v5691_v22  ;;  %v5696_v25 = vsel %vm676_vm2, %v521_v9, 0.0  ;;  %v468_v26 = vadd.f32 %v5430_v8, %v407_v10  ;;  %v469_v34 = vadd.f32 %v5430_v8, %v408_v18  ;;  %v357_v42 = vld [vmem:[%s5425_s16 + $0x178] sm:$0x3] }
  0x31   : > { %7578 = vst [vmem:[#allocation16_spill] sm:$0xff] %v5696_v25  ;;  %4700 = vmatpush3.msra.mxu0 %v3975_v47  ;;  %4598 = vmatprep.mubr.f32.mxu1 %v5524_v0  ;;  %v1016_v45 = vrot.slane %v5696_v25, 1  ;;  %v5707_v60 = vsel %vm676_vm2, %v497_v16, 0.0  ;;  %v383_v46 = vmul.f32 %v5417_v6, %v322_v51  ;;  %v3973_v47 = vld [vmem:[%s7444_s1 + $0x168] sm:$0xff]  ;;  %v5716_v9 = vsel %vm957_vm0, %v1013_v63, %v1014_v2  ;;  %v330_v25 = vld [vmem:[%s5425_s16 + $0xa0] sm:$0x3] }
  0x32   : > { %4622 = vmatpush3.msra.mxu1 %v907_v50  ;;  %4701 = vmatprep.subr.mxu0 %v3974_v11  ;;  %7579 = vst [vmem:[#allocation17_spill] sm:$0xff] %v5716_v9  ;;  %v5719_v10 = vsel %vm957_vm0, %v973_v23, %v974_v15  ;;  %v5721_v16 = vmax.f32 %v468_v26, 0.0  ;;  %v384_v18 = vmul.f32 %v5417_v6, %v323_v20  ;;  %v905_v50 = vld [vmem:[%s7444_s1 + $0x60] sm:$0xff]  ;;  %v976_v51 = vrot.slane %v5707_v60, 1 }
  0x33   : > { %7580 = vst [vmem:[#allocation18_spill] sm:$0xff] %v5719_v10  ;;  %4574 = vmatprep.mubr.f32.mxu0 %v5547_v17  ;;  %4599 = vmatmul.mubr.f32.gmra.mxu1 %v5560_v27  ;;  %v5730_v63 = vmax.f32 %v469_v34, 0.0  ;;  %v444_v23 = vadd.f32 %v5430_v8, %v383_v46  ;;  %v409_v26 = vmul.f32 %v5417_v6, %v348_v30  ;;  %v325_v46 = vld [vmem:[%s5425_s16 + $0x78] sm:$0xff] }
  0x34   : > { %7581 = vst [vmem:[#allocation19_spill] sm:$0xff] %v5721_v16  ;;  %4623 = vmatprep.subr.mxu1 %v906_v31  ;;  %4702 = vmatpush3.msra.mxu0 %v3974_v11  ;;  %v5737_v20 = vsel %vm957_vm0, %v1014_v2, %v1016_v45  ;;  %v5742_v27 = vsel %vm617_vm1, %v5721_v16, 0.0  ;;  %v445_v0 = vadd.f32 %v5430_v8, %v384_v18  ;;  %v3972_v11 = vld [vmem:[%s7444_s1 + $0x160] sm:$0xff]  ;;  %v327_v16 = vld [vmem:[%s5425_s16 + $0x88] sm:$0x3] }
  0x35   : > { %7582 = vst [vmem:[#allocation20_spill] sm:$0xff] %v5730_v63  ;;  %7583 = vst [vmem:[#allocation21_spill] sm:$0xff] %v5737_v20  ;;  %v385_v34 = vmul.f32 %v5417_v6, %v324_v62  ;;  %4575 = vmatmul.mubr.f32.gmra.mxu0 %v5591_v49  ;;  %4624 = vmatpush3.msra.mxu1 %v906_v31  ;;  %v1018_v2 = vrot.slane %v5742_v27, 1  ;;  %v1019_v30 = vrot.slane %v5730_v63, 1  ;;  %v5753_v45 = vmax.f32 %v444_v23, 0.0  ;;  %v326_v49 = vld [vmem:[%s5425_s16 + $0x80] sm:$0xff] }
  0x36   : > { %7584 = vst [vmem:[#allocation22_spill] sm:$0xff] %v5742_v27  ;;  %v470_v58 = vadd.f32 %v5430_v8, %v409_v26  ;;  %4703 = vmatprep.subr.mxu0 %v3973_v47  ;;  %4625 = vmatprep.subr.mxu1 %v905_v50  ;;  %v5756_v18 = vmax.f32 %v445_v0, 0.0  ;;  %v410_v31 = vmul.f32 %v5417_v6, %v349_v3  ;;  %v904_v23 = vld [vmem:[%s7444_s1 + $0x58] sm:$0xff]  ;;  %v354_v27 = vld [vmem:[%s5425_s16 + $0x160] sm:$0x3] }
  0x37   : > { %v446_v62 = vadd.f32 %v5430_v8, %v385_v34  ;;  %v411_v57 = vmul.f32 %v5417_v6, %v350_v5  ;;  %4704 = vmatpush3.msra.mxu0 %v3973_v47  ;;  %4601 = vmatprep.mubr.f32.mxu1 %v5617_v7  ;;  %v5767_v26 = vsel %vm957_vm0, %v974_v15, %v976_v51  ;;  %v5772_v0 = vsel %vm617_vm1, %v5753_v45, 0.0  ;;  %v3971_v5 = vld [vmem:[%s7444_s1 + $0x158] sm:$0xff] }
  0x38   : > { %7585 = vst [vmem:[#allocation23_spill] sm:$0xff] %v5767_v26  ;;  %v524_v34 = vmax.f32 %v470_v58, 0.0  ;;  %v386_v3 = vmul.f32 %v5417_v6, %v325_v46  ;;  %4626 = vmatpush3.msra.mxu1 %v905_v50  ;;  %4705 = vmatprep.subr.mxu0 %v3972_v11  ;;  %v978_v47 = vrot.slane %v5772_v0, 1  ;;  %v979_v15 = vrot.slane %v5756_v18, 1  ;;  %v903_v58 = vld [vmem:[%s7444_s1 + $0x50] sm:$0xff] }
  0x39   : > { %v500_v51 = vmax.f32 %v446_v62, 0.0  ;;  %v471_v7 = vadd.f32 %v5430_v8, %v410_v31  ;;  %4577 = vmatprep.mubr.f32.mxu0 %v5628_v19  ;;  %4602 = vmatmul.mubr.f32.gmra.mxu1 %v5664_v55  ;;  %v472_v46 = vadd.f32 %v5430_v8, %v411_v57  ;;  %v387_v17 = vmul.f32 %v5417_v6, %v326_v49  ;;  %v351_v31 = vld [vmem:[%s5425_s16 + $0x148] sm:$0x3]  ;;  %v3970_v49 = vld [vmem:[%s7444_s1 + $0x150] sm:$0xff] }
  0x3a   : > { %v5788_v50 = vsel %vm676_vm2, %v524_v34, 0.0  ;;  %v447_v62 = vadd.f32 %v5430_v8, %v386_v3  ;;  %4627 = vmatprep.subr.mxu1 %v904_v23  ;;  %4706 = vmatpush3.msra.mxu0 %v3972_v11  ;;  %v5796_v55 = vsel %vm957_vm0, %v1018_v2, %v1019_v30 }
  0x3b   : > { %7586 = vst [vmem:[#allocation24_spill] sm:$0xff] %v5788_v50  ;;  %7587 = vst [vmem:[#allocation25_spill] sm:$0xff] %v5796_v55  ;;  %v1021_v19 = vrot.slane %v5788_v50, 1  ;;  %v5801_v34 = vsel %vm676_vm2, %v500_v51, 0.0  ;;  %v5803_v57 = vmax.f32 %v471_v7, 0.0  ;;  %4578 = vmatmul.mubr.f32.gmra.mxu0 %v5691_v22  ;;  %4628 = vmatpush3.msra.mxu1 %v904_v23  ;;  %v5810_v2 = vmax.f32 %v472_v46, 0.0 }
  0x3c   : > { %v981_v11 = vrot.slane %v5801_v34, 1  ;;  %v448_v3 = vadd.f32 %v5430_v8, %v387_v17  ;;  %v5813_v50 = vmax.f32 %v447_v62, 0.0  ;;  %v352_v51 = vld [vmem:[%s5425_s16 + $0x150] sm:$0xff]  ;;  %4707 = vmatprep.subr.mxu0 %v3971_v5  ;;  %4629 = vmatprep.subr.mxu1 %v903_v58  ;;  %v5817_v7 = vsel %vm957_vm0, %v978_v47, %v979_v15  ;;  %v353_v17 = vld [vmem:[%s5425_s16 + $0x158] sm:$0xff]  ;;  %v902_v62 = vld [vmem:[%s7444_s1 + $0x48] sm:$0xff] }
  0x3d   : > { %7588 = vst [vmem:[#allocation26_spill] sm:$0xff] %v5803_v57  ;;  %7589 = vst [vmem:[#allocation27_spill] sm:$0xff] %v5810_v2  ;;  %v5822_v23 = vsel %vm617_vm1, %v5803_v57, 0.0  ;;  %v412_v22 = vmul.f32 %v5417_v6, %v351_v31  ;;  %v388_v46 = vmul.f32 %v5417_v6, %v327_v16  ;;  %4708 = vmatpush3.msra.mxu0 %v3971_v5  ;;  %4604 = vmatprep.mubr.f32.mxu1 %v5716_v9  ;;  %v328_v31 = vld [vmem:[%s5425_s16 + $0x90] sm:$0xff] }
  0x3e   : > { %7590 = vst [vmem:[#allocation28_spill] sm:$0xff] %v5817_v7  ;;  %7591 = vst [vmem:[#allocation29_spill] sm:$0xff] %v5822_v23  ;;  %v5832_v47 = vsel %vm957_vm0, %v1019_v30, %v1021_v19  ;;  %v1023_v21 = vrot.slane %v5822_v23, 1  ;;  %v1024_v57 = vrot.slane %v5810_v2, 1  ;;  %v5836_v63 = vmax.f32 %v448_v3, 0.0  ;;  %4630 = vmatpush3.msra.mxu1 %v903_v58  ;;  %4709 = vmatprep.subr.mxu0 %v3970_v49  ;;  %v329_v30 = vld [vmem:[%s5425_s16 + $0x98] sm:$0xff] }
  0x3f   : > { %7592 = vst [vmem:[#allocation30_spill] sm:$0xff] %v5832_v47  ;;  %v5842_v16 = vsel %vm617_vm1, %v5813_v50, 0.0  ;;  %v473_v5 = vadd.f32 %v5430_v8, %v412_v22  ;;  %v449_v9 = vadd.f32 %v5430_v8, %v388_v46  ;;  %v413_v19 = vmul.f32 %v5417_v6, %v352_v51  ;;  %4580 = vmatprep.mubr.f32.mxu0 %v5719_v10  ;;  %v3969_v58 = vld [vmem:[%s7444_s1 + $0x148] sm:$0xff]  ;;  %v901_v3 = vld [vmem:[%s7444_s1 + $0x40] sm:$0xff] }
  0x40   : > { %4605 = vmatmul.mubr.f32.gmra.mxu1 %v5737_v20  ;;  %v5857_v2 = vsel %vm957_vm0, %v979_v15, %v981_v11  ;;  %v5860_v22 = vsel %vm957_vm0, %v1023_v21, %v1024_v57  ;;  %v414_v51 = vmul.f32 %v5417_v6, %v353_v17  ;;  %4631 = vmatprep.subr.mxu1 %v902_v62  ;;  %v3968_v46 = vld [vmem:[%s7444_s1 + $0x140] sm:$0xff]  ;;  %v983_v21 = vrot.slane %v5842_v16, 1 }
  0x41   : > { %7593 = vst [vmem:[#allocation31_spill] sm:$0xff] %v5857_v2  ;;  %7594 = vst [vmem:[#allocation32_spill] sm:$0xff] %v5860_v22  ;;  %4710 = vmatpush3.msra.mxu0 %v3970_v49  ;;  %v527_v20 = vmax.f32 %v473_v5, 0.0  ;;  %v503_v10 = vmax.f32 %v449_v9, 0.0  ;;  %v474_v23 = vadd.f32 %v5430_v8, %v413_v19  ;;  %v389_v15 = vmul.f32 %v5417_v6, %v328_v31  ;;  %v900_v19 = vld [vmem:[%s7444_s1 + $0x38] sm:$0xff] }
  0x42   : > { %4581 = vmatmul.mubr.f32.gmra.mxu0 %v5767_v26  ;;  %4632 = vmatpush3.msra.mxu1 %v902_v62  ;;  %v984_v11 = vrot.slane %v5836_v63, 1  ;;  %v475_v17 = vadd.f32 %v5430_v8, %v414_v51  ;;  %v390_v49 = vmul.f32 %v5417_v6, %v329_v30  ;;  %v355_v26 = vld [vmem:[%s5425_s16 + $0x168] sm:$0xff] }
  0x43   : > { %4711 = vmatprep.subr.mxu0 %v3969_v58  ;;  %4633 = vmatprep.subr.mxu1 %v901_v3  ;;  %v5877_v9 = vsel %vm676_vm2, %v527_v20, 0.0  ;;  %v5881_v31 = vsel %vm676_vm2, %v503_v10, 0.0  ;;  %v5883_v62 = vmax.f32 %v474_v23, 0.0  ;;  %v450_v5 = vadd.f32 %v5430_v8, %v389_v15 }
  0x44   : > { %7595 = vst [vmem:[#allocation33_spill] sm:$0xff] %v5877_v9  ;;  %4712 = vmatpush3.msra.mxu0 %v3969_v58  ;;  %4607 = vmatprep.mubr.f32.mxu1 %v5796_v55  ;;  %v1026_v20 = vrot.slane %v5877_v9, 1  ;;  %v986_v30 = vrot.slane %v5881_v31, 1  ;;  %v5892_v51 = vmax.f32 %v475_v17, 0.0  ;;  %v451_v10 = vadd.f32 %v5430_v8, %v390_v49  ;;  %v356_v9 = vld [vmem:[%s5425_s16 + $0x170] sm:$0xff] }
  0x45   : > { %7596 = vst [vmem:[#allocation34_spill] sm:$0xff] %v5883_v62  ;;  %4634 = vmatpush3.msra.mxu1 %v901_v3  ;;  %4713 = vmatprep.subr.mxu0 %v3968_v46  ;;  %v5898_v23 = vsel %vm617_vm1, %v5883_v62, 0.0  ;;  %v5900_v58 = vmax.f32 %v450_v5, 0.0  ;;  %v415_v15 = vmul.f32 %v5417_v6, %v354_v27  ;;  %v391_v55 = vmul.f32 %v5417_v6, %v330_v25  ;;  %v3967_v3 = vld [vmem:[%s7444_s1 + $0x138] sm:$0xff]  ;;  %v899_v17 = vld [vmem:[%s7444_s1 + $0x30] sm:$0xff] }
  0x46   : > { %7597 = vst [vmem:[#allocation35_spill] sm:$0xff] %v5892_v51  ;;  %7598 = vst [vmem:[#allocation36_spill] sm:$0xff] %v5898_v23  ;;  %4583 = vmatprep.mubr.f32.mxu0 %v5817_v7  ;;  %4608 = vmatmul.mubr.f32.gmra.mxu1 %v5832_v47  ;;  %v5915_v49 = vsel %vm957_vm0, %v983_v21, %v984_v11  ;;  %v5918_v27 = vsel %vm957_vm0, %v1024_v57, %v1026_v20  ;;  %v1028_v25 = vrot.slane %v5898_v23, 1  ;;  %v331_v7 = vld [vmem:[%s5425_s16 + $0xa8] sm:$0xff]  ;;  %v332_v57 = vld [vmem:[%s5425_s16 + $0xb0] sm:$0xff] }
  0x47   : > { %7599 = vst [vmem:[#allocation37_spill] sm:$0xff] %v5915_v49  ;;  %7600 = vst [vmem:[#allocation38_spill] sm:$0xff] %v5918_v27  ;;  %v1029_v5 = vrot.slane %v5892_v51, 1  ;;  %4635 = vmatprep.subr.mxu1 %v900_v19  ;;  %4714 = vmatpush3.msra.mxu0 %v3968_v46  ;;  %v5923_v47 = vmax.f32 %v451_v10, 0.0  ;;  %v5928_v62 = vsel %vm617_vm1, %v5900_v58, 0.0  ;;  %v476_v21 = vadd.f32 %v5430_v8, %v415_v15  ;;  %v3966_v20 = vld [vmem:[%s7444_s1 + $0x130] sm:$0xff] }
  0x48   : > { %v452_v29 = vadd.f32 %v5430_v8, %v391_v55  ;;  %4584 = vmatmul.mubr.f32.gmra.mxu0 %v5857_v2  ;;  %4636 = vmatpush3.msra.mxu1 %v900_v19  ;;  %v5938_v46 = vsel %vm957_vm0, %v984_v11, %v986_v30  ;;  %v416_v10 = vmul.f32 %v5417_v6, %v355_v26  ;;  %v988_v55 = vrot.slane %v5928_v62, 1  ;;  %v898_v11 = vld [vmem:[%s7444_s1 + $0x28] sm:$0xff] }
  0x49   : > { %7601 = vst [vmem:[#allocation39_spill] sm:$0xff] %v5938_v46  ;;  %v417_v51 = vmul.f32 %v5417_v6, %v356_v9  ;;  %4715 = vmatprep.subr.mxu0 %v3967_v3  ;;  %4637 = vmatprep.subr.mxu1 %v899_v17  ;;  %v530_v15 = vmax.f32 %v476_v21, 0.0  ;;  %v392_v19 = vmul.f32 %v5417_v6, %v331_v7  ;;  %v989_v26 = vrot.slane %v5923_v47, 1  ;;  %v333_v21 = vld [vmem:[%s5425_s16 + $0xb8] sm:$0x3] }
  0x4a   : > { %v506_v2 = vmax.f32 %v452_v29, 0.0  ;;  %4716 = vmatpush3.msra.mxu0 %v3967_v3  ;;  %4610 = vmatprep.mubr.f32.mxu1 %v5860_v22  ;;  %v477_v30 = vadd.f32 %v5430_v8, %v416_v10  ;;  %v393_v23 = vmul.f32 %v5417_v6, %v332_v57  ;;  %v5955_v29 = vsel %vm957_vm0, %v1028_v25, %v1029_v5 }
  0x4b   : > { %v478_v9 = vadd.f32 %v5430_v8, %v417_v51  ;;  %4638 = vmatpush3.msra.mxu1 %v899_v17  ;;  %4717 = vmatprep.subr.mxu0 %v3966_v20  ;;  %7602 = vst [vmem:[#allocation40_spill] sm:$0xff] %v5955_v29  ;;  %v5959_v7 = vsel %vm676_vm2, %v530_v15, 0.0  ;;  %v453_v10 = vadd.f32 %v5430_v8, %v392_v19  ;;  %v3965_v51 = vld [vmem:[%s7444_s1 + $0x128] sm:$0xff]  ;;  %v897_v17 = vld [vmem:[%s7444_s1 + $0x20] sm:$0xff] }
  0x4c   : > { %v5963_v3 = vsel %vm676_vm2, %v506_v2, 0.0  ;;  %4586 = vmatprep.mubr.f32.mxu0 %v5915_v49  ;;  %4611 = vmatmul.mubr.f32.gmra.mxu1 %v5918_v27  ;;  %v1031_v25 = vrot.slane %v5959_v7, 1  ;;  %v5976_v2 = vmax.f32 %v477_v30, 0.0  ;;  %v454_v19 = vadd.f32 %v5430_v8, %v393_v23  ;;  %v3964_v30 = vld [vmem:[%s7444_s1 + $0x120] sm:$0xff] }
  0x4d   : > { %v991_v57 = vrot.slane %v5963_v3, 1  ;;  %v5978_v15 = vmax.f32 %v478_v9, 0.0  ;;  %4639 = vmatprep.subr.mxu1 %v898_v11  ;;  %4718 = vmatpush3.msra.mxu0 %v3966_v20  ;;  %v5981_v27 = vmax.f32 %v453_v10, 0.0  ;;  %v418_v22 = vmul.f32 %v5417_v6, %v357_v42 }
  0x4e   : > { %7603 = vst [vmem:[#allocation41_spill] sm:$0xff] %v5976_v2  ;;  %v394_v49 = vmul.f32 %v5417_v6, %v333_v21  ;;  %4587 = vmatmul.mubr.f32.gmra.mxu0 %v5938_v46  ;;  %4640 = vmatpush3.msra.mxu1 %v898_v11  ;;  %v5990_v9 = vsel %vm957_vm0, %v988_v55, %v989_v26  ;;  %v5998_v23 = vsel %vm617_vm1, %v5976_v2, 0.0  ;;  %v6002_v11 = vmax.f32 %v454_v19, 0.0  ;;  %v896_v21 = vld [vmem:[%s7444_s1 + $0x18] sm:$0xff] }
  0x4f   : > { %7604 = vst [vmem:[#allocation42_spill] sm:$0xff] %v5990_v9  ;;  %v5993_v20 = vsel %vm957_vm0, %v1029_v5, %v1031_v25  ;;  %v1034_v6 = vrot.slane %v5978_v15, 1  ;;  %4719 = vmatprep.subr.mxu0 %v3965_v51  ;;  %4641 = vmatprep.subr.mxu1 %v897_v17  ;;  %v1033_v42 = vrot.slane %v5998_v23, 1  ;;  %v6007_v55 = vsel %vm617_vm1, %v5981_v27, 0.0 }
  0x50   : > { %7605 = vst [vmem:[#allocation43_spill] sm:$0xff] %v5993_v20  ;;  %v479_v5 = vadd.f32 %v5430_v8, %v418_v22  ;;  %4720 = vmatpush3.msra.mxu0 %v3965_v51  ;;  %4613 = vmatprep.mubr.f32.mxu1 %v5955_v29  ;;  %v455_v10 = vadd.f32 %v5430_v8, %v394_v49  ;;  %v993_v19 = vrot.slane %v6007_v55, 1  ;;  %v994_v46 = vrot.slane %v6002_v11, 1  ;;  %v3963_v22 = vld [vmem:[%s7444_s1 + $0x118] sm:$0xff]  ;;  %v895_v8 = vld [vmem:[%s7444_s1 + $0x10] sm:$0xff] }
  0x51   : > { %4642 = vmatpush3.msra.mxu1 %v897_v17  ;;  %4721 = vmatprep.subr.mxu0 %v3964_v30  ;;  %v6016_v25 = vsel %vm957_vm0, %v989_v26, %v991_v57  ;;  %v6029_v26 = vsel %vm957_vm0, %v1033_v42, %v1034_v6  ;;  %v3962_v17 = vld [vmem:[%s7444_s1 + $0x110] sm:$0xff] }
  0x52   : > { %7606 = vst [vmem:[#allocation44_spill] sm:$0xff] %v6016_v25  ;;  %v533_v2 = vmax.f32 %v479_v5, 0.0  ;;  %4589 = vmatprep.mubr.f32.mxu0 %v5990_v9  ;;  %4614 = vmatmul.mubr.f32.gmra.mxu1 %v5993_v20  ;;  %v509_v49 = vmax.f32 %v455_v10, 0.0  ;;  %7607 = vst [vmem:[#allocation45_spill] sm:$0xff] %v6029_v26 }
  0x53   : > { %4643 = vmatprep.subr.mxu1 %v896_v21  ;;  %4722 = vmatpush3.msra.mxu0 %v3964_v30  ;;  %v6045_v30 = vsel %vm957_vm0, %v993_v19, %v994_v46  ;;  %v3961_v19 = vld [vmem:[%s7444_s1 + $0x108] sm:$0xff] }
  0x54   : > { %v6033_v51 = vsel %vm676_vm2, %v533_v2, 0.0  ;;  %4590 = vmatmul.mubr.f32.gmra.mxu0 %v6016_v25  ;;  %4644 = vmatpush3.msra.mxu1 %v896_v21  ;;  %v6042_v5 = vsel %vm676_vm2, %v509_v49, 0.0  ;;  %7608 = vst [vmem:[#allocation46_spill] sm:$0xff] %v6045_v30  ;;  %v894_v21 = vld [vmem:[%s7444_s1 + $0x8] sm:$0xff]  ;;  %v3991_v49 = vld [vmem:[%s7444_s1 + $0x1f8] sm:$0xff] }
  0x55   : > { %v1036_v57 = vrot.slane %v6033_v51, 1  ;;  %4723 = vmatprep.subr.mxu0 %v3963_v22  ;;  %4645 = vmatprep.subr.mxu1 %v895_v8  ;;  %v996_v2 = vrot.slane %v6042_v5, 1 }
  0x56   : > { %4724 = vmatpush3.msra.mxu0 %v3963_v22  ;;  %4616 = vmatprep.mubr.f32.mxu1 %v6029_v26  ;;  %v7611_v22 = vmov 0.0  }
  0x57   : > { %v6050_v42 = vsel %vm957_vm0, %v1034_v6, %v1036_v57  ;;  %4646 = vmatpush3.msra.mxu1 %v895_v8  ;;  %4725 = vmatprep.subr.mxu0 %v3962_v17  ;;  %v6056_v10 = vsel %vm957_vm0, %v994_v46, %v996_v2  ;;  %v893_v6 = vld [vmem:[%s7444_s1] sm:$0xff]  ;;  %v6071_v8 = vrot.slane %v7611_v22, 2  ;;  %v1544_v57 = vrot.slane %v5505_v53, 2 }
  0x58   : > { %7609 = vst [vmem:[#allocation47_spill] sm:$0xff] %v6050_v42  ;;  %7610 = vst [vmem:[#allocation48_spill] sm:$0xff] %v6056_v10  ;;  %4592 = vmatprep.mubr.f32.mxu0 %v6045_v30  ;;  %4617 = vmatmul.mubr.f32.gmra.mxu1 %v6050_v42  ;;  %v3960_v46 = vld [vmem:[%s7444_s1 + $0x100] sm:$0xff]  ;;  %v1546_v2 = vrot.slane %v5564_v28, 2  ;;  %v3990_v28 = vld [vmem:[%s7444_s1 + $0x1f0] sm:$0xff] }
  0x59   : > { %4647 = vmatprep.subr.mxu1 %v894_v21  ;;  %4726 = vmatpush3.msra.mxu0 %v3962_v17  ;;  %7612 = vst [vmem:[#allocation49_spill] sm:$0xff] %v6071_v8  ;;  %v1543_v17 = vrot.slane %v5529_v1, 2 }
  0x5a   : > { %4593 = vmatmul.mubr.f32.gmra.mxu0 %v6056_v10  ;;  %4648 = vmatpush3.msra.mxu1 %v894_v21  ;;  %v4023_v21 = vld [vmem:[%s7444_s1 + $0x278] sm:$0xff] }
  0x5b   : > { %4727 = vmatprep.subr.mxu0 %v3961_v19  ;;  %4649 = vmatprep.subr.mxu1 %v893_v6  ;;  %v6087_v1 = vsel %vm1537_vm3, %v1543_v17, %v1544_v57  ;;  %v4022_v17 = vld [vmem:[%s7444_s1 + $0x270] sm:$0xff] }
  0x5c   : > { %4728 = vmatpush3.msra.mxu0 %v3961_v19  ;;  %4650 = vmatpush3.msra.mxu1 %v893_v6  ;;  %v1548_v19 = vrot.slane %v5598_v54, 2  ;;  %v1549_v6 = vrot.slane %v5577_v39, 2 }
  0x5d   : > { %4651 = vmatprep.mubr.f32.mxu1 %v7611_v22  ;;  %4729 = vmatprep.subr.mxu0 %v3960_v46 }
  0x5e   : > { %4652 = vmatmul.mubr.f32.vlgmr.msra.gmra.mxu1 %v7611_v22  ;;  %4730 = vmatpush3.msra.mxu0 %v3960_v46  ;;  %v6098_v46 = vsel %vm1537_vm3, %v1544_v57, %v1546_v2  ;;  %v6108_v54 = vsel %vm1537_vm3, %v1548_v19, %v1549_v6  ;;  %v1553_v57 = vrot.slane %v5683_v14, 2  ;;  %v1554_v2 = vrot.slane %v5668_v59, 2  ;;  %v4021_v19 = vld [vmem:[%s7444_s1 + $0x268] sm:$0xff] }
  0x5f   : > { %4731 = vmatprep.mubr.f32.mxu0 %v6071_v8  ;;  %4779 = vmatprep.subr.mxu1 %v3991_v49 }
  0x60   : > { %4732 = vmatmul.mubr.f32.vlgmr.msra.gmra.mxu0 %v6071_v8  ;;  %4780 = vmatpush3.msra.mxu1 %v3991_v49  ;;  %v1551_v49 = vrot.slane %v5639_v24, 2  ;;  %v3989_v24 = vld [vmem:[%s7444_s1 + $0x1e8] sm:$0xff]  ;;  %v6129_v14 = vsel %vm1537_vm3, %v1553_v57, %v1554_v2  ;;  %v4020_v57 = vld [vmem:[%s7444_s1 + $0x260] sm:$0xff] }
  0x61   : > { %4859 = vmatprep.subr.mxu0 %v4023_v21  ;;  %4654 = vmatprep.mubr.msk.f32.mxu1 %vm617_vm1, %v5503_v52  ;;  %v7622_v8 = vld [vmem:[#allocation7_spill] sm:$0xff] }
  0x62   : > { %4860 = vmatpush3.msra.mxu0 %v4023_v21  ;;  %4655 = vmatmul.mubr.f32.gmra.mxu1 %v5505_v53  ;;  %v6119_v21 = vsel %vm1537_vm3, %v1549_v6, %v1551_v49  ;;  %v1558_v6 = vrot.slane %v5772_v0, 2  ;;  %v1559_v49 = vrot.slane %v5756_v18, 2 }
  0x63   : > { %4734 = vmatprep.mubr.f32.mxu0 %v6087_v1  ;;  %4781 = vmatprep.subr.mxu1 %v3990_v28 }
  0x64   : > { %4735 = vmatmul.mubr.f32.gmra.mxu0 %v6098_v46  ;;  %4782 = vmatpush3.msra.mxu1 %v3990_v28  ;;  %v1556_v28 = vrot.slane %v5707_v60, 2  ;;  %v3988_v60 = vld [vmem:[%s7444_s1 + $0x1e0] sm:$0xff]  ;;  %v6150_v0 = vsel %vm1537_vm3, %v1558_v6, %v1559_v49  ;;  %v4019_v6 = vld [vmem:[%s7444_s1 + $0x258] sm:$0xff] }
  0x65   : > { %4861 = vmatprep.subr.mxu0 %v4022_v17  ;;  %4657 = vmatprep.mubr.msk.f32.mxu1 %vm617_vm1, %v5575_v38 }
  0x66   : > { %4862 = vmatpush3.msra.mxu0 %v4022_v17  ;;  %4658 = vmatmul.mubr.f32.gmra.mxu1 %v5577_v39  ;;  %v6140_v17 = vsel %vm1537_vm3, %v1554_v2, %v1556_v28  ;;  %v1563_v2 = vrot.slane %v5842_v16, 2  ;;  %v1564_v28 = vrot.slane %v5836_v63, 2 }
  0x67   : > { %4737 = vmatprep.mubr.f32.mxu0 %v6108_v54  ;;  %4783 = vmatprep.subr.mxu1 %v3989_v24 }
  0x68   : > { %4738 = vmatmul.mubr.f32.gmra.mxu0 %v6119_v21  ;;  %4784 = vmatpush3.msra.mxu1 %v3989_v24  ;;  %v1561_v24 = vrot.slane %v5801_v34, 2  ;;  %v3987_v34 = vld [vmem:[%s7444_s1 + $0x1d8] sm:$0xff]  ;;  %v6171_v16 = vsel %vm1537_vm3, %v1563_v2, %v1564_v28  ;;  %v4018_v2 = vld [vmem:[%s7444_s1 + $0x250] sm:$0xff] }
  0x69   : > { %4863 = vmatprep.subr.mxu0 %v4021_v19  ;;  %4660 = vmatprep.mubr.msk.f32.mxu1 %vm617_vm1, %v5666_v56 }
  0x6a   : > { %4864 = vmatpush3.msra.mxu0 %v4021_v19  ;;  %4661 = vmatmul.mubr.f32.gmra.mxu1 %v5668_v59  ;;  %v6161_v19 = vsel %vm1537_vm3, %v1559_v49, %v1561_v24  ;;  %v1568_v49 = vrot.slane %v5928_v62, 2  ;;  %v1569_v24 = vrot.slane %v5923_v47, 2 }
  0x6b   : > { %4740 = vmatprep.mubr.f32.mxu0 %v6129_v14  ;;  %4785 = vmatprep.subr.mxu1 %v3988_v60 }
  0x6c   : > { %4741 = vmatmul.mubr.f32.gmra.mxu0 %v6140_v17  ;;  %4786 = vmatpush3.msra.mxu1 %v3988_v60  ;;  %v1566_v60 = vrot.slane %v5881_v31, 2  ;;  %v3986_v31 = vld [vmem:[%s7444_s1 + $0x1d0] sm:$0xff]  ;;  %v6192_v62 = vsel %vm1537_vm3, %v1568_v49, %v1569_v24  ;;  %v4017_v49 = vld [vmem:[%s7444_s1 + $0x248] sm:$0xff] }
  0x6d   : > { %4865 = vmatprep.subr.mxu0 %v4020_v57  ;;  %4663 = vmatprep.mubr.msk.f32.mxu1 %vm617_vm1, %v5753_v45 }
  0x6e   : > { %4866 = vmatpush3.msra.mxu0 %v4020_v57  ;;  %4664 = vmatmul.mubr.f32.gmra.mxu1 %v5756_v18  ;;  %v6182_v57 = vsel %vm1537_vm3, %v1564_v28, %v1566_v60  ;;  %v1573_v28 = vrot.slane %v6007_v55, 2  ;;  %v1574_v60 = vrot.slane %v6002_v11, 2 }
  0x6f   : > { %4743 = vmatprep.mubr.f32.mxu0 %v6150_v0  ;;  %4787 = vmatprep.subr.mxu1 %v3987_v34 }
  0x70   : > { %4744 = vmatmul.mubr.f32.gmra.mxu0 %v6161_v19  ;;  %4788 = vmatpush3.msra.mxu1 %v3987_v34  ;;  %v1571_v34 = vrot.slane %v5963_v3, 2  ;;  %v3985_v3 = vld [vmem:[%s7444_s1 + $0x1c8] sm:$0xff]  ;;  %v6213_v55 = vsel %vm1537_vm3, %v1573_v28, %v1574_v60  ;;  %v4016_v28 = vld [vmem:[%s7444_s1 + $0x240] sm:$0xff] }
  0x71   : > { %4867 = vmatprep.subr.mxu0 %v4019_v6  ;;  %4666 = vmatprep.mubr.msk.f32.mxu1 %vm617_vm1, %v5813_v50  ;;  %7614 = vst [vmem:[#allocation51_spill] sm:$0xff] %v6213_v55 }
  0x72   : > { %4868 = vmatpush3.msra.mxu0 %v4019_v6  ;;  %4667 = vmatmul.mubr.f32.gmra.mxu1 %v5836_v63  ;;  %v6203_v6 = vsel %vm1537_vm3, %v1569_v24, %v1571_v34  ;;  %v1578_v24 = vrot.slane %v5482_v41, 2  ;;  %v1579_v34 = vrot.slane %v5467_v33, 2 }
  0x73   : > { %4746 = vmatprep.mubr.f32.mxu0 %v6171_v16  ;;  %4789 = vmatprep.subr.mxu1 %v3986_v31  ;;  %7613 = vst [vmem:[#allocation50_spill] sm:$0xff] %v6203_v6 }
  0x74   : > { %4747 = vmatmul.mubr.f32.gmra.mxu0 %v6182_v57  ;;  %4790 = vmatpush3.msra.mxu1 %v3986_v31  ;;  %v1576_v31 = vrot.slane %v6042_v5, 2  ;;  %v3984_v5 = vld [vmem:[%s7444_s1 + $0x1c0] sm:$0xff]  ;;  %v6234_v41 = vsel %vm1537_vm3, %v1578_v24, %v1579_v34  ;;  %v4015_v24 = vld [vmem:[%s7444_s1 + $0x238] sm:$0xff] }
  0x75   : > { %4869 = vmatprep.subr.mxu0 %v4018_v2  ;;  %4669 = vmatprep.mubr.msk.f32.mxu1 %vm617_vm1, %v5900_v58  ;;  %7616 = vst [vmem:[#allocation53_spill] sm:$0xff] %v6234_v41 }
  0x76   : > { %4870 = vmatpush3.msra.mxu0 %v4018_v2  ;;  %4670 = vmatmul.mubr.f32.gmra.mxu1 %v5923_v47  ;;  %v6224_v2 = vsel %vm1537_vm3, %v1574_v60, %v1576_v31  ;;  %v1583_v60 = vrot.slane %v5496_v48, 2  ;;  %v1584_v31 = vrot.slane %v5472_v37, 2 }
  0x77   : > { %4749 = vmatprep.mubr.f32.mxu0 %v6192_v62  ;;  %4791 = vmatprep.subr.mxu1 %v3985_v3  ;;  %7615 = vst [vmem:[#allocation52_spill] sm:$0xff] %v6224_v2 }
  0x78   : > { %4750 = vmatmul.mubr.f32.gmra.mxu0 %v6203_v6  ;;  %4792 = vmatpush3.msra.mxu1 %v3985_v3  ;;  %v1581_v3 = vrot.slane %v5487_v43, 2  ;;  %v3983_v43 = vld [vmem:[%s7444_s1 + $0x1b8] sm:$0xff]  ;;  %v6255_v48 = vsel %vm1537_vm3, %v1583_v60, %v1584_v31  ;;  %v4014_v60 = vld [vmem:[%s7444_s1 + $0x230] sm:$0xff]  ;;  %v7639_v6 = vld [vmem:[#allocation26_spill] sm:$0xff] }
  0x79   : > { %4871 = vmatprep.subr.mxu0 %v4017_v49  ;;  %4672 = vmatprep.mubr.msk.f32.mxu1 %vm617_vm1, %v5981_v27  ;;  %7618 = vst [vmem:[#allocation55_spill] sm:$0xff] %v6255_v48 }
  0x7a   : > { %4872 = vmatpush3.msra.mxu0 %v4017_v49  ;;  %4673 = vmatmul.mubr.f32.gmra.mxu1 %v6002_v11  ;;  %v6245_v49 = vsel %vm1537_vm3, %v1579_v34, %v1581_v3  ;;  %v1588_v34 = vrot.slane %v5582_v40, 2  ;;  %v1589_v3 = vrot.slane %v5573_v35, 2 }
  0x7b   : > { %4752 = vmatprep.mubr.f32.mxu0 %v6213_v55  ;;  %4793 = vmatprep.subr.mxu1 %v3984_v5  ;;  %7617 = vst [vmem:[#allocation54_spill] sm:$0xff] %v6245_v49 }
  0x7c   : > { %4753 = vmatmul.mubr.f32.gmra.mxu0 %v6224_v2  ;;  %4794 = vmatpush3.msra.mxu1 %v3984_v5  ;;  %v1586_v5 = vrot.slane %v5541_v13, 2  ;;  %v3982_v13 = vld [vmem:[%s7444_s1 + $0x1b0] sm:$0xff]  ;;  %v6276_v40 = vsel %vm1537_vm3, %v1588_v34, %v1589_v3  ;;  %v4013_v34 = vld [vmem:[%s7444_s1 + $0x228] sm:$0xff] }
  0x7d   : > { %4873 = vmatprep.subr.mxu0 %v4016_v28  ;;  %4675 = vmatprep.mubr.msk.f32.mxu1 %vm617_vm1, %v5465_v32  ;;  %7620 = vst [vmem:[#allocation57_spill] sm:$0xff] %v6276_v40  ;;  %v7634_v2 = vld [vmem:[#allocation19_spill] sm:$0xff] }
  0x7e   : > { %4874 = vmatpush3.msra.mxu0 %v4016_v28  ;;  %4676 = vmatmul.mubr.f32.gmra.mxu1 %v5467_v33  ;;  %v6266_v28 = vsel %vm1537_vm3, %v1584_v31, %v1586_v5  ;;  %v1593_v31 = vrot.slane %v5652_v44, 2  ;;  %v7621_v5 = vld [vmem:[#allocation13_spill] sm:$0xff] }
  0x7f   : > { %4755 = vmatprep.mubr.f32.mxu0 %v6234_v41  ;;  %4795 = vmatprep.subr.mxu1 %v3983_v43  ;;  %7619 = vst [vmem:[#allocation56_spill] sm:$0xff] %v6266_v28 }
  0x80   : > { %4756 = vmatmul.mubr.f32.gmra.mxu0 %v6245_v49  ;;  %4796 = vmatpush3.msra.mxu1 %v3983_v43  ;;  %v1591_v43 = vrot.slane %v5606_v61, 2  ;;  %v3981_v61 = vld [vmem:[%s7444_s1 + $0x1a8] sm:$0xff]  ;;  %v7628_v49 = vld [vmem:[#allocation12_spill] sm:$0xff] }
  0x81   : > { %4875 = vmatprep.subr.mxu0 %v4015_v24  ;;  %4678 = vmatprep.mubr.msk.f32.mxu1 %vm617_vm1, %v5470_v36 }
  0x82   : > { %4876 = vmatpush3.msra.mxu0 %v4015_v24  ;;  %4679 = vmatmul.mubr.f32.gmra.mxu1 %v5472_v37  ;;  %v1594_v24 = vrot.slane %v7621_v5, 2  ;;  %v6287_v22 = vsel %vm1537_vm3, %v1589_v3, %v1591_v43  ;;  %v3980_v3 = vld [vmem:[%s7444_s1 + $0x1a0] sm:$0xff] }
  0x83   : > { %4758 = vmatprep.mubr.f32.mxu0 %v6255_v48  ;;  %4797 = vmatprep.subr.mxu1 %v3982_v13  ;;  %7623 = vst [vmem:[#allocation13_spill] sm:$0xff] %v6287_v22  ;;  %v7626_v43 = vld [vmem:[#allocation22_spill] sm:$0xff] }
  0x84   : > { %4759 = vmatmul.mubr.f32.gmra.mxu0 %v6266_v28  ;;  %4798 = vmatpush3.msra.mxu1 %v3982_v13  ;;  %v7624_v13 = vld [vmem:[#allocation16_spill] sm:$0xff]  ;;  %v6297_v44 = vsel %vm1537_vm3, %v1593_v31, %v1594_v24  ;;  %v4012_v31 = vld [vmem:[%s7444_s1 + $0x220] sm:$0xff] }
  0x85   : > { %4877 = vmatprep.subr.mxu0 %v4014_v60  ;;  %4681 = vmatprep.mubr.msk.f32.mxu1 %vm617_vm1, %v7622_v8  ;;  %v1596_v28 = vrot.slane %v7624_v13, 2  ;;  %7625 = vst [vmem:[#allocation7_spill] sm:$0xff] %v6297_v44  ;;  %v7627_v13 = vld [vmem:[#allocation20_spill] sm:$0xff] }
  0x86   : > { %4878 = vmatpush3.msra.mxu0 %v4014_v60  ;;  %4682 = vmatmul.mubr.f32.gmra.mxu1 %v5573_v35  ;;  %v1598_v60 = vrot.slane %v7626_v43, 2  ;;  %v1599_v48 = vrot.slane %v7627_v13, 2 }
  0x87   : > { %4761 = vmatprep.mubr.f32.mxu0 %v6276_v40  ;;  %4799 = vmatprep.subr.mxu1 %v3981_v61  ;;  %v6308_v40 = vsel %vm1537_vm3, %v1594_v24, %v1596_v28  ;;  %v3979_v28 = vld [vmem:[%s7444_s1 + $0x198] sm:$0xff] }
  0x88   : > { %4762 = vmatmul.mubr.f32.gmra.mxu0 %v6287_v22  ;;  %4800 = vmatpush3.msra.mxu1 %v3981_v61  ;;  %7629 = vst [vmem:[#allocation16_spill] sm:$0xff] %v6308_v40  ;;  %v7630_v61 = vld [vmem:[#allocation24_spill] sm:$0xff]  ;;  %v6318_v43 = vsel %vm1537_vm3, %v1598_v60, %v1599_v48  ;;  %v7632_v24 = vld [vmem:[#allocation29_spill] sm:$0xff] }
  0x89   : > { %4879 = vmatprep.subr.mxu0 %v4013_v34  ;;  %4684 = vmatprep.mubr.msk.f32.mxu1 %vm617_vm1, %v7628_v49  ;;  %v1601_v22 = vrot.slane %v7630_v61, 2  ;;  %7631 = vst [vmem:[#allocation22_spill] sm:$0xff] %v6318_v43  ;;  %v7633_v61 = vld [vmem:[#allocation27_spill] sm:$0xff]  ;;  %v4011_v60 = vld [vmem:[%s7444_s1 + $0x218] sm:$0xff] }
  0x8a   : > { %4880 = vmatpush3.msra.mxu0 %v4013_v34  ;;  %4685 = vmatmul.mubr.f32.gmra.mxu1 %v7621_v5  ;;  %v1603_v34 = vrot.slane %v7632_v24, 2  ;;  %v1604_v41 = vrot.slane %v7633_v61, 2 }
  0x8b   : > { %4764 = vmatprep.mubr.f32.mxu0 %v6297_v44  ;;  %4801 = vmatprep.subr.mxu1 %v3980_v3  ;;  %v6329_v44 = vsel %vm1537_vm3, %v1599_v48, %v1601_v22  ;;  %v3978_v22 = vld [vmem:[%s7444_s1 + $0x190] sm:$0xff] }
  0x8c   : > { %4765 = vmatmul.mubr.f32.gmra.mxu0 %v6308_v40  ;;  %4802 = vmatpush3.msra.mxu1 %v3980_v3  ;;  %v7635_v3 = vld [vmem:[#allocation33_spill] sm:$0xff]  ;;  %v6339_v24 = vsel %vm1537_vm3, %v1603_v34, %v1604_v41  ;;  %v7637_v48 = vld [vmem:[#allocation36_spill] sm:$0xff] }
  0x8d   : > { %4881 = vmatprep.subr.mxu0 %v4012_v31  ;;  %4687 = vmatprep.mubr.msk.f32.mxu1 %vm617_vm1, %v7634_v2  ;;  %v1606_v40 = vrot.slane %v7635_v3, 2  ;;  %7636 = vst [vmem:[#allocation20_spill] sm:$0xff] %v6339_v24  ;;  %v7638_v3 = vld [vmem:[#allocation35_spill] sm:$0xff]  ;;  %v4010_v34 = vld [vmem:[%s7444_s1 + $0x210] sm:$0xff] }
  0x8e   : > { %4882 = vmatpush3.msra.mxu0 %v4012_v31  ;;  %4688 = vmatmul.mubr.f32.gmra.mxu1 %v7627_v13  ;;  %v1608_v31 = vrot.slane %v7637_v48, 2  ;;  %v1609_v55 = vrot.slane %v7638_v3, 2 }
  0x8f   : > { %4767 = vmatprep.mubr.f32.mxu0 %v6318_v43  ;;  %4803 = vmatprep.subr.mxu1 %v3979_v28  ;;  %v6350_v43 = vsel %vm1537_vm3, %v1604_v41, %v1606_v40  ;;  %v1613_v41 = vrot.slane %v5998_v23, 2  ;;  %v1614_v40 = vrot.slane %v5978_v15, 2 }
  0x90   : > { %4768 = vmatmul.mubr.f32.gmra.mxu0 %v6329_v44  ;;  %4804 = vmatpush3.msra.mxu1 %v3979_v28  ;;  %v1611_v28 = vrot.slane %v5959_v7, 2  ;;  %v6360_v48 = vsel %vm1537_vm3, %v1608_v31, %v1609_v55  ;;  %v3977_v7 = vld [vmem:[%s7444_s1 + $0x188] sm:$0xff] }
  0x91   : > { %4883 = vmatprep.subr.mxu0 %v4011_v60  ;;  %4690 = vmatprep.mubr.msk.f32.mxu1 %vm617_vm1, %v7639_v6  ;;  %v4009_v31 = vld [vmem:[%s7444_s1 + $0x208] sm:$0xff]  ;;  %v6381_v23 = vsel %vm1537_vm3, %v1613_v41, %v1614_v40  ;;  %v4055_v41 = vld [vmem:[%s7444_s1 + $0x378] sm:$0xff] }
  0x92   : > { %4884 = vmatpush3.msra.mxu0 %v4011_v60  ;;  %4691 = vmatmul.mubr.f32.gmra.mxu1 %v7633_v61  ;;  %v7640_v60 = vld [vmem:[#allocation34_spill] sm:$0xff] }
  0x93   : > { %4770 = vmatprep.mubr.f32.mxu0 %v6339_v24  ;;  %4805 = vmatprep.subr.mxu1 %v3978_v22  ;;  %v6371_v24 = vsel %vm1537_vm3, %v1609_v55, %v1611_v28  ;;  %v7642_v55 = vld [vmem:[#allocation41_spill] sm:$0xff] }
  0x94   : > { %4771 = vmatmul.mubr.f32.gmra.mxu0 %v6350_v43  ;;  %4806 = vmatpush3.msra.mxu1 %v3978_v22  ;;  %7641 = vst [vmem:[#allocation12_spill] sm:$0xff] %v6371_v24  ;;  %v1616_v22 = vrot.slane %v6033_v51, 2  ;;  %v3976_v51 = vld [vmem:[%s7444_s1 + $0x180] sm:$0xff] }
  0x95   : > { %4885 = vmatprep.subr.mxu0 %v4010_v34  ;;  %4693 = vmatprep.mubr.msk.f32.mxu1 %vm617_vm1, %v7640_v60 }
  0x96   : > { %4886 = vmatpush3.msra.mxu0 %v4010_v34  ;;  %4694 = vmatmul.mubr.f32.gmra.mxu1 %v7638_v3  ;;  %v6390_v28 = vsel %vm1537_vm3, %v1614_v40, %v1616_v22  ;;  %v4008_v34 = vld [vmem:[%s7444_s1 + $0x200] sm:$0xff]  ;;  %v7643_v40 = vld [vmem:[#allocation5_spill] sm:$0xff]  ;;  %v7644_v22 = vld [vmem:[#allocation8_spill] sm:$0xff] }
  0x97   : > { %4773 = vmatprep.mubr.f32.mxu0 %v6360_v48  ;;  %4807 = vmatprep.subr.mxu1 %v3977_v7 }
  0x98   : > { %4774 = vmatmul.mubr.f32.gmra.mxu0 %v6371_v24  ;;  %4808 = vmatpush3.msra.mxu1 %v3977_v7  ;;  %v4039_v7 = vld [vmem:[%s7444_s1 + $0x2f8] sm:$0xff] }
  0x99   : > { %4887 = vmatprep.subr.mxu0 %v4009_v31  ;;  %4696 = vmatprep.mubr.msk.f32.mxu1 %vm617_vm1, %v7642_v55 }
  0x9a   : > { %4888 = vmatpush3.msra.mxu0 %v4009_v31  ;;  %4697 = vmatmul.mubr.f32.gmra.mxu1 %v5978_v15  ;;  %v4038_v31 = vld [vmem:[%s7444_s1 + $0x2f0] sm:$0xff] }
  0x9b   : > { %4776 = vmatprep.mubr.f32.mxu0 %v6381_v23  ;;  %4809 = vmatprep.subr.mxu1 %v3976_v51 }
  0x9c   : > { %4777 = vmatmul.mubr.f32.gmra.mxu0 %v6390_v28  ;;  %4810 = vmatpush3.msra.mxu1 %v3976_v51  ;;  %v7646_v51 = vld [vmem:[#allocation15_spill] sm:$0xff] }
  0x9d   : > { %4889 = vmatprep.subr.mxu0 %v4008_v34  ;;  %4811 = vmatprep.mubr.msk.f32.mxu1 %vm617_vm1, %v5503_v52  ;;  %v4054_v52 = vld [vmem:[%s7444_s1 + $0x370] sm:$0xff] }
  0x9e   : > { %4890 = vmatpush3.msra.mxu0 %v4008_v34  ;;  %4812 = vmatmul.mubr.f32.vlgmr.msra.gmra.mxu1 %v5505_v53  ;;  %v7645_v53 = vld [vmem:[#allocation11_spill] sm:$0xff] }
  0x9f   : > { %4891 = vmatprep.mubr.f32.mxu0 %v7643_v40  ;;  %4939 = vmatprep.subr.mxu1 %v4039_v7  ;;  %v4037_v34 = vld [vmem:[%s7444_s1 + $0x2e8] sm:$0xff] }
  0xa0   : > { %4892 = vmatmul.mubr.f32.vlgmr.msra.gmra.mxu0 %v7644_v22  ;;  %4940 = vmatpush3.msra.mxu1 %v4039_v7  ;;  %v4053_v7 = vld [vmem:[%s7444_s1 + $0x368] sm:$0xff]  ;;  %v4036_v22 = vld [vmem:[%s7444_s1 + $0x2e0] sm:$0xff] }
  0xa1   : > { %5019 = vmatprep.subr.mxu0 %v4055_v41  ;;  %4814 = vmatprep.mubr.msk.f32.mxu1 %vm617_vm1, %v5575_v38  ;;  %v7648_v40 = vld [vmem:[#allocation23_spill] sm:$0xff] }
  0xa2   : > { %5020 = vmatpush3.msra.mxu0 %v4055_v41  ;;  %4815 = vmatmul.mubr.f32.gmra.mxu1 %v5577_v39  ;;  %v7647_v41 = vld [vmem:[#allocation18_spill] sm:$0xff] }
  0xa3   : > { %4894 = vmatprep.mubr.f32.mxu0 %v7645_v53  ;;  %4941 = vmatprep.subr.mxu1 %v4038_v31 }
  0xa4   : > { %4895 = vmatmul.mubr.f32.gmra.mxu0 %v7646_v51  ;;  %4942 = vmatpush3.msra.mxu1 %v4038_v31  ;;  %v4052_v31 = vld [vmem:[%s7444_s1 + $0x360] sm:$0xff] }
  0xa5   : > { %5021 = vmatprep.subr.mxu0 %v4054_v52  ;;  %4817 = vmatprep.mubr.msk.f32.mxu1 %vm617_vm1, %v5666_v56  ;;  %v4028_v51 = vld [vmem:[%s7444_s1 + $0x2a0] sm:$0xff] }
  0xa6   : > { %5022 = vmatpush3.msra.mxu0 %v4054_v52  ;;  %4818 = vmatmul.mubr.f32.gmra.mxu1 %v5668_v59  ;;  %v7649_v52 = vld [vmem:[#allocation28_spill] sm:$0xff] }
  0xa7   : > { %4897 = vmatprep.mubr.f32.mxu0 %v7647_v41  ;;  %4943 = vmatprep.subr.mxu1 %v4037_v34  ;;  %v7660_v41 = vld [vmem:[#allocation21_spill] sm:$0xff] }
  0xa8   : > { %4898 = vmatmul.mubr.f32.gmra.mxu0 %v7648_v40  ;;  %4944 = vmatpush3.msra.mxu1 %v4037_v34  ;;  %v7650_v34 = vld [vmem:[#allocation31_spill] sm:$0xff]  ;;  %v4035_v40 = vld [vmem:[%s7444_s1 + $0x2d8] sm:$0xff] }
  0xa9   : > { %5023 = vmatprep.subr.mxu0 %v4053_v7  ;;  %4820 = vmatprep.mubr.msk.f32.mxu1 %vm617_vm1, %v5753_v45 }
  0xaa   : > { %5024 = vmatpush3.msra.mxu0 %v4053_v7  ;;  %4821 = vmatmul.mubr.f32.gmra.mxu1 %v5756_v18  ;;  %v4051_v7 = vld [vmem:[%s7444_s1 + $0x358] sm:$0xff] }
  0xab   : > { %4900 = vmatprep.mubr.f32.mxu0 %v7649_v52  ;;  %4945 = vmatprep.subr.mxu1 %v4036_v22  ;;  %v7651_v52 = vld [vmem:[#allocation37_spill] sm:$0xff] }
  0xac   : > { %4901 = vmatmul.mubr.f32.gmra.mxu0 %v7650_v34  ;;  %4946 = vmatpush3.msra.mxu1 %v4036_v22  ;;  %v7652_v22 = vld [vmem:[#allocation39_spill] sm:$0xff]  ;;  %v4034_v34 = vld [vmem:[%s7444_s1 + $0x2d0] sm:$0xff] }
  0xad   : > { %5025 = vmatprep.subr.mxu0 %v4052_v31  ;;  %4823 = vmatprep.mubr.msk.f32.mxu1 %vm617_vm1, %v5813_v50 }
  0xae   : > { %5026 = vmatpush3.msra.mxu0 %v4052_v31  ;;  %4824 = vmatmul.mubr.f32.gmra.mxu1 %v5836_v63  ;;  %v4050_v31 = vld [vmem:[%s7444_s1 + $0x350] sm:$0xff] }
  0xaf   : > { %4903 = vmatprep.mubr.f32.mxu0 %v7651_v52  ;;  %4947 = vmatprep.subr.mxu1 %v4035_v40  ;;  %v7659_v52 = vld [vmem:[#allocation17_spill] sm:$0xff] }
  0xb0   : > { %4904 = vmatmul.mubr.f32.gmra.mxu0 %v7652_v22  ;;  %4948 = vmatpush3.msra.mxu1 %v4035_v40  ;;  %v4033_v40 = vld [vmem:[%s7444_s1 + $0x2c8] sm:$0xff] }
  0xb1   : > { %5027 = vmatprep.subr.mxu0 %v4051_v7  ;;  %4826 = vmatprep.mubr.msk.f32.mxu1 %vm617_vm1, %v5900_v58 }
  0xb2   : > { %5028 = vmatpush3.msra.mxu0 %v4051_v7  ;;  %4827 = vmatmul.mubr.f32.gmra.mxu1 %v5923_v47  ;;  %v4049_v7 = vld [vmem:[%s7444_s1 + $0x348] sm:$0xff] }
  0xb3   : > { %4906 = vmatprep.mubr.f32.mxu0 %v5990_v9  ;;  %4949 = vmatprep.subr.mxu1 %v4034_v34  ;;  %v4029_v9 = vld [vmem:[%s7444_s1 + $0x2a8] sm:$0xff] }
  0xb4   : > { %4907 = vmatmul.mubr.f32.gmra.mxu0 %v6016_v25  ;;  %4950 = vmatpush3.msra.mxu1 %v4034_v34  ;;  %v4032_v34 = vld [vmem:[%s7444_s1 + $0x2c0] sm:$0xff] }
  0xb5   : > { %5029 = vmatprep.subr.mxu0 %v4050_v31  ;;  %4829 = vmatprep.mubr.msk.f32.mxu1 %vm617_vm1, %v5981_v27  ;;  %v7658_v25 = vld [vmem:[#allocation14_spill] sm:$0xff] }
  0xb6   : > { %5030 = vmatpush3.msra.mxu0 %v4050_v31  ;;  %4830 = vmatmul.mubr.f32.gmra.mxu1 %v6002_v11  ;;  %v4048_v31 = vld [vmem:[%s7444_s1 + $0x340] sm:$0xff] }
  0xb7   : > { %4909 = vmatprep.mubr.f32.mxu0 %v6045_v30  ;;  %4951 = vmatprep.subr.mxu1 %v4033_v40  ;;  %v7653_v30 = vld [vmem:[#allocation2_spill] sm:$0xff] }
  0xb8   : > { %4910 = vmatmul.mubr.f32.gmra.mxu0 %v6056_v10  ;;  %4952 = vmatpush3.msra.mxu1 %v4033_v40  ;;  %v7654_v40 = vld [vmem:[#allocation3_spill] sm:$0xff]  ;;  %v4031_v10 = vld [vmem:[%s7444_s1 + $0x2b8] sm:$0xff] }
  0xb9   : > { %5031 = vmatprep.subr.mxu0 %v4049_v7  ;;  %4832 = vmatprep.mubr.msk.f32.mxu1 %vm617_vm1, %v5465_v32 }
  0xba   : > { %5032 = vmatpush3.msra.mxu0 %v4049_v7  ;;  %4833 = vmatmul.mubr.f32.gmra.mxu1 %v5467_v33  ;;  %v4047_v7 = vld [vmem:[%s7444_s1 + $0x338] sm:$0xff] }
  0xbb   : > { %4912 = vmatprep.mubr.f32.mxu0 %v7653_v30  ;;  %4953 = vmatprep.subr.mxu1 %v4032_v34  ;;  %v4030_v30 = vld [vmem:[%s7444_s1 + $0x2b0] sm:$0xff] }
  0xbc   : > { %4913 = vmatmul.mubr.f32.gmra.mxu0 %v7654_v40  ;;  %4954 = vmatpush3.msra.mxu1 %v4032_v34  ;;  %v7655_v40 = vld [vmem:[#allocation4_spill] sm:$0xff]  ;;  %v7656_v34 = vld [vmem:[#allocation6_spill] sm:$0xff] }
  0xbd   : > { %5033 = vmatprep.subr.mxu0 %v4048_v31  ;;  %4835 = vmatprep.mubr.msk.f32.mxu1 %vm617_vm1, %v5470_v36 }
  0xbe   : > { %5034 = vmatpush3.msra.mxu0 %v4048_v31  ;;  %4836 = vmatmul.mubr.f32.gmra.mxu1 %v5472_v37  ;;  %v4046_v31 = vld [vmem:[%s7444_s1 + $0x330] sm:$0xff] }
  0xbf   : > { %4915 = vmatprep.mubr.f32.mxu0 %v7655_v40  ;;  %4955 = vmatprep.subr.mxu1 %v4031_v10  ;;  %v358_v40 = vld [vmem:[%s5425_s16 + $0x180] sm:$0xff] }
  0xc0   : > { %4916 = vmatmul.mubr.f32.gmra.mxu0 %v7656_v34  ;;  %4956 = vmatpush3.msra.mxu1 %v4031_v10  ;;  %v7657_v34 = vld [vmem:[#allocation10_spill] sm:$0xff]  ;;  %v360_v10 = vld [vmem:[%s5425_s16 + $0x190] sm:$0x3] }
  0xc1   : > { %5035 = vmatprep.subr.mxu0 %v4047_v7  ;;  %4838 = vmatprep.mubr.msk.f32.mxu1 %vm617_vm1, %v7622_v8 }
  0xc2   : > { %5036 = vmatpush3.msra.mxu0 %v4047_v7  ;;  %4839 = vmatmul.mubr.f32.gmra.mxu1 %v5573_v35  ;;  %v5317_v7 = vld [vmem:[%s7446_s3] ss:$0 sm:$0xff] }
  0xc3   : > { %4918 = vmatprep.mubr.f32.mxu0 %v7657_v34  ;;  %4957 = vmatprep.subr.mxu1 %v4030_v30  ;;  %v419_v22 = vmul.f32 %v5317_v7, %v358_v40  ;;  %v359_v34 = vld [vmem:[%s5425_s16 + $0x188] sm:$0xff] }
  0xc4   : > { %4919 = vmatmul.mubr.f32.gmra.mxu0 %v7658_v25  ;;  %4958 = vmatpush3.msra.mxu1 %v4030_v30  ;;  %v4045_v30 = vld [vmem:[%s7444_s1 + $0x328] sm:$0xff]  ;;  %v421_v25 = vmul.f32 %v5317_v7, %v360_v10  ;;  %v420_v40 = vmul.f32 %v5317_v7, %v359_v34  ;;  %v7662_v34 = vld [vmem:[#allocation30_spill] sm:$0xff]  ;;  %v4027_v7 = vld [vmem:[%s7444_s1 + $0x298] sm:$0xff] }
  0xc5   : > { %5037 = vmatprep.subr.mxu0 %v4046_v31  ;;  %4841 = vmatprep.mubr.msk.f32.mxu1 %vm617_vm1, %v7628_v49 }
  0xc6   : > { %5038 = vmatpush3.msra.mxu0 %v4046_v31  ;;  %4842 = vmatmul.mubr.f32.gmra.mxu1 %v7621_v5  ;;  %v5318_v31 = vld [vmem:[%s7447_s4] ss:$0 sm:$0xff] }
  0xc7   : > { %4921 = vmatprep.mubr.f32.mxu0 %v7659_v52  ;;  %4959 = vmatprep.subr.mxu1 %v4029_v9  ;;  %v480_v10 = vadd.f32 %v5318_v31, %v419_v22  ;;  %v7661_v52 = vld [vmem:[#allocation25_spill] sm:$0xff]  ;;  %v481_v53 = vadd.f32 %v5318_v31, %v420_v40  ;;  %v4026_v40 = vld [vmem:[%s7444_s1 + $0x290] sm:$0xff] }
  0xc8   : > { %4922 = vmatmul.mubr.f32.gmra.mxu0 %v7660_v41  ;;  %4960 = vmatpush3.msra.mxu1 %v4029_v9  ;;  %v4044_v9 = vld [vmem:[%s7444_s1 + $0x320] sm:$0xff]  ;;  %v482_v41 = vadd.f32 %v5318_v31, %v421_v25  ;;  %v4043_v25 = vld [vmem:[%s7444_s1 + $0x318] sm:$0xff] }
  0xc9   : > { %5039 = vmatprep.subr.mxu0 %v4045_v30  ;;  %4844 = vmatprep.mubr.msk.f32.mxu1 %vm617_vm1, %v7634_v2  ;;  %v6557_v22 = vmax.f32 %v480_v10, 0.0  ;;  %v6568_v31 = vmax.f32 %v481_v53, 0.0  ;;  %v4042_v10 = vld [vmem:[%s7444_s1 + $0x310] sm:$0xff] }
  0xca   : > { %5040 = vmatpush3.msra.mxu0 %v4045_v30  ;;  %4845 = vmatmul.mubr.f32.gmra.mxu1 %v7627_v13  ;;  %v7663_v30 = vld [vmem:[#allocation32_spill] sm:$0xff] }
  0xcb   : > { %4924 = vmatprep.mubr.f32.mxu0 %v7661_v52  ;;  %4961 = vmatprep.subr.mxu1 %v4028_v51 }
  0xcc   : > { %4925 = vmatmul.mubr.f32.gmra.mxu0 %v7662_v34  ;;  %4962 = vmatpush3.msra.mxu1 %v4028_v51  ;;  %v536_v51 = vmax.f32 %v482_v41, 0.0  ;;  %v7664_v34 = vld [vmem:[#allocation38_spill] sm:$0xff]  ;;  %v6576_v41 = vsel %vm617_vm1, %v6557_v22, 0.0 }
  0xcd   : > { %5041 = vmatprep.subr.mxu0 %v4044_v9  ;;  %4847 = vmatprep.mubr.msk.f32.mxu1 %vm617_vm1, %v7639_v6 }
  0xce   : > { %5042 = vmatpush3.msra.mxu0 %v4044_v9  ;;  %4848 = vmatmul.mubr.f32.gmra.mxu1 %v7633_v61  ;;  %v6584_v53 = vsel %vm676_vm2, %v536_v51, 0.0  ;;  %v4025_v9 = vld [vmem:[%s7444_s1 + $0x288] sm:$0xff] }
  0xcf   : > { %4927 = vmatprep.mubr.f32.mxu0 %v7663_v30  ;;  %4963 = vmatprep.subr.mxu1 %v4027_v7  ;;  %v2204_v12 = vrot.slane %v6584_v53, 1  ;;  %v4041_v51 = vld [vmem:[%s7444_s1 + $0x308] sm:$0xff] }
  0xd0   : > { %4928 = vmatmul.mubr.f32.gmra.mxu0 %v7664_v34  ;;  %4964 = vmatpush3.msra.mxu1 %v4027_v7  ;;  %v2201_v7 = vrot.slane %v6576_v41, 1 }
  0xd1   : > { %5043 = vmatprep.subr.mxu0 %v4043_v25  ;;  %4850 = vmatprep.mubr.msk.f32.mxu1 %vm617_vm1, %v7640_v60 }
  0xd2   : > { %5044 = vmatpush3.msra.mxu0 %v4043_v25  ;;  %4851 = vmatmul.mubr.f32.gmra.mxu1 %v7638_v3  ;;  %v2202_v25 = vrot.slane %v6568_v31, 1 }
  0xd3   : > { %4930 = vmatprep.mubr.f32.mxu0 %v5955_v29  ;;  %4965 = vmatprep.subr.mxu1 %v4026_v40  ;;  %v7681_v29 = vld [vmem:[#allocation22_spill] sm:$0xff] }
  0xd4   : > { %4931 = vmatmul.mubr.f32.gmra.mxu0 %v5993_v20  ;;  %4966 = vmatpush3.msra.mxu1 %v4026_v40  ;;  %v6604_v40 = vsel %vm957_vm0, %v2201_v7, %v2202_v25  ;;  %v4024_v20 = vld [vmem:[%s7444_s1 + $0x280] sm:$0xff]  ;;  %v4086_v7 = vld [vmem:[%s7444_s1 + $0x3f8] sm:$0xff] }
  0xd5   : > { %5045 = vmatprep.subr.mxu0 %v4042_v10  ;;  %4853 = vmatprep.mubr.msk.f32.mxu1 %vm617_vm1, %v7642_v55  ;;  %7665 = vst [vmem:[#allocation24_spill] sm:$0xff] %v6604_v40 }
  0xd6   : > { %5046 = vmatpush3.msra.mxu0 %v4042_v10  ;;  %4854 = vmatmul.mubr.f32.gmra.mxu1 %v5978_v15  ;;  %v6613_v10 = vsel %vm957_vm0, %v2202_v25, %v2204_v12  ;;  %v4102_v25 = vld [vmem:[%s7444_s1 + $0x478] sm:$0xff] }
  0xd7   : > { %4933 = vmatprep.mubr.f32.mxu0 %v6029_v26  ;;  %4967 = vmatprep.subr.mxu1 %v4025_v9  ;;  %7666 = vst [vmem:[#allocation29_spill] sm:$0xff] %v6613_v10  ;;  %v7678_v26 = vld [vmem:[#allocation16_spill] sm:$0xff] }
  0xd8   : > { %4934 = vmatmul.mubr.f32.gmra.mxu0 %v6050_v42  ;;  %4968 = vmatpush3.msra.mxu1 %v4025_v9  ;;  %v4040_v9 = vld [vmem:[%s7444_s1 + $0x300] sm:$0xff]  ;;  %v7677_v42 = vld [vmem:[#allocation7_spill] sm:$0xff] }
  0xd9   : > { %5047 = vmatprep.subr.mxu0 %v4041_v51  ;;  %4856 = vmatprep.mubr.msk.f32.mxu1 %vm617_vm1, %v6557_v22 }
  0xda   : > { %5048 = vmatpush3.msra.mxu0 %v4041_v51  ;;  %4857 = vmatmul.mubr.f32.gmra.mxu1 %v6568_v31  ;;  %v7667_v51 = vld [vmem:[#allocation50_spill] sm:$0xff] }
  0xdb   : > { %4936 = vmatprep.mubr.f32.mxu0 %v6604_v40  ;;  %4969 = vmatprep.subr.mxu1 %v4024_v20 }
  0xdc   : > { %4937 = vmatmul.mubr.f32.gmra.mxu0 %v6613_v10  ;;  %4970 = vmatpush3.msra.mxu1 %v4024_v20  ;;  %v4085_v20 = vld [vmem:[%s7444_s1 + $0x3f0] sm:$0xff]  ;;  %v7675_v10 = vld [vmem:[#allocation13_spill] sm:$0xff] }
  0xdd   : > { %5049 = vmatprep.subr.mxu0 %v4040_v9  ;;  %4971 = vmatprep.mubr.f32.mxu1 %v6087_v1  ;;  %v4101_v1 = vld [vmem:[%s7444_s1 + $0x470] sm:$0xff] }
  0xde   : > { %5050 = vmatpush3.msra.mxu0 %v4040_v9  ;;  %4972 = vmatmul.mubr.f32.vlgmr.msra.gmra.mxu1 %v6098_v46  ;;  %v4080_v9 = vld [vmem:[%s7444_s1 + $0x3c8] sm:$0xff] }
  0xdf   : > { %5051 = vmatprep.mubr.msk.f32.mxu0 %vm617_vm1, %v5575_v38  ;;  %5099 = vmatprep.subr.mxu1 %v4086_v7  ;;  %v4084_v38 = vld [vmem:[%s7444_s1 + $0x3e8] sm:$0xff] }
  0xe0   : > { %5052 = vmatmul.mubr.f32.vlgmr.msra.gmra.mxu0 %v5577_v39  ;;  %5100 = vmatpush3.msra.mxu1 %v4086_v7  ;;  %v4100_v39 = vld [vmem:[%s7444_s1 + $0x468] sm:$0xff] }
  0xe1   : > { %5179 = vmatprep.subr.mxu0 %v4102_v25  ;;  %4974 = vmatprep.mubr.f32.mxu1 %v6108_v54 }
  0xe2   : > { %5180 = vmatpush3.msra.mxu0 %v4102_v25  ;;  %4975 = vmatmul.mubr.f32.gmra.mxu1 %v6119_v21  ;;  %v7668_v25 = vld [vmem:[#allocation51_spill] sm:$0xff] }
  0xe3   : > { %5054 = vmatprep.mubr.msk.f32.mxu0 %vm617_vm1, %v5666_v56  ;;  %5101 = vmatprep.subr.mxu1 %v4085_v20  ;;  %v4083_v56 = vld [vmem:[%s7444_s1 + $0x3e0] sm:$0xff] }
  0xe4   : > { %5055 = vmatmul.mubr.f32.gmra.mxu0 %v5668_v59  ;;  %5102 = vmatpush3.msra.mxu1 %v4085_v20  ;;  %v4099_v59 = vld [vmem:[%s7444_s1 + $0x460] sm:$0xff]  ;;  %v7669_v20 = vld [vmem:[#allocation52_spill] sm:$0xff] }
  0xe5   : > { %5181 = vmatprep.subr.mxu0 %v4101_v1  ;;  %4977 = vmatprep.mubr.f32.mxu1 %v6129_v14 }
  0xe6   : > { %5182 = vmatpush3.msra.mxu0 %v4101_v1  ;;  %4978 = vmatmul.mubr.f32.gmra.mxu1 %v6140_v17 }
  0xe7   : > { %5057 = vmatprep.mubr.msk.f32.mxu0 %vm617_vm1, %v5753_v45  ;;  %5103 = vmatprep.subr.mxu1 %v4084_v38  ;;  %v4082_v45 = vld [vmem:[%s7444_s1 + $0x3d8] sm:$0xff] }
  0xe8   : > { %5058 = vmatmul.mubr.f32.gmra.mxu0 %v5756_v18  ;;  %5104 = vmatpush3.msra.mxu1 %v4084_v38  ;;  %v4098_v18 = vld [vmem:[%s7444_s1 + $0x458] sm:$0xff]  ;;  %v4079_v38 = vld [vmem:[%s7444_s1 + $0x3c0] sm:$0xff] }
  0xe9   : > { %5183 = vmatprep.subr.mxu0 %v4100_v39  ;;  %4980 = vmatprep.mubr.f32.mxu1 %v6150_v0 }
  0xea   : > { %5184 = vmatpush3.msra.mxu0 %v4100_v39  ;;  %4981 = vmatmul.mubr.f32.gmra.mxu1 %v6161_v19 }
  0xeb   : > { %5060 = vmatprep.mubr.msk.f32.mxu0 %vm617_vm1, %v5813_v50  ;;  %5105 = vmatprep.subr.mxu1 %v4083_v56  ;;  %v4081_v50 = vld [vmem:[%s7444_s1 + $0x3d0] sm:$0xff] }
  0xec   : > { %5061 = vmatmul.mubr.f32.gmra.mxu0 %v5836_v63  ;;  %5106 = vmatpush3.msra.mxu1 %v4083_v56  ;;  %v7670_v56 = vld [vmem:[#allocation53_spill] sm:$0xff] }
  0xed   : > { %5185 = vmatprep.subr.mxu0 %v4099_v59  ;;  %4983 = vmatprep.mubr.f32.mxu1 %v6171_v16 }
  0xee   : > { %5186 = vmatpush3.msra.mxu0 %v4099_v59  ;;  %4984 = vmatmul.mubr.f32.gmra.mxu1 %v6182_v57  ;;  %v6680_v63 = vpop.f32.mrf.mxu1  ;;  %v7671_v59 = vld [vmem:[#allocation54_spill] sm:$0xff] }
  0xef   : > { %5063 = vmatprep.mubr.msk.f32.mxu0 %vm617_vm1, %v5900_v58  ;;  %5107 = vmatprep.subr.mxu1 %v4082_v45  ;;  %v6686_v46 = vpop.f32.mrf.mxu0  ;;  %v4097_v58 = vld [vmem:[%s7444_s1 + $0x450] sm:$0xff] }
  0xf0   : > { %5064 = vmatmul.mubr.f32.gmra.mxu0 %v5923_v47  ;;  %5108 = vmatpush3.msra.mxu1 %v4082_v45  ;;  %v6689_v12 = vpop.f32.mrf.mxu1 }
  0xf1   : > { %5187 = vmatprep.subr.mxu0 %v4098_v18  ;;  %4986 = vmatprep.mubr.f32.mxu1 %v6192_v62  ;;  %v6695_v47 = vpop.f32.mrf.mxu0 }
  0xf2   : > { %5188 = vmatpush3.msra.mxu0 %v4098_v18  ;;  %4987 = vmatmul.mubr.f32.gmra.mxu1 %v7667_v51 }
  0xf3   : > { %5066 = vmatprep.mubr.msk.f32.mxu0 %vm617_vm1, %v5981_v27  ;;  %5109 = vmatprep.subr.mxu1 %v4081_v50  ;;  %v6704_v7 = vpop.f32.mrf.mxu1  ;;  %v4096_v27 = vld [vmem:[%s7444_s1 + $0x448] sm:$0xff] }
  0xf4   : > { %5067 = vmatmul.mubr.f32.gmra.mxu0 %v6002_v11  ;;  %5110 = vmatpush3.msra.mxu1 %v4081_v50 }
  0xf5   : > { %5189 = vmatprep.subr.mxu0 %v4097_v58  ;;  %4989 = vmatprep.mubr.f32.mxu1 %v7668_v25  ;;  %v6711_v1 = vpop.f32.mrf.mxu0  ;;  %v6713_v11 = vpop.f32.mrf.mxu1 }
  0xf6   : > { %5190 = vmatpush3.msra.mxu0 %v4097_v58  ;;  %4990 = vmatmul.mubr.f32.gmra.mxu1 %v7669_v20  ;;  %v7672_v58 = vld [vmem:[#allocation55_spill] sm:$0xff] }
  0xf7   : > { %5069 = vmatprep.mubr.msk.f32.mxu0 %vm617_vm1, %v5465_v32  ;;  %5111 = vmatprep.subr.mxu1 %v4080_v9  ;;  %v6722_v39 = vpop.f32.mrf.mxu0  ;;  %v4095_v32 = vld [vmem:[%s7444_s1 + $0x440] sm:$0xff] }
  0xf8   : > { %5070 = vmatmul.mubr.f32.gmra.mxu0 %v5467_v33  ;;  %5112 = vmatpush3.msra.mxu1 %v4080_v9  ;;  %v4078_v33 = vld [vmem:[%s7444_s1 + $0x3b8] sm:$0xff]  ;;  %v7673_v9 = vld [vmem:[#allocation56_spill] sm:$0xff] }
  0xf9   : > { %5191 = vmatprep.subr.mxu0 %v4096_v27  ;;  %4992 = vmatprep.mubr.f32.mxu1 %v7670_v56  ;;  %v6729_v45 = vpop.f32.mrf.mxu1 }
  0xfa   : > { %5192 = vmatpush3.msra.mxu0 %v4096_v27  ;;  %4993 = vmatmul.mubr.f32.gmra.mxu1 %v7671_v59  ;;  %v4077_v27 = vld [vmem:[%s7444_s1 + $0x3b0] sm:$0xff] }
  0xfb   : > { %5072 = vmatprep.mubr.msk.f32.mxu0 %vm617_vm1, %v5470_v36  ;;  %5113 = vmatprep.subr.mxu1 %v4079_v38  ;;  %v6738_v18 = vpop.f32.mrf.mxu0  ;;  %v6740_v50 = vpop.f32.mrf.mxu1  ;;  %v4094_v36 = vld [vmem:[%s7444_s1 + $0x438] sm:$0xff] }
  0xfc   : > { %5073 = vmatmul.mubr.f32.gmra.mxu0 %v5472_v37  ;;  %5114 = vmatpush3.msra.mxu1 %v4079_v38 }
  0xfd   : > { %5193 = vmatprep.subr.mxu0 %v4095_v32  ;;  %4995 = vmatprep.mubr.f32.mxu1 %v7672_v58  ;;  %v6747_v37 = vpop.f32.mrf.mxu0 }
  0xfe   : > { %5194 = vmatpush3.msra.mxu0 %v4095_v32  ;;  %4996 = vmatmul.mubr.f32.gmra.mxu1 %v7673_v9  ;;  %v7674_v32 = vld [vmem:[#allocation57_spill] sm:$0xff] }
  0xff   : > { %5075 = vmatprep.mubr.msk.f32.mxu0 %vm617_vm1, %v7622_v8  ;;  %5115 = vmatprep.subr.mxu1 %v4078_v33  ;;  %v4093_v8 = vld [vmem:[%s7444_s1 + $0x430] sm:$0xff] }
 0x100   : > { %5076 = vmatmul.mubr.f32.gmra.mxu0 %v5573_v35  ;;  %5116 = vmatpush3.msra.mxu1 %v4078_v33  ;;  %v6756_v38 = vpop.f32.mrf.mxu1  ;;  %v4076_v33 = vld [vmem:[%s7444_s1 + $0x3a8] sm:$0xff] }
 0x101   : > { %5195 = vmatprep.subr.mxu0 %v4094_v36  ;;  %4998 = vmatprep.mubr.f32.mxu1 %v7674_v32 }
 0x102   : > { %5196 = vmatpush3.msra.mxu0 %v4094_v36  ;;  %4999 = vmatmul.mubr.f32.gmra.mxu1 %v7675_v10  ;;  %v6763_v40 = vpop.f32.mrf.mxu0  ;;  %v6765_v35 = vpop.f32.mrf.mxu1 }
 0x103   : > { %7676 = vst [vmem:[#allocation27_spill] sm:$0xff] %v6765_v35  ;;  %5078 = vmatprep.mubr.msk.f32.mxu0 %vm617_vm1, %v7628_v49  ;;  %5117 = vmatprep.subr.mxu1 %v4077_v27  ;;  %v4092_v49 = vld [vmem:[%s7444_s1 + $0x428] sm:$0xff] }
 0x104   : > { %5079 = vmatmul.mubr.f32.gmra.mxu0 %v7621_v5  ;;  %5118 = vmatpush3.msra.mxu1 %v4077_v27  ;;  %v6774_v36 = vpop.f32.mrf.mxu0  ;;  %v4075_v5 = vld [vmem:[%s7444_s1 + $0x3a0] sm:$0xff] }
 0x105   : > { %5197 = vmatprep.subr.mxu0 %v4093_v8  ;;  %5001 = vmatprep.mubr.f32.mxu1 %v7677_v42 }
 0x106   : > { %5198 = vmatpush3.msra.mxu0 %v4093_v8  ;;  %5002 = vmatmul.mubr.f32.gmra.mxu1 %v7678_v26  ;;  %v6781_v35 = vpop.f32.mrf.mxu1 }
 0x107   : > { %7679 = vst [vmem:[#allocation19_spill] sm:$0xff] %v6781_v35  ;;  %5081 = vmatprep.mubr.msk.f32.mxu0 %vm617_vm1, %v7634_v2  ;;  %5119 = vmatprep.subr.mxu1 %v4076_v33  ;;  %v4091_v2 = vld [vmem:[%s7444_s1 + $0x420] sm:$0xff] }
 0x108   : > { %5082 = vmatmul.mubr.f32.gmra.mxu0 %v7627_v13  ;;  %5120 = vmatpush3.msra.mxu1 %v4076_v33  ;;  %v6790_v27 = vpop.f32.mrf.mxu0  ;;  %v6792_v8 = vpop.f32.mrf.mxu1  ;;  %v4074_v33 = vld [vmem:[%s7444_s1 + $0x398] sm:$0xff] }
 0x109   : > { %7680 = vst [vmem:[#allocation33_spill] sm:$0xff] %v6792_v8  ;;  %5199 = vmatprep.subr.mxu0 %v4092_v49  ;;  %5004 = vmatprep.mubr.f32.mxu1 %v7681_v29  ;;  %v7683_v8 = vld [vmem:[#allocation20_spill] sm:$0xff] }
 0x10a   : > { %5200 = vmatpush3.msra.mxu0 %v4092_v49  ;;  %5005 = vmatmul.mubr.f32.gmra.mxu1 %v6329_v44  ;;  %v6799_v13 = vpop.f32.mrf.mxu0 }
 0x10b   : > { %5084 = vmatprep.mubr.msk.f32.mxu0 %vm617_vm1, %v7639_v6  ;;  %5121 = vmatprep.subr.mxu1 %v4075_v5  ;;  %v4090_v6 = vld [vmem:[%s7444_s1 + $0x418] sm:$0xff] }
 0x10c   : > { %5085 = vmatmul.mubr.f32.gmra.mxu0 %v7633_v61  ;;  %5122 = vmatpush3.msra.mxu1 %v4075_v5  ;;  %v6808_v49 = vpop.f32.mrf.mxu1  ;;  %v4073_v5 = vld [vmem:[%s7444_s1 + $0x390] sm:$0xff] }
 0x10d   : > { %7682 = vst [vmem:[#allocation36_spill] sm:$0xff] %v6808_v49  ;;  %5201 = vmatprep.subr.mxu0 %v4091_v2  ;;  %5007 = vmatprep.mubr.f32.mxu1 %v7683_v8  ;;  %v2485_v49 = vrot.slane %v6584_v53, 2 }
 0x10e   : > { %5202 = vmatpush3.msra.mxu0 %v4091_v2  ;;  %5008 = vmatmul.mubr.f32.gmra.mxu1 %v6350_v43  ;;  %v6815_v35 = vpop.f32.mrf.mxu0  ;;  %v6817_v61 = vpop.f32.mrf.mxu1 }
 0x10f   : > { %7684 = vst [vmem:[#allocation35_spill] sm:$0xff] %v6817_v61  ;;  %5087 = vmatprep.mubr.msk.f32.mxu0 %vm617_vm1, %v7640_v60  ;;  %5123 = vmatprep.subr.mxu1 %v4074_v33  ;;  %v4089_v60 = vld [vmem:[%s7444_s1 + $0x410] sm:$0xff] }
 0x110   : > { %5088 = vmatmul.mubr.f32.gmra.mxu0 %v7638_v3  ;;  %5124 = vmatpush3.msra.mxu1 %v4074_v33  ;;  %v6826_v2 = vpop.f32.mrf.mxu0  ;;  %v2482_v3 = vrot.slane %v6576_v41, 2  ;;  %v2483_v33 = vrot.slane %v6568_v31, 2 }
 0x111   : > { %5203 = vmatprep.subr.mxu0 %v4090_v6  ;;  %5010 = vmatprep.mubr.f32.mxu1 %v6360_v48 }
 0x112   : > { %5204 = vmatpush3.msra.mxu0 %v4090_v6  ;;  %5011 = vmatmul.mubr.f32.gmra.mxu1 %v6371_v24  ;;  %v6833_v61 = vpop.f32.mrf.mxu1  ;;  %v4072_v6 = vld [vmem:[%s7444_s1 + $0x388] sm:$0xff]  ;;  %v6857_v41 = vsel %vm1537_vm3, %v2482_v3, %v2483_v33  ;;  %v6863_v53 = vsel %vm1537_vm3, %v2483_v33, %v2485_v49  ;;  %v7691_v49 = vmov 0.0  }
 0x113   : > { %7685 = vst [vmem:[#allocation26_spill] sm:$0xff] %v6833_v61  ;;  %5090 = vmatprep.mubr.msk.f32.mxu0 %vm617_vm1, %v7642_v55  ;;  %5125 = vmatprep.subr.mxu1 %v4073_v5  ;;  %v4088_v55 = vld [vmem:[%s7444_s1 + $0x408] sm:$0xff]  ;;  %7687 = vst [vmem:[#allocation41_spill] sm:$0xff] %v6857_v41 }
 0x114   : > { %5091 = vmatmul.mubr.f32.gmra.mxu0 %v5978_v15  ;;  %5126 = vmatpush3.msra.mxu1 %v4073_v5  ;;  %v6845_v24 = vpop.f32.mrf.mxu0  ;;  %v6847_v61 = vpop.f32.mrf.mxu1  ;;  %7688 = vst [vmem:[#allocation5_spill] sm:$0xff] %v6863_v53  ;;  %v7692_v33 = vld [vmem:[#allocation11_spill] sm:$0xff] }
 0x115   : > { %7686 = vst [vmem:[#allocation34_spill] sm:$0xff] %v6847_v61  ;;  %5205 = vmatprep.subr.mxu0 %v4089_v60  ;;  %5013 = vmatprep.mubr.f32.mxu1 %v6381_v23 }
 0x116   : > { %5206 = vmatpush3.msra.mxu0 %v4089_v60  ;;  %5014 = vmatmul.mubr.f32.gmra.mxu1 %v6390_v28  ;;  %v6854_v15 = vpop.f32.mrf.mxu0  ;;  %v4071_v60 = vld [vmem:[%s7444_s1 + $0x380] sm:$0xff] }
 0x117   : > { %5093 = vmatprep.mubr.msk.f32.mxu0 %vm617_vm1, %v6557_v22  ;;  %5127 = vmatprep.subr.mxu1 %v4072_v6 }
 0x118   : > { %5094 = vmatmul.mubr.f32.gmra.mxu0 %v6568_v31  ;;  %5128 = vmatpush3.msra.mxu1 %v4072_v6  ;;  %v6866_v5 = vpop.f32.mrf.mxu1  ;;  %v4087_v31 = vld [vmem:[%s7444_s1 + $0x400] sm:$0xff] }
 0x119   : > { %7689 = vst [vmem:[#allocation8_spill] sm:$0xff] %v6866_v5  ;;  %5207 = vmatprep.subr.mxu0 %v4088_v55  ;;  %5016 = vmatprep.mubr.f32.mxu1 %v6857_v41  ;;  %v7694_v5 = vld [vmem:[#allocation18_spill] sm:$0xff]  ;;  %v7695_v41 = vld [vmem:[#allocation23_spill] sm:$0xff] }
 0x11a   : > { %5208 = vmatpush3.msra.mxu0 %v4088_v55  ;;  %5017 = vmatmul.mubr.f32.gmra.mxu1 %v6863_v53  ;;  %v6873_v4 = vpop.f32.mrf.mxu0  ;;  %v6875_v22 = vpop.f32.mrf.mxu1  ;;  %v7693_v55 = vld [vmem:[#allocation15_spill] sm:$0xff] }
 0x11b   : > { %7690 = vst [vmem:[#allocation25_spill] sm:$0xff] %v6875_v22  ;;  %5096 = vmatprep.mubr.f32.mxu0 %v7691_v49  ;;  %5129 = vmatprep.subr.mxu1 %v4071_v60 }
 0x11c   : > { %5097 = vmatmul.mubr.f32.gmra.mxu0 %v7691_v49  ;;  %5130 = vmatpush3.msra.mxu1 %v4071_v60  ;;  %v6882_v3 = vpop.f32.mrf.mxu0 }
 0x11d   : > { %5209 = vmatprep.subr.mxu0 %v4087_v31  ;;  %5131 = vmatprep.mubr.f32.mxu1 %v7692_v33 }
 0x11e   : > { %5210 = vmatpush3.msra.mxu0 %v4087_v31  ;;  %v4653_v6 = vpop.f32.mrf.mxu1  ;;  %5132 = vmatmul.mubr.f32.vlgmr.msra.gmra.mxu1 %v7693_v55 }
 0x11f   : > { %v1384_v22 = vadd.f32 %v4653_v6, %v6686_v46  ;;  %5211 = vmatprep.mubr.f32.mxu0 %v6108_v54  ;;  %5134 = vmatprep.mubr.f32.mxu1 %v7694_v5  ;;  %v7696_v46 = vld [vmem:[#allocation28_spill] sm:$0xff]  ;;  %v7697_v6 = vld [vmem:[#allocation31_spill] sm:$0xff] }
 0x120   : > { %v4733_v61 = vpop.f32.mrf.mxu0  ;;  %5212 = vmatmul.mubr.f32.vlgmr.msra.gmra.mxu0 %v6119_v21  ;;  %v1378_v49 = vpop.f32.mrf.mxu1 }
 0x121   : > { %v6890_v60 = vadd.f32 %v4733_v61, %v1384_v22  ;;  %v1379_v53 = vadd.f32 %v1378_v49, %v6695_v47  ;;  %5214 = vmatprep.mubr.f32.mxu0 %v6129_v14 }
 0x122   : > { %v1733_v31 = vpop.f32.mrf.mxu0  ;;  %v4656_v33 = vpop.f32.mrf.mxu1  ;;  %5135 = vmatmul.mubr.f32.gmra.mxu1 %v7695_v41 }
 0x123   : > { %v6895_v55 = vadd.f32 %v1733_v31, %v1379_v53  ;;  %v1394_v54 = vadd.f32 %v4656_v33, %v6711_v1  ;;  %5137 = vmatprep.mubr.f32.mxu1 %v7696_v46  ;;  %v7698_v53 = vld [vmem:[#allocation37_spill] sm:$0xff] }
 0x124   : > { %v4736_v5 = vpop.f32.mrf.mxu0  ;;  %5215 = vmatmul.mubr.f32.gmra.mxu0 %v6140_v17  ;;  %v1388_v21 = vpop.f32.mrf.mxu1 }
 0x125   : > { %v6900_v61 = vadd.f32 %v4736_v5, %v1394_v54  ;;  %v1389_v47 = vadd.f32 %v1388_v21, %v6722_v39  ;;  %5217 = vmatprep.mubr.f32.mxu0 %v6150_v0  ;;  %v7699_v54 = vld [vmem:[#allocation39_spill] sm:$0xff]  ;;  %v7700_v5 = vld [vmem:[#allocation42_spill] sm:$0xff] }
 0x126   : > { %v1743_v14 = vpop.f32.mrf.mxu0  ;;  %v4659_v22 = vpop.f32.mrf.mxu1  ;;  %5138 = vmatmul.mubr.f32.gmra.mxu1 %v7697_v6 }
 0x127   : > { %v6905_v41 = vadd.f32 %v1743_v14, %v1389_v47  ;;  %v1404_v1 = vadd.f32 %v4659_v22, %v6738_v18  ;;  %5140 = vmatprep.mubr.f32.mxu1 %v7698_v53  ;;  %v7701_v22 = vld [vmem:[#allocation44_spill] sm:$0xff] }
 0x128   : > { %v4739_v49 = vpop.f32.mrf.mxu0  ;;  %5218 = vmatmul.mubr.f32.gmra.mxu0 %v6161_v19  ;;  %v1398_v17 = vpop.f32.mrf.mxu1 }
 0x129   : > { %v6910_v31 = vadd.f32 %v4739_v49, %v1404_v1  ;;  %v1399_v39 = vadd.f32 %v1398_v17, %v6747_v37  ;;  %5220 = vmatprep.mubr.f32.mxu0 %v6171_v16  ;;  %v7702_v1 = vld [vmem:[#allocation46_spill] sm:$0xff] }
 0x12a   : > { %v1753_v0 = vpop.f32.mrf.mxu0  ;;  %v4662_v33 = vpop.f32.mrf.mxu1  ;;  %5141 = vmatmul.mubr.f32.gmra.mxu1 %v7699_v54 }
 0x12b   : > { %v6915_v46 = vadd.f32 %v1753_v0, %v1399_v39  ;;  %v1414_v18 = vadd.f32 %v4662_v33, %v6763_v40  ;;  %5143 = vmatprep.mubr.f32.mxu1 %v7700_v5  ;;  %v7703_v39 = vld [vmem:[#allocation48_spill] sm:$0xff]  ;;  %v7704_v33 = vld [vmem:[#allocation2_spill] sm:$0xff] }
 0x12c   : > { %v4742_v21 = vpop.f32.mrf.mxu0  ;;  %5221 = vmatmul.mubr.f32.gmra.mxu0 %v6182_v57  ;;  %v1408_v19 = vpop.f32.mrf.mxu1 }
 0x12d   : > { %v6920_v47 = vadd.f32 %v4742_v21, %v1414_v18  ;;  %v1409_v37 = vadd.f32 %v1408_v19, %v6774_v36  ;;  %5223 = vmatprep.mubr.f32.mxu0 %v6192_v62  ;;  %v7705_v21 = vld [vmem:[#allocation3_spill] sm:$0xff] }
 0x12e   : > { %v1763_v16 = vpop.f32.mrf.mxu0  ;;  %v4665_v14 = vpop.f32.mrf.mxu1  ;;  %5144 = vmatmul.mubr.f32.gmra.mxu1 %v7701_v22 }
 0x12f   : > { %v6925_v6 = vadd.f32 %v1763_v16, %v1409_v37  ;;  %v1424_v40 = vadd.f32 %v4665_v14, %v6790_v27  ;;  %5146 = vmatprep.mubr.f32.mxu1 %v7702_v1  ;;  %v7706_v37 = vld [vmem:[#allocation4_spill] sm:$0xff] }
 0x130   : > { %v4745_v53 = vpop.f32.mrf.mxu0  ;;  %5224 = vmatmul.mubr.f32.gmra.mxu0 %v7667_v51  ;;  %v1418_v57 = vpop.f32.mrf.mxu1 }
 0x131   : > { %v6930_v49 = vadd.f32 %v4745_v53, %v1424_v40  ;;  %v1419_v36 = vadd.f32 %v1418_v57, %v6799_v13  ;;  %5226 = vmatprep.mubr.f32.mxu0 %v7668_v25  ;;  %v7707_v40 = vld [vmem:[#allocation6_spill] sm:$0xff] }
 0x132   : > { %v1773_v62 = vpop.f32.mrf.mxu0  ;;  %v4668_v17 = vpop.f32.mrf.mxu1  ;;  %5147 = vmatmul.mubr.f32.gmra.mxu1 %v7703_v39  ;;  %v7708_v53 = vld [vmem:[#allocation10_spill] sm:$0xff] }
 0x133   : > { %v6935_v0 = vadd.f32 %v1773_v62, %v1419_v36  ;;  %v1434_v27 = vadd.f32 %v4668_v17, %v6815_v35  ;;  %5149 = vmatprep.mubr.f32.mxu1 %v7704_v33  ;;  %v7709_v17 = vld [vmem:[#allocation14_spill] sm:$0xff] }
 0x134   : > { %v4748_v54 = vpop.f32.mrf.mxu0  ;;  %5227 = vmatmul.mubr.f32.gmra.mxu0 %v7669_v20  ;;  %v1428_v51 = vpop.f32.mrf.mxu1 }
 0x135   : > { %v6940_v18 = vadd.f32 %v4748_v54, %v1434_v27  ;;  %v1429_v13 = vadd.f32 %v1428_v51, %v6826_v2  ;;  %5229 = vmatprep.mubr.f32.mxu0 %v7670_v56  ;;  %v7710_v27 = vld [vmem:[#allocation17_spill] sm:$0xff] }
 0x136   : > { %v1783_v25 = vpop.f32.mrf.mxu0  ;;  %v4671_v5 = vpop.f32.mrf.mxu1  ;;  %5150 = vmatmul.mubr.f32.gmra.mxu1 %v7705_v21 }
 0x137   : > { %v6945_v19 = vadd.f32 %v1783_v25, %v1429_v13  ;;  %v1444_v35 = vadd.f32 %v4671_v5, %v6845_v24  ;;  %5152 = vmatprep.mubr.f32.mxu1 %v7706_v37  ;;  %v7711_v13 = vld [vmem:[#allocation21_spill] sm:$0xff]  ;;  %v7712_v37 = vld [vmem:[#allocation30_spill] sm:$0xff] }
 0x138   : > { %v4751_v16 = vpop.f32.mrf.mxu0  ;;  %5230 = vmatmul.mubr.f32.gmra.mxu0 %v7671_v59  ;;  %v1438_v20 = vpop.f32.mrf.mxu1 }
 0x139   : > { %v6950_v14 = vadd.f32 %v4751_v16, %v1444_v35  ;;  %v1439_v2 = vadd.f32 %v1438_v20, %v6854_v15  ;;  %5232 = vmatprep.mubr.f32.mxu0 %v7672_v58 }
 0x13a   : > { %v1793_v56 = vpop.f32.mrf.mxu0  ;;  %v4674_v22 = vpop.f32.mrf.mxu1  ;;  %5153 = vmatmul.mubr.f32.gmra.mxu1 %v7707_v40 }
 0x13b   : > { %v6955_v1 = vadd.f32 %v1793_v56, %v1439_v2  ;;  %v1454_v24 = vadd.f32 %v4674_v22, %v6873_v4  ;;  %5155 = vmatprep.mubr.f32.mxu1 %v7708_v53  ;;  %v7713_v22 = vld [vmem:[#allocation40_spill] sm:$0xff] }
 0x13c   : > { %v4754_v57 = vpop.f32.mrf.mxu0  ;;  %5233 = vmatmul.mubr.f32.gmra.mxu0 %v7673_v9  ;;  %v1448_v59 = vpop.f32.mrf.mxu1 }
 0x13d   : > { %v6960_v36 = vadd.f32 %v4754_v57, %v1454_v24  ;;  %v1449_v15 = vadd.f32 %v1448_v59, %v6882_v3  ;;  %5235 = vmatprep.mubr.f32.mxu0 %v7674_v32  ;;  %v7714_v24 = vld [vmem:[#allocation27_spill] sm:$0xff] }
 0x13e   : > { %v1803_v58 = vpop.f32.mrf.mxu0  ;;  %v4677_v62 = vpop.f32.mrf.mxu1  ;;  %5156 = vmatmul.mubr.f32.gmra.mxu1 %v7709_v17  ;;  %v7715_v57 = vld [vmem:[#allocation43_spill] sm:$0xff] }
 0x13f   : > { %v6965_v39 = vadd.f32 %v1803_v58, %v1449_v15  ;;  %v1464_v4 = vadd.f32 %v4677_v62, %v6680_v63  ;;  %5158 = vmatprep.mubr.f32.mxu1 %v7710_v27  ;;  %v7716_v59 = vld [vmem:[#allocation19_spill] sm:$0xff]  ;;  %v7717_v15 = vld [vmem:[#allocation45_spill] sm:$0xff]  ;;  %v7718_v62 = vld [vmem:[#allocation12_spill] sm:$0xff] }
 0x140   : > { %v4757_v33 = vpop.f32.mrf.mxu0  ;;  %5236 = vmatmul.mubr.f32.gmra.mxu0 %v7675_v10  ;;  %v1458_v9 = vpop.f32.mrf.mxu1 }
 0x141   : > { %v6970_v54 = vadd.f32 %v4757_v33, %v1464_v4  ;;  %v1459_v3 = vadd.f32 %v1458_v9, %v6689_v12  ;;  %5238 = vmatprep.mubr.f32.mxu0 %v7677_v42  ;;  %v7719_v4 = vld [vmem:[#allocation33_spill] sm:$0xff]  ;;  %v7720_v9 = vld [vmem:[#allocation47_spill] sm:$0xff] }
 0x142   : > { %v1813_v32 = vpop.f32.mrf.mxu0  ;;  %v4680_v51 = vpop.f32.mrf.mxu1  ;;  %5159 = vmatmul.mubr.f32.gmra.mxu1 %v7711_v13  ;;  %v7722_v13 = vld [vmem:[#allocation24_spill] sm:$0xff] }
 0x143   : > { %v6975_v25 = vadd.f32 %v1813_v32, %v1459_v3  ;;  %v1474_v63 = vadd.f32 %v4680_v51, %v6704_v7  ;;  %5161 = vmatprep.mubr.f32.mxu1 %v7661_v52  ;;  %v7721_v32 = vld [vmem:[#allocation36_spill] sm:$0xff] }
 0x144   : > { %v4760_v5 = vpop.f32.mrf.mxu0  ;;  %5239 = vmatmul.mubr.f32.gmra.mxu0 %v7678_v26  ;;  %v1468_v10 = vpop.f32.mrf.mxu1 }
 0x145   : > { %v6980_v21 = vadd.f32 %v4760_v5, %v1474_v63  ;;  %v1469_v12 = vadd.f32 %v1468_v10, %v6713_v11  ;;  %5241 = vmatprep.mubr.f32.mxu0 %v7681_v29 }
 0x146   : > { %v1823_v42 = vpop.f32.mrf.mxu0  ;;  %v4683_v35 = vpop.f32.mrf.mxu1  ;;  %5162 = vmatmul.mubr.f32.gmra.mxu1 %v7712_v37 }
 0x147   : > { %v6985_v16 = vadd.f32 %v1823_v42, %v1469_v12  ;;  %v1484_v7 = vadd.f32 %v4683_v35, %v6729_v45  ;;  %5164 = vmatprep.mubr.f32.mxu1 %v7663_v30  ;;  %v7723_v12 = vld [vmem:[#allocation35_spill] sm:$0xff]  ;;  %v7724_v35 = vld [vmem:[#allocation41_spill] sm:$0xff] }
 0x148   : > { %v4763_v52 = vpop.f32.mrf.mxu0  ;;  %5242 = vmatmul.mubr.f32.gmra.mxu0 %v6329_v44  ;;  %v1478_v26 = vpop.f32.mrf.mxu1 }
 0x149   : > { %v6990_v20 = vadd.f32 %v4763_v52, %v1484_v7  ;;  %v1479_v11 = vadd.f32 %v1478_v26, %v6740_v50  ;;  %5244 = vmatprep.mubr.f32.mxu0 %v7683_v8  ;;  %v7725_v7 = vld [vmem:[#allocation29_spill] sm:$0xff]  ;;  %v7726_v26 = vld [vmem:[#allocation26_spill] sm:$0xff] }
 0x14a   : > { %v1833_v29 = vpop.f32.mrf.mxu0  ;;  %v4686_v2 = vpop.f32.mrf.mxu1  ;;  %5165 = vmatmul.mubr.f32.gmra.mxu1 %v7664_v34 }
 0x14b   : > { %v6995_v56 = vadd.f32 %v1833_v29, %v1479_v11  ;;  %v1494_v45 = vadd.f32 %v4686_v2, %v6756_v38  ;;  %5167 = vmatprep.mubr.f32.mxu1 %v7713_v22  ;;  %v7727_v29 = vld [vmem:[#allocation9_spill] sm:$0xff] }
 0x14c   : > { %v4766_v30 = vpop.f32.mrf.mxu0  ;;  %5245 = vmatmul.mubr.f32.gmra.mxu0 %v6350_v43  ;;  %v1488_v44 = vpop.f32.mrf.mxu1 }
 0x14d   : > { %v7000_v40 = vadd.f32 %v4766_v30, %v1494_v45  ;;  %v1489_v50 = vadd.f32 %v1488_v44, %v7714_v24  ;;  %5247 = vmatprep.mubr.f32.mxu0 %v6360_v48  ;;  %v7728_v45 = vld [vmem:[#allocation5_spill] sm:$0xff]  ;;  %v7729_v30 = vld [vmem:[#allocation34_spill] sm:$0xff] }
 0x14e   : > { %v1843_v8 = vpop.f32.mrf.mxu0  ;;  %v4689_v53 = vpop.f32.mrf.mxu1  ;;  %5168 = vmatmul.mubr.f32.gmra.mxu1 %v7715_v57  ;;  %v7730_v24 = vld [vmem:[#allocation49_spill] sm:$0xff]  ;;  %v7731_v57 = vld [vmem:[#allocation8_spill] sm:$0xff] }
 0x14f   : > { %v7005_v34 = vadd.f32 %v1843_v8, %v1489_v50  ;;  %v1504_v38 = vadd.f32 %v4689_v53, %v7716_v59  ;;  %5170 = vmatprep.mubr.f32.mxu1 %v7717_v15 }
 0x150   : > { %v4769_v58 = vpop.f32.mrf.mxu0  ;;  %5248 = vmatmul.mubr.f32.gmra.mxu0 %v7718_v62  ;;  %v1498_v43 = vpop.f32.mrf.mxu1  ;;  %v7732_v62 = vld [vmem:[#allocation25_spill] sm:$0xff] }
 0x151   : > { %v7010_v17 = vadd.f32 %v4769_v58, %v1504_v38  ;;  %v1499_v27 = vadd.f32 %v1498_v43, %v7719_v4  ;;  %5250 = vmatprep.mubr.f32.mxu0 %v6381_v23 }
 0x152   : > { %v1853_v48 = vpop.f32.mrf.mxu0  ;;  %v4692_v33 = vpop.f32.mrf.mxu1  ;;  %5171 = vmatmul.mubr.f32.gmra.mxu1 %v7720_v9 }
 0x153   : > { %v7015_v3 = vadd.f32 %v1853_v48, %v1499_v27  ;;  %v1514_v51 = vadd.f32 %v4692_v33, %v7721_v32  ;;  %5173 = vmatprep.mubr.f32.mxu1 %v7722_v13 }
 0x154   : > { %v4772_v63 = vpop.f32.mrf.mxu0  ;;  %5251 = vmatmul.mubr.f32.gmra.mxu0 %v6390_v28  ;;  %v1508_v5 = vpop.f32.mrf.mxu1 }
 0x155   : > { %v7020_v10 = vadd.f32 %v4772_v63, %v1514_v51  ;;  %v1509_v42 = vadd.f32 %v1508_v5, %v7723_v12  ;;  %5253 = vmatprep.mubr.f32.mxu0 %v7724_v35 }
 0x156   : > { %v1863_v23 = vpop.f32.mrf.mxu0  ;;  %v4695_v37 = vpop.f32.mrf.mxu1  ;;  %5174 = vmatmul.mubr.f32.gmra.mxu1 %v7725_v7 }
 0x157   : > { %v7025_v52 = vadd.f32 %v1863_v23, %v1509_v42  ;;  %v1524_v11 = vadd.f32 %v4695_v37, %v7726_v26  ;;  %5176 = vmatprep.mubr.f32.mxu1 %v7727_v29 }
 0x158   : > { %v4775_v2 = vpop.f32.mrf.mxu0  ;;  %5254 = vmatmul.mubr.f32.gmra.mxu0 %v7728_v45  ;;  %v1518_v28 = vpop.f32.mrf.mxu1 }
 0x159   : > { %v7030_v22 = vadd.f32 %v4775_v2, %v1524_v11  ;;  %v1519_v44 = vadd.f32 %v1518_v28, %v7729_v30  ;;  %5256 = vmatprep.mubr.f32.mxu0 %v7730_v24 }
 0x15a   : > { %v1873_v50 = vpop.f32.mrf.mxu0  ;;  %v4698_v8 = vpop.f32.mrf.mxu1  ;;  %5177 = vmatmul.mubr.f32.gmra.mxu1 %v7727_v29 }
 0x15b   : > { %v7035_v53 = vadd.f32 %v1873_v50, %v1519_v44  ;;  %v1534_v59 = vadd.f32 %v4698_v8, %v7731_v57 }
 0x15c   : > { %v4778_v38 = vpop.f32.mrf.mxu0  ;;  %5257 = vmatmul.mubr.f32.gmra.mxu0 %v7730_v24  ;;  %v1528_v15 = vpop.f32.mrf.mxu1 }
 0x15d   : > { %v7039_v58 = vadd.f32 %v4778_v38, %v1534_v59  ;;  %v1529_v43 = vadd.f32 %v1528_v15, %v7732_v62 }
 0x15e   : > { %v1883_v4 = vpop.f32.mrf.mxu0  ;;  %v4813_v27 = vpop.f32.mrf.mxu1 }
 0x15f   : > { %v7042_v48 = vadd.f32 %v1883_v4, %v1529_v43  ;;  %v2167_v33 = vadd.f32 %v4813_v27, %v6890_v60 }
 0x160   : > { %v4893_v9 = vpop.f32.mrf.mxu0  ;;  %v2007_v32 = vpop.f32.mrf.mxu1 }
 0x161   : > { %v7045_v51 = vadd.f32 %v4893_v9, %v2167_v33  ;;  %v2166_v13 = vadd.f32 %v2007_v32, %v6895_v55 }
 0x162   : > { %v2291_v63 = vpop.f32.mrf.mxu0  ;;  %v4816_v5 = vpop.f32.mrf.mxu1 }
 0x163   : > { %v7048_v12 = vadd.f32 %v2291_v63, %v2166_v13  ;;  %v2169_v42 = vadd.f32 %v4816_v5, %v6900_v61 }
 0x164   : > { %v4896_v35 = vpop.f32.mrf.mxu0  ;;  %v2017_v23 = vpop.f32.mrf.mxu1 }
 0x165   : > { %v7051_v37 = vadd.f32 %v4896_v35, %v2169_v42  ;;  %v2168_v7 = vadd.f32 %v2017_v23, %v6905_v41 }
 0x166   : > { %v2301_v26 = vpop.f32.mrf.mxu0  ;;  %v4819_v60 = vpop.f32.mrf.mxu1 }
 0x167   : > { %v7054_v11 = vadd.f32 %v2301_v26, %v2168_v7  ;;  %v2171_v29 = vadd.f32 %v4819_v60, %v6910_v31 }
 0x168   : > { %v4899_v2 = vpop.f32.mrf.mxu0  ;;  %v2027_v55 = vpop.f32.mrf.mxu1 }
 0x169   : > { %v7057_v45 = vadd.f32 %v4899_v2, %v2171_v29  ;;  %v2170_v28 = vadd.f32 %v2027_v55, %v6915_v46 }
 0x16a   : > { %v2311_v30 = vpop.f32.mrf.mxu0  ;;  %v4822_v61 = vpop.f32.mrf.mxu1 }
 0x16b   : > { %v7060_v44 = vadd.f32 %v2311_v30, %v2170_v28  ;;  %v2173_v24 = vadd.f32 %v4822_v61, %v6920_v47 }
 0x16c   : > { %v4902_v50 = vpop.f32.mrf.mxu0  ;;  %v2037_v41 = vpop.f32.mrf.mxu1 }
 0x16d   : > { %v7063_v8 = vadd.f32 %v4902_v50, %v2173_v24  ;;  %v2172_v57 = vadd.f32 %v2037_v41, %v6925_v6 }
 0x16e   : > { %v2321_v59 = vpop.f32.mrf.mxu0  ;;  %v4825_v31 = vpop.f32.mrf.mxu1 }
 0x16f   : > { %v7066_v38 = vadd.f32 %v2321_v59, %v2172_v57  ;;  %v2175_v15 = vadd.f32 %v4825_v31, %v6930_v49 }
 0x170   : > { %v4905_v62 = vpop.f32.mrf.mxu0  ;;  %v2047_v46 = vpop.f32.mrf.mxu1 }
 0x171   : > { %v7069_v43 = vadd.f32 %v4905_v62, %v2175_v15  ;;  %v2174_v4 = vadd.f32 %v2047_v46, %v6935_v0 }
 0x172   : > { %v2331_v27 = vpop.f32.mrf.mxu0  ;;  %v4828_v47 = vpop.f32.mrf.mxu1 }
 0x173   : > { %v7072_v33 = vadd.f32 %v2331_v27, %v2174_v4  ;;  %v2177_v9 = vadd.f32 %v4828_v47, %v6940_v18 }
 0x174   : > { %v4908_v32 = vpop.f32.mrf.mxu0  ;;  %v2057_v6 = vpop.f32.mrf.mxu1 }
 0x175   : > { %v7075_v13 = vadd.f32 %v4908_v32, %v2177_v9  ;;  %v2176_v63 = vadd.f32 %v2057_v6, %v6945_v19 }
 0x176   : > { %v2341_v5 = vpop.f32.mrf.mxu0  ;;  %v4831_v49 = vpop.f32.mrf.mxu1 }
 0x177   : > { %v7078_v42 = vadd.f32 %v2341_v5, %v2176_v63  ;;  %v2179_v35 = vadd.f32 %v4831_v49, %v6950_v14 }
 0x178   : > { %v4911_v23 = vpop.f32.mrf.mxu0  ;;  %v2067_v0 = vpop.f32.mrf.mxu1 }
 0x179   : > { %v7081_v7 = vadd.f32 %v4911_v23, %v2179_v35  ;;  %v2178_v26 = vadd.f32 %v2067_v0, %v6955_v1 }
 0x17a   : > { %v2351_v60 = vpop.f32.mrf.mxu0  ;;  %v4834_v18 = vpop.f32.mrf.mxu1 }
 0x17b   : > { %v7084_v29 = vadd.f32 %v2351_v60, %v2178_v26  ;;  %v2181_v2 = vadd.f32 %v4834_v18, %v6960_v36 }
 0x17c   : > { %v4914_v55 = vpop.f32.mrf.mxu0  ;;  %v2077_v19 = vpop.f32.mrf.mxu1 }
 0x17d   : > { %v7087_v28 = vadd.f32 %v4914_v55, %v2181_v2  ;;  %v2180_v30 = vadd.f32 %v2077_v19, %v6965_v39 }
 0x17e   : > { %v2361_v61 = vpop.f32.mrf.mxu0  ;;  %v4837_v14 = vpop.f32.mrf.mxu1 }
 0x17f   : > { %v7090_v24 = vadd.f32 %v2361_v61, %v2180_v30  ;;  %v2183_v50 = vadd.f32 %v4837_v14, %v6970_v54 }
 0x180   : > { %v4917_v41 = vpop.f32.mrf.mxu0  ;;  %v2087_v1 = vpop.f32.mrf.mxu1 }
 0x181   : > { %v7093_v57 = vadd.f32 %v4917_v41, %v2183_v50  ;;  %v2182_v59 = vadd.f32 %v2087_v1, %v6975_v25 }
 0x182   : > { %v2371_v31 = vpop.f32.mrf.mxu0  ;;  %v4840_v36 = vpop.f32.mrf.mxu1 }
 0x183   : > { %v7096_v15 = vadd.f32 %v2371_v31, %v2182_v59  ;;  %v2185_v62 = vadd.f32 %v4840_v36, %v6980_v21 }
 0x184   : > { %v4920_v46 = vpop.f32.mrf.mxu0  ;;  %v2097_v39 = vpop.f32.mrf.mxu1 }
 0x185   : > { %v7099_v4 = vadd.f32 %v4920_v46, %v2185_v62  ;;  %v2184_v27 = vadd.f32 %v2097_v39, %v6985_v16 }
 0x186   : > { %v2381_v47 = vpop.f32.mrf.mxu0  ;;  %v4843_v54 = vpop.f32.mrf.mxu1 }
 0x187   : > { %7733 = vst [vmem:[#allocation32_spill] sm:$0xff] %v7099_v4  ;;  %v7102_v9 = vadd.f32 %v2381_v47, %v2184_v27  ;;  %v2187_v32 = vadd.f32 %v4843_v54, %v6990_v20 }
 0x188   : > { %v4923_v6 = vpop.f32.mrf.mxu0  ;;  %v2107_v25 = vpop.f32.mrf.mxu1 }
 0x189   : > { %7734 = vst [vmem:[#allocation38_spill] sm:$0xff] %v7102_v9  ;;  %v7105_v63 = vadd.f32 %v4923_v6, %v2187_v32  ;;  %v2186_v5 = vadd.f32 %v2107_v25, %v6995_v56 }
 0x18a   : > { %v2391_v49 = vpop.f32.mrf.mxu0  ;;  %v4846_v21 = vpop.f32.mrf.mxu1 }
 0x18b   : > { %7735 = vst [vmem:[#allocation50_spill] sm:$0xff] %v7105_v63  ;;  %v7108_v35 = vadd.f32 %v2391_v49, %v2186_v5  ;;  %v2189_v23 = vadd.f32 %v4846_v21, %v7000_v40 }
 0x18c   : > { %v4926_v0 = vpop.f32.mrf.mxu0  ;;  %v2117_v16 = vpop.f32.mrf.mxu1 }
 0x18d   : > { %7736 = vst [vmem:[#allocation51_spill] sm:$0xff] %v7108_v35  ;;  %v7111_v26 = vadd.f32 %v4926_v0, %v2189_v23  ;;  %v2188_v60 = vadd.f32 %v2117_v16, %v7005_v34 }
 0x18e   : > { %v2401_v18 = vpop.f32.mrf.mxu0  ;;  %v4849_v20 = vpop.f32.mrf.mxu1 }
 0x18f   : > { %7737 = vst [vmem:[#allocation52_spill] sm:$0xff] %v7111_v26  ;;  %v7114_v2 = vadd.f32 %v2401_v18, %v2188_v60  ;;  %v2191_v55 = vadd.f32 %v4849_v20, %v7010_v17 }
 0x190   : > { %v4929_v19 = vpop.f32.mrf.mxu0  ;;  %v2127_v56 = vpop.f32.mrf.mxu1 }
 0x191   : > { %7738 = vst [vmem:[#allocation53_spill] sm:$0xff] %v7114_v2  ;;  %v7117_v30 = vadd.f32 %v4929_v19, %v2191_v55  ;;  %v2190_v61 = vadd.f32 %v2127_v56, %v7015_v3 }
 0x192   : > { %v2411_v14 = vpop.f32.mrf.mxu0  ;;  %v4852_v40 = vpop.f32.mrf.mxu1 }
 0x193   : > { %7739 = vst [vmem:[#allocation54_spill] sm:$0xff] %v7117_v30  ;;  %v7120_v50 = vadd.f32 %v2411_v14, %v2190_v61  ;;  %v2193_v41 = vadd.f32 %v4852_v40, %v7020_v10 }
 0x194   : > { %v4932_v1 = vpop.f32.mrf.mxu0  ;;  %v2137_v34 = vpop.f32.mrf.mxu1 }
 0x195   : > { %7740 = vst [vmem:[#allocation55_spill] sm:$0xff] %v7120_v50  ;;  %v7123_v59 = vadd.f32 %v4932_v1, %v2193_v41  ;;  %v2192_v31 = vadd.f32 %v2137_v34, %v7025_v52 }
 0x196   : > { %v2421_v36 = vpop.f32.mrf.mxu0  ;;  %v4855_v17 = vpop.f32.mrf.mxu1 }
 0x197   : > { %7741 = vst [vmem:[#allocation56_spill] sm:$0xff] %v7123_v59  ;;  %v7126_v62 = vadd.f32 %v2421_v36, %v2192_v31  ;;  %v2195_v46 = vadd.f32 %v4855_v17, %v7030_v22 }
 0x198   : > { %v4935_v39 = vpop.f32.mrf.mxu0  ;;  %v2147_v3 = vpop.f32.mrf.mxu1 }
 0x199   : > { %7742 = vst [vmem:[#allocation57_spill] sm:$0xff] %v7126_v62  ;;  %v7129_v27 = vadd.f32 %v4935_v39, %v2195_v46  ;;  %v2194_v47 = vadd.f32 %v2147_v3, %v7035_v53 }
 0x19a   : > { %v2431_v54 = vpop.f32.mrf.mxu0  ;;  %v4858_v10 = vpop.f32.mrf.mxu1 }
 0x19b   : > { %7743 = vst [vmem:[#allocation13_spill] sm:$0xff] %v7129_v27  ;;  %v7132_v32 = vadd.f32 %v2431_v54, %v2194_v47  ;;  %v2197_v6 = vadd.f32 %v4858_v10, %v7039_v58 }
 0x19c   : > { %v4938_v25 = vpop.f32.mrf.mxu0  ;;  %v2157_v52 = vpop.f32.mrf.mxu1 }
 0x19d   : > { %7744 = vst [vmem:[#allocation7_spill] sm:$0xff] %v7132_v32  ;;  %v7135_v5 = vadd.f32 %v4938_v25, %v2197_v6  ;;  %v2196_v49 = vadd.f32 %v2157_v52, %v7042_v48 }
 0x19e   : > { %v2441_v21 = vpop.f32.mrf.mxu0  ;;  %v4973_v22 = vpop.f32.mrf.mxu1 }
 0x19f   : > { %7745 = vst [vmem:[#allocation16_spill] sm:$0xff] %v7135_v5  ;;  %v7138_v23 = vadd.f32 %v2441_v21, %v2196_v49 }
 0x1a0   : > { %v7140_v0 = vpop.f32.mrf.mxu0  ;;  %v2572_v16 = vpop.f32.mrf.mxu1 }
 0x1a1   : > { %7746 = vst [vmem:[#allocation22_spill] sm:$0xff] %v7138_v23 }
 0x1a2   : > { %v7142_v53 = vpop.f32.mrf.mxu0  ;;  %v4976_v60 = vpop.f32.mrf.mxu1 }
 0x1a4   : > { %v7144_v18 = vpop.f32.mrf.mxu0  ;;  %v7146_v20 = vpop.f32.mrf.mxu1 }
 0x1a6   : > { %v7148_v58 = vpop.f32.mrf.mxu0  ;;  %v7150_v55 = vpop.f32.mrf.mxu1 }
 0x1a8   : > { %v7152_v19 = vpop.f32.mrf.mxu0  ;;  %v7154_v48 = vpop.f32.mrf.mxu1 }
 0x1aa   : > { %v7156_v56 = vpop.f32.mrf.mxu0  ;;  %v7158_v61 = vpop.f32.mrf.mxu1 }
 0x1ac   : > { %v7160_v14 = vpop.f32.mrf.mxu0  ;;  %v7162_v40 = vpop.f32.mrf.mxu1 }
 0x1ae   : > { %v7164_v41 = vpop.f32.mrf.mxu0  ;;  %v7166_v1 = vpop.f32.mrf.mxu1 }
 0x1b0   : > { %v7168_v34 = vpop.f32.mrf.mxu0  ;;  %v7170_v31 = vpop.f32.mrf.mxu1 }
 0x1b2   : > { %v7172_v36 = vpop.f32.mrf.mxu0  ;;  %v7174_v17 = vpop.f32.mrf.mxu1 }
 0x1b4   : > { %v7176_v46 = vpop.f32.mrf.mxu0  ;;  %v7178_v39 = vpop.f32.mrf.mxu1 }
 0x1b6   : > { %v7180_v3 = vpop.f32.mrf.mxu0  ;;  %v7182_v47 = vpop.f32.mrf.mxu1 }
 0x1b8   : > { %v7184_v54 = vpop.f32.mrf.mxu0  ;;  %v7186_v10 = vpop.f32.mrf.mxu1 }
 0x1ba   : > { %v7188_v6 = vpop.f32.mrf.mxu0  ;;  %v7190_v25 = vpop.f32.mrf.mxu1 }
 0x1bc   : > { %v7192_v52 = vpop.f32.mrf.mxu0  ;;  %v7194_v49 = vpop.f32.mrf.mxu1 }
 0x1be   : > { %v7196_v21 = vpop.f32.mrf.mxu0  ;;  %v7198_v23 = vpop.f32.mrf.mxu1 }
 0x1c0   : > { %v7200_v5 = vpop.f32.mrf.mxu0  ;;  %v7202_v32 = vpop.f32.mrf.mxu1 }
 0x1c2   : > { %v7204_v27 = vpop.f32.mrf.mxu0  ;;  %v7206_v62 = vpop.f32.mrf.mxu1 }
 0x1c3   : > { %7747 = vst [vmem:[#allocation20_spill] sm:$0xff] %v7204_v27  ;;  %7748 = vst [vmem:[#allocation11_spill] sm:$0xff] %v7206_v62 }
 0x1c4   : > { %v7208_v59 = vpop.f32.mrf.mxu0  ;;  %v7210_v50 = vpop.f32.mrf.mxu1 }
 0x1c5   : > { %7749 = vst [vmem:[#allocation15_spill] sm:$0xff] %v7208_v59  ;;  %7750 = vst [vmem:[#allocation18_spill] sm:$0xff] %v7210_v50 }
 0x1c6   : > { %v7212_v30 = vpop.f32.mrf.mxu0  ;;  %v7214_v2 = vpop.f32.mrf.mxu1 }
 0x1c7   : > { %7751 = vst [vmem:[#allocation23_spill] sm:$0xff] %v7212_v30  ;;  %7752 = vst [vmem:[#allocation28_spill] sm:$0xff] %v7214_v2 }
 0x1c8   : > { %v7216_v26 = vpop.f32.mrf.mxu0  ;;  %v7218_v35 = vpop.f32.mrf.mxu1 }
 0x1c9   : > { %7753 = vst [vmem:[#allocation31_spill] sm:$0xff] %v7216_v26  ;;  %7754 = vst [vmem:[#allocation37_spill] sm:$0xff] %v7218_v35 }
 0x1ca   : > { %v7220_v63 = vpop.f32.mrf.mxu0  ;;  %v7222_v9 = vpop.f32.mrf.mxu1 }
 0x1cb   : > { %7755 = vst [vmem:[#allocation39_spill] sm:$0xff] %v7220_v63  ;;  %7756 = vst [vmem:[#allocation42_spill] sm:$0xff] %v7222_v9 }
 0x1cc   : > { %v7224_v4 = vpop.f32.mrf.mxu0  ;;  %v7226_v27 = vpop.f32.mrf.mxu1 }
 0x1cd   : > { %7757 = vst [vmem:[#allocation44_spill] sm:$0xff] %v7224_v4  ;;  %7758 = vst [vmem:[#allocation46_spill] sm:$0xff] %v7226_v27 }
 0x1ce   : > { %v7228_v62 = vpop.f32.mrf.mxu0  ;;  %v7230_v59 = vpop.f32.mrf.mxu1 }
 0x1cf   : > { %7759 = vst [vmem:[#allocation48_spill] sm:$0xff] %v7228_v62  ;;  %7760 = vst [vmem:[#allocation2_spill] sm:$0xff] %v7230_v59 }
 0x1d0   : > { %v7232_v50 = vpop.f32.mrf.mxu0  ;;  %v7234_v30 = vpop.f32.mrf.mxu1 }
 0x1d1   : > { %7761 = vst [vmem:[#allocation3_spill] sm:$0xff] %v7232_v50  ;;  %7762 = vst [vmem:[#allocation4_spill] sm:$0xff] %v7234_v30  ;;  %v2732_v50 = vadd.f32 %v4973_v22, %v7045_v51  ;;  %v2733_v51 = vadd.f32 %v7146_v20, %v7054_v11 }
 0x1d2   : > { %v7236_v2 = vpop.f32.mrf.mxu0  ;;  %v7238_v26 = vpop.f32.mrf.mxu1 }
 0x1d3   : > { %7763 = vst [vmem:[#allocation6_spill] sm:$0xff] %v7236_v2  ;;  %7764 = vst [vmem:[#allocation10_spill] sm:$0xff] %v7238_v26  ;;  %v2731_v26 = vadd.f32 %v2572_v16, %v7048_v12  ;;  %v7273_v12 = vld [vmem:[%s7445_s2] ss:$0 sm:$0xff] }
 0x1d4   : > { %v7240_v35 = vpop.f32.mrf.mxu0  ;;  %v7242_v63 = vpop.f32.mrf.mxu1 }
 0x1d5   : > { %7765 = vst [vmem:[#allocation14_spill] sm:$0xff] %v7240_v35  ;;  %7766 = vst [vmem:[#allocation17_spill] sm:$0xff] %v7242_v63 }
 0x1d6   : > { %v7244_v9 = vpop.f32.mrf.mxu0  ;;  %v7246_v4 = vpop.f32.mrf.mxu1 }
 0x1d7   : > { %7767 = vst [vmem:[#allocation21_spill] sm:$0xff] %v7244_v9  ;;  %7768 = vst [vmem:[#allocation30_spill] sm:$0xff] %v7246_v4  ;;  %v3006_v9 = vadd.f32 %v7140_v0, %v2732_v50  ;;  %v2734_v4 = vadd.f32 %v4976_v60, %v7051_v37  ;;  %v2736_v60 = vadd.f32 %v7150_v55, %v7057_v45 }
 0x1d8   : > { %v7248_v62 = vpop.f32.mrf.mxu0  ;;  %v7250_v59 = vpop.f32.mrf.mxu1 }
 0x1d9   : > { %7769 = vst [vmem:[#allocation40_spill] sm:$0xff] %v7248_v62  ;;  %7770 = vst [vmem:[#allocation27_spill] sm:$0xff] %v7250_v59  ;;  %v3005_v59 = vadd.f32 %v7142_v53, %v2731_v26  ;;  %v3008_v50 = vadd.f32 %v7144_v18, %v2734_v4  ;;  %v2735_v26 = vadd.f32 %v7154_v48, %v7060_v44 }
 0x1da   : > { %v7253_v30 = vpop.f32.mrf.mxu0  ;;  %v7255_v2 = vpop.f32.mrf.mxu1  ;;  %v2738_v44 = vadd.f32 %v7158_v61, %v7063_v8  ;;  %v3010_v48 = vadd.f32 %v7152_v19, %v2736_v60 }
 0x1db   : > { %7771 = vst [vmem:[#allocation43_spill] sm:$0xff] %v7255_v2 }
 0x1dc   : > { %v7258_v35 = vpop.f32.mrf.mxu0  ;;  %v7260_v63 = vpop.f32.mrf.mxu1 }
 0x1de   : > { %v7264_v27 = vpop.f32.mrf.mxu0  ;;  %v5133_v62 = vpop.f32.mrf.mxu1 }
 0x1df   : > { %v3290_v22 = vadd.f32 %v5133_v62, %v3006_v9  ;;  %v3007_v62 = vadd.f32 %v7148_v58, %v2733_v51  ;;  %v2737_v58 = vadd.f32 %v7162_v40, %v7066_v38 }
 0x1e0   : > { %v5213_v2 = vpop.f32.mrf.mxu0  ;;  %v3130_v16 = vpop.f32.mrf.mxu1 }
 0x1e1   : > { %v3571_v37 = vadd.f32 %v5213_v2, %v3290_v22  ;;  %v3289_v0 = vadd.f32 %v3130_v16, %v3005_v59  ;;  %v3009_v22 = vadd.f32 %v7156_v56, %v2735_v26  ;;  %v3012_v26 = vadd.f32 %v7160_v14, %v2738_v44 }
 0x1e2   : > { %v3411_v11 = vpop.f32.mrf.mxu0  ;;  %v5136_v9 = vpop.f32.mrf.mxu1  ;;  %v2742_v44 = vadd.f32 %v7174_v17, %v7075_v13 }
 0x1e3   : > { %v3610_v4 = vadd.f32 %v7273_v12, %v3571_v37  ;;  %v3570_v2 = vadd.f32 %v3411_v11, %v3289_v0  ;;  %v3292_v59 = vadd.f32 %v5136_v9, %v3008_v50  ;;  %v2740_v11 = vadd.f32 %v7166_v1, %v7069_v43 }
 0x1e4   : > { %v5216_v53 = vpop.f32.mrf.mxu0  ;;  %v3140_v45 = vpop.f32.mrf.mxu1 }
 0x1e5   : > { %3642 = vst [vmem:[%s7283_s15 + $0x8] sm:$0xff] %v3610_v4  ;;  %v3609_v18 = vadd.f32 %v7273_v12, %v3570_v2  ;;  %v3573_v20 = vadd.f32 %v5216_v53, %v3292_v59  ;;  %v3291_v55 = vadd.f32 %v3140_v45, %v3007_v62  ;;  %v3712_v51 = vmul.f32 %v3610_v4, %v3610_v4 }
 0x1e6   : > { %v3421_v16 = vpop.f32.mrf.mxu0  ;;  %v5139_v50 = vpop.f32.mrf.mxu1  ;;  %v3011_v62 = vadd.f32 %v7164_v41, %v2737_v58  ;;  %v3014_v14 = vadd.f32 %v7168_v34, %v2740_v11  ;;  %v2744_v34 = vadd.f32 %v7182_v47, %v7081_v7  ;;  %v3016_v11 = vadd.f32 %v7176_v46, %v2742_v44 }
 0x1e7   : > { %3641 = vst [vmem:[%s7283_s15] sm:$0xff] %v3609_v18  ;;  %v3673_v37 = vadd.f32 %v3610_v4, %v3609_v18  ;;  %v3711_v0 = vmul.f32 %v3609_v18, %v3609_v18  ;;  %v3612_v8 = vadd.f32 %v7273_v12, %v3573_v20  ;;  %v3572_v61 = vadd.f32 %v3421_v16, %v3291_v55 }
 0x1e8   : > { %v3294_v19 = vadd.f32 %v5139_v50, %v3010_v48  ;;  %v5219_v60 = vpop.f32.mrf.mxu0  ;;  %v3150_v56 = vpop.f32.mrf.mxu1  ;;  %v2739_v4 = vadd.f32 %v7170_v31, %v7072_v33  ;;  %v2741_v16 = vadd.f32 %v7178_v39, %v7078_v42 }
 0x1e9   : > { %v3743_v9 = vadd.f32 %v3712_v51, %v3711_v0  ;;  %3644 = vst [vmem:[%s7283_s15 + $0x18] sm:$0xff] %v3612_v8  ;;  %v3611_v38 = vadd.f32 %v7273_v12, %v3572_v61  ;;  %v3293_v40 = vadd.f32 %v3150_v56, %v3009_v22  ;;  %v3714_v20 = vmul.f32 %v3612_v8, %v3612_v8 }
 0x1ea   : > { %v3575_v2 = vadd.f32 %v5219_v60, %v3294_v19  ;;  %v3431_v59 = vpop.f32.mrf.mxu0  ;;  %v5142_v53 = vpop.f32.mrf.mxu1  ;;  %v3013_v51 = vadd.f32 %v7172_v36, %v2739_v4  ;;  %v2743_v36 = vadd.f32 %v7186_v10, %v7084_v29  ;;  %v3018_v4 = vadd.f32 %v7184_v54, %v2744_v34 }
 0x1eb   : > { %3643 = vst [vmem:[%s7283_s15 + $0x10] sm:$0xff] %v3611_v38  ;;  %v3674_v43 = vadd.f32 %v3673_v37, %v3611_v38  ;;  %v3713_v1 = vmul.f32 %v3611_v38, %v3611_v38  ;;  %v3574_v45 = vadd.f32 %v3431_v59, %v3293_v40  ;;  %v3296_v18 = vadd.f32 %v5142_v53, %v3012_v26 }
 0x1ec   : > { %v3614_v41 = vadd.f32 %v7273_v12, %v3575_v2  ;;  %v5222_v55 = vpop.f32.mrf.mxu0  ;;  %v3160_v33 = vpop.f32.mrf.mxu1  ;;  %v3017_v59 = vadd.f32 %v7188_v6, %v2743_v36 }
 0x1ed   : > { %v3744_v31 = vadd.f32 %v3743_v9, %v3713_v1  ;;  %v3613_v48 = vadd.f32 %v7273_v12, %v3574_v45  ;;  %v3675_v22 = vadd.f32 %v3674_v43, %v3612_v8  ;;  %v3577_v58 = vadd.f32 %v5222_v55, %v3296_v18 }
 0x1ee   : > { %3646 = vst [vmem:[%s7283_s15 + $0x28] sm:$0xff] %v3614_v41  ;;  %v3295_v13 = vadd.f32 %v3160_v33, %v3011_v62  ;;  %v3441_v17 = vpop.f32.mrf.mxu0  ;;  %v5145_v50 = vpop.f32.mrf.mxu1  ;;  %v3716_v47 = vmul.f32 %v3614_v41, %v3614_v41  ;;  %v3015_v9 = vadd.f32 %v7180_v3, %v2741_v16  ;;  %v2746_v18 = vadd.f32 %v7190_v25, %v7087_v28 }
 0x1ef   : > { %3645 = vst [vmem:[%s7283_s15 + $0x20] sm:$0xff] %v3613_v48  ;;  %v3676_v37 = vadd.f32 %v3675_v22, %v3613_v48  ;;  %v3715_v0 = vmul.f32 %v3613_v48, %v3613_v48  ;;  %v3745_v61 = vadd.f32 %v3744_v31, %v3714_v20  ;;  %v3616_v8 = vadd.f32 %v7273_v12, %v3577_v58 }
 0x1f0   : > { %v3576_v42 = vadd.f32 %v3441_v17, %v3295_v13  ;;  %v3298_v39 = vadd.f32 %v5145_v50, %v3014_v14  ;;  %v5225_v19 = vpop.f32.mrf.mxu0  ;;  %v3170_v7 = vpop.f32.mrf.mxu1  ;;  %v2745_v20 = vadd.f32 %v7194_v49, %v7090_v24  ;;  %v2748_v25 = vadd.f32 %v7198_v23, %v7093_v57 }
 0x1f1   : > { %v3746_v60 = vadd.f32 %v3745_v61, %v3715_v0  ;;  %3648 = vst [vmem:[%s7283_s15 + $0x38] sm:$0xff] %v3616_v8  ;;  %v3677_v56 = vadd.f32 %v3676_v37, %v3614_v41  ;;  %v3297_v26 = vadd.f32 %v3170_v7, %v3013_v51  ;;  %v3718_v41 = vmul.f32 %v3616_v8, %v3616_v8 }
 0x1f2   : > { %v3615_v38 = vadd.f32 %v7273_v12, %v3576_v42  ;;  %v3579_v40 = vadd.f32 %v5225_v19, %v3298_v39  ;;  %v3451_v62 = vpop.f32.mrf.mxu0  ;;  %v5148_v46 = vpop.f32.mrf.mxu1  ;;  %v2747_v51 = vadd.f32 %v7202_v32, %v7096_v15  ;;  %v3020_v13 = vadd.f32 %v7192_v52, %v2746_v18  ;;  %v7772_v39 = vld [vmem:[#allocation20_spill] sm:$0xff]  ;;  %v7777_v18 = vld [vmem:[#allocation50_spill] sm:$0xff] }
 0x1f3   : > { %v3747_v29 = vadd.f32 %v3746_v60, %v3716_v47  ;;  %v3578_v10 = vadd.f32 %v3451_v62, %v3297_v26  ;;  %v3300_v2 = vadd.f32 %v5148_v46, %v3016_v11  ;;  %v3019_v0 = vadd.f32 %v7196_v21, %v2745_v20  ;;  %v7774_v26 = vld [vmem:[#allocation11_spill] sm:$0xff]  ;;  %v7775_v46 = vld [vmem:[#allocation38_spill] sm:$0xff]  ;;  %v7780_v20 = vld [vmem:[#allocation37_spill] sm:$0xff] }
 0x1f4   : > { %3647 = vst [vmem:[%s7283_s15 + $0x30] sm:$0xff] %v3615_v38  ;;  %v3678_v53 = vadd.f32 %v3677_v56, %v3615_v38  ;;  %v3717_v43 = vmul.f32 %v3615_v38, %v3615_v38  ;;  %v3618_v1 = vadd.f32 %v7273_v12, %v3579_v40  ;;  %v5228_v3 = vpop.f32.mrf.mxu0  ;;  %v3180_v45 = vpop.f32.mrf.mxu1  ;;  %v3022_v52 = vadd.f32 %v7200_v5, %v2748_v25  ;;  %v7773_v56 = vld [vmem:[#allocation32_spill] sm:$0xff] }
 0x1f5   : > { %v3617_v14 = vadd.f32 %v7273_v12, %v3578_v10  ;;  %v3581_v54 = vadd.f32 %v5228_v3, %v3300_v2  ;;  %v3299_v44 = vadd.f32 %v3180_v45, %v3015_v9  ;;  %v3021_v19 = vadd.f32 %v7772_v39, %v2747_v51  ;;  %v7782_v51 = vld [vmem:[#allocation23_spill] sm:$0xff]  ;;  %v7785_v39 = vld [vmem:[#allocation52_spill] sm:$0xff] }
 0x1f6   : > { %v3748_v6 = vadd.f32 %v3747_v29, %v3717_v43  ;;  %3650 = vst [vmem:[%s7283_s15 + $0x48] sm:$0xff] %v3618_v1  ;;  %v3679_v55 = vadd.f32 %v3678_v53, %v3616_v8  ;;  %v3461_v33 = vpop.f32.mrf.mxu0  ;;  %v5151_v31 = vpop.f32.mrf.mxu1  ;;  %v3720_v61 = vmul.f32 %v3618_v1, %v3618_v1  ;;  %v2750_v9 = vadd.f32 %v7774_v26, %v7773_v56  ;;  %v7788_v56 = vld [vmem:[#allocation46_spill] sm:$0xff] }
 0x1f7   : > { %3649 = vst [vmem:[%s7283_s15 + $0x40] sm:$0xff] %v3617_v14  ;;  %v3719_v48 = vmul.f32 %v3617_v14, %v3617_v14  ;;  %v3620_v22 = vadd.f32 %v7273_v12, %v3581_v54  ;;  %v3580_v58 = vadd.f32 %v3461_v33, %v3299_v44  ;;  %v3302_v28 = vadd.f32 %v5151_v31, %v3018_v4  ;;  %v7776_v4 = vld [vmem:[#allocation18_spill] sm:$0xff]  ;;  %v7779_v44 = vld [vmem:[#allocation51_spill] sm:$0xff] }
 0x1f8   : > { %v3680_v24 = vadd.f32 %v3679_v55, %v3617_v14  ;;  %v3749_v49 = vadd.f32 %v3748_v6, %v3718_v41  ;;  %v5231_v16 = vpop.f32.mrf.mxu0  ;;  %v3190_v34 = vpop.f32.mrf.mxu1  ;;  %v2749_v29 = vadd.f32 %v7776_v4, %v7775_v46  ;;  %v7778_v14 = vld [vmem:[#allocation28_spill] sm:$0xff]  ;;  %v2751_v41 = vadd.f32 %v7780_v20, %v7779_v44 }
 0x1f9   : > { %3652 = vst [vmem:[%s7283_s15 + $0x58] sm:$0xff] %v3620_v22  ;;  %v3619_v17 = vadd.f32 %v7273_v12, %v3580_v58  ;;  %v3583_v50 = vadd.f32 %v5231_v16, %v3302_v28  ;;  %v3301_v37 = vadd.f32 %v3190_v34, %v3017_v59  ;;  %v3722_v10 = vmul.f32 %v3620_v22, %v3620_v22 }
 0x1fa   : > { %v3750_v8 = vadd.f32 %v3749_v49, %v3719_v48  ;;  %v3681_v57 = vadd.f32 %v3680_v24, %v3618_v1  ;;  %v3471_v23 = vpop.f32.mrf.mxu0  ;;  %v5154_v15 = vpop.f32.mrf.mxu1  ;;  %v2752_v54 = vadd.f32 %v7778_v14, %v7777_v18  ;;  %v7781_v48 = vld [vmem:[#allocation15_spill] sm:$0xff]  ;;  %v3023_v24 = vadd.f32 %v7782_v51, %v2749_v29 }
 0x1fb   : > { %3651 = vst [vmem:[%s7283_s15 + $0x50] sm:$0xff] %v3619_v17  ;;  %v3721_v32 = vmul.f32 %v3619_v17, %v3619_v17  ;;  %v3622_v11 = vadd.f32 %v7273_v12, %v3583_v50  ;;  %v3582_v36 = vadd.f32 %v3471_v23, %v3301_v37  ;;  %v3304_v42 = vadd.f32 %v5154_v15, %v3020_v13  ;;  %v7784_v23 = vld [vmem:[#allocation39_spill] sm:$0xff] }
 0x1fc   : > { %v3682_v7 = vadd.f32 %v3681_v57, %v3619_v17  ;;  %v3751_v47 = vadd.f32 %v3750_v8, %v3720_v61  ;;  %v5234_v21 = vpop.f32.mrf.mxu0  ;;  %v3200_v60 = vpop.f32.mrf.mxu1  ;;  %v7783_v8 = vld [vmem:[#allocation31_spill] sm:$0xff]  ;;  %v3025_v15 = vadd.f32 %v7784_v23, %v2751_v41  ;;  %v7797_v23 = vld [vmem:[#allocation56_spill] sm:$0xff] }
 0x1fd   : > { %3654 = vst [vmem:[%s7283_s15 + $0x68] sm:$0xff] %v3622_v11  ;;  %v3621_v38 = vadd.f32 %v7273_v12, %v3582_v36  ;;  %v3585_v40 = vadd.f32 %v5234_v21, %v3304_v42  ;;  %v3303_v62 = vadd.f32 %v3200_v60, %v3019_v0  ;;  %v3724_v49 = vmul.f32 %v3622_v11, %v3622_v11  ;;  %v7787_v60 = vld [vmem:[#allocation53_spill] sm:$0xff] }
 0x1fe   : > { %v3752_v5 = vadd.f32 %v3751_v47, %v3721_v32  ;;  %v3683_v2 = vadd.f32 %v3682_v7, %v3620_v22  ;;  %v3481_v59 = vpop.f32.mrf.mxu0  ;;  %v5157_v53 = vpop.f32.mrf.mxu1  ;;  %v3024_v22 = vadd.f32 %v7781_v48, %v2750_v9  ;;  %v3026_v57 = vadd.f32 %v7783_v8, %v2752_v54 }
 0x1ff   : > { %3653 = vst [vmem:[%s7283_s15 + $0x60] sm:$0xff] %v3621_v38  ;;  %v3723_v43 = vmul.f32 %v3621_v38, %v3621_v38  ;;  %v3624_v1 = vadd.f32 %v7273_v12, %v3585_v40  ;;  %v3584_v3 = vadd.f32 %v3481_v59, %v3303_v62  ;;  %v3306_v45 = vadd.f32 %v5157_v53, %v3022_v52  ;;  %v7790_v59 = vld [vmem:[#allocation2_spill] sm:$0xff] }
 0x200   : > { %v3684_v6 = vadd.f32 %v3683_v2, %v3621_v38  ;;  %v3753_v55 = vadd.f32 %v3752_v5, %v3722_v10  ;;  %v5237_v33 = vpop.f32.mrf.mxu0  ;;  %v3210_v31 = vpop.f32.mrf.mxu1  ;;  %v2753_v26 = vadd.f32 %v7788_v56, %v7787_v60  ;;  %v7789_v2 = vld [vmem:[#allocation54_spill] sm:$0xff] }
 0x201   : > { %3656 = vst [vmem:[%s7283_s15 + $0x78] sm:$0xff] %v3624_v1  ;;  %v3623_v58 = vadd.f32 %v7273_v12, %v3584_v3  ;;  %v3587_v28 = vadd.f32 %v5237_v33, %v3306_v45  ;;  %v3305_v25 = vadd.f32 %v3210_v31, %v3021_v19  ;;  %v7786_v19 = vld [vmem:[#allocation42_spill] sm:$0xff]  ;;  %v3726_v9 = vmul.f32 %v3624_v1, %v3624_v1  ;;  %v7792_v3 = vld [vmem:[#allocation4_spill] sm:$0xff] }
 0x202   : > { %v3754_v16 = vadd.f32 %v3753_v55, %v3723_v43  ;;  %v3685_v34 = vadd.f32 %v3684_v6, %v3622_v11  ;;  %v3491_v13 = vpop.f32.mrf.mxu0  ;;  %v5160_v17 = vpop.f32.mrf.mxu1  ;;  %v2754_v11 = vadd.f32 %v7786_v19, %v7785_v39  ;;  %v2756_v53 = vadd.f32 %v7790_v59, %v7789_v2  ;;  %v7791_v43 = vld [vmem:[#allocation55_spill] sm:$0xff]  ;;  %v7794_v33 = vld [vmem:[#allocation48_spill] sm:$0xff]  ;;  %v7800_v39 = vld [vmem:[#allocation17_spill] sm:$0xff] }
 0x203   : > { %3655 = vst [vmem:[%s7283_s15 + $0x70] sm:$0xff] %v3623_v58  ;;  %v3725_v50 = vmul.f32 %v3623_v58, %v3623_v58  ;;  %v3626_v37 = vadd.f32 %v7273_v12, %v3587_v28  ;;  %v3586_v0 = vadd.f32 %v3491_v13, %v3305_v25  ;;  %v3308_v61 = vadd.f32 %v5160_v17, %v3024_v22  ;;  %v7796_v17 = vld [vmem:[#allocation6_spill] sm:$0xff] }
 0x204   : > { %v3686_v32 = vadd.f32 %v3685_v34, %v3623_v58  ;;  %v3755_v36 = vadd.f32 %v3754_v16, %v3724_v49  ;;  %v5240_v42 = vpop.f32.mrf.mxu0  ;;  %v3220_v52 = vpop.f32.mrf.mxu1  ;;  %v2755_v45 = vadd.f32 %v7792_v3, %v7791_v43  ;;  %v3027_v31 = vadd.f32 %v7794_v33, %v2753_v26  ;;  %v7795_v34 = vld [vmem:[#allocation3_spill] sm:$0xff] }
 0x205   : > { %3658 = vst [vmem:[%s7283_s15 + $0x88] sm:$0xff] %v3626_v37  ;;  %v3625_v7 = vadd.f32 %v7273_v12, %v3586_v0  ;;  %v3589_v47 = vadd.f32 %v5240_v42, %v3308_v61  ;;  %v3307_v21 = vadd.f32 %v3220_v52, %v3023_v24  ;;  %v3728_v48 = vmul.f32 %v3626_v37, %v3626_v37  ;;  %v7799_v52 = vld [vmem:[#allocation57_spill] sm:$0xff] }
 0x206   : > { %v3756_v38 = vadd.f32 %v3755_v36, %v3725_v50  ;;  %v3687_v40 = vadd.f32 %v3686_v32, %v3624_v1  ;;  %v3501_v62 = vpop.f32.mrf.mxu0  ;;  %v5163_v46 = vpop.f32.mrf.mxu1  ;;  %v7793_v1 = vld [vmem:[#allocation44_spill] sm:$0xff]  ;;  %v3030_v13 = vadd.f32 %v7795_v34, %v2756_v53  ;;  %v3029_v50 = vadd.f32 %v7796_v17, %v2755_v45  ;;  %v7809_v17 = vld [vmem:[#allocation43_spill] sm:$0xff] }
 0x207   : > { %3657 = vst [vmem:[%s7283_s15 + $0x80] sm:$0xff] %v3625_v7  ;;  %v3727_v4 = vmul.f32 %v3625_v7, %v3625_v7  ;;  %v3628_v29 = vadd.f32 %v7273_v12, %v3589_v47  ;;  %v3588_v10 = vadd.f32 %v3501_v62, %v3307_v21  ;;  %v3310_v5 = vadd.f32 %v5163_v46, %v3026_v57  ;;  %v7802_v62 = vld [vmem:[#allocation30_spill] sm:$0xff] }
 0x208   : > { %v3688_v18 = vadd.f32 %v3687_v40, %v3625_v7  ;;  %v3757_v14 = vadd.f32 %v3756_v38, %v3726_v9  ;;  %v5243_v54 = vpop.f32.mrf.mxu0  ;;  %v3230_v44 = vpop.f32.mrf.mxu1  ;;  %v3028_v20 = vadd.f32 %v7793_v1, %v2754_v11  ;;  %v2757_v19 = vadd.f32 %v7800_v39, %v7799_v52  ;;  %v7801_v40 = vld [vmem:[#allocation13_spill] sm:$0xff] }
 0x209   : > { %3660 = vst [vmem:[%s7283_s15 + $0x98] sm:$0xff] %v3628_v29  ;;  %v3627_v41 = vadd.f32 %v7273_v12, %v3588_v10  ;;  %v3591_v6 = vadd.f32 %v5243_v54, %v3310_v5  ;;  %v3309_v55 = vadd.f32 %v3230_v44, %v3025_v15  ;;  %v7798_v15 = vld [vmem:[#allocation10_spill] sm:$0xff]  ;;  %v3730_v11 = vmul.f32 %v3628_v29, %v3628_v29  ;;  %v7804_v10 = vld [vmem:[#allocation27_spill] sm:$0xff]  ;;  %v7806_v54 = vld [vmem:[#allocation21_spill] sm:$0xff] }
 0x20a   : > { %v3758_v22 = vadd.f32 %v3757_v14, %v3727_v4  ;;  %v3689_v58 = vadd.f32 %v3688_v18, %v3626_v37  ;;  %v3511_v28 = vpop.f32.mrf.mxu0  ;;  %v5166_v25 = vpop.f32.mrf.mxu1  ;;  %v2758_v37 = vadd.f32 %v7798_v15, %v7797_v23  ;;  %v2760_v46 = vadd.f32 %v7802_v62, %v7801_v40  ;;  %v7803_v4 = vld [vmem:[#allocation7_spill] sm:$0xff] }
 0x20b   : > { %3659 = vst [vmem:[%s7283_s15 + $0x90] sm:$0xff] %v3627_v41  ;;  %v3729_v51 = vmul.f32 %v3627_v41, %v3627_v41  ;;  %v3630_v24 = vadd.f32 %v7273_v12, %v3591_v6  ;;  %v3590_v49 = vadd.f32 %v3511_v28, %v3309_v55  ;;  %v3312_v16 = vadd.f32 %v5166_v25, %v3028_v20 }
 0x20c   : > { %v3690_v0 = vadd.f32 %v3689_v58, %v3627_v41  ;;  %v3759_v61 = vadd.f32 %v3758_v22, %v3728_v48  ;;  %v5246_v8 = vpop.f32.mrf.mxu0  ;;  %v3240_v57 = vpop.f32.mrf.mxu1  ;;  %v2759_v5 = vadd.f32 %v7804_v10, %v7803_v4  ;;  %v3031_v44 = vadd.f32 %v7806_v54, %v2757_v19  ;;  %v7807_v58 = vld [vmem:[#allocation40_spill] sm:$0xff] }
 0x20d   : > { %3662 = vst [vmem:[%s7283_s15 + $0xa8] sm:$0xff] %v3630_v24  ;;  %v3629_v32 = vadd.f32 %v7273_v12, %v3590_v49  ;;  %v3593_v36 = vadd.f32 %v5246_v8, %v3312_v16  ;;  %v3311_v42 = vadd.f32 %v3240_v57, %v3027_v31  ;;  %v3732_v1 = vmul.f32 %v3630_v24, %v3630_v24  ;;  %v7810_v8 = vld [vmem:[#allocation22_spill] sm:$0xff] }
 0x20e   : > { %v3760_v7 = vadd.f32 %v3759_v61, %v3729_v51  ;;  %v3691_v47 = vadd.f32 %v3690_v0, %v3628_v29  ;;  %v3521_v21 = vpop.f32.mrf.mxu0  ;;  %v5169_v60 = vpop.f32.mrf.mxu1  ;;  %v7805_v29 = vld [vmem:[#allocation14_spill] sm:$0xff]  ;;  %v3034_v28 = vadd.f32 %v7807_v58, %v2760_v46  ;;  %v3033_v25 = vadd.f32 %v7253_v30, %v2759_v5 }
 0x20f   : > { %3661 = vst [vmem:[%s7283_s15 + $0xa0] sm:$0xff] %v3629_v32  ;;  %v3731_v56 = vmul.f32 %v3629_v32, %v3629_v32  ;;  %v3632_v26 = vadd.f32 %v7273_v12, %v3593_v36  ;;  %v3592_v9 = vadd.f32 %v3521_v21, %v3311_v42  ;;  %v3314_v38 = vadd.f32 %v5169_v60, %v3030_v13  ;;  %v7808_v13 = vld [vmem:[#allocation16_spill] sm:$0xff] }
 0x210   : > { %v3692_v2 = vadd.f32 %v3691_v47, %v3629_v32  ;;  %v3761_v59 = vadd.f32 %v3760_v7, %v3730_v11  ;;  %v5249_v53 = vpop.f32.mrf.mxu0  ;;  %v3250_v43 = vpop.f32.mrf.mxu1  ;;  %v3032_v3 = vadd.f32 %v7805_v29, %v2758_v37  ;;  %v2761_v57 = vadd.f32 %v7260_v63, %v7810_v8 }
 0x211   : > { %3664 = vst [vmem:[%s7283_s15 + $0xb8] sm:$0xff] %v3632_v26  ;;  %v3631_v45 = vadd.f32 %v7273_v12, %v3592_v9  ;;  %v3595_v18 = vadd.f32 %v5249_v53, %v3314_v38  ;;  %v3313_v14 = vadd.f32 %v3250_v43, %v3029_v50  ;;  %v3734_v23 = vmul.f32 %v3632_v26, %v3632_v26 }
 0x212   : > { %v3762_v20 = vadd.f32 %v3761_v59, %v3731_v56  ;;  %v3693_v41 = vadd.f32 %v3692_v2, %v3630_v24  ;;  %v3531_v6 = vpop.f32.mrf.mxu0  ;;  %v5172_v55 = vpop.f32.mrf.mxu1  ;;  %v2762_v24 = vadd.f32 %v7809_v17, %v7808_v13 }
 0x213   : > { %3663 = vst [vmem:[%s7283_s15 + $0xb0] sm:$0xff] %v3631_v45  ;;  %v3733_v33 = vmul.f32 %v3631_v45, %v3631_v45  ;;  %v3634_v31 = vadd.f32 %v7273_v12, %v3595_v18  ;;  %v3594_v48 = vadd.f32 %v3531_v6, %v3313_v14  ;;  %v3316_v22 = vadd.f32 %v5172_v55, %v3032_v3 }
 0x214   : > { %v3694_v51 = vadd.f32 %v3693_v41, %v3631_v45  ;;  %v3763_v49 = vadd.f32 %v3762_v20, %v3732_v1  ;;  %v5252_v16 = vpop.f32.mrf.mxu0  ;;  %v3260_v34 = vpop.f32.mrf.mxu1  ;;  %v3036_v21 = vadd.f32 %v7258_v35, %v2762_v24 }
 0x215   : > { %3666 = vst [vmem:[%s7283_s15 + $0xc8] sm:$0xff] %v3634_v31  ;;  %v3633_v50 = vadd.f32 %v7273_v12, %v3594_v48  ;;  %v3597_v0 = vadd.f32 %v5252_v16, %v3316_v22  ;;  %v3315_v61 = vadd.f32 %v3260_v34, %v3031_v44  ;;  %v3736_v9 = vmul.f32 %v3634_v31, %v3634_v31 }
 0x216   : > { %v3764_v15 = vadd.f32 %v3763_v49, %v3733_v33  ;;  %v3695_v30 = vadd.f32 %v3694_v51, %v3632_v26  ;;  %v3541_v37 = vpop.f32.mrf.mxu0  ;;  %v5175_v32 = vpop.f32.mrf.mxu1  ;;  %v3035_v26 = vadd.f32 %v7264_v27, %v2761_v57 }
 0x217   : > { %3665 = vst [vmem:[%s7283_s15 + $0xc0] sm:$0xff] %v3633_v50  ;;  %v3735_v36 = vmul.f32 %v3633_v50, %v3633_v50  ;;  %v3636_v42 = vadd.f32 %v7273_v12, %v3597_v0  ;;  %v3596_v52 = vadd.f32 %v3541_v37, %v3315_v61  ;;  %v3318_v39 = vadd.f32 %v5175_v32, %v3034_v28 }
 0x218   : > { %v3696_v19 = vadd.f32 %v3695_v30, %v3633_v50  ;;  %v3765_v11 = vadd.f32 %v3764_v15, %v3734_v23  ;;  %v5255_v7 = vpop.f32.mrf.mxu0  ;;  %v3270_v47 = vpop.f32.mrf.mxu1 }
 0x219   : > { %3668 = vst [vmem:[%s7283_s15 + $0xd8] sm:$0xff] %v3636_v42  ;;  %v3635_v63 = vadd.f32 %v7273_v12, %v3596_v52  ;;  %v3599_v60 = vadd.f32 %v5255_v7, %v3318_v39  ;;  %v3317_v56 = vadd.f32 %v3270_v47, %v3033_v25  ;;  %v3738_v45 = vmul.f32 %v3636_v42, %v3636_v42 }
 0x21a   : > { %v3766_v38 = vadd.f32 %v3765_v11, %v3735_v36  ;;  %v3697_v40 = vadd.f32 %v3696_v19, %v3634_v31  ;;  %v3551_v62 = vpop.f32.mrf.mxu0  ;;  %v5178_v46 = vpop.f32.mrf.mxu1 }
 0x21b   : > { %3667 = vst [vmem:[%s7283_s15 + $0xd0] sm:$0xff] %v3635_v63  ;;  %v3737_v4 = vmul.f32 %v3635_v63, %v3635_v63  ;;  %v3638_v10 = vadd.f32 %v7273_v12, %v3599_v60  ;;  %v3598_v5 = vadd.f32 %v3551_v62, %v3317_v56  ;;  %v3320_v35 = vadd.f32 %v5178_v46, %v3036_v21 }
 0x21c   : > { %v3698_v2 = vadd.f32 %v3697_v40, %v3635_v63  ;;  %v3767_v59 = vadd.f32 %v3766_v38, %v3736_v9  ;;  %v5258_v53 = vpop.f32.mrf.mxu0  ;;  %v3280_v43 = vpop.f32.mrf.mxu1 }
 0x21d   : > { %3670 = vst [vmem:[%s7283_s15 + $0xe8] sm:$0xff] %v3638_v10  ;;  %v3637_v27 = vadd.f32 %v7273_v12, %v3598_v5  ;;  %v3601_v29 = vadd.f32 %v5258_v53, %v3320_v35  ;;  %v3319_v3 = vadd.f32 %v3280_v43, %v3035_v26  ;;  %v3740_v33 = vmul.f32 %v3638_v10, %v3638_v10 }
 0x21e   : > { %v3768_v18 = vadd.f32 %v3767_v59, %v3737_v4  ;;  %v3699_v14 = vadd.f32 %v3698_v2, %v3636_v42  ;;  %v3561_v54 = vpop.f32.mrf.mxu0 }
 0x21f   : > { %3669 = vst [vmem:[%s7283_s15 + $0xe0] sm:$0xff] %v3637_v27  ;;  %v3739_v44 = vmul.f32 %v3637_v27, %v3637_v27  ;;  %v3640_v1 = vadd.f32 %v7273_v12, %v3601_v29  ;;  %v3600_v20 = vadd.f32 %v3561_v54, %v3319_v3 }
 0x220   : > { %v3700_v41 = vadd.f32 %v3699_v14, %v3637_v27  ;;  %v3769_v6 = vadd.f32 %v3768_v18, %v3738_v45 }
 0x221   : > { %3672 = vst [vmem:[%s7283_s15 + $0xf8] sm:$0xff] %v3640_v1  ;;  %v3639_v55 = vadd.f32 %v7273_v12, %v3600_v20  ;;  %v3742_v25 = vmul.f32 %v3640_v1, %v3640_v1 }
 0x222   : > { %v3770_v31 = vadd.f32 %v3769_v6, %v3739_v44  ;;  %v3701_v48 = vadd.f32 %v3700_v41, %v3638_v10 }
 0x223   : > { %3671 = vst [vmem:[%s7283_s15 + $0xf0] sm:$0xff] %v3639_v55  ;;  %v3741_v22 = vmul.f32 %v3639_v55, %v3639_v55 }
 0x224   : > { %v3702_v58 = vadd.f32 %v3701_v48, %v3639_v55  ;;  %v3771_v28 = vadd.f32 %v3770_v31, %v3740_v33 }
 0x226   : > { %v3703_v51 = vadd.f32 %v3702_v58, %v3640_v1  ;;  %v3772_v49 = vadd.f32 %v3771_v28, %v3741_v22 }
 0x228   : > { %v3704_v16 = vrot.slane %v3703_v51, 4  ;;  %v3773_v34 = vadd.f32 %v3772_v49, %v3742_v25 }
 0x22a   : > { %v3705_v13 = vadd.f32 %v3704_v16, %v3703_v51  ;;  %v3774_v17 = vrot.slane %v3773_v34, 4 }
 0x22c   : > { %v3706_v24 = vrot.slane %v3705_v13, 2  ;;  %v3775_v50 = vadd.f32 %v3774_v17, %v3773_v34 }
 0x22e   : > { %v3707_v0 = vadd.f32 %v3706_v24, %v3705_v13  ;;  %v3776_v12 = vrot.slane %v3775_v50, 2 }
 0x230   : > { %v3708_v61 = vrot.slane %v3707_v0, 1  ;;  %v3777_v8 = vadd.f32 %v3776_v12, %v3775_v50 }
 0x232   : > { %v3709_v57 = vadd.f32 %v3708_v61, %v3707_v0  ;;  %v3778_v23 = vrot.slane %v3777_v8, 1 }
 0x234   : > { %3710 = vst [vmem:[%s309_s20] sm:$0x1] %v3709_v57  ;;  %v3779_v15 = vadd.f32 %v3778_v23, %v3777_v8 }
 0x236   : > { %3780 = vst [vmem:[%s309_s20 + $0x1] sm:$0x1] %v3779_v15 }
 0x237 PF: > { %s17_s23 = sadd.s32 1, %s5341_s23   ;;  %s7811_s21 = smov %s5337_s22 }
 0x238   : > { %p14_p5 = scmp.ge.s32.totalorder %s17_s23, 4   ;;  %s7812_s22 = smov %s7814_s24 }
 0x23a   :  { %16 = sbr.rel (!%p14_p5) target bundleno = 2 (0x2), region = 90 }

// kernel: up_block_forward.5
= control target key start
LH: loop header
LB: loop body
LE: loop exit
PB: predicated region body
PF: predicated region fallthrough
CT: control target
= control target key end

     0   :  { %s8953_s21 = smov 0   ;;  %s8955_s22 = smov 0   ;;  %s12506_s0 = inlined_call_operand.vmem [shape: f32[2,1,18,18,128], index: 0, kind: input, shape index: {}]   ;;  %s12507_s1 = inlined_call_operand.vmem [shape: f32[2,1,18,18,128], index: 1, kind: input, shape index: {}]   ;;  %s12508_s2 = inlined_call_operand.vmem [shape: f32[3,3,128,128], index: 2, kind: input, shape index: {}]   ;;  %s12509_s3 = inlined_call_operand.vmem [shape: f32[3,3,128,128], index: 3, kind: input, shape index: {}]   ;;  %s12510_s4 = inlined_call_operand.vmem [shape: f32[1,128], index: 4, kind: input, shape index: {}]   ;;  %s12511_s5 = inlined_call_operand.vmem [shape: f32[2,16,16,128], index: 5, kind: output, shape index: {0}]   ;;  %s12512_s6 = inlined_call_operand.vmem [shape: f32[2,1,2,128], index: 6, kind: output, shape index: {1}]  }
   0x1   :  { %s8957_s23 = smov 0  }
   0x2 LB: > { %s29_s24 = sadd.s32 1, %s8912_s22  ;;  %p6241_p0 = scmp.ge.s32.totalorder %s8916_s23, 1  ;;  %s8916_s23 = sphi %s8957_s23, %s17_s23   ;;  %s8912_s22 = sphi %s8955_s22, %s13236_s22   ;;  %s8908_s21 = sphi %s8953_s21, %s13235_s21  }
   0x3   : > { %p31_p1 = scmp.ge.s32.totalorder %s29_s24, 2  ;;  %p253_p2 = scmp.lt.s32.totalorder %s8916_s23, 3 }
   0x5   : > { %s13238_s24 = smov (%p31_p1, %s29_s24), 0  ;;  %p254_p3 = pnand %p6241_p0, %p253_p2 }
   0x7   : > { %257 = sbr.rel (%p254_p3) target bundleno = 842 (0x34a), region = 40 }
   0xc   : > { %v6262_v0 = vld [vmem:[%s12508_s2 + $0xf8] sm:$0xff]  ;;  %v6261_v2 = vld [vmem:[%s12508_s2 + $0xf0] sm:$0xff]  ;;  %p308_p4 = scmp.lt.s32.totalorder %s8908_s21, 1  ;;  %v6260_v4 = vld [vmem:[%s12508_s2 + $0xe8] sm:$0xff]  ;;  %vm1042_vm0 = vcmask 1045504   ;;  %vm462_vm1 = vcmask 1046528  }
   0xd   : > { %v413_v1 = vld [vmem:[%s12508_s2 + $0x78] sm:$0xff]  ;;  %7371 = vmatprep.subr.mxu0 %v6262_v0  ;;  %v412_v3 = vld [vmem:[%s12508_s2 + $0x70] sm:$0xff]  ;;  %v411_v5 = vld [vmem:[%s12508_s2 + $0x68] sm:$0xff] }
   0xe   : > { %7451 = vmatprep.subr.mxu1 %v413_v1  ;;  %7372 = vmatpush3.msra.mxu0 %v6262_v0  ;;  %s13240_s21 = smov (!%p308_p4, %s8908_s21), 1  ;;  %v6259_v6 = vld [vmem:[%s12508_s2 + $0xe0] sm:$0xff]  ;;  %v6258_v8 = vld [vmem:[%s12508_s2 + $0xd8] sm:$0xff]  ;;  %v6257_v10 = vld [vmem:[%s12508_s2 + $0xd0] sm:$0xff] }
   0xf   : > { %7452 = vmatpush3.msra.mxu1 %v413_v1  ;;  %7373 = vmatprep.subr.mxu0 %v6261_v2  ;;  %v410_v7 = vld [vmem:[%s12508_s2 + $0x60] sm:$0xff]  ;;  %s8811_s17 = smul.u32 432, %s13240_s21  ;;  %v409_v9 = vld [vmem:[%s12508_s2 + $0x58] sm:$0xff]  ;;  %v408_v11 = vld [vmem:[%s12508_s2 + $0x50] sm:$0xff]  ;;  %s6246_s13 = sshll.u32 %s13240_s21, 1 }
  0x10   : > { %7453 = vmatprep.subr.mxu1 %v412_v3  ;;  %7374 = vmatpush3.msra.mxu0 %v6261_v2  ;;  %v6256_v12 = vld [vmem:[%s12508_s2 + $0xc8] sm:$0xff]  ;;  %v6255_v16 = vld [vmem:[%s12508_s2 + $0xc0] sm:$0xff]  ;;  %v6254_v21 = vld [vmem:[%s12508_s2 + $0xb8] sm:$0xff]  ;;  %s343_s16 = scalar_lea.vmem %s12512_s6, %s6246_s13 }
  0x11   : > { %7454 = vmatpush3.msra.mxu1 %v412_v3  ;;  %7375 = vmatprep.subr.mxu0 %v6260_v4  ;;  %s9015_s8 = scalar_lea.vmem %s12506_s0, %s8811_s17  ;;  %v407_v13 = vld [vmem:[%s12508_s2 + $0x48] sm:$0xff]  ;;  %v406_v17 = vld [vmem:[%s12508_s2 + $0x40] sm:$0xff]  ;;  %v405_v22 = vld [vmem:[%s12508_s2 + $0x38] sm:$0xff]  ;;  %s10201_s9 = scalar_lea.vmem %s12507_s1, %s8811_s17 }
  0x12   : > { %7455 = vmatprep.subr.mxu1 %v411_v5  ;;  %7376 = vmatpush3.msra.mxu0 %v6260_v4  ;;  %v9024_v14 = vld [vmem:[%s9015_s8] sm:$0xff]  ;;  %v9027_v15 = vld [vmem:[%s9015_s8 + $0x10] sm:$0x3]  ;;  %v9038_v20 = vld [vmem:[%s9015_s8 + $0x8] sm:$0xff] }
  0x13   : > { %7456 = vmatpush3.msra.mxu1 %v411_v5  ;;  %7377 = vmatprep.subr.mxu0 %v6259_v6  ;;  %v1046_v18 = vrot.slane %v9027_v15, 2  ;;  %v1043_v19 = vrot.slane %v9024_v14, 2  ;;  %v1044_v23 = vrot.slane %v9038_v20, 2  ;;  %v6253_v24 = vld [vmem:[%s12508_s2 + $0xb0] sm:$0xff]  ;;  %v6252_v28 = vld [vmem:[%s12508_s2 + $0xa8] sm:$0xff]  ;;  %v6251_v30 = vld [vmem:[%s12508_s2 + $0xa0] sm:$0xff] }
  0x14   : > { %7457 = vmatprep.subr.mxu1 %v410_v7  ;;  %7378 = vmatpush3.msra.mxu0 %v6259_v6  ;;  %v404_v25 = vld [vmem:[%s12508_s2 + $0x30] sm:$0xff]  ;;  %v403_v29 = vld [vmem:[%s12508_s2 + $0x28] sm:$0xff]  ;;  %v402_v31 = vld [vmem:[%s12508_s2 + $0x20] sm:$0xff]  ;;  %v463_v37 = vrot.slane %v9024_v14, 1  ;;  %v464_v38 = vrot.slane %v9038_v20, 1  ;;  %v466_v42 = vrot.slane %v9027_v15, 1 }
  0x15   : > { %7458 = vmatpush3.msra.mxu1 %v410_v7  ;;  %7379 = vmatprep.subr.mxu0 %v6258_v8  ;;  %v9054_v26 = vsel %vm1042_vm0, %v1043_v19, %v1044_v23  ;;  %v9057_v27 = vsel %vm1042_vm0, %v1044_v23, %v1046_v18  ;;  %v6250_v32 = vld [vmem:[%s12508_s2 + $0x98] sm:$0xff]  ;;  %v6249_v34 = vld [vmem:[%s12508_s2 + $0x90] sm:$0xff]  ;;  %v6248_v36 = vld [vmem:[%s12508_s2 + $0x88] sm:$0xff] }
  0x16   : > { %7459 = vmatprep.subr.mxu1 %v409_v9  ;;  %7380 = vmatpush3.msra.mxu0 %v6258_v8  ;;  %v401_v33 = vld [vmem:[%s12508_s2 + $0x18] sm:$0xff]  ;;  %v400_v35 = vld [vmem:[%s12508_s2 + $0x10] sm:$0xff]  ;;  %v399_v39 = vld [vmem:[%s12508_s2 + $0x8] sm:$0xff]  ;;  %v465_v46 = vsel %vm462_vm1, %v463_v37, %v464_v38  ;;  %v467_v51 = vsel %vm462_vm1, %v464_v38, %v466_v42 }
  0x17   : > { %7460 = vmatpush3.msra.mxu1 %v409_v9  ;;  %7381 = vmatprep.subr.mxu0 %v6257_v10  ;;  %v9092_v40 = vld [vmem:[%s9015_s8 + $0x18] sm:$0xff]  ;;  %v9095_v41 = vld [vmem:[%s9015_s8 + $0x20] sm:$0xff]  ;;  %v9105_v45 = vld [vmem:[%s9015_s8 + $0x28] sm:$0x3] }
  0x18   : > { %7461 = vmatprep.subr.mxu1 %v408_v11  ;;  %7382 = vmatpush3.msra.mxu0 %v6257_v10  ;;  %v6247_v43 = vld [vmem:[%s12508_s2 + $0x80] sm:$0xff]  ;;  %v468_v47 = vrot.slane %v9092_v40, 1  ;;  %v469_v48 = vrot.slane %v9095_v41, 1  ;;  %v9111_v49 = vld [vmem:[%s9015_s8 + $0x30] sm:$0xff]  ;;  %v9114_v50 = vld [vmem:[%s9015_s8 + $0x38] sm:$0xff]  ;;  %v471_v52 = vrot.slane %v9105_v45, 1 }
  0x19   : > { %7462 = vmatpush3.msra.mxu1 %v408_v11  ;;  %7383 = vmatprep.subr.mxu0 %v6256_v12  ;;  %v398_v44 = vld [vmem:[%s12508_s2] sm:$0xff]  ;;  %v6278_v53 = vld [vmem:[%s12508_s2 + $0x178] sm:$0xff]  ;;  %v473_v57 = vrot.slane %v9111_v49, 1  ;;  %v474_v58 = vrot.slane %v9114_v50, 1  ;;  %v9135_v59 = vld [vmem:[%s9015_s8 + $0x48] sm:$0xff] }
  0x1a   : > { %7463 = vmatprep.subr.mxu1 %v407_v13  ;;  %7384 = vmatpush3.msra.mxu0 %v6256_v12  ;;  %v6294_v54 = vld [vmem:[%s12508_s2 + $0x1f8] sm:$0xff]  ;;  %v9125_v55 = vld [vmem:[%s9015_s8 + $0x40] sm:$0x3]  ;;  %v9129_v56 = vsel %vm462_vm1, %v468_v47, %v469_v48  ;;  %v9138_v60 = vld [vmem:[%s9015_s8 + $0x50] sm:$0xff]  ;;  %v9141_v61 = vsel %vm462_vm1, %v469_v48, %v471_v52  ;;  %v478_v3 = vrot.slane %v9135_v59, 1 }
  0x1b   : > { %7464 = vmatpush3.msra.mxu1 %v407_v13  ;;  %7385 = vmatprep.subr.mxu0 %v6255_v16  ;;  %v476_v62 = vrot.slane %v9125_v55, 1  ;;  %v6277_v63 = vld [vmem:[%s12508_s2 + $0x170] sm:$0xff]  ;;  %v9152_v1 = vld [vmem:[%s9015_s8 + $0x58] sm:$0x3]  ;;  %v9156_v2 = vsel %vm462_vm1, %v473_v57, %v474_v58  ;;  %v479_v4 = vrot.slane %v9138_v60, 1  ;;  %v9163_v5 = vld [vmem:[%s9015_s8 + $0x60] sm:$0xff] }
  0x1c   : > { %7465 = vmatprep.subr.mxu1 %v406_v17  ;;  %7386 = vmatpush3.msra.mxu0 %v6255_v16  ;;  %v6293_v0 = vld [vmem:[%s12508_s2 + $0x1f0] sm:$0xff]  ;;  %v9166_v6 = vld [vmem:[%s9015_s8 + $0x68] sm:$0xff]  ;;  %v481_v8 = vrot.slane %v9152_v1, 1  ;;  %v483_v13 = vrot.slane %v9163_v5, 1  ;;  %v9191_v15 = vld [vmem:[%s9015_s8 + $0x78] sm:$0xff] }
  0x1d   : > { %7466 = vmatpush3.msra.mxu1 %v406_v17  ;;  %7387 = vmatprep.subr.mxu0 %v6254_v21  ;;  %v9169_v7 = vsel %vm462_vm1, %v474_v58, %v476_v62  ;;  %v6276_v9 = vld [vmem:[%s12508_s2 + $0x168] sm:$0xff]  ;;  %v9180_v11 = vld [vmem:[%s9015_s8 + $0x70] sm:$0x3]  ;;  %v9184_v12 = vsel %vm462_vm1, %v478_v3, %v479_v4  ;;  %v9194_v16 = vld [vmem:[%s9015_s8 + $0x80] sm:$0xff]  ;;  %v488_v23 = vrot.slane %v9191_v15, 1 }
  0x1e   : > { %7467 = vmatprep.subr.mxu1 %v405_v22  ;;  %7388 = vmatpush3.msra.mxu0 %v6254_v21  ;;  %v6292_v10 = vld [vmem:[%s12508_s2 + $0x1e8] sm:$0xff]  ;;  %v9197_v17 = vsel %vm462_vm1, %v479_v4, %v481_v8  ;;  %v486_v18 = vrot.slane %v9180_v11, 1  ;;  %v6275_v19 = vld [vmem:[%s12508_s2 + $0x160] sm:$0xff]  ;;  %v9250_v38 = vld [vmem:[%s9015_s8 + $0xb0] sm:$0xff] }
  0x1f   : > { %7468 = vmatpush3.msra.mxu1 %v405_v22  ;;  %7389 = vmatprep.subr.mxu0 %v6253_v24  ;;  %12739 = vst [vmem:[#allocation2_spill] sm:$0xff] %v9197_v17  ;;  %v9208_v21 = vld [vmem:[%s9015_s8 + $0x88] sm:$0x3]  ;;  %v9275_v52 = vld [vmem:[%s9015_s8 + $0xc0] sm:$0xff]  ;;  %v9303_v8 = vld [vmem:[%s9015_s8 + $0xd8] sm:$0xff] }
  0x20   : > { %7469 = vmatprep.subr.mxu1 %v404_v25  ;;  %7390 = vmatpush3.msra.mxu0 %v6253_v24  ;;  %v489_v24 = vrot.slane %v9194_v16, 1  ;;  %v9247_v37 = vld [vmem:[%s9015_s8 + $0xa8] sm:$0xff]  ;;  %v503_v3 = vrot.slane %v9275_v52, 1 }
  0x21   : > { %7470 = vmatpush3.msra.mxu1 %v404_v25  ;;  %7391 = vmatprep.subr.mxu0 %v6252_v28  ;;  %v9219_v25 = vld [vmem:[%s9015_s8 + $0x90] sm:$0xff]  ;;  %v498_v48 = vrot.slane %v9247_v37, 1  ;;  %v6272_v58 = vld [vmem:[%s12508_s2 + $0x148] sm:$0xff] }
  0x22   : > { %7471 = vmatprep.subr.mxu1 %v403_v29  ;;  %7392 = vmatpush3.msra.mxu0 %v6252_v28  ;;  %v9222_v28 = vld [vmem:[%s9015_s8 + $0x98] sm:$0xff]  ;;  %v6288_v62 = vld [vmem:[%s12508_s2 + $0x1c8] sm:$0xff] }
  0x23   : > { %7472 = vmatpush3.msra.mxu1 %v403_v29  ;;  %7393 = vmatprep.subr.mxu0 %v6251_v30 }
  0x24   : > { %7473 = vmatprep.subr.mxu1 %v402_v31  ;;  %7394 = vmatpush3.msra.mxu0 %v6251_v30  ;;  %v491_v30 = vrot.slane %v9208_v21, 1 }
  0x25   : > { %7474 = vmatpush3.msra.mxu1 %v402_v31  ;;  %7395 = vmatprep.subr.mxu0 %v6250_v32  ;;  %v6274_v31 = vld [vmem:[%s12508_s2 + $0x158] sm:$0xff] }
  0x26   : > { %7475 = vmatprep.subr.mxu1 %v401_v33  ;;  %7396 = vmatpush3.msra.mxu0 %v6250_v32  ;;  %v6290_v32 = vld [vmem:[%s12508_s2 + $0x1d8] sm:$0xff] }
  0x27   : > { %7476 = vmatpush3.msra.mxu1 %v401_v33  ;;  %7397 = vmatprep.subr.mxu0 %v6249_v34  ;;  %v9236_v33 = vld [vmem:[%s9015_s8 + $0xa0] sm:$0x3] }
  0x28   : > { %7477 = vmatprep.subr.mxu1 %v400_v35  ;;  %7398 = vmatpush3.msra.mxu0 %v6249_v34  ;;  %v9240_v34 = vsel %vm462_vm1, %v488_v23, %v489_v24  ;;  %v496_v42 = vrot.slane %v9236_v33, 1  ;;  %v508_v23 = vrot.slane %v9303_v8, 1 }
  0x29   : > { %7478 = vmatpush3.msra.mxu1 %v400_v35  ;;  %7399 = vmatprep.subr.mxu0 %v6248_v36  ;;  %12742 = vst [vmem:[#allocation5_spill] sm:$0xff] %v9240_v34  ;;  %v493_v35 = vrot.slane %v9219_v25, 1 }
  0x2a   : > { %7479 = vmatprep.subr.mxu1 %v399_v39  ;;  %7400 = vmatpush3.msra.mxu0 %v6248_v36  ;;  %v494_v36 = vrot.slane %v9222_v28, 1 }
  0x2b   : > { %7480 = vmatpush3.msra.mxu1 %v399_v39  ;;  %7401 = vmatprep.subr.mxu0 %v6247_v43  ;;  %v9253_v39 = vsel %vm462_vm1, %v489_v24, %v491_v30  ;;  %v9331_v30 = vld [vmem:[%s9015_s8 + $0xf0] sm:$0xff] }
  0x2c   : > { %7481 = vmatprep.subr.mxu1 %v398_v44  ;;  %7402 = vmatpush3.msra.mxu0 %v6247_v43  ;;  %12743 = vst [vmem:[#allocation6_spill] sm:$0xff] %v9253_v39  ;;  %v6273_v43 = vld [vmem:[%s12508_s2 + $0x150] sm:$0xff]  ;;  %v9268_v47 = vsel %vm462_vm1, %v493_v35, %v494_v36 }
  0x2d   : > { %7403 = vmatprep.mubr.f32.mxu0 %v465_v46  ;;  %7482 = vmatpush3.msra.mxu1 %v398_v44  ;;  %v6289_v44 = vld [vmem:[%s12508_s2 + $0x1d0] sm:$0xff]  ;;  %v9264_v46 = vld [vmem:[%s9015_s8 + $0xb8] sm:$0x3]  ;;  %12744 = vst [vmem:[#allocation7_spill] sm:$0xff] %v9268_v47 }
  0x2e   : > { %7483 = vmatprep.mubr.f32.mxu1 %v9024_v14  ;;  %7404 = vmatmul.mubr.f32.vlgmr.msra.gmra.mxu0 %v467_v51  ;;  %v484_v14 = vrot.slane %v9166_v6, 1  ;;  %v499_v51 = vrot.slane %v9250_v38, 1  ;;  %v501_v57 = vrot.slane %v9264_v46, 1 }
  0x2f   : > { %7484 = vmatmul.mubr.f32.vlgmr.msra.gmra.mxu1 %v9038_v20  ;;  %7531 = vmatprep.subr.mxu0 %v6278_v53  ;;  %v6291_v20 = vld [vmem:[%s12508_s2 + $0x1e0] sm:$0xff] }
  0x30   : > { %7611 = vmatprep.subr.mxu1 %v6294_v54  ;;  %7532 = vmatpush3.msra.mxu0 %v6278_v53  ;;  %v9212_v22 = vsel %vm462_vm1, %v483_v13, %v484_v14  ;;  %v9225_v29 = vsel %vm462_vm1, %v484_v14, %v486_v18  ;;  %v9278_v53 = vld [vmem:[%s9015_s8 + $0xc8] sm:$0xff]  ;;  %v6271_v14 = vld [vmem:[%s12508_s2 + $0x140] sm:$0xff] }
  0x31   : > { %7406 = vmatprep.mubr.f32.mxu0 %v9129_v56  ;;  %7486 = vmatprep.mubr.f32.mxu1 %v9092_v40  ;;  %12740 = vst [vmem:[#allocation3_spill] sm:$0xff] %v9212_v22  ;;  %12741 = vst [vmem:[#allocation4_spill] sm:$0xff] %v9225_v29  ;;  %v504_v4 = vrot.slane %v9278_v53, 1  ;;  %v6287_v18 = vld [vmem:[%s12508_s2 + $0x1c0] sm:$0xff] }
  0x32   : > { %7612 = vmatpush3.msra.mxu1 %v6294_v54  ;;  %7407 = vmatmul.mubr.f32.gmra.mxu0 %v9141_v61  ;;  %v9281_v54 = vsel %vm462_vm1, %v494_v36, %v496_v42  ;;  %v6270_v36 = vld [vmem:[%s12508_s2 + $0x138] sm:$0xff] }
  0x33   : > { %7487 = vmatmul.mubr.f32.gmra.mxu1 %v9095_v41  ;;  %7533 = vmatprep.subr.mxu0 %v6277_v63  ;;  %12745 = vst [vmem:[#allocation8_spill] sm:$0xff] %v9281_v54  ;;  %v6286_v42 = vld [vmem:[%s12508_s2 + $0x1b8] sm:$0xff] }
  0x34   : > { %7613 = vmatprep.subr.mxu1 %v6293_v0  ;;  %7534 = vmatpush3.msra.mxu0 %v6277_v63  ;;  %v9292_v63 = vld [vmem:[%s9015_s8 + $0xd0] sm:$0x3] }
  0x35   : > { %7409 = vmatprep.mubr.f32.mxu0 %v9156_v2  ;;  %7489 = vmatprep.mubr.f32.mxu1 %v9111_v49  ;;  %v506_v13 = vrot.slane %v9292_v63, 1 }
  0x36   : > { %7614 = vmatpush3.msra.mxu1 %v6293_v0  ;;  %7410 = vmatmul.mubr.f32.gmra.mxu0 %v9169_v7  ;;  %v9296_v0 = vsel %vm462_vm1, %v498_v48, %v499_v51  ;;  %v513_v48 = vrot.slane %v9331_v30, 1 }
  0x37   : > { %7490 = vmatmul.mubr.f32.gmra.mxu1 %v9114_v50  ;;  %7535 = vmatprep.subr.mxu0 %v6276_v9  ;;  %12746 = vst [vmem:[#allocation9_spill] sm:$0xff] %v9296_v0 }
  0x38   : > { %7615 = vmatprep.subr.mxu1 %v6292_v10  ;;  %7536 = vmatpush3.msra.mxu0 %v6276_v9  ;;  %v9306_v9 = vld [vmem:[%s9015_s8 + $0xe0] sm:$0xff] }
  0x39   : > { %7412 = vmatprep.mubr.f32.mxu0 %v9184_v12  ;;  %7492 = vmatprep.mubr.f32.mxu1 %v9135_v59  ;;  %v509_v24 = vrot.slane %v9306_v9, 1 }
  0x3a   : > { %7616 = vmatpush3.msra.mxu1 %v6292_v10  ;;  %7413 = vmatmul.mubr.f32.gmra.mxu0 %v9197_v17  ;;  %v9309_v10 = vsel %vm462_vm1, %v499_v51, %v501_v57  ;;  %v9359_v57 = vld [vmem:[%s9015_s8 + $0x108] sm:$0xff] }
  0x3b   : > { %7493 = vmatmul.mubr.f32.gmra.mxu1 %v9138_v60  ;;  %7537 = vmatprep.subr.mxu0 %v6275_v19  ;;  %12747 = vst [vmem:[#allocation10_spill] sm:$0xff] %v9309_v10 }
  0x3c   : > { %7617 = vmatprep.subr.mxu1 %v6291_v20  ;;  %7538 = vmatpush3.msra.mxu0 %v6275_v19  ;;  %v9320_v19 = vld [vmem:[%s9015_s8 + $0xe8] sm:$0x3] }
  0x3d   : > { %7415 = vmatprep.mubr.f32.mxu0 %v9212_v22  ;;  %7495 = vmatprep.mubr.f32.mxu1 %v9163_v5  ;;  %v511_v35 = vrot.slane %v9320_v19, 1  ;;  %v9488_v22 = vld [vmem:[%s9015_s8 + $0x178] sm:$0x3] }
  0x3e   : > { %7618 = vmatpush3.msra.mxu1 %v6291_v20  ;;  %7416 = vmatmul.mubr.f32.gmra.mxu0 %v9225_v29  ;;  %v9324_v20 = vsel %vm462_vm1, %v503_v3, %v504_v4  ;;  %v6281_v29 = vld [vmem:[%s12508_s2 + $0x190] sm:$0xff]  ;;  %v541_v17 = vrot.slane %v9488_v22, 1 }
  0x3f   : > { %7496 = vmatmul.mubr.f32.gmra.mxu1 %v9166_v6  ;;  %7539 = vmatprep.subr.mxu0 %v6274_v31  ;;  %12748 = vst [vmem:[#allocation11_spill] sm:$0xff] %v9324_v20 }
  0x40   : > { %7619 = vmatprep.subr.mxu1 %v6290_v32  ;;  %7540 = vmatpush3.msra.mxu0 %v6274_v31  ;;  %v9334_v31 = vld [vmem:[%s9015_s8 + $0xf8] sm:$0xff] }
  0x41   : > { %7418 = vmatprep.mubr.f32.mxu0 %v9240_v34  ;;  %7498 = vmatprep.mubr.f32.mxu1 %v9191_v15  ;;  %v514_v51 = vrot.slane %v9334_v31, 1  ;;  %v9474_v34 = vld [vmem:[%s9015_s8 + $0x170] sm:$0xff] }
  0x42   : > { %7620 = vmatpush3.msra.mxu1 %v6290_v32  ;;  %7419 = vmatmul.mubr.f32.gmra.mxu0 %v9253_v39  ;;  %v9337_v32 = vsel %vm462_vm1, %v504_v4, %v506_v13  ;;  %v6269_v4 = vld [vmem:[%s12508_s2 + $0x130] sm:$0xff]  ;;  %v9460_v39 = vld [vmem:[%s9015_s8 + $0x160] sm:$0x3] }
  0x43   : > { %7499 = vmatmul.mubr.f32.gmra.mxu1 %v9194_v16  ;;  %7541 = vmatprep.subr.mxu0 %v6273_v43  ;;  %12749 = vst [vmem:[#allocation12_spill] sm:$0xff] %v9337_v32  ;;  %v6285_v13 = vld [vmem:[%s12508_s2 + $0x1b0] sm:$0xff] }
  0x44   : > { %7621 = vmatprep.subr.mxu1 %v6289_v44  ;;  %7542 = vmatpush3.msra.mxu0 %v6273_v43  ;;  %v9348_v43 = vld [vmem:[%s9015_s8 + $0x100] sm:$0x3] }
  0x45   : > { %7421 = vmatprep.mubr.f32.mxu0 %v9268_v47  ;;  %7501 = vmatprep.mubr.f32.mxu1 %v9219_v25  ;;  %v516_v3 = vrot.slane %v9348_v43, 1  ;;  %v6282_v47 = vld [vmem:[%s12508_s2 + $0x198] sm:$0xff] }
  0x46   : > { %7622 = vmatpush3.msra.mxu1 %v6289_v44  ;;  %7422 = vmatmul.mubr.f32.gmra.mxu0 %v9281_v54  ;;  %v9352_v44 = vsel %vm462_vm1, %v508_v23, %v509_v24  ;;  %v518_v23 = vrot.slane %v9359_v57, 1  ;;  %v9446_v54 = vld [vmem:[%s9015_s8 + $0x158] sm:$0xff] }
  0x47   : > { %7502 = vmatmul.mubr.f32.gmra.mxu1 %v9222_v28  ;;  %7543 = vmatprep.subr.mxu0 %v6272_v58  ;;  %12750 = vst [vmem:[#allocation13_spill] sm:$0xff] %v9352_v44 }
  0x48   : > { %7623 = vmatprep.subr.mxu1 %v6288_v62  ;;  %7544 = vmatpush3.msra.mxu0 %v6272_v58  ;;  %v9362_v58 = vld [vmem:[%s9015_s8 + $0x110] sm:$0xff] }
  0x49   : > { %7424 = vmatprep.mubr.f32.mxu0 %v9296_v0  ;;  %7504 = vmatprep.mubr.f32.mxu1 %v9247_v37  ;;  %v9432_v0 = vld [vmem:[%s9015_s8 + $0x148] sm:$0x3] }
  0x4a   : > { %7624 = vmatpush3.msra.mxu1 %v6288_v62  ;;  %7425 = vmatmul.mubr.f32.gmra.mxu0 %v9309_v10  ;;  %v9365_v62 = vsel %vm462_vm1, %v509_v24, %v511_v35  ;;  %v519_v24 = vrot.slane %v9362_v58, 1  ;;  %v9387_v35 = vld [vmem:[%s9015_s8 + $0x120] sm:$0xff] }
  0x4b   : > { %7505 = vmatmul.mubr.f32.gmra.mxu1 %v9250_v38  ;;  %7545 = vmatprep.subr.mxu0 %v6271_v14  ;;  %12751 = vst [vmem:[#allocation14_spill] sm:$0xff] %v9365_v62  ;;  %v6283_v10 = vld [vmem:[%s12508_s2 + $0x1a0] sm:$0xff] }
  0x4c   : > { %7625 = vmatprep.subr.mxu1 %v6287_v18  ;;  %7546 = vmatpush3.msra.mxu0 %v6271_v14  ;;  %v9376_v14 = vld [vmem:[%s9015_s8 + $0x118] sm:$0x3] }
  0x4d   : > { %7427 = vmatprep.mubr.f32.mxu0 %v9324_v20  ;;  %7507 = vmatprep.mubr.f32.mxu1 %v9275_v52  ;;  %v9418_v20 = vld [vmem:[%s9015_s8 + $0x140] sm:$0xff] }
  0x4e   : > { %7626 = vmatpush3.msra.mxu1 %v6287_v18  ;;  %7428 = vmatmul.mubr.f32.gmra.mxu0 %v9337_v32  ;;  %v9380_v18 = vsel %vm462_vm1, %v513_v48, %v514_v51  ;;  %v521_v48 = vrot.slane %v9376_v14, 1  ;;  %v9404_v32 = vld [vmem:[%s9015_s8 + $0x130] sm:$0x3] }
  0x4f   : > { %7508 = vmatmul.mubr.f32.gmra.mxu1 %v9278_v53  ;;  %7547 = vmatprep.subr.mxu0 %v6270_v36  ;;  %12752 = vst [vmem:[#allocation15_spill] sm:$0xff] %v9380_v18 }
  0x50   : > { %7627 = vmatprep.subr.mxu1 %v6286_v42  ;;  %7548 = vmatpush3.msra.mxu0 %v6270_v36  ;;  %v9390_v36 = vld [vmem:[%s9015_s8 + $0x128] sm:$0xff] }
  0x51   : > { %7430 = vmatprep.mubr.f32.mxu0 %v9352_v44  ;;  %7510 = vmatprep.mubr.f32.mxu1 %v9303_v8  ;;  %v6284_v44 = vld [vmem:[%s12508_s2 + $0x1a8] sm:$0xff] }
  0x52   : > { %7628 = vmatpush3.msra.mxu1 %v6286_v42  ;;  %7431 = vmatmul.mubr.f32.gmra.mxu0 %v9365_v62  ;;  %v9393_v42 = vsel %vm462_vm1, %v514_v51, %v516_v3  ;;  %v6268_v62 = vld [vmem:[%s12508_s2 + $0x128] sm:$0xff]  ;;  %v9408_v51 = vsel %vm462_vm1, %v518_v23, %v519_v24  ;;  %v523_v3 = vrot.slane %v9387_v35, 1  ;;  %v526_v23 = vrot.slane %v9404_v32, 1 }
  0x53   : > { %7511 = vmatmul.mubr.f32.gmra.mxu1 %v9306_v9  ;;  %7549 = vmatprep.subr.mxu0 %v6269_v4  ;;  %12753 = vst [vmem:[#allocation16_spill] sm:$0xff] %v9393_v42  ;;  %12754 = vst [vmem:[#allocation17_spill] sm:$0xff] %v9408_v51 }
  0x54   : > { %7629 = vmatprep.subr.mxu1 %v6285_v13  ;;  %7550 = vmatpush3.msra.mxu0 %v6269_v4  ;;  %v524_v4 = vrot.slane %v9390_v36, 1 }
  0x55   : > { %7433 = vmatprep.mubr.f32.mxu0 %v9380_v18  ;;  %7513 = vmatprep.mubr.f32.mxu1 %v9331_v30  ;;  %v9415_v18 = vld [vmem:[%s9015_s8 + $0x138] sm:$0xff] }
  0x56   : > { %7630 = vmatpush3.msra.mxu1 %v6285_v13  ;;  %7434 = vmatmul.mubr.f32.gmra.mxu0 %v9393_v42  ;;  %v9421_v13 = vsel %vm462_vm1, %v519_v24, %v521_v48  ;;  %v6267_v42 = vld [vmem:[%s12508_s2 + $0x120] sm:$0xff]  ;;  %v9436_v24 = vsel %vm462_vm1, %v523_v3, %v524_v4  ;;  %v529_v48 = vrot.slane %v9418_v20, 1  ;;  %v531_v3 = vrot.slane %v9432_v0, 1 }
  0x57   : > { %7514 = vmatmul.mubr.f32.gmra.mxu1 %v9334_v31  ;;  %7551 = vmatprep.subr.mxu0 %v6268_v62  ;;  %12755 = vst [vmem:[#allocation18_spill] sm:$0xff] %v9421_v13  ;;  %12756 = vst [vmem:[#allocation19_spill] sm:$0xff] %v9436_v24 }
  0x58   : > { %7631 = vmatprep.subr.mxu1 %v6284_v44  ;;  %7552 = vmatpush3.msra.mxu0 %v6268_v62  ;;  %v528_v62 = vrot.slane %v9415_v18, 1 }
  0x59   : > { %7436 = vmatprep.mubr.f32.mxu0 %v9408_v51  ;;  %7516 = vmatprep.mubr.f32.mxu1 %v9359_v57  ;;  %v9443_v51 = vld [vmem:[%s9015_s8 + $0x150] sm:$0xff] }
  0x5a   : > { %7632 = vmatpush3.msra.mxu1 %v6284_v44  ;;  %7437 = vmatmul.mubr.f32.gmra.mxu0 %v9421_v13  ;;  %v9449_v44 = vsel %vm462_vm1, %v524_v4, %v526_v23  ;;  %v6266_v13 = vld [vmem:[%s12508_s2 + $0x118] sm:$0xff]  ;;  %v9464_v4 = vsel %vm462_vm1, %v528_v62, %v529_v48  ;;  %v534_v23 = vrot.slane %v9446_v54, 1  ;;  %v536_v62 = vrot.slane %v9460_v39, 1 }
  0x5b   : > { %7517 = vmatmul.mubr.f32.gmra.mxu1 %v9362_v58  ;;  %7553 = vmatprep.subr.mxu0 %v6267_v42  ;;  %12757 = vst [vmem:[#allocation20_spill] sm:$0xff] %v9449_v44  ;;  %12758 = vst [vmem:[#allocation21_spill] sm:$0xff] %v9464_v4 }
  0x5c   : > { %7633 = vmatprep.subr.mxu1 %v6283_v10  ;;  %7554 = vmatpush3.msra.mxu0 %v6267_v42  ;;  %v533_v42 = vrot.slane %v9443_v51, 1 }
  0x5d   : > { %7439 = vmatprep.mubr.f32.mxu0 %v9436_v24  ;;  %7519 = vmatprep.mubr.f32.mxu1 %v9387_v35  ;;  %v9471_v24 = vld [vmem:[%s9015_s8 + $0x168] sm:$0xff] }
  0x5e   : > { %7634 = vmatpush3.msra.mxu1 %v6283_v10  ;;  %7440 = vmatmul.mubr.f32.gmra.mxu0 %v9449_v44  ;;  %v9477_v10 = vsel %vm462_vm1, %v529_v48, %v531_v3  ;;  %v6265_v44 = vld [vmem:[%s12508_s2 + $0x110] sm:$0xff]  ;;  %v9492_v48 = vsel %vm462_vm1, %v533_v42, %v534_v23  ;;  %v539_v3 = vrot.slane %v9474_v34, 1  ;;  %v6280_v42 = vld [vmem:[%s12508_s2 + $0x188] sm:$0xff] }
  0x5f   : > { %7520 = vmatmul.mubr.f32.gmra.mxu1 %v9390_v36  ;;  %7555 = vmatprep.subr.mxu0 %v6266_v13  ;;  %12759 = vst [vmem:[#allocation22_spill] sm:$0xff] %v9477_v10 }
  0x60   : > { %7635 = vmatprep.subr.mxu1 %v6282_v47  ;;  %7556 = vmatpush3.msra.mxu0 %v6266_v13  ;;  %v538_v13 = vrot.slane %v9471_v24, 1 }
  0x61   : > { %7442 = vmatprep.mubr.f32.mxu0 %v9464_v4  ;;  %7522 = vmatprep.mubr.f32.mxu1 %v9415_v18  ;;  %v9499_v4 = vsel %vm462_vm1, %v534_v23, %v536_v62  ;;  %v6263_v23 = vld [vmem:[%s12508_s2 + $0x100] sm:$0xff]  ;;  %v1048_v62 = vrot.slane %v9092_v40, 2 }
  0x62   : > { %7636 = vmatpush3.msra.mxu1 %v6282_v47  ;;  %7443 = vmatmul.mubr.f32.gmra.mxu0 %v9477_v10  ;;  %v6264_v47 = vld [vmem:[%s12508_s2 + $0x108] sm:$0xff]  ;;  %v9511_v10 = vsel %vm462_vm1, %v538_v13, %v539_v3  ;;  %v1049_v13 = vrot.slane %v9095_v41, 2 }
  0x63   : > { %7523 = vmatmul.mubr.f32.gmra.mxu1 %v9418_v20  ;;  %7557 = vmatprep.subr.mxu0 %v6265_v44  ;;  %12760 = vst [vmem:[#allocation23_spill] sm:$0xff] %v9511_v10 }
  0x64   : > { %7637 = vmatprep.subr.mxu1 %v6281_v29  ;;  %7558 = vmatpush3.msra.mxu0 %v6265_v44  ;;  %v9516_v44 = vsel %vm462_vm1, %v539_v3, %v541_v17  ;;  %v6310_v17 = vld [vmem:[%s12508_s2 + $0x278] sm:$0xff]  ;;  %v1051_v3 = vrot.slane %v9105_v45, 2  ;;  %v1056_v45 = vrot.slane %v9125_v55, 2 }
  0x65   : > { %7445 = vmatprep.mubr.f32.mxu0 %v9492_v48  ;;  %7525 = vmatprep.mubr.f32.mxu1 %v9443_v51  ;;  %12761 = vst [vmem:[#allocation24_spill] sm:$0xff] %v9516_v44 }
  0x66   : > { %7638 = vmatpush3.msra.mxu1 %v6281_v29  ;;  %7446 = vmatmul.mubr.f32.gmra.mxu0 %v9499_v4  ;;  %v6279_v29 = vld [vmem:[%s12508_s2 + $0x180] sm:$0xff] }
  0x67   : > { %7526 = vmatmul.mubr.f32.gmra.mxu1 %v9446_v54  ;;  %7559 = vmatprep.subr.mxu0 %v6264_v47 }
  0x68   : > { %7639 = vmatprep.subr.mxu1 %v6280_v42  ;;  %7560 = vmatpush3.msra.mxu0 %v6264_v47  ;;  %v6326_v47 = vld [vmem:[%s12508_s2 + $0x2f8] sm:$0xff] }
  0x69   : > { %7448 = vmatprep.mubr.f32.mxu0 %v9511_v10  ;;  %7528 = vmatprep.mubr.f32.mxu1 %v9471_v24  ;;  %v1054_v10 = vrot.slane %v9114_v50, 2 }
  0x6a   : > { %7640 = vmatpush3.msra.mxu1 %v6280_v42  ;;  %7449 = vmatmul.mubr.f32.gmra.mxu0 %v9516_v44  ;;  %v9540_v42 = vsel %vm1042_vm0, %v1048_v62, %v1049_v13  ;;  %v1053_v44 = vrot.slane %v9111_v49, 2 }
  0x6b   : > { %7529 = vmatmul.mubr.f32.gmra.mxu1 %v9474_v34  ;;  %7561 = vmatprep.subr.mxu0 %v6263_v23  ;;  %v9566_v55 = vsel %vm1042_vm0, %v1054_v10, %v1056_v45  ;;  %v1071_v45 = vrot.slane %v9208_v21, 2 }
  0x6c   : > { %7641 = vmatprep.subr.mxu1 %v6279_v29  ;;  %7562 = vmatpush3.msra.mxu0 %v6263_v23  ;;  %v1058_v23 = vrot.slane %v9135_v59, 2 }
  0x6d   : > { %7563 = vmatprep.mubr.f32.mxu0 %v9054_v26  ;;  %7642 = vmatpush3.msra.mxu1 %v6279_v29  ;;  %v9547_v26 = vsel %vm1042_vm0, %v1049_v13, %v1051_v3  ;;  %v1059_v29 = vrot.slane %v9138_v60, 2  ;;  %v1064_v13 = vrot.slane %v9166_v6, 2 }
  0x6e   : > { %7643 = vmatprep.mubr.f32.mxu1 %v9092_v40  ;;  %7564 = vmatmul.mubr.f32.vlgmr.msra.gmra.mxu0 %v9057_v27  ;;  %v6309_v40 = vld [vmem:[%s12508_s2 + $0x270] sm:$0xff] }
  0x6f   : > { %7691 = vmatprep.subr.mxu0 %v6310_v17  ;;  %7644 = vmatmul.mubr.f32.vlgmr.msra.gmra.mxu1 %v9095_v41  ;;  %v6325_v27 = vld [vmem:[%s12508_s2 + $0x2f0] sm:$0xff]  ;;  %v9559_v41 = vsel %vm1042_vm0, %v1053_v44, %v1054_v10  ;;  %v1061_v44 = vrot.slane %v9152_v1, 2  ;;  %v9578_v62 = vsel %vm1042_vm0, %v1058_v23, %v1059_v29  ;;  %v1063_v10 = vrot.slane %v9163_v5, 2 }
  0x70   : > { %7692 = vmatpush3.msra.mxu0 %v6310_v17  ;;  %7771 = vmatprep.subr.mxu1 %v6326_v47  ;;  %v1066_v17 = vrot.slane %v9180_v11, 2  ;;  %v1073_v23 = vrot.slane %v9219_v25, 2 }
  0x71   : > { %7566 = vmatprep.mubr.f32.mxu0 %v9540_v42  ;;  %7772 = vmatpush3.msra.mxu1 %v6326_v47  ;;  %v9585_v1 = vsel %vm1042_vm0, %v1059_v29, %v1061_v44  ;;  %v9597_v3 = vsel %vm1042_vm0, %v1063_v10, %v1064_v13  ;;  %v1068_v47 = vrot.slane %v9191_v15, 2  ;;  %v1074_v29 = vrot.slane %v9222_v28, 2 }
  0x72   : > { %7646 = vmatprep.mubr.f32.mxu1 %v9111_v49  ;;  %7567 = vmatmul.mubr.f32.gmra.mxu0 %v9547_v26  ;;  %v6308_v49 = vld [vmem:[%s12508_s2 + $0x268] sm:$0xff]  ;;  %v9604_v11 = vsel %vm1042_vm0, %v1064_v13, %v1066_v17  ;;  %v1079_v10 = vrot.slane %v9250_v38, 2  ;;  %v1081_v13 = vrot.slane %v9264_v46, 2  ;;  %v1083_v17 = vrot.slane %v9275_v52, 2 }
  0x73   : > { %7693 = vmatprep.subr.mxu0 %v6309_v40  ;;  %7647 = vmatmul.mubr.f32.gmra.mxu1 %v9114_v50  ;;  %v6324_v50 = vld [vmem:[%s12508_s2 + $0x2e8] sm:$0xff]  ;;  %v9635_v44 = vsel %vm1042_vm0, %v1073_v23, %v1074_v29 }
  0x74   : > { %7694 = vmatpush3.msra.mxu0 %v6309_v40  ;;  %7773 = vmatprep.subr.mxu1 %v6325_v27  ;;  %v1069_v40 = vrot.slane %v9194_v16, 2  ;;  %v9661_v46 = vsel %vm1042_vm0, %v1079_v10, %v1081_v13 }
  0x75   : > { %7569 = vmatprep.mubr.f32.mxu0 %v9559_v41  ;;  %7774 = vmatpush3.msra.mxu1 %v6325_v27 }
  0x76   : > { %7649 = vmatprep.mubr.f32.mxu1 %v9135_v59  ;;  %7570 = vmatmul.mubr.f32.gmra.mxu0 %v9566_v55  ;;  %v6307_v59 = vld [vmem:[%s12508_s2 + $0x260] sm:$0xff]  ;;  %v9616_v27 = vsel %vm1042_vm0, %v1068_v47, %v1069_v40  ;;  %v9623_v21 = vsel %vm1042_vm0, %v1069_v40, %v1071_v45  ;;  %v1086_v47 = vrot.slane %v9292_v63, 2  ;;  %v1089_v45 = vrot.slane %v9306_v9, 2 }
  0x77   : > { %7695 = vmatprep.subr.mxu0 %v6308_v49  ;;  %7650 = vmatmul.mubr.f32.gmra.mxu1 %v9138_v60  ;;  %v6323_v60 = vld [vmem:[%s12508_s2 + $0x2e0] sm:$0xff] }
  0x78   : > { %7696 = vmatpush3.msra.mxu0 %v6308_v49  ;;  %7775 = vmatprep.subr.mxu1 %v6324_v50  ;;  %v1076_v49 = vrot.slane %v9236_v33, 2 }
  0x79   : > { %7572 = vmatprep.mubr.f32.mxu0 %v9578_v62  ;;  %7776 = vmatpush3.msra.mxu1 %v6324_v50  ;;  %v1078_v50 = vrot.slane %v9247_v37, 2 }
  0x7a   : > { %7652 = vmatprep.mubr.f32.mxu1 %v9163_v5  ;;  %7573 = vmatmul.mubr.f32.gmra.mxu0 %v9585_v1  ;;  %v6306_v5 = vld [vmem:[%s12508_s2 + $0x258] sm:$0xff]  ;;  %v9642_v33 = vsel %vm1042_vm0, %v1074_v29, %v1076_v49  ;;  %v1093_v29 = vrot.slane %v9331_v30, 2  ;;  %v1096_v49 = vrot.slane %v9348_v43, 2 }
  0x7b   : > { %7697 = vmatprep.subr.mxu0 %v6307_v59  ;;  %7653 = vmatmul.mubr.f32.gmra.mxu1 %v9166_v6  ;;  %v6322_v6 = vld [vmem:[%s12508_s2 + $0x2d8] sm:$0xff] }
  0x7c   : > { %7698 = vmatpush3.msra.mxu0 %v6307_v59  ;;  %7777 = vmatprep.subr.mxu1 %v6323_v60  ;;  %v9654_v59 = vsel %vm1042_vm0, %v1078_v50, %v1079_v10  ;;  %v1098_v50 = vrot.slane %v9359_v57, 2  ;;  %v1099_v10 = vrot.slane %v9362_v58, 2 }
  0x7d   : > { %7575 = vmatprep.mubr.f32.mxu0 %v9597_v3  ;;  %7778 = vmatpush3.msra.mxu1 %v6323_v60  ;;  %v1084_v60 = vrot.slane %v9278_v53, 2 }
  0x7e   : > { %7655 = vmatprep.mubr.f32.mxu1 %v9191_v15  ;;  %7576 = vmatmul.mubr.f32.gmra.mxu0 %v9604_v11  ;;  %v6305_v15 = vld [vmem:[%s12508_s2 + $0x250] sm:$0xff]  ;;  %v9730_v13 = vsel %vm1042_vm0, %v1098_v50, %v1099_v10  ;;  %v9810_v50 = vld [vmem:[%s9015_s8 + $0x180] sm:$0xff] }
  0x7f   : > { %7699 = vmatprep.subr.mxu0 %v6306_v5  ;;  %7656 = vmatmul.mubr.f32.gmra.mxu1 %v9194_v16  ;;  %v6321_v16 = vld [vmem:[%s12508_s2 + $0x2d0] sm:$0xff]  ;;  %v9673_v40 = vsel %vm1042_vm0, %v1083_v17, %v1084_v60  ;;  %v9680_v63 = vsel %vm1042_vm0, %v1084_v60, %v1086_v47  ;;  %v1104_v17 = vrot.slane %v9390_v36, 2  ;;  %v1106_v60 = vrot.slane %v9404_v32, 2 }
  0x80   : > { %7700 = vmatpush3.msra.mxu0 %v6306_v5  ;;  %7779 = vmatprep.subr.mxu1 %v6322_v6  ;;  %v1088_v5 = vrot.slane %v9303_v8, 2  ;;  %v1108_v47 = vrot.slane %v9415_v18, 2 }
  0x81   : > { %7578 = vmatprep.mubr.f32.mxu0 %v9616_v27  ;;  %7780 = vmatpush3.msra.mxu1 %v6322_v6  ;;  %v1091_v6 = vrot.slane %v9320_v19, 2  ;;  %v9756_v32 = vsel %vm1042_vm0, %v1104_v17, %v1106_v60  ;;  %v12772_v60 = vld [vmem:[#allocation4_spill] sm:$0xff] }
  0x82   : > { %7658 = vmatprep.mubr.f32.mxu1 %v9219_v25  ;;  %7579 = vmatmul.mubr.f32.gmra.mxu0 %v9623_v21  ;;  %v6304_v25 = vld [vmem:[%s12508_s2 + $0x248] sm:$0xff]  ;;  %v9692_v23 = vsel %vm1042_vm0, %v1088_v5, %v1089_v45  ;;  %12763 = vst [vmem:[#allocation26_spill] sm:$0xff] %v9756_v32  ;;  %v1111_v5 = vrot.slane %v9432_v0, 2 }
  0x83   : > { %7701 = vmatprep.subr.mxu0 %v6305_v15  ;;  %7659 = vmatmul.mubr.f32.gmra.mxu1 %v9222_v28  ;;  %v6320_v28 = vld [vmem:[%s12508_s2 + $0x2c8] sm:$0xff]  ;;  %v9699_v19 = vsel %vm1042_vm0, %v1089_v45, %v1091_v6  ;;  %v1114_v6 = vrot.slane %v9446_v54, 2 }
  0x84   : > { %7702 = vmatpush3.msra.mxu0 %v6305_v15  ;;  %7781 = vmatprep.subr.mxu1 %v6321_v16  ;;  %v1094_v15 = vrot.slane %v9334_v31, 2 }
  0x85   : > { %7581 = vmatprep.mubr.f32.mxu0 %v9635_v44  ;;  %7782 = vmatpush3.msra.mxu1 %v6321_v16 }
  0x86   : > { %7661 = vmatprep.mubr.f32.mxu1 %v9247_v37  ;;  %7582 = vmatmul.mubr.f32.gmra.mxu0 %v9642_v33  ;;  %v6303_v37 = vld [vmem:[%s12508_s2 + $0x240] sm:$0xff]  ;;  %v9711_v16 = vsel %vm1042_vm0, %v1093_v29, %v1094_v15  ;;  %v9718_v43 = vsel %vm1042_vm0, %v1094_v15, %v1096_v49  ;;  %v1118_v15 = vrot.slane %v9471_v24, 2  ;;  %v1121_v49 = vrot.slane %v9488_v22, 2 }
  0x87   : > { %7703 = vmatprep.subr.mxu0 %v6304_v25  ;;  %7662 = vmatmul.mubr.f32.gmra.mxu1 %v9250_v38  ;;  %v6319_v38 = vld [vmem:[%s12508_s2 + $0x2c0] sm:$0xff] }
  0x88   : > { %7704 = vmatpush3.msra.mxu0 %v6304_v25  ;;  %7783 = vmatprep.subr.mxu1 %v6320_v28  ;;  %v1101_v25 = vrot.slane %v9376_v14, 2 }
  0x89   : > { %7584 = vmatprep.mubr.f32.mxu0 %v9654_v59  ;;  %7784 = vmatpush3.msra.mxu1 %v6320_v28  ;;  %v1103_v28 = vrot.slane %v9387_v35, 2 }
  0x8a   : > { %7664 = vmatprep.mubr.f32.mxu1 %v9275_v52  ;;  %7585 = vmatmul.mubr.f32.gmra.mxu0 %v9661_v46  ;;  %v6302_v52 = vld [vmem:[%s12508_s2 + $0x238] sm:$0xff]  ;;  %v9737_v14 = vsel %vm1042_vm0, %v1099_v10, %v1101_v25  ;;  %v9821_v10 = vld [vmem:[%s9015_s8 + $0x188] sm:$0xff] }
  0x8b   : > { %7705 = vmatprep.subr.mxu0 %v6303_v37  ;;  %7665 = vmatmul.mubr.f32.gmra.mxu1 %v9278_v53  ;;  %v6318_v53 = vld [vmem:[%s12508_s2 + $0x2b8] sm:$0xff] }
  0x8c   : > { %7706 = vmatpush3.msra.mxu0 %v6303_v37  ;;  %7785 = vmatprep.subr.mxu1 %v6319_v38  ;;  %v9749_v37 = vsel %vm1042_vm0, %v1103_v28, %v1104_v17  ;;  %v6358_v25 = vld [vmem:[%s12508_s2 + $0x3f8] sm:$0xff]  ;;  %v6339_v28 = vld [vmem:[%s12508_s2 + $0x360] sm:$0xff]  ;;  %v12771_v17 = vld [vmem:[#allocation3_spill] sm:$0xff] }
  0x8d   : > { %7587 = vmatprep.mubr.f32.mxu0 %v9673_v40  ;;  %7786 = vmatpush3.msra.mxu1 %v6319_v38  ;;  %12762 = vst [vmem:[#allocation25_spill] sm:$0xff] %v9749_v37  ;;  %v1109_v38 = vrot.slane %v9418_v20, 2 }
  0x8e   : > { %7667 = vmatprep.mubr.f32.mxu1 %v9303_v8  ;;  %7588 = vmatmul.mubr.f32.gmra.mxu0 %v9680_v63  ;;  %v6301_v8 = vld [vmem:[%s12508_s2 + $0x230] sm:$0xff] }
  0x8f   : > { %7707 = vmatprep.subr.mxu0 %v6302_v52  ;;  %7668 = vmatmul.mubr.f32.gmra.mxu1 %v9306_v9  ;;  %v6317_v9 = vld [vmem:[%s12508_s2 + $0x2b0] sm:$0xff]  ;;  %v9768_v45 = vsel %vm1042_vm0, %v1108_v47, %v1109_v38  ;;  %v9775_v0 = vsel %vm1042_vm0, %v1109_v38, %v1111_v5  ;;  %v12773_v47 = vld [vmem:[#allocation5_spill] sm:$0xff] }
  0x90   : > { %7708 = vmatpush3.msra.mxu0 %v6302_v52  ;;  %7787 = vmatprep.subr.mxu1 %v6318_v53  ;;  %12764 = vst [vmem:[#allocation27_spill] sm:$0xff] %v9768_v45  ;;  %v1113_v52 = vrot.slane %v9443_v51, 2  ;;  %12765 = vst [vmem:[#allocation28_spill] sm:$0xff] %v9775_v0  ;;  %v6354_v38 = vld [vmem:[%s12508_s2 + $0x3d8] sm:$0xff]  ;;  %v6337_v5 = vld [vmem:[%s12508_s2 + $0x350] sm:$0xff] }
  0x91   : > { %7590 = vmatprep.mubr.f32.mxu0 %v9692_v23  ;;  %7788 = vmatpush3.msra.mxu1 %v6318_v53  ;;  %v1116_v53 = vrot.slane %v9460_v39, 2 }
  0x92   : > { %7670 = vmatprep.mubr.f32.mxu1 %v9331_v30  ;;  %7591 = vmatmul.mubr.f32.gmra.mxu0 %v9699_v19  ;;  %v6300_v30 = vld [vmem:[%s12508_s2 + $0x228] sm:$0xff]  ;;  %v9787_v29 = vsel %vm1042_vm0, %v1113_v52, %v1114_v6  ;;  %v6353_v52 = vld [vmem:[%s12508_s2 + $0x3d0] sm:$0xff] }
  0x93   : > { %7709 = vmatprep.subr.mxu0 %v6301_v8  ;;  %7671 = vmatmul.mubr.f32.gmra.mxu1 %v9334_v31  ;;  %v6316_v31 = vld [vmem:[%s12508_s2 + $0x2a8] sm:$0xff]  ;;  %12766 = vst [vmem:[#allocation29_spill] sm:$0xff] %v9787_v29  ;;  %v9794_v39 = vsel %vm1042_vm0, %v1114_v6, %v1116_v53  ;;  %v12776_v6 = vld [vmem:[#allocation8_spill] sm:$0xff]  ;;  %v12777_v53 = vld [vmem:[#allocation9_spill] sm:$0xff] }
  0x94   : > { %7710 = vmatpush3.msra.mxu0 %v6301_v8  ;;  %7789 = vmatprep.subr.mxu1 %v6317_v9  ;;  %v1119_v8 = vrot.slane %v9474_v34, 2  ;;  %12767 = vst [vmem:[#allocation30_spill] sm:$0xff] %v9794_v39 }
  0x95   : > { %7593 = vmatprep.mubr.f32.mxu0 %v9711_v16  ;;  %7790 = vmatpush3.msra.mxu1 %v6317_v9 }
  0x96   : > { %7673 = vmatprep.mubr.f32.mxu1 %v9359_v57  ;;  %7594 = vmatmul.mubr.f32.gmra.mxu0 %v9718_v43  ;;  %v6299_v57 = vld [vmem:[%s12508_s2 + $0x220] sm:$0xff]  ;;  %v9806_v9 = vsel %vm1042_vm0, %v1118_v15, %v1119_v8  ;;  %v9814_v22 = vsel %vm1042_vm0, %v1119_v8, %v1121_v49 }
  0x97   : > { %7711 = vmatprep.subr.mxu0 %v6300_v30  ;;  %7674 = vmatmul.mubr.f32.gmra.mxu1 %v9362_v58  ;;  %v6315_v58 = vld [vmem:[%s12508_s2 + $0x2a0] sm:$0xff]  ;;  %12768 = vst [vmem:[#allocation31_spill] sm:$0xff] %v9806_v9  ;;  %12769 = vst [vmem:[#allocation32_spill] sm:$0xff] %v9814_v22 }
  0x98   : > { %7712 = vmatpush3.msra.mxu0 %v6300_v30  ;;  %7791 = vmatprep.subr.mxu1 %v6316_v31  ;;  %v6342_v30 = vld [vmem:[%s12508_s2 + $0x378] sm:$0xff]  ;;  %v12778_v15 = vld [vmem:[#allocation10_spill] sm:$0xff] }
  0x99   : > { %7596 = vmatprep.mubr.f32.mxu0 %v9730_v13  ;;  %7792 = vmatpush3.msra.mxu1 %v6316_v31  ;;  %v6341_v31 = vld [vmem:[%s12508_s2 + $0x370] sm:$0xff]  ;;  %v6335_v8 = vld [vmem:[%s12508_s2 + $0x340] sm:$0xff] }
  0x9a   : > { %7676 = vmatprep.mubr.f32.mxu1 %v9387_v35  ;;  %7597 = vmatmul.mubr.f32.gmra.mxu0 %v9737_v14  ;;  %v6298_v35 = vld [vmem:[%s12508_s2 + $0x218] sm:$0xff]  ;;  %v6351_v49 = vld [vmem:[%s12508_s2 + $0x3c0] sm:$0xff] }
  0x9b   : > { %7713 = vmatprep.subr.mxu0 %v6299_v57  ;;  %7677 = vmatmul.mubr.f32.gmra.mxu1 %v9390_v36  ;;  %v6314_v36 = vld [vmem:[%s12508_s2 + $0x298] sm:$0xff] }
  0x9c   : > { %7714 = vmatpush3.msra.mxu0 %v6299_v57  ;;  %7793 = vmatprep.subr.mxu1 %v6315_v58  ;;  %v6355_v57 = vld [vmem:[%s12508_s2 + $0x3e0] sm:$0xff] }
  0x9d   : > { %7599 = vmatprep.mubr.f32.mxu0 %v9749_v37  ;;  %7794 = vmatpush3.msra.mxu1 %v6315_v58  ;;  %v6338_v58 = vld [vmem:[%s12508_s2 + $0x358] sm:$0xff] }
  0x9e   : > { %7679 = vmatprep.mubr.f32.mxu1 %v9415_v18  ;;  %7600 = vmatmul.mubr.f32.gmra.mxu0 %v9756_v32  ;;  %v6297_v18 = vld [vmem:[%s12508_s2 + $0x210] sm:$0xff] }
  0x9f   : > { %7715 = vmatprep.subr.mxu0 %v6298_v35  ;;  %7680 = vmatmul.mubr.f32.gmra.mxu1 %v9418_v20  ;;  %v6313_v20 = vld [vmem:[%s12508_s2 + $0x290] sm:$0xff] }
  0xa0   : > { %7716 = vmatpush3.msra.mxu0 %v6298_v35  ;;  %7795 = vmatprep.subr.mxu1 %v6314_v36  ;;  %v12774_v35 = vld [vmem:[#allocation6_spill] sm:$0xff] }
  0xa1   : > { %7602 = vmatprep.mubr.f32.mxu0 %v9768_v45  ;;  %7796 = vmatpush3.msra.mxu1 %v6314_v36  ;;  %v12775_v36 = vld [vmem:[#allocation7_spill] sm:$0xff] }
  0xa2   : > { %7682 = vmatprep.mubr.f32.mxu1 %v9443_v51  ;;  %7603 = vmatmul.mubr.f32.gmra.mxu0 %v9775_v0  ;;  %v6296_v51 = vld [vmem:[%s12508_s2 + $0x208] sm:$0xff] }
  0xa3   : > { %7717 = vmatprep.subr.mxu0 %v6297_v18  ;;  %7683 = vmatmul.mubr.f32.gmra.mxu1 %v9446_v54  ;;  %v6312_v54 = vld [vmem:[%s12508_s2 + $0x288] sm:$0xff] }
  0xa4   : > { %7718 = vmatpush3.msra.mxu0 %v6297_v18  ;;  %7797 = vmatprep.subr.mxu1 %v6313_v20  ;;  %v6336_v18 = vld [vmem:[%s12508_s2 + $0x348] sm:$0xff] }
  0xa5   : > { %7605 = vmatprep.mubr.f32.mxu0 %v9787_v29  ;;  %7798 = vmatpush3.msra.mxu1 %v6313_v20  ;;  %v6352_v20 = vld [vmem:[%s12508_s2 + $0x3c8] sm:$0xff] }
  0xa6   : > { %7685 = vmatprep.mubr.f32.mxu1 %v9471_v24  ;;  %7606 = vmatmul.mubr.f32.gmra.mxu0 %v9794_v39  ;;  %v6295_v24 = vld [vmem:[%s12508_s2 + $0x200] sm:$0xff] }
  0xa7   : > { %7719 = vmatprep.subr.mxu0 %v6296_v51  ;;  %7686 = vmatmul.mubr.f32.gmra.mxu1 %v9474_v34  ;;  %v6311_v34 = vld [vmem:[%s12508_s2 + $0x280] sm:$0xff] }
  0xa8   : > { %7720 = vmatpush3.msra.mxu0 %v6296_v51  ;;  %7799 = vmatprep.subr.mxu1 %v6312_v54  ;;  %v12779_v51 = vld [vmem:[#allocation11_spill] sm:$0xff] }
  0xa9   : > { %7608 = vmatprep.mubr.f32.mxu0 %v9806_v9  ;;  %7800 = vmatpush3.msra.mxu1 %v6312_v54  ;;  %v12780_v54 = vld [vmem:[#allocation12_spill] sm:$0xff] }
  0xaa   : > { %7688 = vmatprep.mubr.f32.mxu1 %v9810_v50  ;;  %7609 = vmatmul.mubr.f32.gmra.mxu0 %v9814_v22 }
  0xab   : > { %7721 = vmatprep.subr.mxu0 %v6295_v24  ;;  %7689 = vmatmul.mubr.f32.gmra.mxu1 %v9821_v10 }
  0xac   : > { %7722 = vmatpush3.msra.mxu0 %v6295_v24  ;;  %7801 = vmatprep.subr.mxu1 %v6311_v34  ;;  %v6334_v24 = vld [vmem:[%s12508_s2 + $0x338] sm:$0xff] }
  0xad   : > { %7723 = vmatprep.mubr.f32.mxu0 %v9129_v56  ;;  %7802 = vmatpush3.msra.mxu1 %v6311_v34  ;;  %v6357_v56 = vld [vmem:[%s12508_s2 + $0x3f0] sm:$0xff]  ;;  %v12781_v34 = vld [vmem:[#allocation13_spill] sm:$0xff] }
  0xae   : > { %7803 = vmatprep.mubr.f32.mxu1 %v9540_v42  ;;  %7724 = vmatmul.mubr.f32.vlgmr.msra.gmra.mxu0 %v9141_v61  ;;  %v6340_v61 = vld [vmem:[%s12508_s2 + $0x368] sm:$0xff] }
  0xaf   : > { %7851 = vmatprep.subr.mxu0 %v6342_v30  ;;  %7804 = vmatmul.mubr.f32.vlgmr.msra.gmra.mxu1 %v9547_v26  ;;  %v6356_v42 = vld [vmem:[%s12508_s2 + $0x3e8] sm:$0xff]  ;;  %v12770_v26 = vld [vmem:[#allocation2_spill] sm:$0xff] }
  0xb0   : > { %7852 = vmatpush3.msra.mxu0 %v6342_v30  ;;  %7931 = vmatprep.subr.mxu1 %v6358_v25  ;;  %v6350_v30 = vld [vmem:[%s12508_s2 + $0x3b8] sm:$0xff] }
  0xb1   : > { %7726 = vmatprep.mubr.f32.mxu0 %v9156_v2  ;;  %7932 = vmatpush3.msra.mxu1 %v6358_v25  ;;  %v12782_v25 = vld [vmem:[#allocation14_spill] sm:$0xff] }
  0xb2   : > { %7806 = vmatprep.mubr.f32.mxu1 %v9559_v41  ;;  %7727 = vmatmul.mubr.f32.gmra.mxu0 %v9169_v7 }
  0xb3   : > { %7853 = vmatprep.subr.mxu0 %v6341_v31  ;;  %7807 = vmatmul.mubr.f32.gmra.mxu1 %v9566_v55 }
  0xb4   : > { %7854 = vmatpush3.msra.mxu0 %v6341_v31  ;;  %7933 = vmatprep.subr.mxu1 %v6357_v56  ;;  %v6333_v31 = vld [vmem:[%s12508_s2 + $0x330] sm:$0xff] }
  0xb5   : > { %7729 = vmatprep.mubr.f32.mxu0 %v9184_v12  ;;  %7934 = vmatpush3.msra.mxu1 %v6357_v56  ;;  %v12783_v56 = vld [vmem:[#allocation15_spill] sm:$0xff] }
  0xb6   : > { %7809 = vmatprep.mubr.f32.mxu1 %v9578_v62  ;;  %7730 = vmatmul.mubr.f32.gmra.mxu0 %v12770_v26 }
  0xb7   : > { %7855 = vmatprep.subr.mxu0 %v6340_v61  ;;  %7810 = vmatmul.mubr.f32.gmra.mxu1 %v9585_v1 }
  0xb8   : > { %7856 = vmatpush3.msra.mxu0 %v6340_v61  ;;  %7935 = vmatprep.subr.mxu1 %v6356_v42  ;;  %v6349_v61 = vld [vmem:[%s12508_s2 + $0x3b0] sm:$0xff] }
  0xb9   : > { %7732 = vmatprep.mubr.f32.mxu0 %v12771_v17  ;;  %7936 = vmatpush3.msra.mxu1 %v6356_v42  ;;  %v12784_v42 = vld [vmem:[#allocation16_spill] sm:$0xff] }
  0xba   : > { %7812 = vmatprep.mubr.f32.mxu1 %v9597_v3  ;;  %7733 = vmatmul.mubr.f32.gmra.mxu0 %v12772_v60 }
  0xbb   : > { %7857 = vmatprep.subr.mxu0 %v6339_v28  ;;  %7813 = vmatmul.mubr.f32.gmra.mxu1 %v9604_v11 }
  0xbc   : > { %7858 = vmatpush3.msra.mxu0 %v6339_v28  ;;  %7937 = vmatprep.subr.mxu1 %v6355_v57  ;;  %v6332_v28 = vld [vmem:[%s12508_s2 + $0x328] sm:$0xff] }
  0xbd   : > { %7735 = vmatprep.mubr.f32.mxu0 %v12773_v47  ;;  %7938 = vmatpush3.msra.mxu1 %v6355_v57  ;;  %v12785_v57 = vld [vmem:[#allocation17_spill] sm:$0xff] }
  0xbe   : > { %7815 = vmatprep.mubr.f32.mxu1 %v9616_v27  ;;  %7736 = vmatmul.mubr.f32.gmra.mxu0 %v12774_v35 }
  0xbf   : > { %7859 = vmatprep.subr.mxu0 %v6338_v58  ;;  %7816 = vmatmul.mubr.f32.gmra.mxu1 %v9623_v21 }
  0xc0   : > { %7860 = vmatpush3.msra.mxu0 %v6338_v58  ;;  %7939 = vmatprep.subr.mxu1 %v6354_v38  ;;  %v6348_v58 = vld [vmem:[%s12508_s2 + $0x3a8] sm:$0xff] }
  0xc1   : > { %7738 = vmatprep.mubr.f32.mxu0 %v12775_v36  ;;  %7940 = vmatpush3.msra.mxu1 %v6354_v38  ;;  %v12786_v38 = vld [vmem:[#allocation18_spill] sm:$0xff] }
  0xc2   : > { %7818 = vmatprep.mubr.f32.mxu1 %v9635_v44  ;;  %7739 = vmatmul.mubr.f32.gmra.mxu0 %v12776_v6 }
  0xc3   : > { %7861 = vmatprep.subr.mxu0 %v6337_v5  ;;  %7819 = vmatmul.mubr.f32.gmra.mxu1 %v9642_v33 }
  0xc4   : > { %7862 = vmatpush3.msra.mxu0 %v6337_v5  ;;  %7941 = vmatprep.subr.mxu1 %v6353_v52  ;;  %v6331_v5 = vld [vmem:[%s12508_s2 + $0x320] sm:$0xff] }
  0xc5   : > { %7741 = vmatprep.mubr.f32.mxu0 %v12777_v53  ;;  %7942 = vmatpush3.msra.mxu1 %v6353_v52  ;;  %v12787_v52 = vld [vmem:[#allocation19_spill] sm:$0xff] }
  0xc6   : > { %7821 = vmatprep.mubr.f32.mxu1 %v9654_v59  ;;  %7742 = vmatmul.mubr.f32.gmra.mxu0 %v12778_v15 }
  0xc7   : > { %7863 = vmatprep.subr.mxu0 %v6336_v18  ;;  %7822 = vmatmul.mubr.f32.gmra.mxu1 %v9661_v46 }
  0xc8   : > { %7864 = vmatpush3.msra.mxu0 %v6336_v18  ;;  %7943 = vmatprep.subr.mxu1 %v6352_v20  ;;  %v6347_v18 = vld [vmem:[%s12508_s2 + $0x3a0] sm:$0xff] }
  0xc9   : > { %7744 = vmatprep.mubr.f32.mxu0 %v12779_v51  ;;  %7944 = vmatpush3.msra.mxu1 %v6352_v20  ;;  %v12788_v20 = vld [vmem:[#allocation20_spill] sm:$0xff] }
  0xca   : > { %7824 = vmatprep.mubr.f32.mxu1 %v9673_v40  ;;  %7745 = vmatmul.mubr.f32.gmra.mxu0 %v12780_v54 }
  0xcb   : > { %7865 = vmatprep.subr.mxu0 %v6335_v8  ;;  %7825 = vmatmul.mubr.f32.gmra.mxu1 %v9680_v63 }
  0xcc   : > { %7866 = vmatpush3.msra.mxu0 %v6335_v8  ;;  %7945 = vmatprep.subr.mxu1 %v6351_v49  ;;  %v6330_v8 = vld [vmem:[%s12508_s2 + $0x318] sm:$0xff] }
  0xcd   : > { %7747 = vmatprep.mubr.f32.mxu0 %v12781_v34  ;;  %7946 = vmatpush3.msra.mxu1 %v6351_v49  ;;  %v12789_v49 = vld [vmem:[#allocation21_spill] sm:$0xff] }
  0xce   : > { %7827 = vmatprep.mubr.f32.mxu1 %v9692_v23  ;;  %7748 = vmatmul.mubr.f32.gmra.mxu0 %v12782_v25 }
  0xcf   : > { %7867 = vmatprep.subr.mxu0 %v6334_v24  ;;  %7828 = vmatmul.mubr.f32.gmra.mxu1 %v9699_v19 }
  0xd0   : > { %7868 = vmatpush3.msra.mxu0 %v6334_v24  ;;  %7947 = vmatprep.subr.mxu1 %v6350_v30  ;;  %v6346_v24 = vld [vmem:[%s12508_s2 + $0x398] sm:$0xff] }
  0xd1   : > { %7750 = vmatprep.mubr.f32.mxu0 %v12783_v56  ;;  %7948 = vmatpush3.msra.mxu1 %v6350_v30  ;;  %v12790_v30 = vld [vmem:[#allocation22_spill] sm:$0xff] }
  0xd2   : > { %7830 = vmatprep.mubr.f32.mxu1 %v9711_v16  ;;  %7751 = vmatmul.mubr.f32.gmra.mxu0 %v12784_v42 }
  0xd3   : > { %7869 = vmatprep.subr.mxu0 %v6333_v31  ;;  %7831 = vmatmul.mubr.f32.gmra.mxu1 %v9718_v43 }
  0xd4   : > { %7870 = vmatpush3.msra.mxu0 %v6333_v31  ;;  %7949 = vmatprep.subr.mxu1 %v6349_v61  ;;  %v6329_v31 = vld [vmem:[%s12508_s2 + $0x310] sm:$0xff] }
  0xd5   : > { %7753 = vmatprep.mubr.f32.mxu0 %v12785_v57  ;;  %7950 = vmatpush3.msra.mxu1 %v6349_v61  ;;  %v394_v61 = vld [vmem:[%s9015_s8 + $0x190] sm:$0x3] }
  0xd6   : > { %7833 = vmatprep.mubr.f32.mxu1 %v9730_v13  ;;  %7754 = vmatmul.mubr.f32.gmra.mxu0 %v12786_v38 }
  0xd7   : > { %7871 = vmatprep.subr.mxu0 %v6332_v28  ;;  %7834 = vmatmul.mubr.f32.gmra.mxu1 %v9737_v14 }
  0xd8   : > { %7872 = vmatpush3.msra.mxu0 %v6332_v28  ;;  %7951 = vmatprep.subr.mxu1 %v6348_v58  ;;  %v6345_v28 = vld [vmem:[%s12508_s2 + $0x390] sm:$0xff] }
  0xd9   : > { %7756 = vmatprep.mubr.f32.mxu0 %v12787_v52  ;;  %7952 = vmatpush3.msra.mxu1 %v6348_v58  ;;  %v1706_v58 = vrot.slane %v9810_v50, 1 }
  0xda   : > { %7836 = vmatprep.mubr.f32.mxu1 %v9749_v37  ;;  %7757 = vmatmul.mubr.f32.gmra.mxu0 %v12788_v20 }
  0xdb   : > { %7873 = vmatprep.subr.mxu0 %v6331_v5  ;;  %7837 = vmatmul.mubr.f32.gmra.mxu1 %v9756_v32  ;;  %v6344_v32 = vld [vmem:[%s12508_s2 + $0x388] sm:$0xff] }
  0xdc   : > { %7874 = vmatpush3.msra.mxu0 %v6331_v5  ;;  %7953 = vmatprep.subr.mxu1 %v6347_v18  ;;  %v1707_v5 = vrot.slane %v9821_v10, 1 }
  0xdd   : > { %7759 = vmatprep.mubr.f32.mxu0 %v12789_v49  ;;  %7954 = vmatpush3.msra.mxu1 %v6347_v18  ;;  %v1987_v18 = vrot.slane %v9810_v50, 2 }
  0xde   : > { %7839 = vmatprep.mubr.f32.mxu1 %v9768_v45  ;;  %7760 = vmatmul.mubr.f32.gmra.mxu0 %v12790_v30  ;;  %v1990_v45 = vrot.slane %v394_v61, 2  ;;  %v9983_v37 = vsel %vm462_vm1, %v1706_v58, %v1707_v5 }
  0xdf   : > { %7875 = vmatprep.subr.mxu0 %v6330_v8  ;;  %7840 = vmatmul.mubr.f32.gmra.mxu1 %v9775_v0  ;;  %v12791_v0 = vld [vmem:[#allocation23_spill] sm:$0xff] }
  0xe0   : > { %7876 = vmatpush3.msra.mxu0 %v6330_v8  ;;  %7955 = vmatprep.subr.mxu1 %v6346_v24  ;;  %v1988_v8 = vrot.slane %v9821_v10, 2 }
  0xe1   : > { %7762 = vmatprep.mubr.f32.mxu0 %v9492_v48  ;;  %7956 = vmatpush3.msra.mxu1 %v6346_v24  ;;  %v6328_v24 = vld [vmem:[%s12508_s2 + $0x308] sm:$0xff] }
  0xe2   : > { %7842 = vmatprep.mubr.f32.mxu1 %v9787_v29  ;;  %7763 = vmatmul.mubr.f32.gmra.mxu0 %v9499_v4  ;;  %v1709_v29 = vrot.slane %v394_v61, 1  ;;  %v9998_v58 = vsel %vm1042_vm0, %v1988_v8, %v1990_v45  ;;  %v8836_v45 = vld [vmem:[%s9015_s8 + $0x30] sm:$0xff] }
  0xe3   : > { %7877 = vmatprep.subr.mxu0 %v6329_v31  ;;  %7843 = vmatmul.mubr.f32.gmra.mxu1 %v9794_v39  ;;  %v9987_v39 = vsel %vm1042_vm0, %v1987_v18, %v1988_v8  ;;  %12794 = vst [vmem:[#allocation3_spill] sm:$0xff] %v9998_v58  ;;  %v6343_v18 = vld [vmem:[%s12508_s2 + $0x380] sm:$0xff] }
  0xe4   : > { %7878 = vmatpush3.msra.mxu0 %v6329_v31  ;;  %7957 = vmatprep.subr.mxu1 %v6345_v28  ;;  %v12792_v31 = vld [vmem:[#allocation24_spill] sm:$0xff]  ;;  %12793 = vst [vmem:[#allocation2_spill] sm:$0xff] %v9987_v39  ;;  %v9991_v61 = vsel %vm462_vm1, %v1707_v5, %v1709_v29  ;;  %v6374_v29 = vld [vmem:[%s12508_s2 + $0x478] sm:$0xff] }
  0xe5   : > { %7765 = vmatprep.mubr.f32.mxu0 %v12791_v0  ;;  %7958 = vmatpush3.msra.mxu1 %v6345_v28  ;;  %v6327_v28 = vld [vmem:[%s12508_s2 + $0x300] sm:$0xff] }
  0xe6   : > { %7845 = vmatprep.mubr.f32.mxu1 %v9806_v9  ;;  %7766 = vmatmul.mubr.f32.gmra.mxu0 %v12792_v31 }
  0xe7   : > { %7879 = vmatprep.subr.mxu0 %v6328_v24  ;;  %7846 = vmatmul.mubr.f32.gmra.mxu1 %v9814_v22  ;;  %v8863_v22 = vld [vmem:[%s9015_s8 + $0x170] sm:$0xff] }
  0xe8   : > { %7880 = vmatpush3.msra.mxu0 %v6328_v24  ;;  %7959 = vmatprep.subr.mxu1 %v6344_v32  ;;  %v8837_v24 = vld [vmem:[%s9015_s8 + $0x38] sm:$0xff] }
  0xe9   : > { %7768 = vmatprep.mubr.f32.mxu0 %v9983_v37  ;;  %7960 = vmatpush3.msra.mxu1 %v6344_v32  ;;  %v6390_v32 = vld [vmem:[%s12509_s3 + $0xf8] sm:$0xff] }
  0xea   : > { %7848 = vmatprep.mubr.f32.mxu1 %v9987_v39  ;;  %7769 = vmatmul.mubr.f32.gmra.mxu0 %v9991_v61 }
  0xeb   : > { %7881 = vmatprep.subr.mxu0 %v6327_v28  ;;  %7849 = vmatmul.mubr.f32.gmra.mxu1 %v9998_v58  ;;  %v8838_v58 = vld [vmem:[%s9015_s8 + $0x48] sm:$0xff] }
  0xec   : > { %7882 = vmatpush3.msra.mxu0 %v6327_v28  ;;  %7961 = vmatprep.subr.mxu1 %v6343_v18 }
  0xed   : > { %7883 = vmatprep.mubr.f32.mxu0 %v8836_v45  ;;  %7962 = vmatpush3.msra.mxu1 %v6343_v18  ;;  %v6373_v18 = vld [vmem:[%s12508_s2 + $0x470] sm:$0xff] }
  0xee   : > { %7963 = vmatprep.mubr.f32.mxu1 %v9156_v2  ;;  %v7405_v5 = vpop.f32.mrf.mxu0  ;;  %7884 = vmatmul.mubr.f32.vlgmr.msra.gmra.mxu0 %v8837_v24 }
  0xef   : > { %v7485_v8 = vpop.f32.mrf.mxu1  ;;  %8011 = vmatprep.subr.mxu0 %v6374_v29  ;;  %7964 = vmatmul.mubr.f32.vlgmr.msra.gmra.mxu1 %v9169_v7  ;;  %v6389_v7 = vld [vmem:[%s12509_s3 + $0xf0] sm:$0xff] }
  0xf0   : > { %v10015_v28 = vadd.f32 %v7485_v8, %v7405_v5  ;;  %8012 = vmatpush3.msra.mxu0 %v6374_v29  ;;  %v658_v2 = vpop.f32.mrf.mxu0  ;;  %8091 = vmatprep.subr.mxu1 %v6390_v32  ;;  %v8839_v8 = vld [vmem:[%s9015_s8 + $0x50] sm:$0xff] }
  0xf1   : > { %v883_v45 = vpop.f32.mrf.mxu1  ;;  %7886 = vmatprep.mubr.f32.mxu0 %v8838_v58  ;;  %8092 = vmatpush3.msra.mxu1 %v6390_v32  ;;  %v6372_v58 = vld [vmem:[%s12508_s2 + $0x468] sm:$0xff] }
  0xf2   : > { %v10022_v39 = vadd.f32 %v883_v45, %v658_v2  ;;  %7966 = vmatprep.mubr.f32.mxu1 %v9184_v12  ;;  %v7408_v29 = vpop.f32.mrf.mxu0  ;;  %7887 = vmatmul.mubr.f32.gmra.mxu0 %v8839_v8  ;;  %v8840_v2 = vld [vmem:[%s9015_s8 + $0x60] sm:$0xff] }
  0xf3   : > { %v7488_v5 = vpop.f32.mrf.mxu1  ;;  %8013 = vmatprep.subr.mxu0 %v6373_v18  ;;  %7967 = vmatmul.mubr.f32.gmra.mxu1 %v12770_v26  ;;  %v6388_v26 = vld [vmem:[%s12509_s3 + $0xe8] sm:$0xff] }
  0xf4   : > { %v10029_v24 = vadd.f32 %v7488_v5, %v7408_v29  ;;  %8014 = vmatpush3.msra.mxu0 %v6373_v18  ;;  %v668_v12 = vpop.f32.mrf.mxu0  ;;  %8093 = vmatprep.subr.mxu1 %v6389_v7  ;;  %v8841_v5 = vld [vmem:[%s9015_s8 + $0x68] sm:$0xff] }
  0xf5   : > { %v893_v32 = vpop.f32.mrf.mxu1  ;;  %7889 = vmatprep.mubr.f32.mxu0 %v8840_v2  ;;  %8094 = vmatpush3.msra.mxu1 %v6389_v7  ;;  %v6371_v7 = vld [vmem:[%s12508_s2 + $0x460] sm:$0xff] }
  0xf6   : > { %v10036_v45 = vadd.f32 %v893_v32, %v668_v12  ;;  %7969 = vmatprep.mubr.f32.mxu1 %v12771_v17  ;;  %v7411_v18 = vpop.f32.mrf.mxu0  ;;  %7890 = vmatmul.mubr.f32.gmra.mxu0 %v8841_v5  ;;  %v8842_v32 = vld [vmem:[%s9015_s8 + $0x78] sm:$0xff] }
  0xf7   : > { %v7491_v29 = vpop.f32.mrf.mxu1  ;;  %8015 = vmatprep.subr.mxu0 %v6372_v58  ;;  %7970 = vmatmul.mubr.f32.gmra.mxu1 %v12772_v60  ;;  %v6387_v60 = vld [vmem:[%s12509_s3 + $0xe0] sm:$0xff] }
  0xf8   : > { %v10043_v8 = vadd.f32 %v7491_v29, %v7411_v18  ;;  %8016 = vmatpush3.msra.mxu0 %v6372_v58  ;;  %v678_v17 = vpop.f32.mrf.mxu0  ;;  %8095 = vmatprep.subr.mxu1 %v6388_v26  ;;  %v8843_v29 = vld [vmem:[%s9015_s8 + $0x80] sm:$0xff] }
  0xf9   : > { %v903_v12 = vpop.f32.mrf.mxu1  ;;  %7892 = vmatprep.mubr.f32.mxu0 %v8842_v32  ;;  %8096 = vmatpush3.msra.mxu1 %v6388_v26  ;;  %v6370_v26 = vld [vmem:[%s12508_s2 + $0x458] sm:$0xff] }
  0xfa   : > { %v10050_v2 = vadd.f32 %v903_v12, %v678_v17  ;;  %7972 = vmatprep.mubr.f32.mxu1 %v12773_v47  ;;  %v7414_v58 = vpop.f32.mrf.mxu0  ;;  %7893 = vmatmul.mubr.f32.gmra.mxu0 %v8843_v29  ;;  %v8844_v12 = vld [vmem:[%s9015_s8 + $0x90] sm:$0xff] }
  0xfb   : > { %v7494_v18 = vpop.f32.mrf.mxu1  ;;  %8017 = vmatprep.subr.mxu0 %v6371_v7  ;;  %7973 = vmatmul.mubr.f32.gmra.mxu1 %v12774_v35  ;;  %v6386_v35 = vld [vmem:[%s12509_s3 + $0xd8] sm:$0xff] }
  0xfc   : > { %v10057_v5 = vadd.f32 %v7494_v18, %v7414_v58  ;;  %8018 = vmatpush3.msra.mxu0 %v6371_v7  ;;  %v688_v47 = vpop.f32.mrf.mxu0  ;;  %8097 = vmatprep.subr.mxu1 %v6387_v60  ;;  %v8845_v18 = vld [vmem:[%s9015_s8 + $0x98] sm:$0xff] }
  0xfd   : > { %v913_v17 = vpop.f32.mrf.mxu1  ;;  %7895 = vmatprep.mubr.f32.mxu0 %v8844_v12  ;;  %8098 = vmatpush3.msra.mxu1 %v6387_v60  ;;  %v6369_v60 = vld [vmem:[%s12508_s2 + $0x450] sm:$0xff] }
  0xfe   : > { %v10064_v32 = vadd.f32 %v913_v17, %v688_v47  ;;  %7975 = vmatprep.mubr.f32.mxu1 %v12775_v36  ;;  %v7417_v7 = vpop.f32.mrf.mxu0  ;;  %7896 = vmatmul.mubr.f32.gmra.mxu0 %v8845_v18  ;;  %v8846_v17 = vld [vmem:[%s9015_s8 + $0xa8] sm:$0xff] }
  0xff   : > { %v7497_v58 = vpop.f32.mrf.mxu1  ;;  %8019 = vmatprep.subr.mxu0 %v6370_v26  ;;  %7976 = vmatmul.mubr.f32.gmra.mxu1 %v12776_v6  ;;  %v6385_v6 = vld [vmem:[%s12509_s3 + $0xd0] sm:$0xff] }
 0x100   : > { %v10071_v29 = vadd.f32 %v7497_v58, %v7417_v7  ;;  %8020 = vmatpush3.msra.mxu0 %v6370_v26  ;;  %v698_v36 = vpop.f32.mrf.mxu0  ;;  %8099 = vmatprep.subr.mxu1 %v6386_v35  ;;  %v8847_v58 = vld [vmem:[%s9015_s8 + $0xb0] sm:$0xff] }
 0x101   : > { %v923_v47 = vpop.f32.mrf.mxu1  ;;  %7898 = vmatprep.mubr.f32.mxu0 %v8846_v17  ;;  %8100 = vmatpush3.msra.mxu1 %v6386_v35  ;;  %v6368_v35 = vld [vmem:[%s12508_s2 + $0x448] sm:$0xff] }
 0x102   : > { %v10078_v12 = vadd.f32 %v923_v47, %v698_v36  ;;  %7978 = vmatprep.mubr.f32.mxu1 %v12777_v53  ;;  %v7420_v26 = vpop.f32.mrf.mxu0  ;;  %7899 = vmatmul.mubr.f32.gmra.mxu0 %v8847_v58  ;;  %v8848_v47 = vld [vmem:[%s9015_s8 + $0xc0] sm:$0xff] }
 0x103   : > { %v7500_v7 = vpop.f32.mrf.mxu1  ;;  %8021 = vmatprep.subr.mxu0 %v6369_v60  ;;  %7979 = vmatmul.mubr.f32.gmra.mxu1 %v12778_v15  ;;  %v6384_v15 = vld [vmem:[%s12509_s3 + $0xc8] sm:$0xff] }
 0x104   : > { %v10085_v18 = vadd.f32 %v7500_v7, %v7420_v26  ;;  %8022 = vmatpush3.msra.mxu0 %v6369_v60  ;;  %v708_v53 = vpop.f32.mrf.mxu0  ;;  %8101 = vmatprep.subr.mxu1 %v6385_v6  ;;  %v8849_v7 = vld [vmem:[%s9015_s8 + $0xc8] sm:$0xff] }
 0x105   : > { %v933_v36 = vpop.f32.mrf.mxu1  ;;  %7901 = vmatprep.mubr.f32.mxu0 %v8848_v47  ;;  %8102 = vmatpush3.msra.mxu1 %v6385_v6  ;;  %v6367_v6 = vld [vmem:[%s12508_s2 + $0x440] sm:$0xff] }
 0x106   : > { %v10092_v17 = vadd.f32 %v933_v36, %v708_v53  ;;  %7981 = vmatprep.mubr.f32.mxu1 %v12779_v51  ;;  %v7423_v60 = vpop.f32.mrf.mxu0  ;;  %7902 = vmatmul.mubr.f32.gmra.mxu0 %v8849_v7  ;;  %v8850_v36 = vld [vmem:[%s9015_s8 + $0xd8] sm:$0xff] }
 0x107   : > { %v7503_v26 = vpop.f32.mrf.mxu1  ;;  %8023 = vmatprep.subr.mxu0 %v6368_v35  ;;  %7982 = vmatmul.mubr.f32.gmra.mxu1 %v12780_v54  ;;  %v6383_v54 = vld [vmem:[%s12509_s3 + $0xc0] sm:$0xff] }
 0x108   : > { %v10099_v58 = vadd.f32 %v7503_v26, %v7423_v60  ;;  %8024 = vmatpush3.msra.mxu0 %v6368_v35  ;;  %v718_v51 = vpop.f32.mrf.mxu0  ;;  %8103 = vmatprep.subr.mxu1 %v6384_v15  ;;  %v8851_v26 = vld [vmem:[%s9015_s8 + $0xe0] sm:$0xff] }
 0x109   : > { %v943_v53 = vpop.f32.mrf.mxu1  ;;  %7904 = vmatprep.mubr.f32.mxu0 %v8850_v36  ;;  %8104 = vmatpush3.msra.mxu1 %v6384_v15  ;;  %v6366_v15 = vld [vmem:[%s12508_s2 + $0x438] sm:$0xff] }
 0x10a   : > { %v10106_v47 = vadd.f32 %v943_v53, %v718_v51  ;;  %7984 = vmatprep.mubr.f32.mxu1 %v12781_v34  ;;  %v7426_v35 = vpop.f32.mrf.mxu0  ;;  %7905 = vmatmul.mubr.f32.gmra.mxu0 %v8851_v26  ;;  %v8852_v53 = vld [vmem:[%s9015_s8 + $0xf0] sm:$0xff] }
 0x10b   : > { %v7506_v60 = vpop.f32.mrf.mxu1  ;;  %8025 = vmatprep.subr.mxu0 %v6367_v6  ;;  %7985 = vmatmul.mubr.f32.gmra.mxu1 %v12782_v25  ;;  %v6382_v25 = vld [vmem:[%s12509_s3 + $0xb8] sm:$0xff] }
 0x10c   : > { %v10113_v7 = vadd.f32 %v7506_v60, %v7426_v35  ;;  %8026 = vmatpush3.msra.mxu0 %v6367_v6  ;;  %v728_v34 = vpop.f32.mrf.mxu0  ;;  %8105 = vmatprep.subr.mxu1 %v6383_v54  ;;  %v8853_v60 = vld [vmem:[%s9015_s8 + $0xf8] sm:$0xff] }
 0x10d   : > { %v953_v51 = vpop.f32.mrf.mxu1  ;;  %7907 = vmatprep.mubr.f32.mxu0 %v8852_v53  ;;  %8106 = vmatpush3.msra.mxu1 %v6383_v54  ;;  %v6365_v54 = vld [vmem:[%s12508_s2 + $0x430] sm:$0xff] }
 0x10e   : > { %v10120_v36 = vadd.f32 %v953_v51, %v728_v34  ;;  %7987 = vmatprep.mubr.f32.mxu1 %v12783_v56  ;;  %v7429_v6 = vpop.f32.mrf.mxu0  ;;  %7908 = vmatmul.mubr.f32.gmra.mxu0 %v8853_v60  ;;  %v8854_v51 = vld [vmem:[%s9015_s8 + $0x108] sm:$0xff] }
 0x10f   : > { %v7509_v35 = vpop.f32.mrf.mxu1  ;;  %8027 = vmatprep.subr.mxu0 %v6366_v15  ;;  %7988 = vmatmul.mubr.f32.gmra.mxu1 %v12784_v42  ;;  %v6381_v42 = vld [vmem:[%s12509_s3 + $0xb0] sm:$0xff] }
 0x110   : > { %v10127_v26 = vadd.f32 %v7509_v35, %v7429_v6  ;;  %8028 = vmatpush3.msra.mxu0 %v6366_v15  ;;  %v738_v56 = vpop.f32.mrf.mxu0  ;;  %8107 = vmatprep.subr.mxu1 %v6382_v25  ;;  %v8855_v35 = vld [vmem:[%s9015_s8 + $0x110] sm:$0xff] }
 0x111   : > { %v963_v34 = vpop.f32.mrf.mxu1  ;;  %7910 = vmatprep.mubr.f32.mxu0 %v8854_v51  ;;  %8108 = vmatpush3.msra.mxu1 %v6382_v25  ;;  %v6364_v25 = vld [vmem:[%s12508_s2 + $0x428] sm:$0xff] }
 0x112   : > { %v10134_v53 = vadd.f32 %v963_v34, %v738_v56  ;;  %7990 = vmatprep.mubr.f32.mxu1 %v12785_v57  ;;  %v7432_v15 = vpop.f32.mrf.mxu0  ;;  %7911 = vmatmul.mubr.f32.gmra.mxu0 %v8855_v35  ;;  %v8856_v34 = vld [vmem:[%s9015_s8 + $0x120] sm:$0xff] }
 0x113   : > { %v7512_v6 = vpop.f32.mrf.mxu1  ;;  %8029 = vmatprep.subr.mxu0 %v6365_v54  ;;  %7991 = vmatmul.mubr.f32.gmra.mxu1 %v12786_v38  ;;  %v6380_v38 = vld [vmem:[%s12509_s3 + $0xa8] sm:$0xff] }
 0x114   : > { %v10141_v60 = vadd.f32 %v7512_v6, %v7432_v15  ;;  %8030 = vmatpush3.msra.mxu0 %v6365_v54  ;;  %v748_v57 = vpop.f32.mrf.mxu0  ;;  %8109 = vmatprep.subr.mxu1 %v6381_v42  ;;  %v8857_v6 = vld [vmem:[%s9015_s8 + $0x128] sm:$0xff] }
 0x115   : > { %v973_v56 = vpop.f32.mrf.mxu1  ;;  %7913 = vmatprep.mubr.f32.mxu0 %v8856_v34  ;;  %8110 = vmatpush3.msra.mxu1 %v6381_v42  ;;  %v6363_v42 = vld [vmem:[%s12508_s2 + $0x420] sm:$0xff] }
 0x116   : > { %v10148_v51 = vadd.f32 %v973_v56, %v748_v57  ;;  %7993 = vmatprep.mubr.f32.mxu1 %v12787_v52  ;;  %v7435_v54 = vpop.f32.mrf.mxu0  ;;  %7914 = vmatmul.mubr.f32.gmra.mxu0 %v8857_v6  ;;  %v8858_v56 = vld [vmem:[%s9015_s8 + $0x138] sm:$0xff] }
 0x117   : > { %v7515_v15 = vpop.f32.mrf.mxu1  ;;  %8031 = vmatprep.subr.mxu0 %v6364_v25  ;;  %7994 = vmatmul.mubr.f32.gmra.mxu1 %v12788_v20  ;;  %v6379_v20 = vld [vmem:[%s12509_s3 + $0xa0] sm:$0xff] }
 0x118   : > { %v10155_v35 = vadd.f32 %v7515_v15, %v7435_v54  ;;  %8032 = vmatpush3.msra.mxu0 %v6364_v25  ;;  %v758_v52 = vpop.f32.mrf.mxu0  ;;  %8111 = vmatprep.subr.mxu1 %v6380_v38  ;;  %v8859_v15 = vld [vmem:[%s9015_s8 + $0x140] sm:$0xff] }
 0x119   : > { %v983_v57 = vpop.f32.mrf.mxu1  ;;  %7916 = vmatprep.mubr.f32.mxu0 %v8858_v56  ;;  %8112 = vmatpush3.msra.mxu1 %v6380_v38  ;;  %v6362_v38 = vld [vmem:[%s12508_s2 + $0x418] sm:$0xff] }
 0x11a   : > { %v10162_v34 = vadd.f32 %v983_v57, %v758_v52  ;;  %7996 = vmatprep.mubr.f32.mxu1 %v12789_v49  ;;  %v7438_v25 = vpop.f32.mrf.mxu0  ;;  %7917 = vmatmul.mubr.f32.gmra.mxu0 %v8859_v15  ;;  %v8860_v57 = vld [vmem:[%s9015_s8 + $0x150] sm:$0xff] }
 0x11b   : > { %v7518_v54 = vpop.f32.mrf.mxu1  ;;  %8033 = vmatprep.subr.mxu0 %v6363_v42  ;;  %7997 = vmatmul.mubr.f32.gmra.mxu1 %v12790_v30  ;;  %v6378_v30 = vld [vmem:[%s12509_s3 + $0x98] sm:$0xff] }
 0x11c   : > { %v10169_v6 = vadd.f32 %v7518_v54, %v7438_v25  ;;  %8034 = vmatpush3.msra.mxu0 %v6363_v42  ;;  %v768_v49 = vpop.f32.mrf.mxu0  ;;  %8113 = vmatprep.subr.mxu1 %v6379_v20  ;;  %v8861_v54 = vld [vmem:[%s9015_s8 + $0x158] sm:$0xff] }
 0x11d   : > { %v993_v52 = vpop.f32.mrf.mxu1  ;;  %7919 = vmatprep.mubr.f32.mxu0 %v8860_v57  ;;  %8114 = vmatpush3.msra.mxu1 %v6379_v20  ;;  %v10190_v20 = vld [vmem:[%s9015_s8 + $0x198] sm:$0xff] }
 0x11e   : > { %v10176_v56 = vadd.f32 %v993_v52, %v768_v49  ;;  %7999 = vmatprep.mubr.f32.mxu1 %v9492_v48  ;;  %v7441_v42 = vpop.f32.mrf.mxu0  ;;  %7920 = vmatmul.mubr.f32.gmra.mxu0 %v8861_v54  ;;  %v6361_v48 = vld [vmem:[%s12508_s2 + $0x410] sm:$0xff]  ;;  %v10193_v49 = vld [vmem:[%s9015_s8 + $0x1a0] sm:$0xff]  ;;  %v8862_v54 = vld [vmem:[%s9015_s8 + $0x168] sm:$0xff]  ;;  %v2545_v9 = vrot.slane %v10190_v20, 1 }
 0x11f   : > { %v7521_v25 = vpop.f32.mrf.mxu1  ;;  %8035 = vmatprep.subr.mxu0 %v6362_v38  ;;  %8000 = vmatmul.mubr.f32.gmra.mxu1 %v9499_v4  ;;  %12797 = vst [vmem:[#allocation6_spill] sm:$0xff] %v10193_v49 }
 0x120   : > { %12795 = vst [vmem:[#allocation4_spill] sm:$0xff] %v10176_v56  ;;  %v10183_v15 = vadd.f32 %v7521_v25, %v7441_v42  ;;  %8036 = vmatpush3.msra.mxu0 %v6362_v38  ;;  %v778_v52 = vpop.f32.mrf.mxu0  ;;  %8115 = vmatprep.subr.mxu1 %v6378_v30  ;;  %v6377_v38 = vld [vmem:[%s12509_s3 + $0x90] sm:$0xff]  ;;  %v10210_v42 = vld [vmem:[%s9015_s8 + $0x1a8] sm:$0x3] }
 0x121   : > { %v1003_v57 = vpop.f32.mrf.mxu1  ;;  %7922 = vmatprep.mubr.f32.mxu0 %v8862_v54  ;;  %8116 = vmatpush3.msra.mxu1 %v6378_v30  ;;  %12799 = vst [vmem:[#allocation8_spill] sm:$0xff] %v10210_v42  ;;  %v2548_v56 = vrot.slane %v10210_v42, 1 }
 0x122   : > { %12796 = vst [vmem:[#allocation5_spill] sm:$0xff] %v10183_v15  ;;  %v10203_v4 = vadd.f32 %v1003_v57, %v778_v52  ;;  %8002 = vmatprep.mubr.f32.mxu1 %v12791_v0  ;;  %v7444_v25 = vpop.f32.mrf.mxu0  ;;  %7923 = vmatmul.mubr.f32.gmra.mxu0 %v8863_v22  ;;  %v2546_v52 = vrot.slane %v10193_v49, 1  ;;  %v6360_v0 = vld [vmem:[%s12508_s2 + $0x408] sm:$0xff]  ;;  %v10222_v57 = vld [vmem:[%s10201_s9] sm:$0xff] }
 0x123   : > { %v7524_v54 = vpop.f32.mrf.mxu1  ;;  %8037 = vmatprep.subr.mxu0 %v6361_v48  ;;  %8003 = vmatmul.mubr.f32.gmra.mxu1 %v12792_v31  ;;  %12801 = vst [vmem:[#allocation10_spill] sm:$0xff] %v10222_v57  ;;  %v6376_v31 = vld [vmem:[%s12509_s3 + $0x88] sm:$0xff] }
 0x124   : > { %12798 = vst [vmem:[#allocation7_spill] sm:$0xff] %v10203_v4  ;;  %v10215_v30 = vadd.f32 %v7524_v54, %v7444_v25  ;;  %8038 = vmatpush3.msra.mxu0 %v6361_v48  ;;  %v10225_v4 = vld [vmem:[%s10201_s9 + $0x8] sm:$0xff]  ;;  %v788_v22 = vpop.f32.mrf.mxu0  ;;  %8117 = vmatprep.subr.mxu1 %v6377_v38  ;;  %v10236_v48 = vld [vmem:[%s10201_s9 + $0x10] sm:$0x3] }
 0x125   : > { %12802 = vst [vmem:[#allocation11_spill] sm:$0xff] %v10225_v4  ;;  %v1013_v15 = vpop.f32.mrf.mxu1  ;;  %7925 = vmatprep.mubr.f32.mxu0 %v9810_v50  ;;  %8118 = vmatpush3.msra.mxu1 %v6377_v38  ;;  %12804 = vst [vmem:[#allocation13_spill] sm:$0xff] %v10236_v48  ;;  %v2547_v50 = vsel %vm462_vm1, %v2545_v9, %v2546_v52  ;;  %v3226_v38 = vrot.slane %v10225_v4, 1 }
 0x126   : > { %12800 = vst [vmem:[#allocation9_spill] sm:$0xff] %v10215_v30  ;;  %v10229_v25 = vadd.f32 %v1013_v15, %v788_v22  ;;  %8005 = vmatprep.mubr.f32.mxu1 %v9983_v37  ;;  %v7447_v54 = vpop.f32.mrf.mxu0  ;;  %7926 = vmatmul.mubr.f32.gmra.mxu0 %v9821_v10  ;;  %v3225_v15 = vrot.slane %v10222_v57, 1  ;;  %v6359_v37 = vld [vmem:[%s12508_s2 + $0x400] sm:$0xff] }
 0x127   : > { %v7527_v30 = vpop.f32.mrf.mxu1  ;;  %8039 = vmatprep.subr.mxu0 %v6360_v0  ;;  %8006 = vmatmul.mubr.f32.gmra.mxu1 %v9991_v61  ;;  %v10252_v10 = vld [vmem:[%s10201_s9 + $0x20] sm:$0xff] }
 0x128   : > { %12803 = vst [vmem:[#allocation12_spill] sm:$0xff] %v10229_v25  ;;  %v10242_v22 = vadd.f32 %v7527_v30, %v7447_v54  ;;  %8040 = vmatpush3.msra.mxu0 %v6360_v0  ;;  %v10249_v25 = vld [vmem:[%s10201_s9 + $0x18] sm:$0xff]  ;;  %v798_v42 = vpop.f32.mrf.mxu0  ;;  %8119 = vmatprep.subr.mxu1 %v6376_v31  ;;  %v2549_v30 = vsel %vm462_vm1, %v2546_v52, %v2548_v56  ;;  %v3228_v54 = vrot.slane %v10236_v48, 1  ;;  %v6375_v61 = vld [vmem:[%s12509_s3 + $0x80] sm:$0xff]  ;;  %v10263_v0 = vld [vmem:[%s10201_s9 + $0x28] sm:$0x3] }
 0x129   : > { %v1023_v9 = vpop.f32.mrf.mxu1  ;;  %7928 = vmatprep.mubr.f32.mxu0 %v10190_v20  ;;  %8120 = vmatpush3.msra.mxu1 %v6376_v31  ;;  %v3227_v56 = vsel %vm462_vm1, %v3225_v15, %v3226_v38  ;;  %v3231_v52 = vrot.slane %v10252_v10, 1 }
 0x12a   : > { %12805 = vst [vmem:[#allocation14_spill] sm:$0xff] %v10242_v22  ;;  %v10257_v22 = vadd.f32 %v1023_v9, %v798_v42  ;;  %8008 = vmatprep.mubr.f32.mxu1 %v2547_v50  ;;  %v7450_v4 = vpop.f32.mrf.mxu0  ;;  %7929 = vmatmul.mubr.f32.gmra.mxu0 %v10193_v49  ;;  %v3230_v42 = vrot.slane %v10249_v25, 1  ;;  %v3176_v50 = vld [vmem:[%s12509_s3 + $0x78] sm:$0xff]  ;;  %v10275_v9 = vld [vmem:[%s10201_s9 + $0x30] sm:$0xff]  ;;  %v3229_v15 = vsel %vm462_vm1, %v3226_v38, %v3228_v54 }
 0x12b   : > { %v7530_v57 = vpop.f32.mrf.mxu1  ;;  %8041 = vmatprep.subr.mxu0 %v6359_v37  ;;  %8009 = vmatmul.mubr.f32.gmra.mxu1 %v2549_v30  ;;  %12808 = vst [vmem:[#allocation17_spill] sm:$0xff] %v10275_v9  ;;  %v10289_v30 = vld [vmem:[%s10201_s9 + $0x40] sm:$0x3] }
 0x12c   : > { %12806 = vst [vmem:[#allocation15_spill] sm:$0xff] %v10257_v22  ;;  %v10269_v31 = vadd.f32 %v7530_v57, %v7450_v4  ;;  %8042 = vmatpush3.msra.mxu0 %v6359_v37  ;;  %v10278_v22 = vld [vmem:[%s10201_s9 + $0x38] sm:$0xff]  ;;  %v808_v48 = vpop.f32.mrf.mxu0  ;;  %8121 = vmatprep.subr.mxu1 %v6375_v61  ;;  %v3233_v4 = vrot.slane %v10263_v0, 1 }
 0x12d   : > { %12809 = vst [vmem:[#allocation18_spill] sm:$0xff] %v10278_v22  ;;  %v1033_v49 = vpop.f32.mrf.mxu1  ;;  %8043 = vmatprep.mubr.f32.mxu0 %v9559_v41  ;;  %8122 = vmatpush3.msra.mxu1 %v6375_v61  ;;  %v6406_v37 = vld [vmem:[%s12509_s3 + $0x178] sm:$0xff]  ;;  %v10293_v41 = vsel %vm462_vm1, %v3230_v42, %v3231_v52  ;;  %v3175_v61 = vld [vmem:[%s12509_s3 + $0x70] sm:$0xff] }
 0x12e   : > { %12807 = vst [vmem:[#allocation16_spill] sm:$0xff] %v10269_v31  ;;  %v10283_v57 = vadd.f32 %v1033_v49, %v808_v48  ;;  %8123 = vmatprep.mubr.f32.mxu1 %v3227_v56  ;;  %v7565_v31 = vpop.f32.mrf.mxu0  ;;  %8044 = vmatmul.mubr.f32.vlgmr.msra.gmra.mxu0 %v9566_v55  ;;  %12810 = vst [vmem:[#allocation19_spill] sm:$0xff] %v10293_v41  ;;  %v3235_v49 = vrot.slane %v10275_v9, 1  ;;  %v3236_v48 = vrot.slane %v10278_v22, 1  ;;  %v10302_v56 = vld [vmem:[%s10201_s9 + $0x48] sm:$0xff]  ;;  %v10305_v55 = vld [vmem:[%s10201_s9 + $0x50] sm:$0xff] }
 0x12f   : > { %8171 = vmatprep.subr.mxu0 %v3176_v50  ;;  %v1398_v38 = vadd.f32 %v7565_v31, %v10015_v28  ;;  %v7645_v54 = vpop.f32.mrf.mxu1  ;;  %8124 = vmatmul.mubr.f32.vlgmr.msra.gmra.mxu1 %v3229_v15  ;;  %12811 = vst [vmem:[#allocation20_spill] sm:$0xff] %v10302_v56  ;;  %v10309_v22 = vsel %vm462_vm1, %v3231_v52, %v3233_v4  ;;  %v3238_v28 = vrot.slane %v10289_v30, 1  ;;  %v6405_v9 = vld [vmem:[%s12509_s3 + $0x170] sm:$0xff] }
 0x130   : > { %8172 = vmatpush3.msra.mxu0 %v3176_v50  ;;  %v1238_v42 = vpop.f32.mrf.mxu0  ;;  %8251 = vmatprep.subr.mxu1 %v6406_v37  ;;  %12812 = vst [vmem:[#allocation21_spill] sm:$0xff] %v10309_v22  ;;  %v10324_v4 = vsel %vm462_vm1, %v3235_v49, %v3236_v48  ;;  %v10339_v49 = vld [vmem:[%s10201_s9 + $0x68] sm:$0xff] }
 0x131   : > { %8046 = vmatprep.mubr.f32.mxu0 %v9578_v62  ;;  %v10312_v31 = vadd.f32 %v7645_v54, %v1398_v38  ;;  %v1397_v50 = vadd.f32 %v1238_v42, %v10022_v39  ;;  %v1512_v15 = vpop.f32.mrf.mxu1  ;;  %8252 = vmatpush3.msra.mxu1 %v6406_v37  ;;  %v10320_v62 = vld [vmem:[%s10201_s9 + $0x58] sm:$0x3]  ;;  %12813 = vst [vmem:[#allocation22_spill] sm:$0xff] %v10324_v4  ;;  %v3240_v39 = vrot.slane %v10302_v56, 1  ;;  %v3241_v37 = vrot.slane %v10305_v55, 1 }
 0x132   : > { %8126 = vmatprep.mubr.f32.mxu1 %v10293_v41  ;;  %v7568_v52 = vpop.f32.mrf.mxu0  ;;  %8047 = vmatmul.mubr.f32.gmra.mxu0 %v9585_v1  ;;  %v3174_v1 = vld [vmem:[%s12509_s3 + $0x68] sm:$0xff]  ;;  %v10336_v41 = vld [vmem:[%s10201_s9 + $0x60] sm:$0xff] }
 0x133   : > { %8173 = vmatprep.subr.mxu0 %v3175_v61  ;;  %v10328_v38 = vadd.f32 %v1512_v15, %v1397_v50  ;;  %v1400_v54 = vadd.f32 %v7568_v52, %v10029_v24  ;;  %v7648_v42 = vpop.f32.mrf.mxu1  ;;  %8127 = vmatmul.mubr.f32.gmra.mxu1 %v10309_v22  ;;  %12814 = vst [vmem:[#allocation23_spill] sm:$0xff] %v10336_v41  ;;  %v3243_v24 = vrot.slane %v10320_v62, 1  ;;  %v6404_v22 = vld [vmem:[%s12509_s3 + $0x168] sm:$0xff] }
 0x134   : > { %8174 = vmatpush3.msra.mxu0 %v3175_v61  ;;  %v1248_v56 = vpop.f32.mrf.mxu0  ;;  %8253 = vmatprep.subr.mxu1 %v6405_v9  ;;  %v10343_v50 = vsel %vm462_vm1, %v3236_v48, %v3238_v28  ;;  %v10358_v28 = vsel %vm462_vm1, %v3240_v39, %v3241_v37  ;;  %v10373_v39 = vld [vmem:[%s10201_s9 + $0x80] sm:$0xff] }
 0x135   : > { %8049 = vmatprep.mubr.f32.mxu0 %v9597_v3  ;;  %12815 = vst [vmem:[#allocation24_spill] sm:$0xff] %v10343_v50  ;;  %v10346_v15 = vadd.f32 %v7648_v42, %v1400_v54  ;;  %v1399_v61 = vadd.f32 %v1248_v56, %v10036_v45  ;;  %v1522_v52 = vpop.f32.mrf.mxu1  ;;  %8254 = vmatpush3.msra.mxu1 %v6405_v9  ;;  %v10354_v3 = vld [vmem:[%s10201_s9 + $0x70] sm:$0x3]  ;;  %12816 = vst [vmem:[#allocation33_spill] sm:$0xff] %v10358_v28  ;;  %v3245_v45 = vrot.slane %v10336_v41, 1 }
 0x136   : > { %8129 = vmatprep.mubr.f32.mxu1 %v10324_v4  ;;  %v7571_v48 = vpop.f32.mrf.mxu0  ;;  %8050 = vmatmul.mubr.f32.gmra.mxu0 %v9604_v11  ;;  %v3246_v9 = vrot.slane %v10339_v49, 1  ;;  %v3173_v11 = vld [vmem:[%s12509_s3 + $0x60] sm:$0xff]  ;;  %v10370_v4 = vld [vmem:[%s10201_s9 + $0x78] sm:$0xff] }
 0x137   : > { %8175 = vmatprep.subr.mxu0 %v3174_v1  ;;  %v10362_v56 = vadd.f32 %v1522_v52, %v1399_v61  ;;  %v1402_v54 = vadd.f32 %v7571_v48, %v10043_v8  ;;  %v7651_v42 = vpop.f32.mrf.mxu1  ;;  %8130 = vmatmul.mubr.f32.gmra.mxu1 %v10343_v50  ;;  %12817 = vst [vmem:[#allocation34_spill] sm:$0xff] %v10370_v4  ;;  %v3248_v8 = vrot.slane %v10354_v3, 1  ;;  %v6403_v50 = vld [vmem:[%s12509_s3 + $0x160] sm:$0xff] }
 0x138   : > { %8176 = vmatpush3.msra.mxu0 %v3174_v1  ;;  %v1258_v41 = vpop.f32.mrf.mxu0  ;;  %8255 = vmatprep.subr.mxu1 %v6404_v22  ;;  %v10377_v61 = vsel %vm462_vm1, %v3241_v37, %v3243_v24  ;;  %v10392_v24 = vsel %vm462_vm1, %v3245_v45, %v3246_v9  ;;  %v10407_v45 = vld [vmem:[%s10201_s9 + $0x98] sm:$0xff] }
 0x139   : > { %8052 = vmatprep.mubr.f32.mxu0 %v9616_v27  ;;  %12818 = vst [vmem:[#allocation35_spill] sm:$0xff] %v10377_v61  ;;  %v10380_v52 = vadd.f32 %v7651_v42, %v1402_v54  ;;  %v1401_v1 = vadd.f32 %v1258_v41, %v10050_v2  ;;  %v1532_v48 = vpop.f32.mrf.mxu1  ;;  %8256 = vmatpush3.msra.mxu1 %v6404_v22  ;;  %v10388_v27 = vld [vmem:[%s10201_s9 + $0x88] sm:$0x3]  ;;  %12819 = vst [vmem:[#allocation36_spill] sm:$0xff] %v10392_v24  ;;  %v3250_v2 = vrot.slane %v10370_v4, 1 }
 0x13a   : > { %8132 = vmatprep.mubr.f32.mxu1 %v10358_v28  ;;  %v7574_v37 = vpop.f32.mrf.mxu0  ;;  %8053 = vmatmul.mubr.f32.gmra.mxu0 %v9623_v21  ;;  %v3251_v22 = vrot.slane %v10373_v39, 1  ;;  %v3172_v21 = vld [vmem:[%s12509_s3 + $0x58] sm:$0xff]  ;;  %v10404_v28 = vld [vmem:[%s10201_s9 + $0x90] sm:$0xff] }
 0x13b   : > { %8177 = vmatprep.subr.mxu0 %v3173_v11  ;;  %v10396_v41 = vadd.f32 %v1532_v48, %v1401_v1  ;;  %v1404_v54 = vadd.f32 %v7574_v37, %v10057_v5  ;;  %v7654_v42 = vpop.f32.mrf.mxu1  ;;  %8133 = vmatmul.mubr.f32.gmra.mxu1 %v10377_v61  ;;  %12820 = vst [vmem:[#allocation37_spill] sm:$0xff] %v10404_v28  ;;  %v3253_v5 = vrot.slane %v10388_v27, 1  ;;  %v6402_v61 = vld [vmem:[%s12509_s3 + $0x158] sm:$0xff] }
 0x13c   : > { %8178 = vmatpush3.msra.mxu0 %v3173_v11  ;;  %v1268_v4 = vpop.f32.mrf.mxu0  ;;  %8257 = vmatprep.subr.mxu1 %v6403_v50  ;;  %v10411_v1 = vsel %vm462_vm1, %v3246_v9, %v3248_v8  ;;  %v10426_v8 = vsel %vm462_vm1, %v3250_v2, %v3251_v22  ;;  %v10441_v2 = vld [vmem:[%s10201_s9 + $0xb0] sm:$0xff] }
 0x13d   : > { %8055 = vmatprep.mubr.f32.mxu0 %v9635_v44  ;;  %12821 = vst [vmem:[#allocation38_spill] sm:$0xff] %v10411_v1  ;;  %v10414_v48 = vadd.f32 %v7654_v42, %v1404_v54  ;;  %v1403_v11 = vadd.f32 %v1268_v4, %v10064_v32  ;;  %v1542_v37 = vpop.f32.mrf.mxu1  ;;  %8258 = vmatpush3.msra.mxu1 %v6403_v50  ;;  %v10422_v44 = vld [vmem:[%s10201_s9 + $0xa0] sm:$0x3]  ;;  %12822 = vst [vmem:[#allocation39_spill] sm:$0xff] %v10426_v8  ;;  %v3255_v32 = vrot.slane %v10404_v28, 1 }
 0x13e   : > { %8135 = vmatprep.mubr.f32.mxu1 %v10392_v24  ;;  %v7577_v9 = vpop.f32.mrf.mxu0  ;;  %8056 = vmatmul.mubr.f32.gmra.mxu0 %v9642_v33  ;;  %v3256_v4 = vrot.slane %v10407_v45, 1  ;;  %v3171_v33 = vld [vmem:[%s12509_s3 + $0x50] sm:$0xff]  ;;  %v10438_v24 = vld [vmem:[%s10201_s9 + $0xa8] sm:$0xff] }
 0x13f   : > { %8179 = vmatprep.subr.mxu0 %v3172_v21  ;;  %v10430_v50 = vadd.f32 %v1542_v37, %v1403_v11  ;;  %v1406_v54 = vadd.f32 %v7577_v9, %v10071_v29  ;;  %v7657_v42 = vpop.f32.mrf.mxu1  ;;  %8136 = vmatmul.mubr.f32.gmra.mxu1 %v10411_v1  ;;  %12823 = vst [vmem:[#allocation40_spill] sm:$0xff] %v10438_v24  ;;  %v3258_v29 = vrot.slane %v10422_v44, 1  ;;  %v6401_v1 = vld [vmem:[%s12509_s3 + $0x150] sm:$0xff] }
 0x140   : > { %8180 = vmatpush3.msra.mxu0 %v3172_v21  ;;  %v1278_v28 = vpop.f32.mrf.mxu0  ;;  %8259 = vmatprep.subr.mxu1 %v6402_v61  ;;  %v10445_v11 = vsel %vm462_vm1, %v3251_v22, %v3253_v5  ;;  %v10460_v5 = vsel %vm462_vm1, %v3255_v32, %v3256_v4  ;;  %v10475_v32 = vld [vmem:[%s10201_s9 + $0xc8] sm:$0xff] }
 0x141   : > { %8058 = vmatprep.mubr.f32.mxu0 %v9654_v59  ;;  %12824 = vst [vmem:[#allocation41_spill] sm:$0xff] %v10445_v11  ;;  %v10448_v37 = vadd.f32 %v7657_v42, %v1406_v54  ;;  %v1405_v21 = vadd.f32 %v1278_v28, %v10078_v12  ;;  %v1552_v9 = vpop.f32.mrf.mxu1  ;;  %8260 = vmatpush3.msra.mxu1 %v6402_v61  ;;  %v10456_v59 = vld [vmem:[%s10201_s9 + $0xb8] sm:$0x3]  ;;  %12825 = vst [vmem:[#allocation42_spill] sm:$0xff] %v10460_v5  ;;  %v3260_v12 = vrot.slane %v10438_v24, 1 }
 0x142   : > { %8138 = vmatprep.mubr.f32.mxu1 %v10426_v8  ;;  %v7580_v22 = vpop.f32.mrf.mxu0  ;;  %8059 = vmatmul.mubr.f32.gmra.mxu0 %v9661_v46  ;;  %v3261_v28 = vrot.slane %v10441_v2, 1  ;;  %v3170_v46 = vld [vmem:[%s12509_s3 + $0x48] sm:$0xff]  ;;  %v10472_v8 = vld [vmem:[%s10201_s9 + $0xc0] sm:$0xff] }
 0x143   : > { %8181 = vmatprep.subr.mxu0 %v3171_v33  ;;  %v10464_v61 = vadd.f32 %v1552_v9, %v1405_v21  ;;  %v1408_v54 = vadd.f32 %v7580_v22, %v10085_v18  ;;  %v7660_v42 = vpop.f32.mrf.mxu1  ;;  %8139 = vmatmul.mubr.f32.gmra.mxu1 %v10445_v11  ;;  %12826 = vst [vmem:[#allocation43_spill] sm:$0xff] %v10472_v8  ;;  %v3263_v18 = vrot.slane %v10456_v59, 1  ;;  %v6400_v11 = vld [vmem:[%s12509_s3 + $0x148] sm:$0xff] }
 0x144   : > { %8182 = vmatpush3.msra.mxu0 %v3171_v33  ;;  %v1288_v24 = vpop.f32.mrf.mxu0  ;;  %8261 = vmatprep.subr.mxu1 %v6401_v1  ;;  %v10479_v21 = vsel %vm462_vm1, %v3256_v4, %v3258_v29  ;;  %v10494_v29 = vsel %vm462_vm1, %v3260_v12, %v3261_v28  ;;  %v10509_v12 = vld [vmem:[%s10201_s9 + $0xe0] sm:$0xff] }
 0x145   : > { %8061 = vmatprep.mubr.f32.mxu0 %v9673_v40  ;;  %12827 = vst [vmem:[#allocation44_spill] sm:$0xff] %v10479_v21  ;;  %v10482_v9 = vadd.f32 %v7660_v42, %v1408_v54  ;;  %v1407_v33 = vadd.f32 %v1288_v24, %v10092_v17  ;;  %v1562_v22 = vpop.f32.mrf.mxu1  ;;  %8262 = vmatpush3.msra.mxu1 %v6401_v1  ;;  %v10490_v40 = vld [vmem:[%s10201_s9 + $0xd0] sm:$0x3]  ;;  %12828 = vst [vmem:[#allocation45_spill] sm:$0xff] %v10494_v29  ;;  %v3265_v17 = vrot.slane %v10472_v8, 1 }
 0x146   : > { %8141 = vmatprep.mubr.f32.mxu1 %v10460_v5  ;;  %v7583_v4 = vpop.f32.mrf.mxu0  ;;  %8062 = vmatmul.mubr.f32.gmra.mxu0 %v9680_v63  ;;  %v3266_v24 = vrot.slane %v10475_v32, 1  ;;  %v3169_v63 = vld [vmem:[%s12509_s3 + $0x40] sm:$0xff]  ;;  %v10506_v5 = vld [vmem:[%s10201_s9 + $0xd8] sm:$0xff] }
 0x147   : > { %8183 = vmatprep.subr.mxu0 %v3170_v46  ;;  %v10498_v1 = vadd.f32 %v1562_v22, %v1407_v33  ;;  %v1410_v54 = vadd.f32 %v7583_v4, %v10099_v58  ;;  %v7663_v42 = vpop.f32.mrf.mxu1  ;;  %8142 = vmatmul.mubr.f32.gmra.mxu1 %v10479_v21  ;;  %12829 = vst [vmem:[#allocation46_spill] sm:$0xff] %v10506_v5  ;;  %v3268_v58 = vrot.slane %v10490_v40, 1  ;;  %v6399_v21 = vld [vmem:[%s12509_s3 + $0x140] sm:$0xff] }
 0x148   : > { %8184 = vmatpush3.msra.mxu0 %v3170_v46  ;;  %v1298_v8 = vpop.f32.mrf.mxu0  ;;  %8263 = vmatprep.subr.mxu1 %v6400_v11  ;;  %v10513_v33 = vsel %vm462_vm1, %v3261_v28, %v3263_v18  ;;  %v10528_v18 = vsel %vm462_vm1, %v3265_v17, %v3266_v24  ;;  %v10543_v17 = vld [vmem:[%s10201_s9 + $0xf8] sm:$0xff] }
 0x149   : > { %8064 = vmatprep.mubr.f32.mxu0 %v9692_v23  ;;  %12830 = vst [vmem:[#allocation47_spill] sm:$0xff] %v10513_v33  ;;  %v10516_v22 = vadd.f32 %v7663_v42, %v1410_v54  ;;  %v1409_v46 = vadd.f32 %v1298_v8, %v10106_v47  ;;  %v1572_v4 = vpop.f32.mrf.mxu1  ;;  %8264 = vmatpush3.msra.mxu1 %v6400_v11  ;;  %v10524_v23 = vld [vmem:[%s10201_s9 + $0xe8] sm:$0x3]  ;;  %12831 = vst [vmem:[#allocation48_spill] sm:$0xff] %v10528_v18  ;;  %v3270_v47 = vrot.slane %v10506_v5, 1 }
 0x14a   : > { %8144 = vmatprep.mubr.f32.mxu1 %v10494_v29  ;;  %v7586_v28 = vpop.f32.mrf.mxu0  ;;  %8065 = vmatmul.mubr.f32.gmra.mxu0 %v9699_v19  ;;  %v3271_v8 = vrot.slane %v10509_v12, 1  ;;  %v3168_v19 = vld [vmem:[%s12509_s3 + $0x38] sm:$0xff]  ;;  %v10540_v29 = vld [vmem:[%s10201_s9 + $0xf0] sm:$0xff] }
 0x14b   : > { %8185 = vmatprep.subr.mxu0 %v3169_v63  ;;  %v10532_v11 = vadd.f32 %v1572_v4, %v1409_v46  ;;  %v1412_v54 = vadd.f32 %v7586_v28, %v10113_v7  ;;  %v7666_v42 = vpop.f32.mrf.mxu1  ;;  %8145 = vmatmul.mubr.f32.gmra.mxu1 %v10513_v33  ;;  %12832 = vst [vmem:[#allocation49_spill] sm:$0xff] %v10540_v29  ;;  %v3273_v7 = vrot.slane %v10524_v23, 1  ;;  %v6398_v33 = vld [vmem:[%s12509_s3 + $0x138] sm:$0xff] }
 0x14c   : > { %8186 = vmatpush3.msra.mxu0 %v3169_v63  ;;  %v1308_v5 = vpop.f32.mrf.mxu0  ;;  %8265 = vmatprep.subr.mxu1 %v6399_v21  ;;  %v10547_v46 = vsel %vm462_vm1, %v3266_v24, %v3268_v58  ;;  %v10562_v58 = vsel %vm462_vm1, %v3270_v47, %v3271_v8  ;;  %v10577_v47 = vld [vmem:[%s10201_s9 + $0x110] sm:$0xff] }
 0x14d   : > { %8067 = vmatprep.mubr.f32.mxu0 %v9711_v16  ;;  %12833 = vst [vmem:[#allocation50_spill] sm:$0xff] %v10547_v46  ;;  %v10550_v4 = vadd.f32 %v7666_v42, %v1412_v54  ;;  %v1411_v63 = vadd.f32 %v1308_v5, %v10120_v36  ;;  %v1582_v28 = vpop.f32.mrf.mxu1  ;;  %8266 = vmatpush3.msra.mxu1 %v6399_v21  ;;  %v10558_v16 = vld [vmem:[%s10201_s9 + $0x100] sm:$0x3]  ;;  %12834 = vst [vmem:[#allocation51_spill] sm:$0xff] %v10562_v58  ;;  %v3275_v36 = vrot.slane %v10540_v29, 1 }
 0x14e   : > { %8147 = vmatprep.mubr.f32.mxu1 %v10528_v18  ;;  %v7589_v24 = vpop.f32.mrf.mxu0  ;;  %8068 = vmatmul.mubr.f32.gmra.mxu0 %v9718_v43  ;;  %v3276_v5 = vrot.slane %v10543_v17, 1  ;;  %v3167_v43 = vld [vmem:[%s12509_s3 + $0x30] sm:$0xff]  ;;  %v10574_v18 = vld [vmem:[%s10201_s9 + $0x108] sm:$0xff]  ;;  %12836 = vst [vmem:[#allocation53_spill] sm:$0xff] %v10577_v47 }
 0x14f   : > { %8187 = vmatprep.subr.mxu0 %v3168_v19  ;;  %v10566_v21 = vadd.f32 %v1582_v28, %v1411_v63  ;;  %v1414_v54 = vadd.f32 %v7589_v24, %v10127_v26  ;;  %v7669_v42 = vpop.f32.mrf.mxu1  ;;  %8148 = vmatmul.mubr.f32.gmra.mxu1 %v10547_v46  ;;  %12835 = vst [vmem:[#allocation52_spill] sm:$0xff] %v10574_v18  ;;  %v3278_v26 = vrot.slane %v10558_v16, 1  ;;  %v6397_v46 = vld [vmem:[%s12509_s3 + $0x130] sm:$0xff] }
 0x150   : > { %8188 = vmatpush3.msra.mxu0 %v3168_v19  ;;  %v1318_v29 = vpop.f32.mrf.mxu0  ;;  %8267 = vmatprep.subr.mxu1 %v6398_v33  ;;  %v10581_v63 = vsel %vm462_vm1, %v3271_v8, %v3273_v7  ;;  %v10596_v7 = vsel %vm462_vm1, %v3275_v36, %v3276_v5  ;;  %v10611_v36 = vld [vmem:[%s10201_s9 + $0x128] sm:$0xff] }
 0x151   : > { %8070 = vmatprep.mubr.f32.mxu0 %v9730_v13  ;;  %12837 = vst [vmem:[#allocation54_spill] sm:$0xff] %v10581_v63  ;;  %v10584_v28 = vadd.f32 %v7669_v42, %v1414_v54  ;;  %v1413_v19 = vadd.f32 %v1318_v29, %v10134_v53  ;;  %v1592_v24 = vpop.f32.mrf.mxu1  ;;  %8268 = vmatpush3.msra.mxu1 %v6398_v33  ;;  %v10592_v13 = vld [vmem:[%s10201_s9 + $0x118] sm:$0x3]  ;;  %12839 = vst [vmem:[#allocation56_spill] sm:$0xff] %v10596_v7  ;;  %v3280_v53 = vrot.slane %v10574_v18, 1 }
 0x152   : > { %8150 = vmatprep.mubr.f32.mxu1 %v10562_v58  ;;  %12838 = vst [vmem:[#allocation55_spill] sm:$0xff] %v10592_v13  ;;  %v7592_v8 = vpop.f32.mrf.mxu0  ;;  %8071 = vmatmul.mubr.f32.gmra.mxu0 %v9737_v14  ;;  %v3281_v29 = vrot.slane %v10577_v47, 1  ;;  %v3166_v14 = vld [vmem:[%s12509_s3 + $0x28] sm:$0xff]  ;;  %v10608_v58 = vld [vmem:[%s10201_s9 + $0x120] sm:$0xff]  ;;  %12841 = vst [vmem:[#allocation58_spill] sm:$0xff] %v10611_v36 }
 0x153   : > { %8189 = vmatprep.subr.mxu0 %v3167_v43  ;;  %v10600_v33 = vadd.f32 %v1592_v24, %v1413_v19  ;;  %v1416_v54 = vadd.f32 %v7592_v8, %v10141_v60  ;;  %v7672_v42 = vpop.f32.mrf.mxu1  ;;  %8151 = vmatmul.mubr.f32.gmra.mxu1 %v10581_v63  ;;  %12840 = vst [vmem:[#allocation57_spill] sm:$0xff] %v10608_v58  ;;  %v12842_v47 = vld [vmem:[#allocation25_spill] sm:$0xff]  ;;  %v3283_v60 = vrot.slane %v10592_v13, 1  ;;  %v6396_v63 = vld [vmem:[%s12509_s3 + $0x128] sm:$0xff] }
 0x154   : > { %8190 = vmatpush3.msra.mxu0 %v3167_v43  ;;  %v1328_v18 = vpop.f32.mrf.mxu0  ;;  %8269 = vmatprep.subr.mxu1 %v6397_v46  ;;  %v10615_v19 = vsel %vm462_vm1, %v3276_v5, %v3278_v26  ;;  %v12846_v26 = vld [vmem:[#allocation26_spill] sm:$0xff]  ;;  %v10642_v13 = vld [vmem:[%s10201_s9 + $0x138] sm:$0xff] }
 0x155   : > { %8073 = vmatprep.mubr.f32.mxu0 %v12842_v47  ;;  %12843 = vst [vmem:[#allocation25_spill] sm:$0xff] %v10615_v19  ;;  %v10618_v24 = vadd.f32 %v7672_v42, %v1416_v54  ;;  %v1415_v43 = vadd.f32 %v1328_v18, %v10148_v51  ;;  %v1602_v8 = vpop.f32.mrf.mxu1  ;;  %8270 = vmatpush3.msra.mxu1 %v6397_v46  ;;  %v10626_v47 = vld [vmem:[%s10201_s9 + $0x130] sm:$0x3]  ;;  %v3285_v51 = vrot.slane %v10608_v58, 1  ;;  %v3286_v18 = vrot.slane %v10611_v36, 1  ;;  %v12851_v36 = vld [vmem:[#allocation27_spill] sm:$0xff] }
 0x156   : > { %8153 = vmatprep.mubr.f32.mxu1 %v10596_v7  ;;  %12845 = vst [vmem:[#allocation60_spill] sm:$0xff] %v10626_v47  ;;  %v7595_v5 = vpop.f32.mrf.mxu0  ;;  %8074 = vmatmul.mubr.f32.gmra.mxu0 %v12846_v26  ;;  %v10630_v54 = vsel %vm462_vm1, %v3280_v53, %v3281_v29  ;;  %v3165_v26 = vld [vmem:[%s12509_s3 + $0x20] sm:$0xff]  ;;  %12849 = vst [vmem:[#allocation62_spill] sm:$0xff] %v10642_v13 }
 0x157   : > { %12844 = vst [vmem:[#allocation59_spill] sm:$0xff] %v10618_v24  ;;  %8191 = vmatprep.subr.mxu0 %v3166_v14  ;;  %12847 = vst [vmem:[#allocation26_spill] sm:$0xff] %v10630_v54  ;;  %v10634_v46 = vadd.f32 %v1602_v8, %v1415_v43  ;;  %v1418_v42 = vadd.f32 %v7595_v5, %v10155_v35  ;;  %v7675_v7 = vpop.f32.mrf.mxu1  ;;  %8154 = vmatmul.mubr.f32.gmra.mxu1 %v10615_v19  ;;  %v10645_v53 = vld [vmem:[%s10201_s9 + $0x140] sm:$0xff]  ;;  %v3288_v35 = vrot.slane %v10626_v47, 1  ;;  %v10676_v47 = vld [vmem:[%s10201_s9 + $0x150] sm:$0xff] }
 0x158   : > { %8192 = vmatpush3.msra.mxu0 %v3166_v14  ;;  %12850 = vst [vmem:[#allocation63_spill] sm:$0xff] %v10645_v53  ;;  %v1338_v58 = vpop.f32.mrf.mxu0  ;;  %8271 = vmatprep.subr.mxu1 %v6396_v63  ;;  %v10649_v43 = vsel %vm462_vm1, %v3281_v29, %v3283_v60  ;;  %v6395_v19 = vld [vmem:[%s12509_s3 + $0x120] sm:$0xff]  ;;  %v12855_v60 = vld [vmem:[#allocation28_spill] sm:$0xff]  ;;  %12858 = vst [vmem:[#allocation67_spill] sm:$0xff] %v10676_v47 }
 0x159   : > { %12848 = vst [vmem:[#allocation61_spill] sm:$0xff] %v10634_v46  ;;  %8076 = vmatprep.mubr.f32.mxu0 %v12851_v36  ;;  %12852 = vst [vmem:[#allocation27_spill] sm:$0xff] %v10649_v43  ;;  %v10652_v8 = vadd.f32 %v7675_v7, %v1418_v42  ;;  %v1417_v14 = vadd.f32 %v1338_v58, %v10162_v34  ;;  %v1612_v5 = vpop.f32.mrf.mxu1  ;;  %8272 = vmatpush3.msra.mxu1 %v6396_v63  ;;  %v10660_v36 = vld [vmem:[%s10201_s9 + $0x148] sm:$0x3]  ;;  %v3290_v34 = vrot.slane %v10642_v13, 1  ;;  %v12881_v24 = vld [vmem:[#allocation2_spill] sm:$0xff] }
 0x15a   : > { %8156 = vmatprep.mubr.f32.mxu1 %v10630_v54  ;;  %12854 = vst [vmem:[#allocation65_spill] sm:$0xff] %v10660_v36  ;;  %v7598_v29 = vpop.f32.mrf.mxu0  ;;  %8077 = vmatmul.mubr.f32.gmra.mxu0 %v12855_v60  ;;  %v10664_v7 = vsel %vm462_vm1, %v3285_v51, %v3286_v18  ;;  %v3291_v58 = vrot.slane %v10645_v53, 1  ;;  %v3164_v60 = vld [vmem:[%s12509_s3 + $0x18] sm:$0xff] }
 0x15b   : > { %12853 = vst [vmem:[#allocation64_spill] sm:$0xff] %v10652_v8  ;;  %8193 = vmatprep.subr.mxu0 %v3165_v26  ;;  %12856 = vst [vmem:[#allocation28_spill] sm:$0xff] %v10664_v7  ;;  %v10668_v63 = vadd.f32 %v1612_v5, %v1417_v14  ;;  %v1420_v42 = vadd.f32 %v7598_v29, %v10169_v6  ;;  %v7678_v54 = vpop.f32.mrf.mxu1  ;;  %8157 = vmatmul.mubr.f32.gmra.mxu1 %v10649_v43  ;;  %v10679_v51 = vld [vmem:[%s10201_s9 + $0x158] sm:$0xff]  ;;  %v3293_v6 = vrot.slane %v10660_v36, 1 }
 0x15c   : > { %8194 = vmatpush3.msra.mxu0 %v3165_v26  ;;  %12859 = vst [vmem:[#allocation68_spill] sm:$0xff] %v10679_v51  ;;  %v1348_v13 = vpop.f32.mrf.mxu0  ;;  %8273 = vmatprep.subr.mxu1 %v6395_v19  ;;  %v12860_v53 = vld [vmem:[#allocation29_spill] sm:$0xff]  ;;  %v10683_v14 = vsel %vm462_vm1, %v3286_v18, %v3288_v35  ;;  %v12863_v26 = vld [vmem:[#allocation4_spill] sm:$0xff]  ;;  %v12865_v35 = vld [vmem:[#allocation30_spill] sm:$0xff] }
 0x15d   : > { %12857 = vst [vmem:[#allocation66_spill] sm:$0xff] %v10668_v63  ;;  %8079 = vmatprep.mubr.f32.mxu0 %v12860_v53  ;;  %12861 = vst [vmem:[#allocation29_spill] sm:$0xff] %v10683_v14  ;;  %v10686_v5 = vadd.f32 %v7678_v54, %v1420_v42  ;;  %v1419_v29 = vadd.f32 %v1348_v13, %v12863_v26  ;;  %v1622_v43 = vpop.f32.mrf.mxu1  ;;  %8274 = vmatpush3.msra.mxu1 %v6395_v19  ;;  %v6394_v63 = vld [vmem:[%s12509_s3 + $0x118] sm:$0xff]  ;;  %v10694_v53 = vld [vmem:[%s10201_s9 + $0x160] sm:$0x3]  ;;  %v3295_v13 = vrot.slane %v10676_v47, 1 }
 0x15e   : > { %8159 = vmatprep.mubr.f32.mxu1 %v10664_v7  ;;  %12864 = vst [vmem:[#allocation4_spill] sm:$0xff] %v10694_v53  ;;  %v7601_v18 = vpop.f32.mrf.mxu0  ;;  %8080 = vmatmul.mubr.f32.gmra.mxu0 %v12865_v35  ;;  %v10698_v54 = vsel %vm462_vm1, %v3290_v34, %v3291_v58  ;;  %v3296_v19 = vrot.slane %v10679_v51, 1  ;;  %v12868_v26 = vld [vmem:[#allocation5_spill] sm:$0xff]  ;;  %v3163_v35 = vld [vmem:[%s12509_s3 + $0x10] sm:$0xff]  ;;  %v12871_v51 = vld [vmem:[#allocation31_spill] sm:$0xff] }
 0x15f   : > { %12862 = vst [vmem:[#allocation69_spill] sm:$0xff] %v10686_v5  ;;  %8195 = vmatprep.subr.mxu0 %v3164_v60  ;;  %12866 = vst [vmem:[#allocation30_spill] sm:$0xff] %v10698_v54  ;;  %v10702_v42 = vadd.f32 %v1622_v43, %v1419_v29  ;;  %v1422_v7 = vadd.f32 %v7601_v18, %v12868_v26  ;;  %v7681_v36 = vpop.f32.mrf.mxu1  ;;  %8160 = vmatmul.mubr.f32.gmra.mxu1 %v10683_v14  ;;  %v10710_v5 = vld [vmem:[%s10201_s9 + $0x168] sm:$0xff]  ;;  %v10713_v34 = vld [vmem:[%s10201_s9 + $0x170] sm:$0xff]  ;;  %v3298_v29 = vrot.slane %v10694_v53, 1 }
 0x160   : > { %8196 = vmatpush3.msra.mxu0 %v3164_v60  ;;  %12869 = vst [vmem:[#allocation5_spill] sm:$0xff] %v10710_v5  ;;  %12870 = vst [vmem:[#allocation71_spill] sm:$0xff] %v10713_v34  ;;  %v1358_v47 = vpop.f32.mrf.mxu0  ;;  %8275 = vmatprep.subr.mxu1 %v6394_v63  ;;  %v10717_v43 = vsel %vm462_vm1, %v3291_v58, %v3293_v6  ;;  %v2826_v60 = vrot.slane %v10190_v20, 2  ;;  %v12873_v18 = vld [vmem:[#allocation6_spill] sm:$0xff]  ;;  %v10730_v58 = vld [vmem:[%s10201_s9 + $0x178] sm:$0x3]  ;;  %v10734_v20 = vsel %vm462_vm1, %v3295_v13, %v3296_v19 }
 0x161   : > { %12867 = vst [vmem:[#allocation70_spill] sm:$0xff] %v10702_v42  ;;  %8082 = vmatprep.mubr.f32.mxu0 %v12871_v51  ;;  %12872 = vst [vmem:[#allocation31_spill] sm:$0xff] %v10717_v43  ;;  %v2827_v26 = vrot.slane %v12873_v18, 2  ;;  %v10722_v14 = vadd.f32 %v7681_v36, %v1422_v7  ;;  %v12875_v42 = vld [vmem:[#allocation7_spill] sm:$0xff]  ;;  %v1632_v46 = vpop.f32.mrf.mxu1  ;;  %8276 = vmatpush3.msra.mxu1 %v6394_v63  ;;  %v6393_v51 = vld [vmem:[%s12509_s3 + $0x110] sm:$0xff]  ;;  %v3300_v36 = vrot.slane %v10710_v5, 1 }
 0x162   : > { %v1421_v8 = vadd.f32 %v1358_v47, %v12875_v42  ;;  %8162 = vmatprep.mubr.f32.mxu1 %v10698_v54  ;;  %12876 = vst [vmem:[#allocation7_spill] sm:$0xff] %v10730_v58  ;;  %v7604_v6 = vpop.f32.mrf.mxu0  ;;  %v12877_v53 = vld [vmem:[#allocation32_spill] sm:$0xff]  ;;  %8197 = vmatprep.subr.mxu0 %v3163_v35  ;;  %v3301_v47 = vrot.slane %v10713_v34, 1  ;;  %v12879_v63 = vld [vmem:[#allocation9_spill] sm:$0xff]  ;;  %v10748_v34 = vsel %vm462_vm1, %v3296_v19, %v3298_v29  ;;  %v12885_v5 = vld [vmem:[#allocation3_spill] sm:$0xff] }
 0x163   : > { %12874 = vst [vmem:[#allocation6_spill] sm:$0xff] %v10722_v14  ;;  %8083 = vmatmul.mubr.f32.gmra.mxu0 %v12877_v53  ;;  %12878 = vst [vmem:[#allocation32_spill] sm:$0xff] %v10734_v20  ;;  %v1424_v42 = vadd.f32 %v7604_v6, %v12879_v63  ;;  %v7684_v18 = vpop.f32.mrf.mxu1  ;;  %8163 = vmatmul.mubr.f32.gmra.mxu1 %v10717_v43  ;;  %v3162_v53 = vld [vmem:[%s12509_s3 + $0x8] sm:$0xff]  ;;  %v12880_v54 = vld [vmem:[#allocation8_spill] sm:$0xff]  ;;  %v2828_v43 = vsel %vm1042_vm0, %v2826_v60, %v2827_v26 }
 0x164   : > { %v10738_v7 = vadd.f32 %v1632_v46, %v1421_v8  ;;  %8198 = vmatpush3.msra.mxu0 %v3163_v35  ;;  %v2829_v14 = vrot.slane %v12880_v54, 2  ;;  %v1368_v13 = vpop.f32.mrf.mxu0  ;;  %8277 = vmatprep.subr.mxu1 %v6393_v51  ;;  %12882 = vst [vmem:[#allocation9_spill] sm:$0xff] %v10748_v34  ;;  %v3303_v46 = vrot.slane %v10730_v58, 1  ;;  %v12884_v6 = vld [vmem:[#allocation12_spill] sm:$0xff]  ;;  %v6392_v54 = vld [vmem:[%s12509_s3 + $0x108] sm:$0xff]  ;;  %v10761_v19 = vsel %vm462_vm1, %v3300_v36, %v3301_v47  ;;  %v12887_v29 = vld [vmem:[#allocation10_spill] sm:$0xff] }
 0x165   : > { %8085 = vmatprep.mubr.f32.mxu0 %v12881_v24  ;;  %v10751_v8 = vadd.f32 %v7684_v18, %v1424_v42  ;;  %v1423_v63 = vadd.f32 %v1368_v13, %v12884_v6  ;;  %v1642_v35 = vpop.f32.mrf.mxu1  ;;  %8278 = vmatpush3.msra.mxu1 %v6393_v51  ;;  %12886 = vst [vmem:[#allocation2_spill] sm:$0xff] %v10761_v19  ;;  %v3804_v42 = vrot.slane %v12887_v29, 2  ;;  %v12888_v18 = vld [vmem:[#allocation11_spill] sm:$0xff]  ;;  %v12890_v6 = vld [vmem:[#allocation14_spill] sm:$0xff] }
 0x166   : > { %8165 = vmatprep.mubr.f32.mxu1 %v10734_v20  ;;  %v7607_v24 = vpop.f32.mrf.mxu0  ;;  %8199 = vmatprep.subr.mxu0 %v3162_v53  ;;  %v3805_v13 = vrot.slane %v12888_v18, 2  ;;  %v2830_v60 = vsel %vm1042_vm0, %v2827_v26, %v2829_v14  ;;  %v6391_v14 = vld [vmem:[%s12509_s3 + $0x100] sm:$0xff] }
 0x167   : > { %12883 = vst [vmem:[#allocation8_spill] sm:$0xff] %v10751_v8  ;;  %8086 = vmatmul.mubr.f32.gmra.mxu0 %v12885_v5  ;;  %v10765_v51 = vadd.f32 %v1642_v35, %v1423_v63  ;;  %v1426_v20 = vadd.f32 %v7607_v24, %v12890_v6  ;;  %v7687_v58 = vpop.f32.mrf.mxu1  ;;  %8166 = vmatmul.mubr.f32.gmra.mxu1 %v10748_v34  ;;  %v3161_v5 = vld [vmem:[%s12509_s3] sm:$0xff]  ;;  %v12892_v63 = vld [vmem:[#allocation13_spill] sm:$0xff]  ;;  %v12893_v24 = vld [vmem:[#allocation15_spill] sm:$0xff] }
 0x168   : > { %8200 = vmatpush3.msra.mxu0 %v3162_v53  ;;  %v1378_v36 = vpop.f32.mrf.mxu0  ;;  %8279 = vmatprep.subr.mxu1 %v6392_v54  ;;  %v10774_v8 = vsel %vm462_vm1, %v3301_v47, %v3303_v46  ;;  %v3807_v35 = vrot.slane %v12892_v63, 2  ;;  %v3809_v47 = vrot.slane %v10249_v25, 2  ;;  %v12894_v53 = vld [vmem:[#allocation16_spill] sm:$0xff]  ;;  %v3812_v63 = vrot.slane %v10263_v0, 2 }
 0x169   : > { %12889 = vst [vmem:[#allocation12_spill] sm:$0xff] %v10765_v51  ;;  %8088 = vmatprep.mubr.f32.mxu0 %v2828_v43  ;;  %12891 = vst [vmem:[#allocation3_spill] sm:$0xff] %v10774_v8  ;;  %v10777_v51 = vadd.f32 %v7687_v58, %v1426_v20  ;;  %v1425_v6 = vadd.f32 %v1378_v36, %v12893_v24  ;;  %v1652_v34 = vpop.f32.mrf.mxu1  ;;  %8280 = vmatpush3.msra.mxu1 %v6392_v54  ;;  %v3810_v58 = vrot.slane %v10252_v10, 2  ;;  %v6422_v36 = vld [vmem:[%s12509_s3 + $0x1f8] sm:$0xff] }
 0x16a   : > { %8168 = vmatprep.mubr.f32.mxu1 %v10761_v19  ;;  %v7610_v26 = vpop.f32.mrf.mxu0  ;;  %8201 = vmatprep.subr.mxu0 %v3161_v5  ;;  %v3806_v43 = vsel %vm1042_vm0, %v3804_v42, %v3805_v13  ;;  %v3808_v42 = vsel %vm1042_vm0, %v3805_v13, %v3807_v35  ;;  %v12895_v13 = vld [vmem:[#allocation17_spill] sm:$0xff]  ;;  %v12896_v35 = vld [vmem:[#allocation18_spill] sm:$0xff] }
 0x16b   : > { %8089 = vmatmul.mubr.f32.gmra.mxu0 %v2830_v60  ;;  %v10787_v20 = vadd.f32 %v1652_v34, %v1425_v6  ;;  %v1428_v46 = vadd.f32 %v7610_v26, %v12894_v53  ;;  %v7690_v54 = vpop.f32.mrf.mxu1  ;;  %8169 = vmatmul.mubr.f32.gmra.mxu1 %v10774_v8  ;;  %v3814_v0 = vrot.slane %v12895_v13, 2  ;;  %v3815_v53 = vrot.slane %v12896_v35, 2 }
 0x16c   : > { %8202 = vmatpush3.msra.mxu0 %v3161_v5  ;;  %v1388_v60 = vpop.f32.mrf.mxu0  ;;  %8281 = vmatprep.subr.mxu1 %v6391_v14  ;;  %v6438_v5 = vld [vmem:[%s12509_s3 + $0x278] sm:$0xff] }
 0x16d   : > { %8203 = vmatprep.mubr.f32.mxu0 %v12887_v29  ;;  %v10797_v34 = vadd.f32 %v7690_v54, %v1428_v46  ;;  %v1427_v24 = vadd.f32 %v1388_v60, %v10283_v57  ;;  %v1662_v6 = vpop.f32.mrf.mxu1  ;;  %8282 = vmatpush3.msra.mxu1 %v6391_v14  ;;  %v10805_v29 = vsel %vm1042_vm0, %v3809_v47, %v3810_v58  ;;  %v3817_v54 = vrot.slane %v10289_v30, 2  ;;  %v12897_v30 = vld [vmem:[#allocation20_spill] sm:$0xff] }
 0x16e   : > { %8283 = vmatprep.mubr.f32.mxu1 %v3806_v43  ;;  %v7725_v26 = vpop.f32.mrf.mxu0  ;;  %8331 = vmatprep.subr.mxu0 %v6422_v36  ;;  %v6421_v43 = vld [vmem:[%s12509_s3 + $0x1f0] sm:$0xff]  ;;  %v10817_v47 = vsel %vm1042_vm0, %v3810_v58, %v3812_v63  ;;  %v3819_v58 = vrot.slane %v12897_v30, 2  ;;  %v3820_v63 = vrot.slane %v10305_v55, 2 }
 0x16f   : > { %8204 = vmatmul.mubr.f32.vlgmr.msra.gmra.mxu0 %v12888_v18  ;;  %v10809_v46 = vadd.f32 %v1662_v6, %v1427_v24  ;;  %v1956_v57 = vadd.f32 %v7725_v26, %v10312_v31  ;;  %v7805_v14 = vpop.f32.mrf.mxu1  ;;  %8284 = vmatmul.mubr.f32.vlgmr.msra.gmra.mxu1 %v3808_v42 }
 0x170   : > { %8332 = vmatpush3.msra.mxu0 %v6422_v36  ;;  %v1796_v18 = vpop.f32.mrf.mxu0  ;;  %8411 = vmatprep.subr.mxu1 %v6438_v5  ;;  %v6437_v36 = vld [vmem:[%s12509_s3 + $0x270] sm:$0xff] }
 0x171   : > { %8206 = vmatprep.mubr.f32.mxu0 %v10249_v25  ;;  %v10820_v60 = vadd.f32 %v7805_v14, %v1956_v57  ;;  %v1955_v31 = vadd.f32 %v1796_v18, %v10328_v38  ;;  %v2077_v24 = vpop.f32.mrf.mxu1  ;;  %8412 = vmatpush3.msra.mxu1 %v6438_v5  ;;  %v10829_v25 = vsel %vm1042_vm0, %v3814_v0, %v3815_v53  ;;  %v3822_v57 = vrot.slane %v10320_v62, 2  ;;  %v12898_v62 = vld [vmem:[#allocation23_spill] sm:$0xff] }
 0x172   : > { %8286 = vmatprep.mubr.f32.mxu1 %v10805_v29  ;;  %v7728_v42 = vpop.f32.mrf.mxu0  ;;  %8333 = vmatprep.subr.mxu0 %v6421_v43  ;;  %v10842_v0 = vsel %vm1042_vm0, %v3815_v53, %v3817_v54  ;;  %v3824_v53 = vrot.slane %v12898_v62, 2  ;;  %v3825_v54 = vrot.slane %v10339_v49, 2 }
 0x173   : > { %8207 = vmatmul.mubr.f32.gmra.mxu0 %v10252_v10  ;;  %v10833_v38 = vadd.f32 %v2077_v24, %v1955_v31  ;;  %v1958_v6 = vadd.f32 %v7728_v42, %v10346_v15  ;;  %v7808_v5 = vpop.f32.mrf.mxu1  ;;  %8287 = vmatmul.mubr.f32.gmra.mxu1 %v10817_v47  ;;  %v6420_v10 = vld [vmem:[%s12509_s3 + $0x1e8] sm:$0xff] }
 0x174   : > { %8334 = vmatpush3.msra.mxu0 %v6421_v43  ;;  %v1806_v26 = vpop.f32.mrf.mxu0  ;;  %8413 = vmatprep.subr.mxu1 %v6437_v36  ;;  %v6436_v43 = vld [vmem:[%s12509_s3 + $0x268] sm:$0xff] }
 0x175   : > { %8209 = vmatprep.mubr.f32.mxu0 %v12895_v13  ;;  %v10845_v14 = vadd.f32 %v7808_v5, %v1958_v6  ;;  %v1957_v15 = vadd.f32 %v1806_v26, %v10362_v56  ;;  %v2087_v18 = vpop.f32.mrf.mxu1  ;;  %8414 = vmatpush3.msra.mxu1 %v6437_v36  ;;  %v10854_v13 = vsel %vm1042_vm0, %v3819_v58, %v3820_v63  ;;  %v3827_v6 = vrot.slane %v10354_v3, 2  ;;  %v12899_v3 = vld [vmem:[#allocation34_spill] sm:$0xff] }
 0x176   : > { %8289 = vmatprep.mubr.f32.mxu1 %v10829_v25  ;;  %v7731_v31 = vpop.f32.mrf.mxu0  ;;  %8335 = vmatprep.subr.mxu0 %v6420_v10  ;;  %v10867_v58 = vsel %vm1042_vm0, %v3820_v63, %v3822_v57  ;;  %v3829_v63 = vrot.slane %v12899_v3, 2  ;;  %v3830_v57 = vrot.slane %v10373_v39, 2 }
 0x177   : > { %8210 = vmatmul.mubr.f32.gmra.mxu0 %v12896_v35  ;;  %v10858_v56 = vadd.f32 %v2087_v18, %v1957_v15  ;;  %v1960_v24 = vadd.f32 %v7731_v31, %v10380_v52  ;;  %v7811_v36 = vpop.f32.mrf.mxu1  ;;  %8290 = vmatmul.mubr.f32.gmra.mxu1 %v10842_v0  ;;  %v6419_v35 = vld [vmem:[%s12509_s3 + $0x1e0] sm:$0xff] }
 0x178   : > { %8336 = vmatpush3.msra.mxu0 %v6420_v10  ;;  %v1816_v42 = vpop.f32.mrf.mxu0  ;;  %8415 = vmatprep.subr.mxu1 %v6436_v43  ;;  %v6435_v10 = vld [vmem:[%s12509_s3 + $0x260] sm:$0xff] }
 0x179   : > { %8212 = vmatprep.mubr.f32.mxu0 %v12897_v30  ;;  %v10870_v5 = vadd.f32 %v7811_v36, %v1960_v24  ;;  %v1959_v52 = vadd.f32 %v1816_v42, %v10396_v41  ;;  %v2097_v26 = vpop.f32.mrf.mxu1  ;;  %8416 = vmatpush3.msra.mxu1 %v6436_v43  ;;  %v10879_v30 = vsel %vm1042_vm0, %v3824_v53, %v3825_v54  ;;  %v3832_v24 = vrot.slane %v10388_v27, 2  ;;  %v12900_v27 = vld [vmem:[#allocation37_spill] sm:$0xff] }
 0x17a   : > { %8292 = vmatprep.mubr.f32.mxu1 %v10854_v13  ;;  %v7734_v15 = vpop.f32.mrf.mxu0  ;;  %8337 = vmatprep.subr.mxu0 %v6419_v35  ;;  %v10892_v53 = vsel %vm1042_vm0, %v3825_v54, %v3827_v6  ;;  %v3834_v54 = vrot.slane %v12900_v27, 2  ;;  %v3835_v6 = vrot.slane %v10407_v45, 2 }
 0x17b   : > { %8213 = vmatmul.mubr.f32.gmra.mxu0 %v10305_v55  ;;  %v10883_v41 = vadd.f32 %v2097_v26, %v1959_v52  ;;  %v1962_v18 = vadd.f32 %v7734_v15, %v10414_v48  ;;  %v7814_v43 = vpop.f32.mrf.mxu1  ;;  %8293 = vmatmul.mubr.f32.gmra.mxu1 %v10867_v58  ;;  %v6418_v55 = vld [vmem:[%s12509_s3 + $0x1d8] sm:$0xff] }
 0x17c   : > { %8338 = vmatpush3.msra.mxu0 %v6419_v35  ;;  %v1826_v31 = vpop.f32.mrf.mxu0  ;;  %8417 = vmatprep.subr.mxu1 %v6435_v10  ;;  %v6434_v35 = vld [vmem:[%s12509_s3 + $0x258] sm:$0xff] }
 0x17d   : > { %8215 = vmatprep.mubr.f32.mxu0 %v12898_v62  ;;  %v10895_v36 = vadd.f32 %v7814_v43, %v1962_v18  ;;  %v1961_v48 = vadd.f32 %v1826_v31, %v10430_v50  ;;  %v2107_v42 = vpop.f32.mrf.mxu1  ;;  %8418 = vmatpush3.msra.mxu1 %v6435_v10  ;;  %v10904_v62 = vsel %vm1042_vm0, %v3829_v63, %v3830_v57  ;;  %v3837_v18 = vrot.slane %v10422_v44, 2  ;;  %v12903_v44 = vld [vmem:[#allocation40_spill] sm:$0xff] }
 0x17e   : > { %8295 = vmatprep.mubr.f32.mxu1 %v10879_v30  ;;  %v7737_v52 = vpop.f32.mrf.mxu0  ;;  %8339 = vmatprep.subr.mxu0 %v6418_v55  ;;  %v10917_v63 = vsel %vm1042_vm0, %v3830_v57, %v3832_v24  ;;  %v3839_v57 = vrot.slane %v12903_v44, 2  ;;  %v3840_v24 = vrot.slane %v10441_v2, 2 }
 0x17f   : > { %8216 = vmatmul.mubr.f32.gmra.mxu0 %v10339_v49  ;;  %v10908_v50 = vadd.f32 %v2107_v42, %v1961_v48  ;;  %v1964_v26 = vadd.f32 %v7737_v52, %v10448_v37  ;;  %v7817_v10 = vpop.f32.mrf.mxu1  ;;  %8296 = vmatmul.mubr.f32.gmra.mxu1 %v10892_v53  ;;  %v6417_v49 = vld [vmem:[%s12509_s3 + $0x1d0] sm:$0xff]  ;;  %12901 = vst [vmem:[#allocation10_spill] sm:$0xff] %v10917_v63 }
 0x180   : > { %8340 = vmatpush3.msra.mxu0 %v6418_v55  ;;  %v1836_v15 = vpop.f32.mrf.mxu0  ;;  %8419 = vmatprep.subr.mxu1 %v6434_v35  ;;  %v6433_v55 = vld [vmem:[%s12509_s3 + $0x250] sm:$0xff] }
 0x181   : > { %8218 = vmatprep.mubr.f32.mxu0 %v12899_v3  ;;  %v10920_v43 = vadd.f32 %v7817_v10, %v1964_v26  ;;  %v1963_v37 = vadd.f32 %v1836_v15, %v10464_v61  ;;  %v2117_v31 = vpop.f32.mrf.mxu1  ;;  %8420 = vmatpush3.msra.mxu1 %v6434_v35  ;;  %v10929_v3 = vsel %vm1042_vm0, %v3834_v54, %v3835_v6  ;;  %v3842_v26 = vrot.slane %v10456_v59, 2  ;;  %v12906_v59 = vld [vmem:[#allocation43_spill] sm:$0xff] }
 0x182   : > { %8298 = vmatprep.mubr.f32.mxu1 %v10904_v62  ;;  %v7740_v48 = vpop.f32.mrf.mxu0  ;;  %8341 = vmatprep.subr.mxu0 %v6417_v49  ;;  %12902 = vst [vmem:[#allocation11_spill] sm:$0xff] %v10929_v3  ;;  %v10942_v54 = vsel %vm1042_vm0, %v3835_v6, %v3837_v18  ;;  %v3844_v6 = vrot.slane %v12906_v59, 2  ;;  %v3845_v18 = vrot.slane %v10475_v32, 2 }
 0x183   : > { %8219 = vmatmul.mubr.f32.gmra.mxu0 %v10373_v39  ;;  %v10933_v61 = vadd.f32 %v2117_v31, %v1963_v37  ;;  %v1966_v42 = vadd.f32 %v7740_v48, %v10482_v9  ;;  %v7820_v35 = vpop.f32.mrf.mxu1  ;;  %8299 = vmatmul.mubr.f32.gmra.mxu1 %v10917_v63  ;;  %v6416_v39 = vld [vmem:[%s12509_s3 + $0x1c8] sm:$0xff]  ;;  %12904 = vst [vmem:[#allocation14_spill] sm:$0xff] %v10942_v54 }
 0x184   : > { %8342 = vmatpush3.msra.mxu0 %v6417_v49  ;;  %v1846_v52 = vpop.f32.mrf.mxu0  ;;  %8421 = vmatprep.subr.mxu1 %v6433_v55  ;;  %v6432_v49 = vld [vmem:[%s12509_s3 + $0x248] sm:$0xff] }
 0x185   : > { %8221 = vmatprep.mubr.f32.mxu0 %v12900_v27  ;;  %v10945_v10 = vadd.f32 %v7820_v35, %v1966_v42  ;;  %v1965_v9 = vadd.f32 %v1846_v52, %v10498_v1  ;;  %v2127_v15 = vpop.f32.mrf.mxu1  ;;  %8422 = vmatpush3.msra.mxu1 %v6433_v55  ;;  %v10954_v27 = vsel %vm1042_vm0, %v3839_v57, %v3840_v24  ;;  %v3847_v42 = vrot.slane %v10490_v40, 2  ;;  %v12909_v40 = vld [vmem:[#allocation46_spill] sm:$0xff] }
 0x186   : > { %8301 = vmatprep.mubr.f32.mxu1 %v10929_v3  ;;  %v7743_v37 = vpop.f32.mrf.mxu0  ;;  %8343 = vmatprep.subr.mxu0 %v6416_v39  ;;  %12905 = vst [vmem:[#allocation13_spill] sm:$0xff] %v10954_v27  ;;  %v10967_v57 = vsel %vm1042_vm0, %v3840_v24, %v3842_v26  ;;  %v3849_v24 = vrot.slane %v12909_v40, 2  ;;  %v3850_v26 = vrot.slane %v10509_v12, 2  ;;  %v12946_v3 = vld [vmem:[#allocation7_spill] sm:$0xff] }
 0x187   : > { %8222 = vmatmul.mubr.f32.gmra.mxu0 %v10407_v45  ;;  %v10958_v1 = vadd.f32 %v2127_v15, %v1965_v9  ;;  %v1968_v31 = vadd.f32 %v7743_v37, %v10516_v22  ;;  %v7823_v55 = vpop.f32.mrf.mxu1  ;;  %8302 = vmatmul.mubr.f32.gmra.mxu1 %v10942_v54  ;;  %v6415_v45 = vld [vmem:[%s12509_s3 + $0x1c0] sm:$0xff]  ;;  %12907 = vst [vmem:[#allocation15_spill] sm:$0xff] %v10967_v57  ;;  %v12940_v54 = vld [vmem:[#allocation4_spill] sm:$0xff] }
 0x188   : > { %8344 = vmatpush3.msra.mxu0 %v6416_v39  ;;  %v1856_v48 = vpop.f32.mrf.mxu0  ;;  %8423 = vmatprep.subr.mxu1 %v6432_v49  ;;  %v6431_v39 = vld [vmem:[%s12509_s3 + $0x240] sm:$0xff] }
 0x189   : > { %8224 = vmatprep.mubr.f32.mxu0 %v12903_v44  ;;  %v10970_v35 = vadd.f32 %v7823_v55, %v1968_v31  ;;  %v1967_v22 = vadd.f32 %v1856_v48, %v10532_v11  ;;  %v2137_v52 = vpop.f32.mrf.mxu1  ;;  %8424 = vmatpush3.msra.mxu1 %v6432_v49  ;;  %v10979_v44 = vsel %vm1042_vm0, %v3844_v6, %v3845_v18  ;;  %v3852_v31 = vrot.slane %v10524_v23, 2  ;;  %v12912_v23 = vld [vmem:[#allocation49_spill] sm:$0xff] }
 0x18a   : > { %8304 = vmatprep.mubr.f32.mxu1 %v10954_v27  ;;  %v7746_v9 = vpop.f32.mrf.mxu0  ;;  %8345 = vmatprep.subr.mxu0 %v6415_v45  ;;  %12908 = vst [vmem:[#allocation16_spill] sm:$0xff] %v10979_v44  ;;  %v10992_v6 = vsel %vm1042_vm0, %v3845_v18, %v3847_v42  ;;  %v3854_v18 = vrot.slane %v12912_v23, 2  ;;  %v3855_v42 = vrot.slane %v10543_v17, 2 }
 0x18b   : > { %8225 = vmatmul.mubr.f32.gmra.mxu0 %v10441_v2  ;;  %v10983_v11 = vadd.f32 %v2137_v52, %v1967_v22  ;;  %v1970_v15 = vadd.f32 %v7746_v9, %v10550_v4  ;;  %v7826_v49 = vpop.f32.mrf.mxu1  ;;  %8305 = vmatmul.mubr.f32.gmra.mxu1 %v10967_v57  ;;  %v6414_v2 = vld [vmem:[%s12509_s3 + $0x1b8] sm:$0xff]  ;;  %12910 = vst [vmem:[#allocation17_spill] sm:$0xff] %v10992_v6 }
 0x18c   : > { %8346 = vmatpush3.msra.mxu0 %v6415_v45  ;;  %v1866_v37 = vpop.f32.mrf.mxu0  ;;  %8425 = vmatprep.subr.mxu1 %v6431_v39  ;;  %v6430_v45 = vld [vmem:[%s12509_s3 + $0x238] sm:$0xff] }
 0x18d   : > { %8227 = vmatprep.mubr.f32.mxu0 %v12906_v59  ;;  %v10995_v55 = vadd.f32 %v7826_v49, %v1970_v15  ;;  %v1969_v4 = vadd.f32 %v1866_v37, %v10566_v21  ;;  %v2147_v48 = vpop.f32.mrf.mxu1  ;;  %8426 = vmatpush3.msra.mxu1 %v6431_v39  ;;  %v11004_v59 = vsel %vm1042_vm0, %v3849_v24, %v3850_v26  ;;  %v3857_v15 = vrot.slane %v10558_v16, 2  ;;  %v12915_v16 = vld [vmem:[#allocation52_spill] sm:$0xff]  ;;  %v12933_v57 = vld [vmem:[#allocation65_spill] sm:$0xff] }
 0x18e   : > { %8307 = vmatprep.mubr.f32.mxu1 %v10979_v44  ;;  %v7749_v22 = vpop.f32.mrf.mxu0  ;;  %8347 = vmatprep.subr.mxu0 %v6414_v2  ;;  %12911 = vst [vmem:[#allocation18_spill] sm:$0xff] %v11004_v59  ;;  %v11017_v24 = vsel %vm1042_vm0, %v3850_v26, %v3852_v31  ;;  %v3859_v26 = vrot.slane %v12915_v16, 2  ;;  %v12916_v31 = vld [vmem:[#allocation53_spill] sm:$0xff] }
 0x18f   : > { %8228 = vmatmul.mubr.f32.gmra.mxu0 %v10475_v32  ;;  %v11008_v21 = vadd.f32 %v2147_v48, %v1969_v4  ;;  %v1972_v52 = vadd.f32 %v7749_v22, %v10584_v28  ;;  %v7829_v39 = vpop.f32.mrf.mxu1  ;;  %8308 = vmatmul.mubr.f32.gmra.mxu1 %v10992_v6  ;;  %v6413_v32 = vld [vmem:[%s12509_s3 + $0x1b0] sm:$0xff]  ;;  %12913 = vst [vmem:[#allocation20_spill] sm:$0xff] %v11017_v24  ;;  %v3860_v48 = vrot.slane %v12916_v31, 2 }
 0x190   : > { %8348 = vmatpush3.msra.mxu0 %v6414_v2  ;;  %v1876_v9 = vpop.f32.mrf.mxu0  ;;  %8427 = vmatprep.subr.mxu1 %v6430_v45  ;;  %v6429_v2 = vld [vmem:[%s12509_s3 + $0x230] sm:$0xff] }
 0x191   : > { %8230 = vmatprep.mubr.f32.mxu0 %v12909_v40  ;;  %v11020_v49 = vadd.f32 %v7829_v39, %v1972_v52  ;;  %v1971_v28 = vadd.f32 %v1876_v9, %v10600_v33  ;;  %v2157_v37 = vpop.f32.mrf.mxu1  ;;  %8428 = vmatpush3.msra.mxu1 %v6430_v45  ;;  %v11029_v40 = vsel %vm1042_vm0, %v3854_v18, %v3855_v42  ;;  %v12917_v45 = vld [vmem:[#allocation59_spill] sm:$0xff]  ;;  %v12926_v6 = vld [vmem:[#allocation60_spill] sm:$0xff] }
 0x192   : > { %8310 = vmatprep.mubr.f32.mxu1 %v11004_v59  ;;  %v7752_v4 = vpop.f32.mrf.mxu0  ;;  %8349 = vmatprep.subr.mxu0 %v6413_v32  ;;  %12914 = vst [vmem:[#allocation23_spill] sm:$0xff] %v11029_v40  ;;  %v11042_v18 = vsel %vm1042_vm0, %v3855_v42, %v3857_v15  ;;  %v12919_v9 = vld [vmem:[#allocation55_spill] sm:$0xff]  ;;  %v12922_v42 = vld [vmem:[#allocation57_spill] sm:$0xff] }
 0x193   : > { %8231 = vmatmul.mubr.f32.gmra.mxu0 %v10509_v12  ;;  %v11033_v33 = vadd.f32 %v2157_v37, %v1971_v28  ;;  %v1974_v22 = vadd.f32 %v7752_v4, %v12917_v45  ;;  %v7832_v52 = vpop.f32.mrf.mxu1  ;;  %8311 = vmatmul.mubr.f32.gmra.mxu1 %v11017_v24  ;;  %v6412_v12 = vld [vmem:[%s12509_s3 + $0x1a8] sm:$0xff]  ;;  %12918 = vst [vmem:[#allocation34_spill] sm:$0xff] %v11042_v18  ;;  %v3862_v28 = vrot.slane %v12919_v9, 2  ;;  %v12920_v4 = vld [vmem:[#allocation61_spill] sm:$0xff]  ;;  %v3864_v15 = vrot.slane %v12922_v42, 2 }
 0x194   : > { %8350 = vmatpush3.msra.mxu0 %v6413_v32  ;;  %v1886_v39 = vpop.f32.mrf.mxu0  ;;  %8429 = vmatprep.subr.mxu1 %v6429_v2  ;;  %v6428_v32 = vld [vmem:[%s12509_s3 + $0x228] sm:$0xff] }
 0x195   : > { %8233 = vmatprep.mubr.f32.mxu0 %v12912_v23  ;;  %v11045_v37 = vadd.f32 %v7832_v52, %v1974_v22  ;;  %v1973_v45 = vadd.f32 %v1886_v39, %v12920_v4  ;;  %v2167_v59 = vpop.f32.mrf.mxu1  ;;  %8430 = vmatpush3.msra.mxu1 %v6429_v2  ;;  %v11054_v23 = vsel %vm1042_vm0, %v3859_v26, %v3860_v48  ;;  %v12923_v22 = vld [vmem:[#allocation58_spill] sm:$0xff]  ;;  %v12924_v2 = vld [vmem:[#allocation64_spill] sm:$0xff] }
 0x196   : > { %8313 = vmatprep.mubr.f32.mxu1 %v11029_v40  ;;  %v7755_v24 = vpop.f32.mrf.mxu0  ;;  %8351 = vmatprep.subr.mxu0 %v6412_v12  ;;  %12921 = vst [vmem:[#allocation37_spill] sm:$0xff] %v11054_v23  ;;  %v3865_v52 = vrot.slane %v12923_v22, 2  ;;  %v11067_v26 = vsel %vm1042_vm0, %v3860_v48, %v3862_v28  ;;  %v12930_v28 = vld [vmem:[#allocation63_spill] sm:$0xff] }
 0x197   : > { %8234 = vmatmul.mubr.f32.gmra.mxu0 %v10543_v17  ;;  %v11058_v39 = vadd.f32 %v2167_v59, %v1973_v45  ;;  %v1976_v9 = vadd.f32 %v7755_v24, %v12924_v2  ;;  %v7835_v4 = vpop.f32.mrf.mxu1  ;;  %8314 = vmatmul.mubr.f32.gmra.mxu1 %v11042_v18  ;;  %v6411_v17 = vld [vmem:[%s12509_s3 + $0x1a0] sm:$0xff]  ;;  %12925 = vst [vmem:[#allocation40_spill] sm:$0xff] %v11067_v26  ;;  %v3867_v59 = vrot.slane %v12926_v6, 2 }
 0x198   : > { %8352 = vmatpush3.msra.mxu0 %v6412_v12  ;;  %v1896_v40 = vpop.f32.mrf.mxu0  ;;  %8431 = vmatprep.subr.mxu1 %v6428_v32  ;;  %v12927_v24 = vld [vmem:[#allocation66_spill] sm:$0xff] }
 0x199   : > { %8236 = vmatprep.mubr.f32.mxu0 %v12915_v16  ;;  %v11070_v45 = vadd.f32 %v7835_v4, %v1976_v9  ;;  %v1975_v2 = vadd.f32 %v1896_v40, %v12927_v24  ;;  %v2177_v44 = vpop.f32.mrf.mxu1  ;;  %8432 = vmatpush3.msra.mxu1 %v6428_v32  ;;  %v6427_v12 = vld [vmem:[%s12509_s3 + $0x220] sm:$0xff]  ;;  %v11079_v16 = vsel %vm1042_vm0, %v3864_v15, %v3865_v52  ;;  %v3870_v9 = vrot.slane %v12930_v28, 2  ;;  %v12931_v32 = vld [vmem:[#allocation69_spill] sm:$0xff] }
 0x19a   : > { %8316 = vmatprep.mubr.f32.mxu1 %v11054_v23  ;;  %v7758_v18 = vpop.f32.mrf.mxu0  ;;  %8353 = vmatprep.subr.mxu0 %v6411_v17  ;;  %12928 = vst [vmem:[#allocation43_spill] sm:$0xff] %v11079_v16  ;;  %v12929_v6 = vld [vmem:[#allocation62_spill] sm:$0xff]  ;;  %v11092_v15 = vsel %vm1042_vm0, %v3865_v52, %v3867_v59  ;;  %v12937_v59 = vld [vmem:[#allocation68_spill] sm:$0xff] }
 0x19b   : > { %8237 = vmatmul.mubr.f32.gmra.mxu0 %v12916_v31  ;;  %v3869_v48 = vrot.slane %v12929_v6, 2  ;;  %v11083_v40 = vadd.f32 %v2177_v44, %v1975_v2  ;;  %v1978_v4 = vadd.f32 %v7758_v18, %v12931_v32  ;;  %v7838_v24 = vpop.f32.mrf.mxu1  ;;  %8317 = vmatmul.mubr.f32.gmra.mxu1 %v11067_v26  ;;  %v6410_v31 = vld [vmem:[%s12509_s3 + $0x198] sm:$0xff]  ;;  %12932 = vst [vmem:[#allocation46_spill] sm:$0xff] %v11092_v15  ;;  %v3872_v44 = vrot.slane %v12933_v57, 2  ;;  %v12934_v18 = vld [vmem:[#allocation70_spill] sm:$0xff]  ;;  %v12936_v57 = vld [vmem:[#allocation67_spill] sm:$0xff] }
 0x19c   : > { %8354 = vmatpush3.msra.mxu0 %v6411_v17  ;;  %v1906_v23 = vpop.f32.mrf.mxu0  ;;  %8433 = vmatprep.subr.mxu1 %v6427_v12  ;;  %v6426_v17 = vld [vmem:[%s12509_s3 + $0x218] sm:$0xff]  ;;  %v3874_v52 = vrot.slane %v12936_v57, 2 }
 0x19d   : > { %8239 = vmatprep.mubr.f32.mxu0 %v12922_v42  ;;  %v11095_v2 = vadd.f32 %v7838_v24, %v1978_v4  ;;  %v1977_v32 = vadd.f32 %v1906_v23, %v12934_v18  ;;  %v2187_v27 = vpop.f32.mrf.mxu1  ;;  %8434 = vmatpush3.msra.mxu1 %v6427_v12  ;;  %v11104_v42 = vsel %vm1042_vm0, %v3869_v48, %v3870_v9  ;;  %v3875_v4 = vrot.slane %v12937_v59, 2  ;;  %v12938_v12 = vld [vmem:[#allocation6_spill] sm:$0xff] }
 0x19e   : > { %8319 = vmatprep.mubr.f32.mxu1 %v11079_v16  ;;  %v7761_v26 = vpop.f32.mrf.mxu0  ;;  %8355 = vmatprep.subr.mxu0 %v6410_v31  ;;  %12935 = vst [vmem:[#allocation49_spill] sm:$0xff] %v11104_v42  ;;  %v11117_v48 = vsel %vm1042_vm0, %v3870_v9, %v3872_v44  ;;  %v12943_v44 = vld [vmem:[#allocation71_spill] sm:$0xff] }
 0x19f   : > { %8240 = vmatmul.mubr.f32.gmra.mxu0 %v12923_v22  ;;  %v11108_v23 = vadd.f32 %v2187_v27, %v1977_v32  ;;  %v1980_v24 = vadd.f32 %v7761_v26, %v12938_v12  ;;  %v7841_v18 = vpop.f32.mrf.mxu1  ;;  %8320 = vmatmul.mubr.f32.gmra.mxu1 %v11092_v15  ;;  %v6409_v22 = vld [vmem:[%s12509_s3 + $0x190] sm:$0xff]  ;;  %12939 = vst [vmem:[#allocation52_spill] sm:$0xff] %v11117_v48  ;;  %v3877_v27 = vrot.slane %v12940_v54, 2  ;;  %v12942_v54 = vld [vmem:[#allocation5_spill] sm:$0xff] }
 0x1a0   : > { %8356 = vmatpush3.msra.mxu0 %v6410_v31  ;;  %v1916_v16 = vpop.f32.mrf.mxu0  ;;  %8435 = vmatprep.subr.mxu1 %v6426_v17  ;;  %v6425_v31 = vld [vmem:[%s12509_s3 + $0x210] sm:$0xff]  ;;  %v3879_v9 = vrot.slane %v12942_v54, 2 }
 0x1a1   : > { %8242 = vmatprep.mubr.f32.mxu0 %v12929_v6  ;;  %v11120_v32 = vadd.f32 %v7841_v18, %v1980_v24  ;;  %v1979_v26 = vadd.f32 %v1916_v16, %v10738_v7  ;;  %v2197_v12 = vpop.f32.mrf.mxu1  ;;  %8436 = vmatpush3.msra.mxu1 %v6426_v17  ;;  %v11129_v6 = vsel %vm1042_vm0, %v3874_v52, %v3875_v4  ;;  %v3880_v24 = vrot.slane %v12943_v44, 2  ;;  %v12944_v16 = vld [vmem:[#allocation8_spill] sm:$0xff] }
 0x1a2   : > { %8322 = vmatprep.mubr.f32.mxu1 %v11104_v42  ;;  %v7764_v15 = vpop.f32.mrf.mxu0  ;;  %8357 = vmatprep.subr.mxu0 %v6409_v22  ;;  %12941 = vst [vmem:[#allocation53_spill] sm:$0xff] %v11129_v6  ;;  %v11142_v52 = vsel %vm1042_vm0, %v3875_v4, %v3877_v27  ;;  %v6407_v27 = vld [vmem:[%s12509_s3 + $0x180] sm:$0xff] }
 0x1a3   : > { %8243 = vmatmul.mubr.f32.gmra.mxu0 %v12930_v28  ;;  %v11133_v7 = vadd.f32 %v2197_v12, %v1979_v26  ;;  %v1982_v17 = vadd.f32 %v7764_v15, %v12944_v16  ;;  %v7844_v18 = vpop.f32.mrf.mxu1  ;;  %8323 = vmatmul.mubr.f32.gmra.mxu1 %v11117_v48  ;;  %v6408_v28 = vld [vmem:[%s12509_s3 + $0x188] sm:$0xff]  ;;  %12945 = vst [vmem:[#allocation59_spill] sm:$0xff] %v11142_v52  ;;  %v3882_v26 = vrot.slane %v12946_v3, 2  ;;  %v12947_v15 = vld [vmem:[#allocation12_spill] sm:$0xff] }
 0x1a4   : > { %8358 = vmatpush3.msra.mxu0 %v6409_v22  ;;  %v1926_v42 = vpop.f32.mrf.mxu0  ;;  %8437 = vmatprep.subr.mxu1 %v6425_v31  ;;  %v6424_v22 = vld [vmem:[%s12509_s3 + $0x208] sm:$0xff] }
 0x1a5   : > { %8245 = vmatprep.mubr.f32.mxu0 %v12936_v57  ;;  %v11145_v12 = vadd.f32 %v7844_v18, %v1982_v17  ;;  %v1981_v16 = vadd.f32 %v1926_v42, %v12947_v15  ;;  %v2207_v63 = vpop.f32.mrf.mxu1  ;;  %8438 = vmatpush3.msra.mxu1 %v6425_v31  ;;  %v11154_v57 = vsel %vm1042_vm0, %v3879_v9, %v3880_v24 }
 0x1a6   : > { %8325 = vmatprep.mubr.f32.mxu1 %v11129_v6  ;;  %v7767_v48 = vpop.f32.mrf.mxu0  ;;  %8359 = vmatprep.subr.mxu0 %v6408_v28  ;;  %12948 = vst [vmem:[#allocation55_spill] sm:$0xff] %v11154_v57 }
 0x1a7   : > { %8246 = vmatmul.mubr.f32.gmra.mxu0 %v12937_v59  ;;  %v11156_v3 = vadd.f32 %v2207_v63, %v1981_v16  ;;  %v1984_v4 = vadd.f32 %v7767_v48, %v10777_v51  ;;  %v7847_v42 = vpop.f32.mrf.mxu1  ;;  %8326 = vmatmul.mubr.f32.gmra.mxu1 %v11142_v52  ;;  %v11165_v59 = vsel %vm1042_vm0, %v3880_v24, %v3882_v26  ;;  %v6423_v48 = vld [vmem:[%s12509_s3 + $0x200] sm:$0xff]  ;;  %v8864_v26 = vld [vmem:[%s10201_s9 + $0x18] sm:$0xff] }
 0x1a8   : > { %8360 = vmatpush3.msra.mxu0 %v6408_v28  ;;  %v1936_v31 = vpop.f32.mrf.mxu0  ;;  %8439 = vmatprep.subr.mxu1 %v6424_v22  ;;  %12949 = vst [vmem:[#allocation61_spill] sm:$0xff] %v11165_v59 }
 0x1a9   : > { %8248 = vmatprep.mubr.f32.mxu0 %v12942_v54  ;;  %v11167_v9 = vadd.f32 %v7847_v42, %v1984_v4  ;;  %v1983_v63 = vadd.f32 %v1936_v31, %v10787_v20  ;;  %v2217_v51 = vpop.f32.mrf.mxu1  ;;  %8440 = vmatpush3.msra.mxu1 %v6424_v22  ;;  %v6454_v20 = vld [vmem:[%s12509_s3 + $0x2f8] sm:$0xff]  ;;  %v8865_v42 = vld [vmem:[%s10201_s9 + $0x20] sm:$0xff] }
 0x1aa   : > { %8328 = vmatprep.mubr.f32.mxu1 %v11154_v57  ;;  %v7770_v17 = vpop.f32.mrf.mxu0  ;;  %8361 = vmatprep.subr.mxu0 %v6407_v27  ;;  %v6470_v22 = vld [vmem:[%s12509_s3 + $0x378] sm:$0xff] }
 0x1ab   : > { %8249 = vmatmul.mubr.f32.gmra.mxu0 %v12943_v44  ;;  %v11175_v54 = vadd.f32 %v2217_v51, %v1983_v63  ;;  %v1986_v24 = vadd.f32 %v7770_v17, %v10797_v34  ;;  %v7850_v18 = vpop.f32.mrf.mxu1  ;;  %8329 = vmatmul.mubr.f32.gmra.mxu1 %v11165_v59  ;;  %v12950_v34 = vld [vmem:[#allocation19_spill] sm:$0xff]  ;;  %v6453_v51 = vld [vmem:[%s12509_s3 + $0x2f0] sm:$0xff] }
 0x1ac   : > { %8362 = vmatpush3.msra.mxu0 %v6407_v27  ;;  %v1946_v28 = vpop.f32.mrf.mxu0  ;;  %8441 = vmatprep.subr.mxu1 %v6423_v48  ;;  %v11199_v17 = vld [vmem:[%s10201_s9 + $0x30] sm:$0xff] }
 0x1ad   : > { %8363 = vmatprep.mubr.f32.mxu0 %v8864_v26  ;;  %v11183_v15 = vadd.f32 %v7850_v18, %v1986_v24  ;;  %v1985_v44 = vadd.f32 %v1946_v28, %v10809_v46  ;;  %v2227_v16 = vpop.f32.mrf.mxu1  ;;  %8442 = vmatpush3.msra.mxu1 %v6423_v48  ;;  %v12951_v46 = vld [vmem:[#allocation21_spill] sm:$0xff]  ;;  %v12952_v28 = vld [vmem:[#allocation22_spill] sm:$0xff] }
 0x1ae   : > { %8443 = vmatprep.mubr.f32.mxu1 %v12950_v34  ;;  %v7885_v4 = vpop.f32.mrf.mxu0  ;;  %8491 = vmatprep.subr.mxu0 %v6454_v20 }
 0x1af   : > { %8364 = vmatmul.mubr.f32.vlgmr.msra.gmra.mxu0 %v8865_v42  ;;  %v11191_v27 = vadd.f32 %v2227_v16, %v1985_v44  ;;  %v2511_v31 = vadd.f32 %v7885_v4, %v10820_v60  ;;  %v7965_v63 = vpop.f32.mrf.mxu1  ;;  %8444 = vmatmul.mubr.f32.vlgmr.msra.gmra.mxu1 %v12951_v46  ;;  %v11210_v44 = vld [vmem:[%s10201_s9 + $0x38] sm:$0xff]  ;;  %v12953_v4 = vld [vmem:[#allocation24_spill] sm:$0xff] }
 0x1b0   : > { %8492 = vmatpush3.msra.mxu0 %v6454_v20  ;;  %v2351_v48 = vpop.f32.mrf.mxu0  ;;  %8571 = vmatprep.subr.mxu1 %v6470_v22  ;;  %v6469_v20 = vld [vmem:[%s12509_s3 + $0x370] sm:$0xff] }
 0x1b1   : > { %8366 = vmatprep.mubr.f32.mxu0 %v11199_v17  ;;  %v11202_v24 = vadd.f32 %v7965_v63, %v2511_v31  ;;  %v2510_v18 = vadd.f32 %v2351_v48, %v10833_v38  ;;  %v2635_v60 = vpop.f32.mrf.mxu1  ;;  %8572 = vmatpush3.msra.mxu1 %v6470_v22  ;;  %v6452_v22 = vld [vmem:[%s12509_s3 + $0x2e8] sm:$0xff]  ;;  %v12954_v48 = vld [vmem:[#allocation33_spill] sm:$0xff] }
 0x1b2   : > { %8446 = vmatprep.mubr.f32.mxu1 %v12952_v28  ;;  %v7888_v26 = vpop.f32.mrf.mxu0  ;;  %8493 = vmatprep.subr.mxu0 %v6453_v51  ;;  %v11221_v31 = vld [vmem:[%s10201_s9 + $0x48] sm:$0xff] }
 0x1b3   : > { %8367 = vmatmul.mubr.f32.gmra.mxu0 %v11210_v44  ;;  %v11213_v16 = vadd.f32 %v2635_v60, %v2510_v18  ;;  %v2513_v34 = vadd.f32 %v7888_v26, %v10845_v14  ;;  %v7968_v38 = vpop.f32.mrf.mxu1  ;;  %8447 = vmatmul.mubr.f32.gmra.mxu1 %v12953_v4  ;;  %v11232_v60 = vld [vmem:[%s10201_s9 + $0x50] sm:$0xff] }
 0x1b4   : > { %8494 = vmatpush3.msra.mxu0 %v6453_v51  ;;  %v2361_v42 = vpop.f32.mrf.mxu0  ;;  %8573 = vmatprep.subr.mxu1 %v6469_v20  ;;  %v6468_v51 = vld [vmem:[%s12509_s3 + $0x368] sm:$0xff] }
 0x1b5   : > { %8369 = vmatprep.mubr.f32.mxu0 %v11221_v31  ;;  %v11224_v63 = vadd.f32 %v7968_v38, %v2513_v34  ;;  %v2512_v46 = vadd.f32 %v2361_v42, %v10858_v56  ;;  %v2645_v14 = vpop.f32.mrf.mxu1  ;;  %8574 = vmatpush3.msra.mxu1 %v6469_v20  ;;  %v12955_v38 = vld [vmem:[#allocation35_spill] sm:$0xff]  ;;  %v6451_v20 = vld [vmem:[%s12509_s3 + $0x2e0] sm:$0xff] }
 0x1b6   : > { %8449 = vmatprep.mubr.f32.mxu1 %v12954_v48  ;;  %v7891_v18 = vpop.f32.mrf.mxu0  ;;  %8495 = vmatprep.subr.mxu0 %v6452_v22  ;;  %v11243_v48 = vld [vmem:[%s10201_s9 + $0x60] sm:$0xff] }
 0x1b7   : > { %8370 = vmatmul.mubr.f32.gmra.mxu0 %v11232_v60  ;;  %v11235_v26 = vadd.f32 %v2645_v14, %v2512_v46  ;;  %v2515_v34 = vadd.f32 %v7891_v18, %v10870_v5  ;;  %v7971_v56 = vpop.f32.mrf.mxu1  ;;  %8450 = vmatmul.mubr.f32.gmra.mxu1 %v12955_v38  ;;  %v12956_v14 = vld [vmem:[#allocation36_spill] sm:$0xff]  ;;  %v11254_v38 = vld [vmem:[%s10201_s9 + $0x68] sm:$0xff] }
 0x1b8   : > { %8496 = vmatpush3.msra.mxu0 %v6452_v22  ;;  %v2371_v42 = vpop.f32.mrf.mxu0  ;;  %8575 = vmatprep.subr.mxu1 %v6468_v51  ;;  %v6467_v22 = vld [vmem:[%s12509_s3 + $0x360] sm:$0xff] }
 0x1b9   : > { %8372 = vmatprep.mubr.f32.mxu0 %v11243_v48  ;;  %v11246_v4 = vadd.f32 %v7971_v56, %v2515_v34  ;;  %v2514_v46 = vadd.f32 %v2371_v42, %v10883_v41  ;;  %v2655_v5 = vpop.f32.mrf.mxu1  ;;  %8576 = vmatpush3.msra.mxu1 %v6468_v51  ;;  %v12957_v56 = vld [vmem:[#allocation38_spill] sm:$0xff]  ;;  %v6450_v51 = vld [vmem:[%s12509_s3 + $0x2d8] sm:$0xff] }
 0x1ba   : > { %8452 = vmatprep.mubr.f32.mxu1 %v12956_v14  ;;  %v7894_v18 = vpop.f32.mrf.mxu0  ;;  %8497 = vmatprep.subr.mxu0 %v6451_v20  ;;  %v11265_v14 = vld [vmem:[%s10201_s9 + $0x78] sm:$0xff] }
 0x1bb   : > { %8373 = vmatmul.mubr.f32.gmra.mxu0 %v11254_v38  ;;  %v11257_v28 = vadd.f32 %v2655_v5, %v2514_v46  ;;  %v2517_v34 = vadd.f32 %v7894_v18, %v10895_v36  ;;  %v7974_v41 = vpop.f32.mrf.mxu1  ;;  %8453 = vmatmul.mubr.f32.gmra.mxu1 %v12957_v56  ;;  %v12958_v5 = vld [vmem:[#allocation39_spill] sm:$0xff]  ;;  %v11276_v56 = vld [vmem:[%s10201_s9 + $0x80] sm:$0xff] }
 0x1bc   : > { %8498 = vmatpush3.msra.mxu0 %v6451_v20  ;;  %v2381_v42 = vpop.f32.mrf.mxu0  ;;  %8577 = vmatprep.subr.mxu1 %v6467_v22  ;;  %v6466_v20 = vld [vmem:[%s12509_s3 + $0x358] sm:$0xff] }
 0x1bd   : > { %8375 = vmatprep.mubr.f32.mxu0 %v11265_v14  ;;  %v11268_v59 = vadd.f32 %v7974_v41, %v2517_v34  ;;  %v2516_v46 = vadd.f32 %v2381_v42, %v10908_v50  ;;  %v2665_v36 = vpop.f32.mrf.mxu1  ;;  %8578 = vmatpush3.msra.mxu1 %v6467_v22  ;;  %v12959_v41 = vld [vmem:[#allocation41_spill] sm:$0xff]  ;;  %v6449_v22 = vld [vmem:[%s12509_s3 + $0x2d0] sm:$0xff] }
 0x1be   : > { %8455 = vmatprep.mubr.f32.mxu1 %v12958_v5  ;;  %v7897_v18 = vpop.f32.mrf.mxu0  ;;  %8499 = vmatprep.subr.mxu0 %v6450_v51  ;;  %v11287_v5 = vld [vmem:[%s10201_s9 + $0x90] sm:$0xff] }
 0x1bf   : > { %8376 = vmatmul.mubr.f32.gmra.mxu0 %v11276_v56  ;;  %v11279_v57 = vadd.f32 %v2665_v36, %v2516_v46  ;;  %v2519_v34 = vadd.f32 %v7897_v18, %v10920_v43  ;;  %v7977_v50 = vpop.f32.mrf.mxu1  ;;  %8456 = vmatmul.mubr.f32.gmra.mxu1 %v12959_v41  ;;  %v12960_v36 = vld [vmem:[#allocation42_spill] sm:$0xff]  ;;  %v11298_v41 = vld [vmem:[%s10201_s9 + $0x98] sm:$0xff] }
 0x1c0   : > { %8500 = vmatpush3.msra.mxu0 %v6450_v51  ;;  %v2391_v42 = vpop.f32.mrf.mxu0  ;;  %8579 = vmatprep.subr.mxu1 %v6466_v20  ;;  %v6465_v51 = vld [vmem:[%s12509_s3 + $0x350] sm:$0xff]  ;;  %12961 = vst [vmem:[#allocation57_spill] sm:$0xff] %v11298_v41 }
 0x1c1   : > { %8378 = vmatprep.mubr.f32.mxu0 %v11287_v5  ;;  %v11290_v52 = vadd.f32 %v7977_v50, %v2519_v34  ;;  %v2518_v46 = vadd.f32 %v2391_v42, %v10933_v61  ;;  %v2675_v43 = vpop.f32.mrf.mxu1  ;;  %8580 = vmatpush3.msra.mxu1 %v6466_v20  ;;  %v12962_v50 = vld [vmem:[#allocation44_spill] sm:$0xff]  ;;  %v6448_v20 = vld [vmem:[%s12509_s3 + $0x2c8] sm:$0xff] }
 0x1c2   : > { %8458 = vmatprep.mubr.f32.mxu1 %v12960_v36  ;;  %v7900_v18 = vpop.f32.mrf.mxu0  ;;  %8501 = vmatprep.subr.mxu0 %v6449_v22  ;;  %v11309_v36 = vld [vmem:[%s10201_s9 + $0xa8] sm:$0xff] }
 0x1c3   : > { %8379 = vmatmul.mubr.f32.gmra.mxu0 %v11298_v41  ;;  %v11301_v6 = vadd.f32 %v2675_v43, %v2518_v46  ;;  %v2521_v34 = vadd.f32 %v7900_v18, %v10945_v10  ;;  %v7980_v61 = vpop.f32.mrf.mxu1  ;;  %8459 = vmatmul.mubr.f32.gmra.mxu1 %v12962_v50  ;;  %12963 = vst [vmem:[#allocation58_spill] sm:$0xff] %v11309_v36  ;;  %v12964_v43 = vld [vmem:[#allocation45_spill] sm:$0xff]  ;;  %v11320_v50 = vld [vmem:[%s10201_s9 + $0xb0] sm:$0xff] }
 0x1c4   : > { %8502 = vmatpush3.msra.mxu0 %v6449_v22  ;;  %v2401_v42 = vpop.f32.mrf.mxu0  ;;  %8581 = vmatprep.subr.mxu1 %v6465_v51  ;;  %v6464_v22 = vld [vmem:[%s12509_s3 + $0x348] sm:$0xff]  ;;  %12965 = vst [vmem:[#allocation64_spill] sm:$0xff] %v11320_v50 }
 0x1c5   : > { %8381 = vmatprep.mubr.f32.mxu0 %v11309_v36  ;;  %v11312_v41 = vadd.f32 %v7980_v61, %v2521_v34  ;;  %v2520_v46 = vadd.f32 %v2401_v42, %v10958_v1  ;;  %v2685_v10 = vpop.f32.mrf.mxu1  ;;  %8582 = vmatpush3.msra.mxu1 %v6465_v51  ;;  %v12966_v61 = vld [vmem:[#allocation47_spill] sm:$0xff]  ;;  %v6447_v51 = vld [vmem:[%s12509_s3 + $0x2c0] sm:$0xff] }
 0x1c6   : > { %8461 = vmatprep.mubr.f32.mxu1 %v12964_v43  ;;  %v7903_v18 = vpop.f32.mrf.mxu0  ;;  %8503 = vmatprep.subr.mxu0 %v6448_v20  ;;  %v11331_v43 = vld [vmem:[%s10201_s9 + $0xc0] sm:$0xff] }
 0x1c7   : > { %8382 = vmatmul.mubr.f32.gmra.mxu0 %v11320_v50  ;;  %v11323_v36 = vadd.f32 %v2685_v10, %v2520_v46  ;;  %v2523_v34 = vadd.f32 %v7903_v18, %v10970_v35  ;;  %v7983_v1 = vpop.f32.mrf.mxu1  ;;  %8462 = vmatmul.mubr.f32.gmra.mxu1 %v12966_v61  ;;  %12967 = vst [vmem:[#allocation60_spill] sm:$0xff] %v11331_v43  ;;  %v12968_v10 = vld [vmem:[#allocation48_spill] sm:$0xff]  ;;  %v11342_v61 = vld [vmem:[%s10201_s9 + $0xc8] sm:$0xff] }
 0x1c8   : > { %8504 = vmatpush3.msra.mxu0 %v6448_v20  ;;  %v2411_v42 = vpop.f32.mrf.mxu0  ;;  %8583 = vmatprep.subr.mxu1 %v6464_v22  ;;  %v6463_v20 = vld [vmem:[%s12509_s3 + $0x340] sm:$0xff]  ;;  %12969 = vst [vmem:[#allocation66_spill] sm:$0xff] %v11342_v61 }
 0x1c9   : > { %8384 = vmatprep.mubr.f32.mxu0 %v11331_v43  ;;  %v11334_v50 = vadd.f32 %v7983_v1, %v2523_v34  ;;  %v2522_v46 = vadd.f32 %v2411_v42, %v10983_v11  ;;  %v2695_v35 = vpop.f32.mrf.mxu1  ;;  %8584 = vmatpush3.msra.mxu1 %v6464_v22  ;;  %v12970_v1 = vld [vmem:[#allocation50_spill] sm:$0xff]  ;;  %v6446_v22 = vld [vmem:[%s12509_s3 + $0x2b8] sm:$0xff] }
 0x1ca   : > { %8464 = vmatprep.mubr.f32.mxu1 %v12968_v10  ;;  %v7906_v18 = vpop.f32.mrf.mxu0  ;;  %8505 = vmatprep.subr.mxu0 %v6447_v51  ;;  %v11353_v10 = vld [vmem:[%s10201_s9 + $0xd8] sm:$0xff] }
 0x1cb   : > { %8385 = vmatmul.mubr.f32.gmra.mxu0 %v11342_v61  ;;  %v11345_v43 = vadd.f32 %v2695_v35, %v2522_v46  ;;  %v2525_v34 = vadd.f32 %v7906_v18, %v10995_v55  ;;  %v7986_v11 = vpop.f32.mrf.mxu1  ;;  %8465 = vmatmul.mubr.f32.gmra.mxu1 %v12970_v1  ;;  %12971 = vst [vmem:[#allocation62_spill] sm:$0xff] %v11353_v10  ;;  %v12972_v35 = vld [vmem:[#allocation51_spill] sm:$0xff]  ;;  %v11364_v1 = vld [vmem:[%s10201_s9 + $0xe0] sm:$0xff] }
 0x1cc   : > { %8506 = vmatpush3.msra.mxu0 %v6447_v51  ;;  %v2421_v42 = vpop.f32.mrf.mxu0  ;;  %8585 = vmatprep.subr.mxu1 %v6463_v20  ;;  %v6462_v51 = vld [vmem:[%s12509_s3 + $0x338] sm:$0xff]  ;;  %12973 = vst [vmem:[#allocation63_spill] sm:$0xff] %v11364_v1 }
 0x1cd   : > { %8387 = vmatprep.mubr.f32.mxu0 %v11353_v10  ;;  %v11356_v61 = vadd.f32 %v7986_v11, %v2525_v34  ;;  %v2524_v46 = vadd.f32 %v2421_v42, %v11008_v21  ;;  %v2705_v55 = vpop.f32.mrf.mxu1  ;;  %8586 = vmatpush3.msra.mxu1 %v6463_v20  ;;  %v12974_v11 = vld [vmem:[#allocation54_spill] sm:$0xff]  ;;  %v6445_v20 = vld [vmem:[%s12509_s3 + $0x2b0] sm:$0xff] }
 0x1ce   : > { %8467 = vmatprep.mubr.f32.mxu1 %v12972_v35  ;;  %v7909_v18 = vpop.f32.mrf.mxu0  ;;  %8507 = vmatprep.subr.mxu0 %v6446_v22  ;;  %v11375_v35 = vld [vmem:[%s10201_s9 + $0xf0] sm:$0xff] }
 0x1cf   : > { %8388 = vmatmul.mubr.f32.gmra.mxu0 %v11364_v1  ;;  %v11367_v10 = vadd.f32 %v2705_v55, %v2524_v46  ;;  %v2527_v34 = vadd.f32 %v7909_v18, %v11020_v49  ;;  %v7989_v21 = vpop.f32.mrf.mxu1  ;;  %8468 = vmatmul.mubr.f32.gmra.mxu1 %v12974_v11  ;;  %12975 = vst [vmem:[#allocation69_spill] sm:$0xff] %v11375_v35  ;;  %v12976_v55 = vld [vmem:[#allocation56_spill] sm:$0xff]  ;;  %v11386_v11 = vld [vmem:[%s10201_s9 + $0xf8] sm:$0xff] }
 0x1d0   : > { %8508 = vmatpush3.msra.mxu0 %v6446_v22  ;;  %v2431_v42 = vpop.f32.mrf.mxu0  ;;  %8587 = vmatprep.subr.mxu1 %v6462_v51  ;;  %v6461_v22 = vld [vmem:[%s12509_s3 + $0x330] sm:$0xff]  ;;  %12977 = vst [vmem:[#allocation65_spill] sm:$0xff] %v11386_v11 }
 0x1d1   : > { %8390 = vmatprep.mubr.f32.mxu0 %v11375_v35  ;;  %v11378_v1 = vadd.f32 %v7989_v21, %v2527_v34  ;;  %v2526_v46 = vadd.f32 %v2431_v42, %v11033_v33  ;;  %v2715_v49 = vpop.f32.mrf.mxu1  ;;  %8588 = vmatpush3.msra.mxu1 %v6462_v51  ;;  %v12978_v21 = vld [vmem:[#allocation25_spill] sm:$0xff]  ;;  %v6444_v51 = vld [vmem:[%s12509_s3 + $0x2a8] sm:$0xff] }
 0x1d2   : > { %8470 = vmatprep.mubr.f32.mxu1 %v12976_v55  ;;  %v7912_v18 = vpop.f32.mrf.mxu0  ;;  %8509 = vmatprep.subr.mxu0 %v6445_v20  ;;  %v11397_v55 = vld [vmem:[%s10201_s9 + $0x108] sm:$0xff] }
 0x1d3   : > { %8391 = vmatmul.mubr.f32.gmra.mxu0 %v11386_v11  ;;  %v11389_v35 = vadd.f32 %v2715_v49, %v2526_v46  ;;  %v2529_v34 = vadd.f32 %v7912_v18, %v11045_v37  ;;  %v7992_v33 = vpop.f32.mrf.mxu1  ;;  %8471 = vmatmul.mubr.f32.gmra.mxu1 %v12978_v21  ;;  %12979 = vst [vmem:[#allocation70_spill] sm:$0xff] %v11397_v55  ;;  %v12980_v49 = vld [vmem:[#allocation26_spill] sm:$0xff]  ;;  %v11408_v21 = vld [vmem:[%s10201_s9 + $0x110] sm:$0xff] }
 0x1d4   : > { %8510 = vmatpush3.msra.mxu0 %v6445_v20  ;;  %v2441_v42 = vpop.f32.mrf.mxu0  ;;  %8589 = vmatprep.subr.mxu1 %v6461_v22  ;;  %v6460_v20 = vld [vmem:[%s12509_s3 + $0x328] sm:$0xff]  ;;  %12981 = vst [vmem:[#allocation67_spill] sm:$0xff] %v11408_v21 }
 0x1d5   : > { %8393 = vmatprep.mubr.f32.mxu0 %v11397_v55  ;;  %v11400_v11 = vadd.f32 %v7992_v33, %v2529_v34  ;;  %v2528_v46 = vadd.f32 %v2441_v42, %v11058_v39  ;;  %v2725_v37 = vpop.f32.mrf.mxu1  ;;  %8590 = vmatpush3.msra.mxu1 %v6461_v22  ;;  %v12982_v33 = vld [vmem:[#allocation27_spill] sm:$0xff]  ;;  %v6443_v22 = vld [vmem:[%s12509_s3 + $0x2a0] sm:$0xff] }
 0x1d6   : > { %8473 = vmatprep.mubr.f32.mxu1 %v12980_v49  ;;  %v7915_v18 = vpop.f32.mrf.mxu0  ;;  %8511 = vmatprep.subr.mxu0 %v6444_v51  ;;  %v11419_v49 = vld [vmem:[%s10201_s9 + $0x120] sm:$0xff] }
 0x1d7   : > { %8394 = vmatmul.mubr.f32.gmra.mxu0 %v11408_v21  ;;  %v11411_v55 = vadd.f32 %v2725_v37, %v2528_v46  ;;  %v2531_v34 = vadd.f32 %v7915_v18, %v11070_v45  ;;  %v7995_v39 = vpop.f32.mrf.mxu1  ;;  %8474 = vmatmul.mubr.f32.gmra.mxu1 %v12982_v33  ;;  %12983 = vst [vmem:[#allocation68_spill] sm:$0xff] %v11419_v49  ;;  %v12984_v37 = vld [vmem:[#allocation28_spill] sm:$0xff]  ;;  %v11430_v33 = vld [vmem:[%s10201_s9 + $0x128] sm:$0xff] }
 0x1d8   : > { %8512 = vmatpush3.msra.mxu0 %v6444_v51  ;;  %v2451_v42 = vpop.f32.mrf.mxu0  ;;  %8591 = vmatprep.subr.mxu1 %v6460_v20  ;;  %v6459_v51 = vld [vmem:[%s12509_s3 + $0x320] sm:$0xff]  ;;  %12985 = vst [vmem:[#allocation6_spill] sm:$0xff] %v11430_v33 }
 0x1d9   : > { %8396 = vmatprep.mubr.f32.mxu0 %v11419_v49  ;;  %v11422_v21 = vadd.f32 %v7995_v39, %v2531_v34  ;;  %v2530_v46 = vadd.f32 %v2451_v42, %v11083_v40  ;;  %v2735_v45 = vpop.f32.mrf.mxu1  ;;  %8592 = vmatpush3.msra.mxu1 %v6460_v20  ;;  %v12987_v39 = vld [vmem:[#allocation29_spill] sm:$0xff] }
 0x1da   : > { %8476 = vmatprep.mubr.f32.mxu1 %v12984_v37  ;;  %v7918_v18 = vpop.f32.mrf.mxu0  ;;  %8513 = vmatprep.subr.mxu0 %v6443_v22  ;;  %v6442_v20 = vld [vmem:[%s12509_s3 + $0x298] sm:$0xff] }
 0x1db   : > { %8397 = vmatmul.mubr.f32.gmra.mxu0 %v11430_v33  ;;  %v11433_v49 = vadd.f32 %v2735_v45, %v2530_v46  ;;  %v2533_v34 = vadd.f32 %v7918_v18, %v11095_v2  ;;  %v7998_v40 = vpop.f32.mrf.mxu1  ;;  %8477 = vmatmul.mubr.f32.gmra.mxu1 %v12987_v39  ;;  %v11441_v37 = vld [vmem:[%s10201_s9 + $0x138] sm:$0xff]  ;;  %v12990_v45 = vld [vmem:[#allocation30_spill] sm:$0xff] }
 0x1dc   : > { %8514 = vmatpush3.msra.mxu0 %v6443_v22  ;;  %v2461_v42 = vpop.f32.mrf.mxu0  ;;  %8593 = vmatprep.subr.mxu1 %v6459_v51  ;;  %12988 = vst [vmem:[#allocation5_spill] sm:$0xff] %v11441_v37  ;;  %v6458_v22 = vld [vmem:[%s12509_s3 + $0x318] sm:$0xff]  ;;  %v11452_v39 = vld [vmem:[%s10201_s9 + $0x140] sm:$0xff] }
 0x1dd   : > { %12986 = vst [vmem:[#allocation4_spill] sm:$0xff] %v11433_v49  ;;  %8399 = vmatprep.mubr.f32.mxu0 %v11441_v37  ;;  %v11444_v33 = vadd.f32 %v7998_v40, %v2533_v34  ;;  %v2532_v2 = vadd.f32 %v2461_v42, %v11108_v23  ;;  %v2745_v46 = vpop.f32.mrf.mxu1  ;;  %8594 = vmatpush3.msra.mxu1 %v6459_v51  ;;  %12991 = vst [vmem:[#allocation8_spill] sm:$0xff] %v11452_v39  ;;  %v12993_v42 = vld [vmem:[#allocation31_spill] sm:$0xff]  ;;  %v6441_v51 = vld [vmem:[%s12509_s3 + $0x290] sm:$0xff] }
 0x1de   : > { %8479 = vmatprep.mubr.f32.mxu1 %v12990_v45  ;;  %v7921_v18 = vpop.f32.mrf.mxu0  ;;  %8515 = vmatprep.subr.mxu0 %v6442_v20  ;;  %v11463_v45 = vld [vmem:[%s10201_s9 + $0x180] sm:$0xff]  ;;  %v11483_v49 = vld [vmem:[%s10201_s9 + $0x158] sm:$0xff] }
 0x1df   : > { %12989 = vst [vmem:[#allocation71_spill] sm:$0xff] %v11444_v33  ;;  %8400 = vmatmul.mubr.f32.gmra.mxu0 %v11452_v39  ;;  %v11455_v34 = vadd.f32 %v2745_v46, %v2532_v2  ;;  %v2535_v23 = vadd.f32 %v7921_v18, %v11120_v32  ;;  %v8001_v40 = vpop.f32.mrf.mxu1  ;;  %8480 = vmatmul.mubr.f32.gmra.mxu1 %v12993_v42  ;;  %v11466_v33 = vld [vmem:[%s10201_s9 + $0x188] sm:$0xff]  ;;  %v11469_v2 = vld [vmem:[%s10201_s9 + $0x150] sm:$0xff]  ;;  %12998 = vst [vmem:[#allocation72_spill] sm:$0xff] %v11483_v49 }
 0x1e0   : > { %8516 = vmatpush3.msra.mxu0 %v6442_v20  ;;  %v2471_v39 = vpop.f32.mrf.mxu0  ;;  %8595 = vmatprep.subr.mxu1 %v6458_v22  ;;  %12994 = vst [vmem:[#allocation12_spill] sm:$0xff] %v11469_v2  ;;  %v12996_v18 = vld [vmem:[#allocation32_spill] sm:$0xff] }
 0x1e1   : > { %12992 = vst [vmem:[#allocation7_spill] sm:$0xff] %v11455_v34  ;;  %8402 = vmatprep.mubr.f32.mxu0 %v11469_v2  ;;  %v11472_v32 = vadd.f32 %v8001_v40, %v2535_v23  ;;  %v2534_v46 = vadd.f32 %v2471_v39, %v11133_v7  ;;  %v2755_v20 = vpop.f32.mrf.mxu1  ;;  %8596 = vmatpush3.msra.mxu1 %v6458_v22  ;;  %v6457_v42 = vld [vmem:[%s12509_s3 + $0x310] sm:$0xff]  ;;  %v4467_v23 = vrot.slane %v11463_v45, 1  ;;  %v4468_v7 = vrot.slane %v11466_v33, 1 }
 0x1e2   : > { %8482 = vmatprep.mubr.f32.mxu1 %v12996_v18  ;;  %v11480_v34 = vld [vmem:[%s10201_s9 + $0x190] sm:$0x3]  ;;  %v7924_v37 = vpop.f32.mrf.mxu0  ;;  %8517 = vmatprep.subr.mxu0 %v6441_v51  ;;  %v13000_v18 = vld [vmem:[#allocation9_spill] sm:$0xff] }
 0x1e3   : > { %12995 = vst [vmem:[#allocation19_spill] sm:$0xff] %v11472_v32  ;;  %12997 = vst [vmem:[#allocation21_spill] sm:$0xff] %v11480_v34  ;;  %8403 = vmatmul.mubr.f32.gmra.mxu0 %v11483_v49  ;;  %v11488_v39 = vadd.f32 %v2755_v20, %v2534_v46  ;;  %v2537_v22 = vadd.f32 %v7924_v37, %v11145_v12  ;;  %v8004_v40 = vpop.f32.mrf.mxu1  ;;  %8483 = vmatmul.mubr.f32.gmra.mxu1 %v13000_v18  ;;  %v6440_v32 = vld [vmem:[%s12509_s3 + $0x288] sm:$0xff]  ;;  %v4470_v46 = vrot.slane %v11480_v34, 1 }
 0x1e4   : > { %8518 = vmatpush3.msra.mxu0 %v6441_v51  ;;  %v2481_v2 = vpop.f32.mrf.mxu0  ;;  %8597 = vmatprep.subr.mxu1 %v6457_v42  ;;  %v11496_v49 = vld [vmem:[%s10201_s9 + $0x168] sm:$0xff]  ;;  %v11512_v34 = vsel %vm462_vm1, %v4467_v23, %v4468_v7 }
 0x1e5   : > { %12999 = vst [vmem:[#allocation73_spill] sm:$0xff] %v11488_v39  ;;  %8405 = vmatprep.mubr.f32.mxu0 %v11496_v49  ;;  %v11500_v20 = vadd.f32 %v8004_v40, %v2537_v22  ;;  %v2536_v12 = vadd.f32 %v2481_v2, %v11156_v3  ;;  %v2765_v37 = vpop.f32.mrf.mxu1  ;;  %8598 = vmatpush3.msra.mxu1 %v6457_v42  ;;  %v6456_v51 = vld [vmem:[%s12509_s3 + $0x308] sm:$0xff]  ;;  %v11508_v39 = vld [vmem:[%s10201_s9 + $0x170] sm:$0xff]  ;;  %13001 = vst [vmem:[#allocation74_spill] sm:$0xff] %v11512_v34 }
 0x1e6   : > { %8485 = vmatprep.mubr.f32.mxu1 %v10761_v19  ;;  %v7927_v18 = vpop.f32.mrf.mxu0  ;;  %8519 = vmatprep.subr.mxu0 %v6440_v32  ;;  %v6439_v2 = vld [vmem:[%s12509_s3 + $0x280] sm:$0xff]  ;;  %v11523_v19 = vsel %vm462_vm1, %v4468_v7, %v4470_v46 }
 0x1e7   : > { %8406 = vmatmul.mubr.f32.gmra.mxu0 %v11508_v39  ;;  %v11514_v22 = vadd.f32 %v2765_v37, %v2536_v12  ;;  %v2539_v3 = vadd.f32 %v7927_v18, %v11167_v9  ;;  %v8007_v42 = vpop.f32.mrf.mxu1  ;;  %8486 = vmatmul.mubr.f32.gmra.mxu1 %v10774_v8  ;;  %13002 = vst [vmem:[#allocation75_spill] sm:$0xff] %v11523_v19 }
 0x1e8   : > { %8520 = vmatpush3.msra.mxu0 %v6440_v32  ;;  %v2491_v40 = vpop.f32.mrf.mxu0  ;;  %8599 = vmatprep.subr.mxu1 %v6456_v51  ;;  %v6455_v32 = vld [vmem:[%s12509_s3 + $0x300] sm:$0xff] }
 0x1e9   : > { %8408 = vmatprep.mubr.f32.mxu0 %v11463_v45  ;;  %v11525_v23 = vadd.f32 %v8007_v42, %v2539_v3  ;;  %v2538_v12 = vadd.f32 %v2491_v40, %v11175_v54  ;;  %v2775_v9 = vpop.f32.mrf.mxu1  ;;  %8600 = vmatpush3.msra.mxu1 %v6456_v51  ;;  %v6486_v54 = vld [vmem:[%s12509_s3 + $0x3f8] sm:$0xff] }
 0x1ea   : > { %8488 = vmatprep.mubr.f32.mxu1 %v11512_v34  ;;  %v7930_v18 = vpop.f32.mrf.mxu0  ;;  %8521 = vmatprep.subr.mxu0 %v6439_v2 }
 0x1eb   : > { %8409 = vmatmul.mubr.f32.gmra.mxu0 %v11466_v33  ;;  %v11533_v37 = vadd.f32 %v2775_v9, %v2538_v12  ;;  %v2541_v7 = vadd.f32 %v7930_v18, %v11183_v15  ;;  %v8010_v46 = vpop.f32.mrf.mxu1  ;;  %8489 = vmatmul.mubr.f32.gmra.mxu1 %v11523_v19  ;;  %v6502_v15 = vld [vmem:[%s12509_s3 + $0x478] sm:$0xff] }
 0x1ec   : > { %8522 = vmatpush3.msra.mxu0 %v6439_v2  ;;  %v2501_v51 = vpop.f32.mrf.mxu0  ;;  %8601 = vmatprep.subr.mxu1 %v6455_v32 }
 0x1ed   : > { %8523 = vmatprep.mubr.f32.mxu0 %v10805_v29  ;;  %v11541_v3 = vadd.f32 %v8010_v46, %v2541_v7  ;;  %v2540_v42 = vadd.f32 %v2501_v51, %v11191_v27  ;;  %v2785_v40 = vpop.f32.mrf.mxu1  ;;  %8602 = vmatpush3.msra.mxu1 %v6455_v32  ;;  %v6485_v27 = vld [vmem:[%s12509_s3 + $0x3f0] sm:$0xff] }
 0x1ee   : > { %8603 = vmatprep.mubr.f32.mxu1 %v11199_v17  ;;  %v8045_v2 = vpop.f32.mrf.mxu0  ;;  %8651 = vmatprep.subr.mxu0 %v6486_v54 }
 0x1ef   : > { %8524 = vmatmul.mubr.f32.vlgmr.msra.gmra.mxu0 %v10817_v47  ;;  %v11549_v12 = vadd.f32 %v2785_v40, %v2540_v42  ;;  %v11552_v29 = vadd.f32 %v8045_v2, %v11202_v24  ;;  %v11554_v9 = vpop.f32.mrf.mxu1  ;;  %8604 = vmatmul.mubr.f32.vlgmr.msra.gmra.mxu1 %v11210_v44  ;;  %v6501_v24 = vld [vmem:[%s12509_s3 + $0x470] sm:$0xff] }
 0x1f0   : > { %8652 = vmatpush3.msra.mxu0 %v6486_v54  ;;  %v2916_v17 = vpop.f32.mrf.mxu0  ;;  %8731 = vmatprep.subr.mxu1 %v6502_v15 }
 0x1f1   : > { %13003 = vst [vmem:[#allocation76_spill] sm:$0xff] %v11552_v29  ;;  %8526 = vmatprep.mubr.f32.mxu0 %v10829_v25  ;;  %v11562_v47 = vadd.f32 %v2916_v17, %v11213_v16  ;;  %v11564_v32 = vpop.f32.mrf.mxu1  ;;  %8732 = vmatpush3.msra.mxu1 %v6502_v15  ;;  %v6484_v16 = vld [vmem:[%s12509_s3 + $0x3e8] sm:$0xff] }
 0x1f2   : > { %8606 = vmatprep.mubr.f32.mxu1 %v11221_v31  ;;  %v8048_v44 = vpop.f32.mrf.mxu0  ;;  %8653 = vmatprep.subr.mxu0 %v6485_v27 }
 0x1f3   : > { %13004 = vst [vmem:[#allocation77_spill] sm:$0xff] %v11562_v47  ;;  %8527 = vmatmul.mubr.f32.gmra.mxu0 %v10842_v0  ;;  %v11572_v18 = vadd.f32 %v8048_v44, %v11224_v63  ;;  %v11574_v7 = vpop.f32.mrf.mxu1  ;;  %8607 = vmatmul.mubr.f32.gmra.mxu1 %v11232_v60  ;;  %v6500_v63 = vld [vmem:[%s12509_s3 + $0x468] sm:$0xff]  ;;  %v13011_v44 = vld [vmem:[#allocation10_spill] sm:$0xff] }
 0x1f4   : > { %8654 = vmatpush3.msra.mxu0 %v6485_v27  ;;  %v2926_v31 = vpop.f32.mrf.mxu0  ;;  %8733 = vmatprep.subr.mxu1 %v6501_v24 }
 0x1f5   : > { %13005 = vst [vmem:[#allocation78_spill] sm:$0xff] %v11572_v18  ;;  %8529 = vmatprep.mubr.f32.mxu0 %v10854_v13  ;;  %v11582_v46 = vadd.f32 %v2926_v31, %v11235_v26  ;;  %v11584_v54 = vpop.f32.mrf.mxu1  ;;  %8734 = vmatpush3.msra.mxu1 %v6501_v24 }
 0x1f6   : > { %8609 = vmatprep.mubr.f32.mxu1 %v11243_v48  ;;  %v8051_v60 = vpop.f32.mrf.mxu0  ;;  %8655 = vmatprep.subr.mxu0 %v6484_v16  ;;  %v6483_v48 = vld [vmem:[%s12509_s3 + $0x3e0] sm:$0xff] }
 0x1f7   : > { %13006 = vst [vmem:[#allocation79_spill] sm:$0xff] %v11582_v46  ;;  %8530 = vmatmul.mubr.f32.gmra.mxu0 %v10867_v58  ;;  %v11592_v51 = vadd.f32 %v8051_v60, %v11246_v4  ;;  %v11594_v42 = vpop.f32.mrf.mxu1  ;;  %8610 = vmatmul.mubr.f32.gmra.mxu1 %v11254_v38  ;;  %v6499_v4 = vld [vmem:[%s12509_s3 + $0x460] sm:$0xff]  ;;  %v13014_v60 = vld [vmem:[#allocation11_spill] sm:$0xff] }
 0x1f8   : > { %8656 = vmatpush3.msra.mxu0 %v6484_v16  ;;  %v2936_v26 = vpop.f32.mrf.mxu0  ;;  %8735 = vmatprep.subr.mxu1 %v6500_v63 }
 0x1f9   : > { %13007 = vst [vmem:[#allocation80_spill] sm:$0xff] %v11592_v51  ;;  %8532 = vmatprep.mubr.f32.mxu0 %v10879_v30  ;;  %v11602_v40 = vadd.f32 %v2936_v26, %v11257_v28  ;;  %v11604_v15 = vpop.f32.mrf.mxu1  ;;  %8736 = vmatpush3.msra.mxu1 %v6500_v63  ;;  %v6482_v28 = vld [vmem:[%s12509_s3 + $0x3d8] sm:$0xff] }
 0x1fa   : > { %8612 = vmatprep.mubr.f32.mxu1 %v11265_v14  ;;  %v8054_v38 = vpop.f32.mrf.mxu0  ;;  %8657 = vmatprep.subr.mxu0 %v6483_v48 }
 0x1fb   : > { %13008 = vst [vmem:[#allocation81_spill] sm:$0xff] %v11602_v40  ;;  %8533 = vmatmul.mubr.f32.gmra.mxu0 %v10892_v53  ;;  %v11612_v2 = vadd.f32 %v8054_v38, %v11268_v59  ;;  %v11614_v27 = vpop.f32.mrf.mxu1  ;;  %8613 = vmatmul.mubr.f32.gmra.mxu1 %v11276_v56  ;;  %v6498_v59 = vld [vmem:[%s12509_s3 + $0x458] sm:$0xff] }
 0x1fc   : > { %8658 = vmatpush3.msra.mxu0 %v6483_v48  ;;  %v2946_v14 = vpop.f32.mrf.mxu0  ;;  %8737 = vmatprep.subr.mxu1 %v6499_v4 }
 0x1fd   : > { %13009 = vst [vmem:[#allocation82_spill] sm:$0xff] %v11612_v2  ;;  %8535 = vmatprep.mubr.f32.mxu0 %v10904_v62  ;;  %v11622_v17 = vadd.f32 %v2946_v14, %v11279_v57  ;;  %v11624_v24 = vpop.f32.mrf.mxu1  ;;  %8738 = vmatpush3.msra.mxu1 %v6499_v4  ;;  %v13013_v57 = vld [vmem:[#allocation57_spill] sm:$0xff]  ;;  %v6497_v4 = vld [vmem:[%s12509_s3 + $0x450] sm:$0xff] }
 0x1fe   : > { %8615 = vmatprep.mubr.f32.mxu1 %v11287_v5  ;;  %v8057_v56 = vpop.f32.mrf.mxu0  ;;  %8659 = vmatprep.subr.mxu0 %v6482_v28  ;;  %v6481_v5 = vld [vmem:[%s12509_s3 + $0x3d0] sm:$0xff] }
 0x1ff   : > { %13010 = vst [vmem:[#allocation83_spill] sm:$0xff] %v11622_v17  ;;  %8536 = vmatmul.mubr.f32.gmra.mxu0 %v13011_v44  ;;  %v11632_v16 = vadd.f32 %v8057_v56, %v11290_v52  ;;  %v11634_v31 = vpop.f32.mrf.mxu1  ;;  %8616 = vmatmul.mubr.f32.gmra.mxu1 %v13013_v57  ;;  %v13016_v52 = vld [vmem:[#allocation58_spill] sm:$0xff] }
 0x200   : > { %8660 = vmatpush3.msra.mxu0 %v6482_v28  ;;  %v2956_v63 = vpop.f32.mrf.mxu0  ;;  %8739 = vmatprep.subr.mxu1 %v6498_v59  ;;  %v13017_v28 = vld [vmem:[#allocation14_spill] sm:$0xff] }
 0x201   : > { %13012 = vst [vmem:[#allocation10_spill] sm:$0xff] %v11632_v16  ;;  %8538 = vmatprep.mubr.f32.mxu0 %v13014_v60  ;;  %v11642_v48 = vadd.f32 %v2956_v63, %v11301_v6  ;;  %v11644_v26 = vpop.f32.mrf.mxu1  ;;  %8740 = vmatpush3.msra.mxu1 %v6498_v59  ;;  %v13019_v6 = vld [vmem:[#allocation64_spill] sm:$0xff]  ;;  %v6480_v59 = vld [vmem:[%s12509_s3 + $0x3c8] sm:$0xff]  ;;  %v13020_v63 = vld [vmem:[#allocation13_spill] sm:$0xff] }
 0x202   : > { %8618 = vmatprep.mubr.f32.mxu1 %v13016_v52  ;;  %v8060_v38 = vpop.f32.mrf.mxu0  ;;  %8661 = vmatprep.subr.mxu0 %v6481_v5 }
 0x203   : > { %13015 = vst [vmem:[#allocation57_spill] sm:$0xff] %v11642_v48  ;;  %8539 = vmatmul.mubr.f32.gmra.mxu0 %v13017_v28  ;;  %v11652_v14 = vadd.f32 %v8060_v38, %v11312_v41  ;;  %v11654_v56 = vpop.f32.mrf.mxu1  ;;  %8619 = vmatmul.mubr.f32.gmra.mxu1 %v13019_v6  ;;  %v13022_v41 = vld [vmem:[#allocation60_spill] sm:$0xff]  ;;  %v13023_v6 = vld [vmem:[#allocation15_spill] sm:$0xff] }
 0x204   : > { %8662 = vmatpush3.msra.mxu0 %v6481_v5  ;;  %v2966_v57 = vpop.f32.mrf.mxu0  ;;  %8741 = vmatprep.subr.mxu1 %v6497_v4  ;;  %v6496_v5 = vld [vmem:[%s12509_s3 + $0x448] sm:$0xff] }
 0x205   : > { %13018 = vst [vmem:[#allocation11_spill] sm:$0xff] %v11652_v14  ;;  %8541 = vmatprep.mubr.f32.mxu0 %v13020_v63  ;;  %v11662_v52 = vadd.f32 %v2966_v57, %v11323_v36  ;;  %v11664_v48 = vpop.f32.mrf.mxu1  ;;  %8742 = vmatpush3.msra.mxu1 %v6497_v4  ;;  %v13025_v36 = vld [vmem:[#allocation66_spill] sm:$0xff] }
 0x206   : > { %8621 = vmatprep.mubr.f32.mxu1 %v13022_v41  ;;  %v8063_v38 = vpop.f32.mrf.mxu0  ;;  %8663 = vmatprep.subr.mxu0 %v6480_v59  ;;  %v6479_v4 = vld [vmem:[%s12509_s3 + $0x3c0] sm:$0xff]  ;;  %v13026_v41 = vld [vmem:[#allocation16_spill] sm:$0xff] }
 0x207   : > { %13021 = vst [vmem:[#allocation58_spill] sm:$0xff] %v11662_v52  ;;  %8542 = vmatmul.mubr.f32.gmra.mxu0 %v13023_v6  ;;  %v11672_v14 = vadd.f32 %v8063_v38, %v11334_v50  ;;  %v11674_v16 = vpop.f32.mrf.mxu1  ;;  %8622 = vmatmul.mubr.f32.gmra.mxu1 %v13025_v36  ;;  %v13028_v50 = vld [vmem:[#allocation62_spill] sm:$0xff]  ;;  %v13029_v36 = vld [vmem:[#allocation17_spill] sm:$0xff] }
 0x208   : > { %8664 = vmatpush3.msra.mxu0 %v6480_v59  ;;  %v2976_v57 = vpop.f32.mrf.mxu0  ;;  %8743 = vmatprep.subr.mxu1 %v6496_v5  ;;  %v6495_v59 = vld [vmem:[%s12509_s3 + $0x440] sm:$0xff] }
 0x209   : > { %13024 = vst [vmem:[#allocation14_spill] sm:$0xff] %v11672_v14  ;;  %8544 = vmatprep.mubr.f32.mxu0 %v13026_v41  ;;  %v11682_v52 = vadd.f32 %v2976_v57, %v11345_v43  ;;  %v11684_v17 = vpop.f32.mrf.mxu1  ;;  %8744 = vmatpush3.msra.mxu1 %v6496_v5  ;;  %v13031_v43 = vld [vmem:[#allocation63_spill] sm:$0xff]  ;;  %v6478_v5 = vld [vmem:[%s12509_s3 + $0x3b8] sm:$0xff] }
 0x20a   : > { %8624 = vmatprep.mubr.f32.mxu1 %v13028_v50  ;;  %v8066_v38 = vpop.f32.mrf.mxu0  ;;  %8665 = vmatprep.subr.mxu0 %v6479_v4  ;;  %v13032_v50 = vld [vmem:[#allocation18_spill] sm:$0xff] }
 0x20b   : > { %13027 = vst [vmem:[#allocation64_spill] sm:$0xff] %v11682_v52  ;;  %8545 = vmatmul.mubr.f32.gmra.mxu0 %v13029_v36  ;;  %v11692_v14 = vadd.f32 %v8066_v38, %v11356_v61  ;;  %v11694_v2 = vpop.f32.mrf.mxu1  ;;  %8625 = vmatmul.mubr.f32.gmra.mxu1 %v13031_v43  ;;  %v13034_v61 = vld [vmem:[#allocation69_spill] sm:$0xff]  ;;  %v13035_v43 = vld [vmem:[#allocation20_spill] sm:$0xff] }
 0x20c   : > { %8666 = vmatpush3.msra.mxu0 %v6479_v4  ;;  %v2986_v57 = vpop.f32.mrf.mxu0  ;;  %8745 = vmatprep.subr.mxu1 %v6495_v59  ;;  %v6494_v4 = vld [vmem:[%s12509_s3 + $0x438] sm:$0xff] }
 0x20d   : > { %13030 = vst [vmem:[#allocation13_spill] sm:$0xff] %v11692_v14  ;;  %8547 = vmatprep.mubr.f32.mxu0 %v13032_v50  ;;  %v11702_v52 = vadd.f32 %v2986_v57, %v11367_v10  ;;  %v11704_v40 = vpop.f32.mrf.mxu1  ;;  %8746 = vmatpush3.msra.mxu1 %v6495_v59  ;;  %v13037_v10 = vld [vmem:[#allocation65_spill] sm:$0xff]  ;;  %v6477_v59 = vld [vmem:[%s12509_s3 + $0x3b0] sm:$0xff] }
 0x20e   : > { %8627 = vmatprep.mubr.f32.mxu1 %v13034_v61  ;;  %v8069_v38 = vpop.f32.mrf.mxu0  ;;  %8667 = vmatprep.subr.mxu0 %v6478_v5  ;;  %v13038_v61 = vld [vmem:[#allocation23_spill] sm:$0xff] }
 0x20f   : > { %13033 = vst [vmem:[#allocation60_spill] sm:$0xff] %v11702_v52  ;;  %8548 = vmatmul.mubr.f32.gmra.mxu0 %v13035_v43  ;;  %v11712_v14 = vadd.f32 %v8069_v38, %v11378_v1  ;;  %v11714_v51 = vpop.f32.mrf.mxu1  ;;  %8628 = vmatmul.mubr.f32.gmra.mxu1 %v13037_v10  ;;  %v13040_v1 = vld [vmem:[#allocation70_spill] sm:$0xff] }
 0x210   : > { %8668 = vmatpush3.msra.mxu0 %v6478_v5  ;;  %v2996_v57 = vpop.f32.mrf.mxu0  ;;  %8747 = vmatprep.subr.mxu1 %v6494_v4  ;;  %v6493_v5 = vld [vmem:[%s12509_s3 + $0x430] sm:$0xff]  ;;  %v13041_v10 = vld [vmem:[#allocation34_spill] sm:$0xff] }
 0x211   : > { %13036 = vst [vmem:[#allocation15_spill] sm:$0xff] %v11712_v14  ;;  %8550 = vmatprep.mubr.f32.mxu0 %v13038_v61  ;;  %v11722_v52 = vadd.f32 %v2996_v57, %v11389_v35  ;;  %v11724_v46 = vpop.f32.mrf.mxu1  ;;  %8748 = vmatpush3.msra.mxu1 %v6494_v4  ;;  %v13043_v35 = vld [vmem:[#allocation67_spill] sm:$0xff] }
 0x212   : > { %8630 = vmatprep.mubr.f32.mxu1 %v13040_v1  ;;  %v8072_v38 = vpop.f32.mrf.mxu0  ;;  %8669 = vmatprep.subr.mxu0 %v6477_v59  ;;  %v6476_v4 = vld [vmem:[%s12509_s3 + $0x3a8] sm:$0xff]  ;;  %v13044_v1 = vld [vmem:[#allocation37_spill] sm:$0xff] }
 0x213   : > { %13039 = vst [vmem:[#allocation66_spill] sm:$0xff] %v11722_v52  ;;  %8551 = vmatmul.mubr.f32.gmra.mxu0 %v13041_v10  ;;  %v11732_v14 = vadd.f32 %v8072_v38, %v11400_v11  ;;  %v11734_v18 = vpop.f32.mrf.mxu1  ;;  %8631 = vmatmul.mubr.f32.gmra.mxu1 %v13043_v35  ;;  %v13046_v11 = vld [vmem:[#allocation68_spill] sm:$0xff] }
 0x214   : > { %8670 = vmatpush3.msra.mxu0 %v6477_v59  ;;  %v3006_v57 = vpop.f32.mrf.mxu0  ;;  %8749 = vmatprep.subr.mxu1 %v6493_v5  ;;  %v6492_v59 = vld [vmem:[%s12509_s3 + $0x428] sm:$0xff]  ;;  %v13047_v35 = vld [vmem:[#allocation40_spill] sm:$0xff] }
 0x215   : > { %13042 = vst [vmem:[#allocation16_spill] sm:$0xff] %v11732_v14  ;;  %8553 = vmatprep.mubr.f32.mxu0 %v13044_v1  ;;  %v11742_v52 = vadd.f32 %v3006_v57, %v11411_v55  ;;  %v11744_v47 = vpop.f32.mrf.mxu1  ;;  %8750 = vmatpush3.msra.mxu1 %v6493_v5  ;;  %v13050_v55 = vld [vmem:[#allocation6_spill] sm:$0xff] }
 0x216   : > { %8633 = vmatprep.mubr.f32.mxu1 %v13046_v11  ;;  %v8075_v38 = vpop.f32.mrf.mxu0  ;;  %8671 = vmatprep.subr.mxu0 %v6476_v4  ;;  %v6475_v5 = vld [vmem:[%s12509_s3 + $0x3a0] sm:$0xff]  ;;  %v13051_v11 = vld [vmem:[#allocation43_spill] sm:$0xff] }
 0x217   : > { %13045 = vst [vmem:[#allocation62_spill] sm:$0xff] %v11742_v52  ;;  %8554 = vmatmul.mubr.f32.gmra.mxu0 %v13047_v35  ;;  %v11752_v14 = vadd.f32 %v8075_v38, %v11422_v21  ;;  %v11754_v29 = vpop.f32.mrf.mxu1  ;;  %8634 = vmatmul.mubr.f32.gmra.mxu1 %v13050_v55  ;;  %v13052_v52 = vld [vmem:[#allocation4_spill] sm:$0xff]  ;;  %v13055_v21 = vld [vmem:[#allocation5_spill] sm:$0xff]  ;;  %v13056_v55 = vld [vmem:[#allocation46_spill] sm:$0xff] }
 0x218   : > { %13049 = vst [vmem:[#allocation63_spill] sm:$0xff] %v11754_v29  ;;  %8672 = vmatpush3.msra.mxu0 %v6476_v4  ;;  %v3016_v57 = vpop.f32.mrf.mxu0  ;;  %8751 = vmatprep.subr.mxu1 %v6492_v59  ;;  %v6491_v4 = vld [vmem:[%s12509_s3 + $0x420] sm:$0xff] }
 0x219   : > { %13048 = vst [vmem:[#allocation17_spill] sm:$0xff] %v11752_v14  ;;  %8556 = vmatprep.mubr.f32.mxu0 %v13051_v11  ;;  %v11762_v19 = vadd.f32 %v3016_v57, %v13052_v52  ;;  %v11764_v34 = vpop.f32.mrf.mxu1  ;;  %8752 = vmatpush3.msra.mxu1 %v6492_v59  ;;  %v13057_v14 = vld [vmem:[#allocation71_spill] sm:$0xff]  ;;  %v13060_v52 = vld [vmem:[#allocation8_spill] sm:$0xff]  ;;  %v6474_v59 = vld [vmem:[%s12509_s3 + $0x398] sm:$0xff] }
 0x21a   : > { %13054 = vst [vmem:[#allocation69_spill] sm:$0xff] %v11764_v34  ;;  %8636 = vmatprep.mubr.f32.mxu1 %v13055_v21  ;;  %v8078_v38 = vpop.f32.mrf.mxu0  ;;  %8673 = vmatprep.subr.mxu0 %v6475_v5  ;;  %v13061_v21 = vld [vmem:[#allocation49_spill] sm:$0xff] }
 0x21b   : > { %13053 = vst [vmem:[#allocation18_spill] sm:$0xff] %v11762_v19  ;;  %8557 = vmatmul.mubr.f32.gmra.mxu0 %v13056_v55  ;;  %v11772_v8 = vadd.f32 %v8078_v38, %v13057_v14  ;;  %v11774_v29 = vpop.f32.mrf.mxu1  ;;  %8637 = vmatmul.mubr.f32.gmra.mxu1 %v13060_v52  ;;  %v13062_v19 = vld [vmem:[#allocation7_spill] sm:$0xff]  ;;  %v13065_v14 = vld [vmem:[#allocation12_spill] sm:$0xff] }
 0x21c   : > { %13059 = vst [vmem:[#allocation65_spill] sm:$0xff] %v11774_v29  ;;  %8674 = vmatpush3.msra.mxu0 %v6475_v5  ;;  %v3026_v57 = vpop.f32.mrf.mxu0  ;;  %8753 = vmatprep.subr.mxu1 %v6491_v4  ;;  %v6490_v5 = vld [vmem:[%s12509_s3 + $0x418] sm:$0xff]  ;;  %v13066_v52 = vld [vmem:[#allocation52_spill] sm:$0xff] }
 0x21d   : > { %13058 = vst [vmem:[#allocation20_spill] sm:$0xff] %v11772_v8  ;;  %8559 = vmatprep.mubr.f32.mxu0 %v13061_v21  ;;  %v11782_v34 = vadd.f32 %v3026_v57, %v13062_v19  ;;  %v11784_v55 = vpop.f32.mrf.mxu1  ;;  %8754 = vmatpush3.msra.mxu1 %v6491_v4  ;;  %v13067_v8 = vld [vmem:[#allocation19_spill] sm:$0xff]  ;;  %v13070_v19 = vld [vmem:[#allocation72_spill] sm:$0xff] }
 0x21e   : > { %13064 = vst [vmem:[#allocation70_spill] sm:$0xff] %v11784_v55  ;;  %8639 = vmatprep.mubr.f32.mxu1 %v13065_v14  ;;  %v8081_v38 = vpop.f32.mrf.mxu0  ;;  %8675 = vmatprep.subr.mxu0 %v6474_v59  ;;  %v6473_v4 = vld [vmem:[%s12509_s3 + $0x390] sm:$0xff]  ;;  %v13071_v14 = vld [vmem:[#allocation53_spill] sm:$0xff] }
 0x21f   : > { %13063 = vst [vmem:[#allocation23_spill] sm:$0xff] %v11782_v34  ;;  %8560 = vmatmul.mubr.f32.gmra.mxu0 %v13066_v52  ;;  %v11792_v29 = vadd.f32 %v8081_v38, %v13067_v8  ;;  %v11794_v21 = vpop.f32.mrf.mxu1  ;;  %8640 = vmatmul.mubr.f32.gmra.mxu1 %v13070_v19  ;;  %v13072_v34 = vld [vmem:[#allocation73_spill] sm:$0xff]  ;;  %v6489_v8 = vld [vmem:[%s12509_s3 + $0x410] sm:$0xff]  ;;  %v4749_v38 = vrot.slane %v11466_v33, 2 }
 0x220   : > { %13069 = vst [vmem:[#allocation67_spill] sm:$0xff] %v11794_v21  ;;  %8676 = vmatpush3.msra.mxu0 %v6474_v59  ;;  %v3036_v57 = vpop.f32.mrf.mxu0  ;;  %8755 = vmatprep.subr.mxu1 %v6490_v5  ;;  %v4748_v59 = vrot.slane %v11463_v45, 2  ;;  %v13078_v21 = vld [vmem:[#allocation55_spill] sm:$0xff] }
 0x221   : > { %13068 = vst [vmem:[#allocation34_spill] sm:$0xff] %v11792_v29  ;;  %8562 = vmatprep.mubr.f32.mxu0 %v13071_v14  ;;  %v11802_v55 = vadd.f32 %v3036_v57, %v13072_v34  ;;  %v11804_v52 = vpop.f32.mrf.mxu1  ;;  %8756 = vmatpush3.msra.mxu1 %v6490_v5  ;;  %v13075_v29 = vld [vmem:[#allocation59_spill] sm:$0xff]  ;;  %v13077_v5 = vld [vmem:[#allocation21_spill] sm:$0xff] }
 0x222   : > { %13074 = vst [vmem:[#allocation68_spill] sm:$0xff] %v11804_v52  ;;  %8642 = vmatprep.mubr.f32.mxu1 %v11496_v49  ;;  %8677 = vmatprep.subr.mxu0 %v6473_v4  ;;  %v6472_v49 = vld [vmem:[%s12509_s3 + $0x388] sm:$0xff] }
 0x223   : > { %13073 = vst [vmem:[#allocation37_spill] sm:$0xff] %v11802_v55  ;;  %v8084_v19 = vpop.f32.mrf.mxu0  ;;  %8563 = vmatmul.mubr.f32.gmra.mxu0 %v13075_v29  ;;  %v11816_v57 = vpop.f32.mrf.mxu1  ;;  %8643 = vmatmul.mubr.f32.gmra.mxu1 %v11508_v39  ;;  %v4751_v55 = vrot.slane %v13077_v5, 2  ;;  %v6488_v39 = vld [vmem:[%s12509_s3 + $0x408] sm:$0xff]  ;;  %v13080_v5 = vld [vmem:[#allocation61_spill] sm:$0xff] }
 0x224   : > { %v11814_v34 = vadd.f32 %v8084_v19, %v11500_v20  ;;  %8678 = vmatpush3.msra.mxu0 %v6473_v4  ;;  %8757 = vmatprep.subr.mxu1 %v6489_v8  ;;  %v11834_v4 = vsel %vm1042_vm0, %v4748_v59, %v4749_v38 }
 0x225   : > { %v3046_v52 = vpop.f32.mrf.mxu0  ;;  %8565 = vmatprep.mubr.f32.mxu0 %v13078_v21  ;;  %v11827_v20 = vpop.f32.mrf.mxu1  ;;  %8758 = vmatpush3.msra.mxu1 %v6489_v8  ;;  %v6471_v8 = vld [vmem:[%s12509_s3 + $0x380] sm:$0xff] }
 0x226   : > { %13076 = vst [vmem:[#allocation40_spill] sm:$0xff] %v11814_v34  ;;  %v11825_v29 = vadd.f32 %v3046_v52, %v11514_v22  ;;  %8645 = vmatprep.mubr.f32.mxu1 %v11463_v45  ;;  %8679 = vmatprep.subr.mxu0 %v6472_v49  ;;  %v11838_v34 = vld [vmem:[%s10201_s9 + $0x198] sm:$0xff]  ;;  %v11847_v45 = vsel %vm1042_vm0, %v4749_v38, %v4751_v55 }
 0x227   : > { %v8087_v19 = vpop.f32.mrf.mxu0  ;;  %8566 = vmatmul.mubr.f32.gmra.mxu0 %v13080_v5  ;;  %v11843_v52 = vpop.f32.mrf.mxu1  ;;  %8646 = vmatmul.mubr.f32.gmra.mxu1 %v11466_v33  ;;  %v6487_v33 = vld [vmem:[%s12509_s3 + $0x400] sm:$0xff] }
 0x228   : > { %13079 = vst [vmem:[#allocation6_spill] sm:$0xff] %v11825_v29  ;;  %v11841_v22 = vadd.f32 %v8087_v19, %v11525_v23  ;;  %8680 = vmatpush3.msra.mxu0 %v6472_v49  ;;  %8759 = vmatprep.subr.mxu1 %v6488_v39  ;;  %v11854_v29 = vld [vmem:[%s10201_s9 + $0x1a0] sm:$0xff] }
 0x229   : > { %v3056_v59 = vpop.f32.mrf.mxu0  ;;  %8568 = vmatprep.mubr.f32.mxu0 %v11834_v4  ;;  %v11859_v19 = vpop.f32.mrf.mxu1  ;;  %8760 = vmatpush3.msra.mxu1 %v6488_v39  ;;  %v13085_v39 = vld [vmem:[#allocation22_spill] sm:$0xff] }
 0x22a   : > { %13081 = vst [vmem:[#allocation43_spill] sm:$0xff] %v11841_v22  ;;  %v11857_v23 = vadd.f32 %v3056_v59, %v11533_v37  ;;  %8648 = vmatprep.mubr.f32.mxu1 %v11838_v34  ;;  %8681 = vmatprep.subr.mxu0 %v6471_v8 }
 0x22b   : > { %v8090_v55 = vpop.f32.mrf.mxu0  ;;  %8569 = vmatmul.mubr.f32.gmra.mxu0 %v11847_v45  ;;  %v11869_v49 = vpop.f32.mrf.mxu1  ;;  %8649 = vmatmul.mubr.f32.gmra.mxu1 %v11854_v29 }
 0x22c   : > { %13082 = vst [vmem:[#allocation4_spill] sm:$0xff] %v11857_v23  ;;  %v11867_v38 = vadd.f32 %v8090_v55, %v11541_v3  ;;  %13084 = vst [vmem:[#allocation71_spill] sm:$0xff] %v11869_v49  ;;  %8682 = vmatpush3.msra.mxu0 %v6471_v8  ;;  %8761 = vmatprep.subr.mxu1 %v6487_v33  ;;  %v13087_v3 = vld [vmem:[#allocation24_spill] sm:$0xff]  ;;  %v13088_v8 = vld [vmem:[#allocation33_spill] sm:$0xff] }
 0x22d   : > { %v3066_v37 = vpop.f32.mrf.mxu0  ;;  %8683 = vmatprep.mubr.f32.mxu0 %v13085_v39  ;;  %v11876_v23 = vpop.f32.mrf.mxu1  ;;  %8762 = vmatpush3.msra.mxu1 %v6487_v33 }
 0x22e   : > { %13083 = vst [vmem:[#allocation5_spill] sm:$0xff] %v11867_v38  ;;  %v11874_v59 = vadd.f32 %v3066_v37, %v11549_v12  ;;  %8763 = vmatprep.mubr.f32.mxu1 %v10829_v25  ;;  %v13089_v25 = vld [vmem:[#allocation35_spill] sm:$0xff] }
 0x22f   : > { %v8205_v22 = vpop.f32.mrf.mxu0  ;;  %8684 = vmatmul.mubr.f32.vlgmr.msra.gmra.mxu0 %v13087_v3  ;;  %v8285_v38 = vpop.f32.mrf.mxu1  ;;  %8764 = vmatmul.mubr.f32.vlgmr.msra.gmra.mxu1 %v10842_v0  ;;  %v13090_v0 = vld [vmem:[#allocation36_spill] sm:$0xff] }
 0x230   : > { %13086 = vst [vmem:[#allocation8_spill] sm:$0xff] %v11874_v59  ;;  %v3651_v55 = vadd.f32 %v8205_v22, %v11554_v9  ;;  %8686 = vmatprep.mubr.f32.mxu0 %v13088_v8  ;;  %8766 = vmatprep.mubr.f32.mxu1 %v10854_v13 }
 0x231   : > { %v3645_v49 = vpop.f32.mrf.mxu0  ;;  %v3999_v33 = vpop.f32.mrf.mxu1 }
 0x232   : > { %v11884_v12 = vadd.f32 %v8285_v38, %v3651_v55  ;;  %v3646_v37 = vadd.f32 %v3645_v49, %v11564_v32  ;;  %v13091_v55 = vld [vmem:[#allocation38_spill] sm:$0xff] }
 0x233   : > { %v8208_v39 = vpop.f32.mrf.mxu0  ;;  %8687 = vmatmul.mubr.f32.gmra.mxu0 %v13089_v25  ;;  %v8288_v22 = vpop.f32.mrf.mxu1  ;;  %8767 = vmatmul.mubr.f32.gmra.mxu1 %v10867_v58  ;;  %v13092_v58 = vld [vmem:[#allocation39_spill] sm:$0xff] }
 0x234   : > { %v11888_v59 = vadd.f32 %v3999_v33, %v3646_v37  ;;  %v3661_v9 = vadd.f32 %v8208_v39, %v11574_v7  ;;  %8689 = vmatprep.mubr.f32.mxu0 %v13090_v0  ;;  %8769 = vmatprep.mubr.f32.mxu1 %v10879_v30 }
 0x235   : > { %v3655_v3 = vpop.f32.mrf.mxu0  ;;  %v4009_v38 = vpop.f32.mrf.mxu1 }
 0x236   : > { %v11894_v13 = vadd.f32 %v8288_v22, %v3661_v9  ;;  %v3656_v32 = vadd.f32 %v3655_v3, %v11584_v54  ;;  %v13093_v9 = vld [vmem:[#allocation41_spill] sm:$0xff] }
 0x237   : > { %v8211_v49 = vpop.f32.mrf.mxu0  ;;  %8690 = vmatmul.mubr.f32.gmra.mxu0 %v13091_v55  ;;  %v8291_v37 = vpop.f32.mrf.mxu1  ;;  %8770 = vmatmul.mubr.f32.gmra.mxu1 %v10892_v53  ;;  %v13094_v53 = vld [vmem:[#allocation42_spill] sm:$0xff] }
 0x238   : > { %v11898_v8 = vadd.f32 %v4009_v38, %v3656_v32  ;;  %v3671_v7 = vadd.f32 %v8211_v49, %v11594_v42  ;;  %8692 = vmatprep.mubr.f32.mxu0 %v13092_v58  ;;  %8772 = vmatprep.mubr.f32.mxu1 %v10904_v62  ;;  %v13095_v49 = vld [vmem:[#allocation44_spill] sm:$0xff] }
 0x239   : > { %v3665_v33 = vpop.f32.mrf.mxu0  ;;  %v4019_v39 = vpop.f32.mrf.mxu1 }
 0x23a   : > { %v11904_v30 = vadd.f32 %v8291_v37, %v3671_v7  ;;  %v3666_v54 = vadd.f32 %v3665_v33, %v11604_v15 }
 0x23b   : > { %v8214_v25 = vpop.f32.mrf.mxu0  ;;  %8693 = vmatmul.mubr.f32.gmra.mxu0 %v13093_v9  ;;  %v8294_v0 = vpop.f32.mrf.mxu1  ;;  %8773 = vmatmul.mubr.f32.gmra.mxu1 %v13011_v44  ;;  %v13096_v44 = vld [vmem:[#allocation45_spill] sm:$0xff] }
 0x23c   : > { %v11908_v22 = vadd.f32 %v4019_v39, %v3666_v54  ;;  %v3681_v42 = vadd.f32 %v8214_v25, %v11614_v27  ;;  %8695 = vmatprep.mubr.f32.mxu0 %v13094_v53  ;;  %8775 = vmatprep.mubr.f32.mxu1 %v13014_v60  ;;  %v13097_v54 = vld [vmem:[#allocation47_spill] sm:$0xff]  ;;  %v13099_v53 = vld [vmem:[#allocation50_spill] sm:$0xff] }
 0x23d   : > { %v3675_v3 = vpop.f32.mrf.mxu0  ;;  %v4029_v32 = vpop.f32.mrf.mxu1 }
 0x23e   : > { %v11914_v62 = vadd.f32 %v8294_v0, %v3681_v42  ;;  %v3676_v15 = vadd.f32 %v3675_v3, %v11624_v24 }
 0x23f   : > { %v8217_v38 = vpop.f32.mrf.mxu0  ;;  %8696 = vmatmul.mubr.f32.gmra.mxu0 %v13095_v49  ;;  %v8297_v7 = vpop.f32.mrf.mxu1  ;;  %8776 = vmatmul.mubr.f32.gmra.mxu1 %v13017_v28  ;;  %v13098_v28 = vld [vmem:[#allocation48_spill] sm:$0xff] }
 0x240   : > { %v11918_v55 = vadd.f32 %v4029_v32, %v3676_v15  ;;  %v3691_v27 = vadd.f32 %v8217_v38, %v11634_v31  ;;  %8698 = vmatprep.mubr.f32.mxu0 %v13096_v44  ;;  %8778 = vmatprep.mubr.f32.mxu1 %v13020_v63 }
 0x241   : > { %v3685_v37 = vpop.f32.mrf.mxu0  ;;  %v4039_v58 = vpop.f32.mrf.mxu1 }
 0x242   : > { %v11924_v60 = vadd.f32 %v8297_v7, %v3691_v27  ;;  %v3686_v24 = vadd.f32 %v3685_v37, %v11644_v26  ;;  %v13101_v27 = vld [vmem:[#allocation54_spill] sm:$0xff] }
 0x243   : > { %v8220_v33 = vpop.f32.mrf.mxu0  ;;  %8699 = vmatmul.mubr.f32.gmra.mxu0 %v13097_v54  ;;  %v8300_v25 = vpop.f32.mrf.mxu1  ;;  %8779 = vmatmul.mubr.f32.gmra.mxu1 %v13023_v6  ;;  %v13100_v6 = vld [vmem:[#allocation51_spill] sm:$0xff] }
 0x244   : > { %v11928_v39 = vadd.f32 %v4039_v58, %v3686_v24  ;;  %v3701_v31 = vadd.f32 %v8220_v33, %v11654_v56  ;;  %8701 = vmatprep.mubr.f32.mxu0 %v13098_v28  ;;  %8781 = vmatprep.mubr.f32.mxu1 %v13026_v41  ;;  %v13103_v33 = vld [vmem:[#allocation25_spill] sm:$0xff] }
 0x245   : > { %v3695_v9 = vpop.f32.mrf.mxu0  ;;  %v4049_v42 = vpop.f32.mrf.mxu1 }
 0x246   : > { %v11934_v63 = vadd.f32 %v8300_v25, %v3701_v31  ;;  %v3696_v26 = vadd.f32 %v3695_v9, %v11664_v48 }
 0x247   : > { %v8223_v0 = vpop.f32.mrf.mxu0  ;;  %8702 = vmatmul.mubr.f32.gmra.mxu0 %v13099_v53  ;;  %v8303_v15 = vpop.f32.mrf.mxu1  ;;  %8782 = vmatmul.mubr.f32.gmra.mxu1 %v13029_v36  ;;  %v13102_v36 = vld [vmem:[#allocation56_spill] sm:$0xff] }
 0x248   : > { %v11938_v3 = vadd.f32 %v4049_v42, %v3696_v26  ;;  %v3711_v56 = vadd.f32 %v8223_v0, %v11674_v16  ;;  %8704 = vmatprep.mubr.f32.mxu0 %v13100_v6  ;;  %8784 = vmatprep.mubr.f32.mxu1 %v13032_v50  ;;  %v13105_v26 = vld [vmem:[#allocation27_spill] sm:$0xff]  ;;  %v13107_v6 = vld [vmem:[#allocation29_spill] sm:$0xff] }
 0x249   : > { %v3705_v32 = vpop.f32.mrf.mxu0  ;;  %v4059_v38 = vpop.f32.mrf.mxu1 }
 0x24a   : > { %v11944_v41 = vadd.f32 %v8303_v15, %v3711_v56  ;;  %v3706_v48 = vadd.f32 %v3705_v32, %v11684_v17 }
 0x24b   : > { %v8226_v49 = vpop.f32.mrf.mxu0  ;;  %8705 = vmatmul.mubr.f32.gmra.mxu0 %v13101_v27  ;;  %v8306_v44 = vpop.f32.mrf.mxu1  ;;  %8785 = vmatmul.mubr.f32.gmra.mxu1 %v13035_v43  ;;  %v13104_v43 = vld [vmem:[#allocation26_spill] sm:$0xff] }
 0x24c   : > { %v11948_v7 = vadd.f32 %v4059_v38, %v3706_v48  ;;  %v3721_v16 = vadd.f32 %v8226_v49, %v11694_v2  ;;  %8707 = vmatprep.mubr.f32.mxu0 %v13102_v36  ;;  %8787 = vmatprep.mubr.f32.mxu1 %v13038_v61  ;;  %v13108_v48 = vld [vmem:[#allocation63_spill] sm:$0xff]  ;;  %v13109_v49 = vld [vmem:[#allocation46_spill] sm:$0xff] }
 0x24d   : > { %v3715_v37 = vpop.f32.mrf.mxu0  ;;  %v4069_v24 = vpop.f32.mrf.mxu1 }
 0x24e   : > { %v11954_v50 = vadd.f32 %v8306_v44, %v3721_v16  ;;  %v3716_v17 = vadd.f32 %v3715_v37, %v11704_v40  ;;  %v13111_v16 = vld [vmem:[#allocation49_spill] sm:$0xff] }
 0x24f   : > { %v8229_v58 = vpop.f32.mrf.mxu0  ;;  %8708 = vmatmul.mubr.f32.gmra.mxu0 %v13103_v33  ;;  %v8309_v31 = vpop.f32.mrf.mxu1  ;;  %8788 = vmatmul.mubr.f32.gmra.mxu1 %v13041_v10  ;;  %v13106_v10 = vld [vmem:[#allocation28_spill] sm:$0xff]  ;;  %v13112_v44 = vld [vmem:[#allocation69_spill] sm:$0xff] }
 0x250   : > { %v11958_v54 = vadd.f32 %v4069_v24, %v3716_v17  ;;  %v3731_v2 = vadd.f32 %v8229_v58, %v11714_v51  ;;  %8710 = vmatprep.mubr.f32.mxu0 %v13104_v43  ;;  %8790 = vmatprep.mubr.f32.mxu1 %v13044_v1  ;;  %v13113_v17 = vld [vmem:[#allocation31_spill] sm:$0xff]  ;;  %v13114_v58 = vld [vmem:[#allocation65_spill] sm:$0xff]  ;;  %v13116_v43 = vld [vmem:[#allocation32_spill] sm:$0xff] }
 0x251   : > { %v3725_v25 = vpop.f32.mrf.mxu0  ;;  %v4079_v28 = vpop.f32.mrf.mxu1 }
 0x252   : > { %v11964_v61 = vadd.f32 %v8309_v31, %v3731_v2  ;;  %v3726_v40 = vadd.f32 %v3725_v25, %v11724_v46  ;;  %v13115_v31 = vld [vmem:[#allocation52_spill] sm:$0xff] }
 0x253   : > { %v8232_v9 = vpop.f32.mrf.mxu0  ;;  %8711 = vmatmul.mubr.f32.gmra.mxu0 %v13105_v26  ;;  %v8312_v0 = vpop.f32.mrf.mxu1  ;;  %8791 = vmatmul.mubr.f32.gmra.mxu1 %v13047_v35  ;;  %v13110_v35 = vld [vmem:[#allocation30_spill] sm:$0xff] }
 0x254   : > { %v11968_v42 = vadd.f32 %v4079_v28, %v3726_v40  ;;  %v3741_v51 = vadd.f32 %v8232_v9, %v11734_v18  ;;  %8713 = vmatprep.mubr.f32.mxu0 %v13106_v10  ;;  %8793 = vmatprep.mubr.f32.mxu1 %v13051_v11  ;;  %v13117_v28 = vld [vmem:[#allocation70_spill] sm:$0xff] }
 0x255   : > { %v3735_v53 = vpop.f32.mrf.mxu0  ;;  %v4089_v56 = vpop.f32.mrf.mxu1 }
 0x256   : > { %v11974_v1 = vadd.f32 %v8312_v0, %v3741_v51  ;;  %v3736_v46 = vadd.f32 %v3735_v53, %v11744_v47  ;;  %v13118_v0 = vld [vmem:[#allocation9_spill] sm:$0xff]  ;;  %v13119_v53 = vld [vmem:[#allocation67_spill] sm:$0xff] }
 0x257   : > { %v8235_v15 = vpop.f32.mrf.mxu0  ;;  %8714 = vmatmul.mubr.f32.gmra.mxu0 %v13107_v6  ;;  %v8315_v38 = vpop.f32.mrf.mxu1  ;;  %8794 = vmatmul.mubr.f32.gmra.mxu1 %v13109_v49  ;;  %v13121_v6 = vld [vmem:[#allocation2_spill] sm:$0xff]  ;;  %v5587_v49 = vrot.slane %v11838_v34, 2 }
 0x258   : > { %v11978_v32 = vadd.f32 %v4089_v56, %v3736_v46  ;;  %v3751_v18 = vadd.f32 %v8235_v15, %v13108_v48  ;;  %8716 = vmatprep.mubr.f32.mxu0 %v13110_v35  ;;  %8796 = vmatprep.mubr.f32.mxu1 %v13111_v16  ;;  %v13120_v15 = vld [vmem:[#allocation59_spill] sm:$0xff]  ;;  %v5306_v48 = vrot.slane %v11838_v34, 1  ;;  %v5588_v35 = vrot.slane %v11854_v29, 2  ;;  %v13122_v16 = vld [vmem:[#allocation68_spill] sm:$0xff] }
 0x259   : > { %v3745_v27 = vpop.f32.mrf.mxu0  ;;  %v4099_v36 = vpop.f32.mrf.mxu1 }
 0x25a   : > { %v11984_v11 = vadd.f32 %v8315_v38, %v3751_v18  ;;  %v3746_v47 = vadd.f32 %v3745_v27, %v13112_v44  ;;  %v3160_v38 = vld [vmem:[%s10201_s9 + $0x1a8] sm:$0x3]  ;;  %s6506_s9 = sshll.u32 %s13240_s21, 8 }
 0x25b   : > { %v8238_v37 = vpop.f32.mrf.mxu0  ;;  %8717 = vmatmul.mubr.f32.gmra.mxu0 %v13113_v17  ;;  %v8318_v2 = vpop.f32.mrf.mxu1  ;;  %8797 = vmatmul.mubr.f32.gmra.mxu1 %v13115_v31  ;;  %v5309_v34 = vrot.slane %v3160_v38, 1  ;;  %v5590_v31 = vrot.slane %v3160_v38, 2  ;;  %s12294_s8 = scalar_lea.vmem %s12511_s5, %s6506_s9 }
 0x25c   : > { %v11988_v24 = vadd.f32 %v4099_v36, %v3746_v47  ;;  %v3761_v33 = vadd.f32 %v8238_v37, %v13114_v58  ;;  %8719 = vmatprep.mubr.f32.mxu0 %v13116_v43  ;;  %8799 = vmatprep.mubr.f32.mxu1 %v13071_v14  ;;  %v5307_v14 = vrot.slane %v11854_v29, 1  ;;  %v13123_v37 = vld [vmem:[#allocation3_spill] sm:$0xff] }
 0x25d   : > { %v3755_v25 = vpop.f32.mrf.mxu0  ;;  %v4109_v26 = vpop.f32.mrf.mxu1 }
 0x25e   : > { %v11994_v40 = vadd.f32 %v8318_v2, %v3761_v33  ;;  %v3756_v9 = vadd.f32 %v3755_v25, %v13117_v28  ;;  %v5308_v29 = vsel %vm462_vm1, %v5306_v48, %v5307_v14 }
 0x25f   : > { %v8241_v51 = vpop.f32.mrf.mxu0  ;;  %8720 = vmatmul.mubr.f32.gmra.mxu0 %v13118_v0  ;;  %v8321_v56 = vpop.f32.mrf.mxu1  ;;  %8800 = vmatmul.mubr.f32.gmra.mxu1 %v13120_v15 }
 0x260   : > { %v11998_v10 = vadd.f32 %v4109_v26, %v3756_v9  ;;  %v3771_v46 = vadd.f32 %v8241_v51, %v13119_v53  ;;  %8722 = vmatprep.mubr.f32.mxu0 %v13121_v6  ;;  %8802 = vmatprep.mubr.f32.mxu1 %v13078_v21  ;;  %v13124_v21 = vld [vmem:[#allocation74_spill] sm:$0xff]  ;;  %v5589_v9 = vsel %vm1042_vm0, %v5587_v49, %v5588_v35  ;;  %v13125_v26 = vld [vmem:[#allocation75_spill] sm:$0xff] }
 0x261   : > { %v3765_v18 = vpop.f32.mrf.mxu0  ;;  %v4119_v47 = vpop.f32.mrf.mxu1 }
 0x262   : > { %v12009_v27 = vadd.f32 %v8321_v56, %v3771_v46  ;;  %v3766_v44 = vadd.f32 %v3765_v18, %v13122_v16 }
 0x263   : > { %v8244_v36 = vpop.f32.mrf.mxu0  ;;  %8723 = vmatmul.mubr.f32.gmra.mxu0 %v13123_v37  ;;  %v8324_v33 = vpop.f32.mrf.mxu1  ;;  %8803 = vmatmul.mubr.f32.gmra.mxu1 %v13080_v5 }
 0x264   : > { %v12013_v17 = vadd.f32 %v4119_v47, %v3766_v44  ;;  %v3781_v58 = vadd.f32 %v8244_v36, %v11816_v57  ;;  %8725 = vmatprep.mubr.f32.mxu0 %v13124_v21  ;;  %8805 = vmatprep.mubr.f32.mxu1 %v11834_v4  ;;  %v5310_v4 = vsel %vm462_vm1, %v5307_v14, %v5309_v34 }
 0x265   : > { %v3775_v2 = vpop.f32.mrf.mxu0  ;;  %v4129_v28 = vpop.f32.mrf.mxu1 }
 0x266   : > { %v12020_v43 = vadd.f32 %v8324_v33, %v3781_v58  ;;  %v3776_v25 = vadd.f32 %v3775_v2, %v11827_v20  ;;  %v5591_v20 = vsel %vm1042_vm0, %v5588_v35, %v5590_v31 }
 0x267   : > { %v8247_v57 = vpop.f32.mrf.mxu0  ;;  %8726 = vmatmul.mubr.f32.gmra.mxu0 %v13125_v26  ;;  %v8327_v0 = vpop.f32.mrf.mxu1  ;;  %8806 = vmatmul.mubr.f32.gmra.mxu1 %v11847_v45 }
 0x268   : > { %v12025_v5 = vadd.f32 %v4129_v28, %v3776_v25  ;;  %v3791_v51 = vadd.f32 %v8247_v57, %v11843_v52  ;;  %8728 = vmatprep.mubr.f32.mxu0 %v5308_v29  ;;  %8808 = vmatprep.mubr.f32.mxu1 %v5589_v9  ;;  %v13126_v52 = vld [vmem:[#allocation71_spill] sm:$0xff] }
 0x269   : > { %v3785_v53 = vpop.f32.mrf.mxu0  ;;  %v4139_v15 = vpop.f32.mrf.mxu1 }
 0x26a   : > { %v12031_v46 = vadd.f32 %v8327_v0, %v3791_v51  ;;  %v3786_v56 = vadd.f32 %v3785_v53, %v11859_v19 }
 0x26b   : > { %v8250_v6 = vpop.f32.mrf.mxu0  ;;  %8729 = vmatmul.mubr.f32.gmra.mxu0 %v5310_v4  ;;  %v8330_v38 = vpop.f32.mrf.mxu1  ;;  %8809 = vmatmul.mubr.f32.gmra.mxu1 %v5591_v20 }
 0x26c   : > { %v12034_v48 = vadd.f32 %v4139_v15, %v3786_v56  ;;  %v3801_v18 = vadd.f32 %v8250_v6, %v13126_v52 }
 0x26d   : > { %v3795_v45 = vpop.f32.mrf.mxu0  ;;  %v4149_v16 = vpop.f32.mrf.mxu1 }
 0x26e   : > { %v12037_v49 = vadd.f32 %v8330_v38, %v3801_v18  ;;  %v3796_v14 = vadd.f32 %v3795_v45, %v11876_v23 }
 0x26f   : > { %v8365_v35 = vpop.f32.mrf.mxu0  ;;  %v8445_v47 = vpop.f32.mrf.mxu1 }
 0x270   : > { %v12040_v44 = vadd.f32 %v4149_v16, %v3796_v14  ;;  %v4433_v19 = vadd.f32 %v8365_v35, %v11884_v12 }
 0x271   : > { %v4273_v36 = vpop.f32.mrf.mxu0  ;;  %v4557_v33 = vpop.f32.mrf.mxu1 }
 0x272   : > { %v12043_v37 = vadd.f32 %v8445_v47, %v4433_v19  ;;  %v4432_v58 = vadd.f32 %v4273_v36, %v11888_v59 }
 0x273   : > { %v8368_v21 = vpop.f32.mrf.mxu0  ;;  %v8448_v29 = vpop.f32.mrf.mxu1 }
 0x274   : > { %v12046_v34 = vadd.f32 %v4557_v33, %v4432_v58  ;;  %v4435_v2 = vadd.f32 %v8368_v21, %v11894_v13 }
 0x275   : > { %v4283_v23 = vpop.f32.mrf.mxu0  ;;  %v4567_v28 = vpop.f32.mrf.mxu1 }
 0x276   : > { %v12049_v31 = vadd.f32 %v8448_v29, %v4435_v2  ;;  %v4434_v25 = vadd.f32 %v4283_v23, %v11898_v8 }
 0x277   : > { %v8371_v12 = vpop.f32.mrf.mxu0  ;;  %v8451_v26 = vpop.f32.mrf.mxu1 }
 0x278   : > { %v12052_v9 = vadd.f32 %v4567_v28, %v4434_v25  ;;  %v4437_v57 = vadd.f32 %v8371_v12, %v11904_v30 }
 0x279   : > { %v4293_v59 = vpop.f32.mrf.mxu0  ;;  %v4577_v4 = vpop.f32.mrf.mxu1 }
 0x27a   : > { %v12055_v51 = vadd.f32 %v8451_v26, %v4437_v57  ;;  %v4436_v0 = vadd.f32 %v4293_v59, %v11908_v22 }
 0x27b   : > { %v8374_v13 = vpop.f32.mrf.mxu0  ;;  %v8454_v56 = vpop.f32.mrf.mxu1 }
 0x27c   : > { %v12058_v53 = vadd.f32 %v4577_v4, %v4436_v0  ;;  %v4439_v20 = vadd.f32 %v8374_v13, %v11914_v62 }
 0x27d   : > { %v4303_v8 = vpop.f32.mrf.mxu0  ;;  %v4587_v52 = vpop.f32.mrf.mxu1 }
 0x27e   : > { %v12061_v15 = vadd.f32 %v8454_v56, %v4439_v20  ;;  %v4438_v6 = vadd.f32 %v4303_v8, %v11918_v55 }
 0x27f   : > { %v8377_v30 = vpop.f32.mrf.mxu0  ;;  %v8457_v45 = vpop.f32.mrf.mxu1 }
 0x280   : > { %v12064_v18 = vadd.f32 %v4587_v52, %v4438_v6  ;;  %v4441_v38 = vadd.f32 %v8377_v30, %v11924_v60 }
 0x281   : > { %v4313_v22 = vpop.f32.mrf.mxu0  ;;  %v4597_v35 = vpop.f32.mrf.mxu1 }
 0x282   : > { %v12067_v14 = vadd.f32 %v8457_v45, %v4441_v38  ;;  %v4440_v16 = vadd.f32 %v4313_v22, %v11928_v39 }
 0x283   : > { %v8380_v62 = vpop.f32.mrf.mxu0  ;;  %v8460_v36 = vpop.f32.mrf.mxu1 }
 0x284   : > { %v12070_v19 = vadd.f32 %v4597_v35, %v4440_v16  ;;  %v4443_v47 = vadd.f32 %v8380_v62, %v11934_v63 }
 0x285   : > { %v4323_v55 = vpop.f32.mrf.mxu0  ;;  %v4607_v21 = vpop.f32.mrf.mxu1 }
 0x286   : > { %v12073_v58 = vadd.f32 %v8460_v36, %v4443_v47  ;;  %v4442_v33 = vadd.f32 %v4323_v55, %v11938_v3 }
 0x287   : > { %v8383_v60 = vpop.f32.mrf.mxu0  ;;  %v8463_v23 = vpop.f32.mrf.mxu1 }
 0x288   : > { %v12076_v2 = vadd.f32 %v4607_v21, %v4442_v33  ;;  %v4445_v29 = vadd.f32 %v8383_v60, %v11944_v41 }
 0x289   : > { %v4333_v39 = vpop.f32.mrf.mxu0  ;;  %v4617_v12 = vpop.f32.mrf.mxu1 }
 0x28a   : > { %v12079_v25 = vadd.f32 %v8463_v23, %v4445_v29  ;;  %v4444_v28 = vadd.f32 %v4333_v39, %v11948_v7 }
 0x28b   : > { %v8386_v63 = vpop.f32.mrf.mxu0  ;;  %v8466_v59 = vpop.f32.mrf.mxu1 }
 0x28c   : > { %v12082_v57 = vadd.f32 %v4617_v12, %v4444_v28  ;;  %v4447_v26 = vadd.f32 %v8386_v63, %v11954_v50 }
 0x28d   : > { %v4343_v3 = vpop.f32.mrf.mxu0  ;;  %v4627_v13 = vpop.f32.mrf.mxu1 }
 0x28e   : > { %v12085_v0 = vadd.f32 %v8466_v59, %v4447_v26  ;;  %v4446_v4 = vadd.f32 %v4343_v3, %v11958_v54 }
 0x28f   : > { %v8389_v41 = vpop.f32.mrf.mxu0  ;;  %v8469_v8 = vpop.f32.mrf.mxu1 }
 0x290   : > { %v12088_v20 = vadd.f32 %v4627_v13, %v4446_v4  ;;  %v4449_v56 = vadd.f32 %v8389_v41, %v11964_v61 }
 0x291   : > { %v4353_v7 = vpop.f32.mrf.mxu0  ;;  %v4637_v30 = vpop.f32.mrf.mxu1 }
 0x292   : > { %v12091_v6 = vadd.f32 %v8469_v8, %v4449_v56  ;;  %v4448_v52 = vadd.f32 %v4353_v7, %v11968_v42 }
 0x293   : > { %v8392_v50 = vpop.f32.mrf.mxu0  ;;  %v8472_v22 = vpop.f32.mrf.mxu1 }
 0x294   : > { %v12094_v38 = vadd.f32 %v4637_v30, %v4448_v52  ;;  %v4451_v45 = vadd.f32 %v8392_v50, %v11974_v1 }
 0x295   : > { %v4363_v54 = vpop.f32.mrf.mxu0  ;;  %v4647_v62 = vpop.f32.mrf.mxu1 }
 0x296   : > { %v12097_v16 = vadd.f32 %v8472_v22, %v4451_v45  ;;  %v4450_v35 = vadd.f32 %v4363_v54, %v11978_v32 }
 0x297   : > { %v8395_v61 = vpop.f32.mrf.mxu0  ;;  %v8475_v55 = vpop.f32.mrf.mxu1 }
 0x298   : > { %v12100_v47 = vadd.f32 %v4647_v62, %v4450_v35  ;;  %v4453_v36 = vadd.f32 %v8395_v61, %v11984_v11 }
 0x299   : > { %v4373_v42 = vpop.f32.mrf.mxu0  ;;  %v4657_v60 = vpop.f32.mrf.mxu1 }
 0x29a   : > { %13127 = vst [vmem:[#allocation7_spill] sm:$0xff] %v12100_v47  ;;  %v12103_v33 = vadd.f32 %v8475_v55, %v4453_v36  ;;  %v4452_v21 = vadd.f32 %v4373_v42, %v11988_v24 }
 0x29b   : > { %v8398_v1 = vpop.f32.mrf.mxu0  ;;  %v8478_v39 = vpop.f32.mrf.mxu1 }
 0x29c   : > { %13128 = vst [vmem:[#allocation12_spill] sm:$0xff] %v12103_v33  ;;  %v12106_v29 = vadd.f32 %v4657_v60, %v4452_v21  ;;  %v4455_v23 = vadd.f32 %v8398_v1, %v11994_v40 }
 0x29d   : > { %v4383_v32 = vpop.f32.mrf.mxu0  ;;  %v4667_v63 = vpop.f32.mrf.mxu1 }
 0x29e   : > { %13129 = vst [vmem:[#allocation19_spill] sm:$0xff] %v12106_v29  ;;  %v12109_v28 = vadd.f32 %v8478_v39, %v4455_v23  ;;  %v4454_v12 = vadd.f32 %v4383_v32, %v11998_v10 }
 0x29f   : > { %v8401_v11 = vpop.f32.mrf.mxu0  ;;  %v8481_v3 = vpop.f32.mrf.mxu1 }
 0x2a0   : > { %13130 = vst [vmem:[#allocation72_spill] sm:$0xff] %v12109_v28  ;;  %v12112_v26 = vadd.f32 %v4667_v63, %v4454_v12  ;;  %v4457_v59 = vadd.f32 %v8401_v11, %v12009_v27 }
 0x2a1   : > { %v4393_v24 = vpop.f32.mrf.mxu0  ;;  %v4677_v41 = vpop.f32.mrf.mxu1 }
 0x2a2   : > { %13131 = vst [vmem:[#allocation53_spill] sm:$0xff] %v12112_v26  ;;  %v12115_v4 = vadd.f32 %v8481_v3, %v4457_v59  ;;  %v4456_v13 = vadd.f32 %v4393_v24, %v12013_v17 }
 0x2a3   : > { %v8404_v40 = vpop.f32.mrf.mxu0  ;;  %v8484_v7 = vpop.f32.mrf.mxu1 }
 0x2a4   : > { %13132 = vst [vmem:[#allocation73_spill] sm:$0xff] %v12115_v4  ;;  %v12118_v56 = vadd.f32 %v4677_v41, %v4456_v13  ;;  %v4459_v8 = vadd.f32 %v8404_v40, %v12020_v43 }
 0x2a5   : > { %v4403_v10 = vpop.f32.mrf.mxu0  ;;  %v4687_v50 = vpop.f32.mrf.mxu1 }
 0x2a6   : > { %13133 = vst [vmem:[#allocation21_spill] sm:$0xff] %v12118_v56  ;;  %v12121_v52 = vadd.f32 %v8484_v7, %v4459_v8  ;;  %v4458_v30 = vadd.f32 %v4403_v10, %v12025_v5 }
 0x2a7   : > { %v8407_v27 = vpop.f32.mrf.mxu0  ;;  %v8487_v54 = vpop.f32.mrf.mxu1 }
 0x2a8   : > { %13134 = vst [vmem:[#allocation55_spill] sm:$0xff] %v12121_v52  ;;  %v12124_v45 = vadd.f32 %v4687_v50, %v4458_v30  ;;  %v4461_v22 = vadd.f32 %v8407_v27, %v12031_v46 }
 0x2a9   : > { %v4413_v17 = vpop.f32.mrf.mxu0  ;;  %v4697_v61 = vpop.f32.mrf.mxu1 }
 0x2aa   : > { %13135 = vst [vmem:[#allocation61_spill] sm:$0xff] %v12124_v45  ;;  %v12127_v35 = vadd.f32 %v8487_v54, %v4461_v22  ;;  %v4460_v62 = vadd.f32 %v4413_v17, %v12034_v48 }
 0x2ab   : > { %v8410_v43 = vpop.f32.mrf.mxu0  ;;  %v8490_v42 = vpop.f32.mrf.mxu1 }
 0x2ac   : > { %13136 = vst [vmem:[#allocation22_spill] sm:$0xff] %v12127_v35  ;;  %v12130_v36 = vadd.f32 %v4697_v61, %v4460_v62  ;;  %v4463_v55 = vadd.f32 %v8410_v43, %v12037_v49 }
 0x2ad   : > { %v4423_v5 = vpop.f32.mrf.mxu0  ;;  %v4707_v1 = vpop.f32.mrf.mxu1 }
 0x2ae   : > { %13137 = vst [vmem:[#allocation24_spill] sm:$0xff] %v12130_v36  ;;  %v12133_v21 = vadd.f32 %v8490_v42, %v4463_v55  ;;  %v4462_v60 = vadd.f32 %v4423_v5, %v12040_v44 }
 0x2af   : > { %v8525_v46 = vpop.f32.mrf.mxu0  ;;  %v12138_v39 = vpop.f32.mrf.mxu1 }
 0x2b0   : > { %13138 = vst [vmem:[#allocation33_spill] sm:$0xff] %v12133_v21  ;;  %v12136_v23 = vadd.f32 %v4707_v1, %v4462_v60 }
 0x2b1   : > { %v4838_v32 = vpop.f32.mrf.mxu0  ;;  %v12140_v48 = vpop.f32.mrf.mxu1 }
 0x2b2   : > { %13139 = vst [vmem:[#allocation35_spill] sm:$0xff] %v12136_v23 }
 0x2b3   : > { %v8528_v12 = vpop.f32.mrf.mxu0  ;;  %v12142_v63 = vpop.f32.mrf.mxu1 }
 0x2b5   : > { %v4848_v11 = vpop.f32.mrf.mxu0  ;;  %v12144_v49 = vpop.f32.mrf.mxu1 }
 0x2b7   : > { %v8531_v59 = vpop.f32.mrf.mxu0  ;;  %v12146_v3 = vpop.f32.mrf.mxu1 }
 0x2b9   : > { %v4858_v24 = vpop.f32.mrf.mxu0  ;;  %v12148_v44 = vpop.f32.mrf.mxu1 }
 0x2bb   : > { %v8534_v13 = vpop.f32.mrf.mxu0  ;;  %v12150_v41 = vpop.f32.mrf.mxu1 }
 0x2bd   : > { %v4868_v40 = vpop.f32.mrf.mxu0  ;;  %v12152_v8 = vpop.f32.mrf.mxu1 }
 0x2bf   : > { %v8537_v7 = vpop.f32.mrf.mxu0  ;;  %v12154_v10 = vpop.f32.mrf.mxu1 }
 0x2c1   : > { %v4878_v30 = vpop.f32.mrf.mxu0  ;;  %v12156_v50 = vpop.f32.mrf.mxu1 }
 0x2c3   : > { %v8540_v27 = vpop.f32.mrf.mxu0  ;;  %v12158_v22 = vpop.f32.mrf.mxu1 }
 0x2c5   : > { %v4888_v54 = vpop.f32.mrf.mxu0  ;;  %v12160_v17 = vpop.f32.mrf.mxu1 }
 0x2c7   : > { %v12162_v62 = vpop.f32.mrf.mxu0  ;;  %v12164_v61 = vpop.f32.mrf.mxu1 }
 0x2c9   : > { %v12166_v43 = vpop.f32.mrf.mxu0  ;;  %v12168_v55 = vpop.f32.mrf.mxu1 }
 0x2cb   : > { %v12170_v42 = vpop.f32.mrf.mxu0  ;;  %v12172_v5 = vpop.f32.mrf.mxu1 }
 0x2cd   : > { %v12174_v60 = vpop.f32.mrf.mxu0  ;;  %v12176_v1 = vpop.f32.mrf.mxu1 }
 0x2ce   : > { %13140 = vst [vmem:[#allocation36_spill] sm:$0xff] %v12176_v1 }
 0x2cf   : > { %v12178_v23 = vpop.f32.mrf.mxu0  ;;  %v12180_v21 = vpop.f32.mrf.mxu1 }
 0x2d0   : > { %13141 = vst [vmem:[#allocation38_spill] sm:$0xff] %v12180_v21 }
 0x2d1   : > { %v12182_v36 = vpop.f32.mrf.mxu0  ;;  %v12184_v35 = vpop.f32.mrf.mxu1 }
 0x2d2   : > { %13142 = vst [vmem:[#allocation39_spill] sm:$0xff] %v12184_v35 }
 0x2d3   : > { %v12186_v45 = vpop.f32.mrf.mxu0  ;;  %v12188_v52 = vpop.f32.mrf.mxu1 }
 0x2d4   : > { %13143 = vst [vmem:[#allocation41_spill] sm:$0xff] %v12188_v52 }
 0x2d5   : > { %v12190_v56 = vpop.f32.mrf.mxu0  ;;  %v12192_v4 = vpop.f32.mrf.mxu1 }
 0x2d6   : > { %13144 = vst [vmem:[#allocation42_spill] sm:$0xff] %v12190_v56  ;;  %13145 = vst [vmem:[#allocation44_spill] sm:$0xff] %v12192_v4 }
 0x2d7   : > { %v12194_v26 = vpop.f32.mrf.mxu0  ;;  %v12196_v28 = vpop.f32.mrf.mxu1 }
 0x2d8   : > { %13146 = vst [vmem:[#allocation45_spill] sm:$0xff] %v12194_v26  ;;  %13147 = vst [vmem:[#allocation47_spill] sm:$0xff] %v12196_v28 }
 0x2d9   : > { %v12198_v29 = vpop.f32.mrf.mxu0  ;;  %v12200_v33 = vpop.f32.mrf.mxu1 }
 0x2da   : > { %13148 = vst [vmem:[#allocation48_spill] sm:$0xff] %v12198_v29  ;;  %13149 = vst [vmem:[#allocation50_spill] sm:$0xff] %v12200_v33 }
 0x2db   : > { %v12202_v47 = vpop.f32.mrf.mxu0  ;;  %v12204_v21 = vpop.f32.mrf.mxu1 }
 0x2dc   : > { %13150 = vst [vmem:[#allocation51_spill] sm:$0xff] %v12202_v47  ;;  %13151 = vst [vmem:[#allocation54_spill] sm:$0xff] %v12204_v21 }
 0x2dd   : > { %v12206_v35 = vpop.f32.mrf.mxu0  ;;  %v12208_v1 = vpop.f32.mrf.mxu1 }
 0x2de   : > { %13152 = vst [vmem:[#allocation56_spill] sm:$0xff] %v12206_v35  ;;  %13153 = vst [vmem:[#allocation25_spill] sm:$0xff] %v12208_v1 }
 0x2df   : > { %v12210_v52 = vpop.f32.mrf.mxu0  ;;  %v12212_v56 = vpop.f32.mrf.mxu1 }
 0x2e0   : > { %13154 = vst [vmem:[#allocation26_spill] sm:$0xff] %v12210_v52  ;;  %13155 = vst [vmem:[#allocation27_spill] sm:$0xff] %v12212_v56  ;;  %v4998_v56 = vadd.f32 %v8525_v46, %v12043_v37  ;;  %v5001_v37 = vadd.f32 %v4858_v24, %v12058_v53  ;;  %v5004_v46 = vadd.f32 %v8534_v13, %v12061_v15 }
 0x2e1   : > { %v12214_v4 = vpop.f32.mrf.mxu0  ;;  %v12216_v26 = vpop.f32.mrf.mxu1 }
 0x2e2   : > { %13156 = vst [vmem:[#allocation28_spill] sm:$0xff] %v12214_v4  ;;  %13157 = vst [vmem:[#allocation29_spill] sm:$0xff] %v12216_v26  ;;  %v4997_v26 = vadd.f32 %v4838_v32, %v12046_v34  ;;  %v5003_v34 = vadd.f32 %v4868_v40, %v12064_v18  ;;  %v5278_v24 = vadd.f32 %v12150_v41, %v5004_v46 }
 0x2e3   : > { %v12218_v28 = vpop.f32.mrf.mxu0  ;;  %v12220_v29 = vpop.f32.mrf.mxu1 }
 0x2e4   : > { %13158 = vst [vmem:[#allocation63_spill] sm:$0xff] %v12218_v28  ;;  %13159 = vst [vmem:[#allocation46_spill] sm:$0xff] %v12220_v29  ;;  %v5000_v29 = vadd.f32 %v8528_v12, %v12049_v31  ;;  %v5006_v31 = vadd.f32 %v8537_v7, %v12067_v14  ;;  %v5005_v12 = vadd.f32 %v4878_v30, %v12070_v19 }
 0x2e5   : > { %v12222_v33 = vpop.f32.mrf.mxu0  ;;  %v12224_v47 = vpop.f32.mrf.mxu1  ;;  %v5275_v14 = vadd.f32 %v12148_v44, %v5001_v37  ;;  %v12263_v19 = vadd.f32 %v12152_v8, %v5003_v34  ;;  %v5011_v7 = vadd.f32 %v12174_v60, %v12088_v20  ;;  %v5014_v20 = vadd.f32 %v12178_v23, %v12091_v6  ;;  %v13167_v37 = vld [vmem:[#allocation78_spill] sm:$0xff] }
 0x2e6   : > { %13160 = vst [vmem:[#allocation30_spill] sm:$0xff] %v12222_v33  ;;  %13161 = vst [vmem:[#allocation49_spill] sm:$0xff] %v12224_v47  ;;  %v4999_v47 = vadd.f32 %v4848_v11, %v12052_v9  ;;  %v5271_v9 = vadd.f32 %v12140_v48, %v4997_v26  ;;  %v5016_v60 = vadd.f32 %v12186_v45, %v12097_v16 }
 0x2e7   : > { %v12226_v21 = vpop.f32.mrf.mxu0  ;;  %v12228_v35 = vpop.f32.mrf.mxu1 }
 0x2e8   : > { %13162 = vst [vmem:[#allocation69_spill] sm:$0xff] %v12226_v21  ;;  %v5002_v21 = vadd.f32 %v8531_v59, %v12055_v51  ;;  %v5274_v51 = vadd.f32 %v12142_v63, %v5000_v29  ;;  %v5273_v53 = vadd.f32 %v12144_v49, %v4999_v47  ;;  %v5007_v59 = vadd.f32 %v4888_v54, %v12076_v2 }
 0x2e9   : > { %v12230_v1 = vpop.f32.mrf.mxu0  ;;  %v12233_v52 = vpop.f32.mrf.mxu1  ;;  %v12266_v47 = vadd.f32 %v12154_v10, %v5006_v31  ;;  %v5009_v2 = vadd.f32 %v12166_v43, %v12082_v57  ;;  %v12278_v49 = vadd.f32 %v12156_v50, %v5005_v12  ;;  %v5012_v57 = vadd.f32 %v12170_v42, %v12085_v0  ;;  %v13166_v50 = vld [vmem:[#allocation77_spill] sm:$0xff]  ;;  %v13168_v31 = vld [vmem:[#allocation36_spill] sm:$0xff] }
 0x2ea   : > { %13163 = vst [vmem:[#allocation31_spill] sm:$0xff] %v12230_v1  ;;  %13164 = vst [vmem:[#allocation65_spill] sm:$0xff] %v12233_v52  ;;  %v5272_v1 = vadd.f32 %v12138_v39, %v4998_v56  ;;  %v5276_v15 = vadd.f32 %v12146_v3, %v5002_v21  ;;  %v5008_v39 = vadd.f32 %v8540_v27, %v12073_v58  ;;  %v12275_v21 = vld [vmem:[%s12510_s4] ss:$0 sm:$0xff]  ;;  %v13165_v3 = vld [vmem:[#allocation76_spill] sm:$0xff] }
 0x2eb   : > { %v12235_v4 = vpop.f32.mrf.mxu0  ;;  %v12239_v28 = vpop.f32.mrf.mxu1  ;;  %v5010_v58 = vadd.f32 %v12162_v62, %v12079_v25  ;;  %v12285_v25 = vadd.f32 %v12160_v17, %v5007_v59  ;;  %v12302_v0 = vadd.f32 %v12168_v55, %v5009_v2  ;;  %v5013_v43 = vadd.f32 %v12182_v36, %v12094_v38 }
 0x2ec   : > { %v12282_v8 = vadd.f32 %v12158_v22, %v5008_v39  ;;  %v12314_v55 = vadd.f32 %v12172_v5, %v5012_v57  ;;  %v13171_v5 = vld [vmem:[#allocation39_spill] sm:$0xff]  ;;  %v13177_v57 = vld [vmem:[#allocation80_spill] sm:$0xff] }
 0x2ed   : > { %v12243_v33 = vpop.f32.mrf.mxu0  ;;  %v12248_v52 = vpop.f32.mrf.mxu1  ;;  %v12299_v62 = vadd.f32 %v12164_v61, %v5010_v58 }
 0x2ef   : > { %v8685_v32 = vpop.f32.mrf.mxu0  ;;  %v8765_v56 = vpop.f32.mrf.mxu1 }
 0x2f0   : > { %v5556_v11 = vadd.f32 %v8685_v32, %v5272_v1  ;;  %v12317_v32 = vadd.f32 %v13168_v31, %v5011_v7 }
 0x2f1   : > { %v5396_v18 = vpop.f32.mrf.mxu0  ;;  %v5677_v48 = vpop.f32.mrf.mxu1 }
 0x2f2   : > { %v5837_v26 = vadd.f32 %v8765_v56, %v5556_v11  ;;  %v5555_v29 = vadd.f32 %v5396_v18, %v5271_v9  ;;  %v13169_v9 = vld [vmem:[#allocation79_spill] sm:$0xff]  ;;  %v13170_v11 = vld [vmem:[#allocation38_spill] sm:$0xff] }
 0x2f3   : > { %v8688_v63 = vpop.f32.mrf.mxu0  ;;  %v8768_v40 = vpop.f32.mrf.mxu1  ;;  %v12323_v56 = vadd.f32 %v13170_v11, %v5014_v20 }
 0x2f4   : > { %v5869_v44 = vadd.f32 %v5837_v26, %v13165_v3  ;;  %v5836_v13 = vadd.f32 %v5677_v48, %v5555_v29  ;;  %v5558_v41 = vadd.f32 %v8688_v63, %v5274_v51  ;;  %v13173_v63 = vld [vmem:[#allocation7_spill] sm:$0xff]  ;;  %v13174_v3 = vld [vmem:[#allocation42_spill] sm:$0xff] }
 0x2f5   : > { %v5406_v10 = vpop.f32.mrf.mxu0  ;;  %v5687_v17 = vpop.f32.mrf.mxu1 }
 0x2f6   : > { %v5908_v30 = vadd.f32 %v12275_v21, %v5869_v44  ;;  %v5868_v27 = vadd.f32 %v5836_v13, %v13166_v50  ;;  %v5839_v22 = vadd.f32 %v8768_v40, %v5558_v41  ;;  %v5557_v54 = vadd.f32 %v5406_v10, %v5273_v53  ;;  %v13175_v13 = vld [vmem:[#allocation12_spill] sm:$0xff]  ;;  %v13176_v41 = vld [vmem:[#allocation45_spill] sm:$0xff] }
 0x2f7   : > { %v8691_v42 = vpop.f32.mrf.mxu0  ;;  %v8771_v34 = vpop.f32.mrf.mxu1  ;;  %v12326_v53 = vadd.f32 %v13171_v5, %v5013_v43  ;;  %v5015_v44 = vadd.f32 %v13174_v3, %v13173_v63  ;;  %v5018_v40 = vadd.f32 %v13176_v41, %v13175_v13  ;;  %v13184_v5 = vld [vmem:[#allocation83_spill] sm:$0xff]  ;;  %v13186_v3 = vld [vmem:[#allocation72_spill] sm:$0xff] }
 0x2f8   : > { %5940 = vst [vmem:[%s12294_s8 + $0x8] sm:$0xff] %v5908_v30  ;;  %v5907_v1 = vadd.f32 %v12275_v21, %v5868_v27  ;;  %v5871_v61 = vadd.f32 %v5839_v22, %v13167_v37  ;;  %v5838_v46 = vadd.f32 %v5687_v17, %v5557_v54  ;;  %v6010_v6 = vmul.f32 %v5908_v30, %v5908_v30  ;;  %v13179_v17 = vld [vmem:[#allocation48_spill] sm:$0xff] }
 0x2f9   : > { %v5560_v38 = vadd.f32 %v8691_v42, %v5276_v15  ;;  %v5416_v36 = vpop.f32.mrf.mxu0  ;;  %v5697_v12 = vpop.f32.mrf.mxu1  ;;  %v13172_v15 = vld [vmem:[#allocation41_spill] sm:$0xff] }
 0x2fa   : > { %5939 = vst [vmem:[%s12294_s8] sm:$0xff] %v5907_v1  ;;  %v5971_v23 = vadd.f32 %v5908_v30, %v5907_v1  ;;  %v6009_v16 = vmul.f32 %v5907_v1, %v5907_v1  ;;  %v5910_v45 = vadd.f32 %v12275_v21, %v5871_v61  ;;  %v5870_v51 = vadd.f32 %v5838_v46, %v13169_v9 }
 0x2fb   : > { %v5841_v39 = vadd.f32 %v8771_v34, %v5560_v38  ;;  %v5559_v59 = vadd.f32 %v5416_v36, %v5275_v14  ;;  %v8694_v18 = vpop.f32.mrf.mxu0  ;;  %v12329_v26 = vadd.f32 %v13172_v15, %v5016_v60  ;;  %v8774_v2 = vpop.f32.mrf.mxu1  ;;  %v13180_v60 = vld [vmem:[#allocation81_spill] sm:$0xff]  ;;  %v13181_v34 = vld [vmem:[#allocation82_spill] sm:$0xff]  ;;  %v13182_v36 = vld [vmem:[#allocation44_spill] sm:$0xff] }
 0x2fc   : > { %v6041_v29 = vadd.f32 %v6010_v6, %v6009_v16  ;;  %5942 = vst [vmem:[%s12294_s8 + $0x18] sm:$0xff] %v5910_v45  ;;  %v5909_v48 = vadd.f32 %v12275_v21, %v5870_v51  ;;  %v5562_v58 = vadd.f32 %v8694_v18, %v5278_v24  ;;  %v13178_v24 = vld [vmem:[#allocation19_spill] sm:$0xff]  ;;  %v6012_v43 = vmul.f32 %v5910_v45, %v5910_v45  ;;  %v13185_v15 = vld [vmem:[#allocation50_spill] sm:$0xff] }
 0x2fd   : > { %v5873_v7 = vadd.f32 %v5841_v39, %v13177_v57  ;;  %v5840_v10 = vadd.f32 %v5697_v12, %v5559_v59  ;;  %v5426_v14 = vpop.f32.mrf.mxu0  ;;  %v5707_v54 = vpop.f32.mrf.mxu1  ;;  %v5017_v20 = vadd.f32 %v13179_v17, %v13178_v24 }
 0x2fe   : > { %5941 = vst [vmem:[%s12294_s8 + $0x10] sm:$0xff] %v5909_v48  ;;  %v5972_v30 = vadd.f32 %v5971_v23, %v5909_v48  ;;  %v6011_v50 = vmul.f32 %v5909_v48, %v5909_v48  ;;  %v5843_v27 = vadd.f32 %v8774_v2, %v5562_v58  ;;  %v5561_v22 = vadd.f32 %v5426_v14, %v12263_v19  ;;  %v13183_v19 = vld [vmem:[#allocation47_spill] sm:$0xff]  ;;  %v13188_v14 = vld [vmem:[#allocation10_spill] sm:$0xff] }
 0x2ff   : > { %v5912_v42 = vadd.f32 %v12275_v21, %v5873_v7  ;;  %v5872_v1 = vadd.f32 %v5840_v10, %v13180_v60  ;;  %v8697_v37 = vpop.f32.mrf.mxu0  ;;  %v8777_v38 = vpop.f32.mrf.mxu1  ;;  %v12346_v23 = vadd.f32 %v13182_v36, %v5015_v44  ;;  %v12349_v16 = vadd.f32 %v13183_v19, %v5018_v40  ;;  %v13191_v60 = vld [vmem:[#allocation56_spill] sm:$0xff]  ;;  %v13193_v19 = vld [vmem:[#allocation54_spill] sm:$0xff] }
 0x300   : > { %v6042_v61 = vadd.f32 %v6041_v29, %v6011_v50  ;;  %v5973_v46 = vadd.f32 %v5972_v30, %v5910_v45  ;;  %v5875_v31 = vadd.f32 %v5843_v27, %v13181_v34  ;;  %v5842_v6 = vadd.f32 %v5707_v54, %v5561_v22  ;;  %v13189_v22 = vld [vmem:[#allocation57_spill] sm:$0xff]  ;;  %v13192_v34 = vld [vmem:[#allocation11_spill] sm:$0xff] }
 0x301   : > { %5944 = vst [vmem:[%s12294_s8 + $0x28] sm:$0xff] %v5912_v42  ;;  %v5911_v9 = vadd.f32 %v12275_v21, %v5872_v1  ;;  %v5564_v51 = vadd.f32 %v8697_v37, %v12266_v47  ;;  %v5436_v12 = vpop.f32.mrf.mxu0  ;;  %v5717_v18 = vpop.f32.mrf.mxu1  ;;  %v12358_v29 = vadd.f32 %v13185_v15, %v5017_v20  ;;  %v13187_v47 = vld [vmem:[#allocation51_spill] sm:$0xff]  ;;  %v6014_v57 = vmul.f32 %v5912_v42, %v5912_v42 }
 0x302   : > { %v6043_v11 = vadd.f32 %v6042_v61, %v6012_v43  ;;  %v5914_v45 = vadd.f32 %v12275_v21, %v5875_v31  ;;  %v5874_v39 = vadd.f32 %v5842_v6, %v13184_v5  ;;  %v5563_v59 = vadd.f32 %v5436_v12, %v12278_v49  ;;  %v13190_v43 = vld [vmem:[#allocation53_spill] sm:$0xff] }
 0x303   : > { %5943 = vst [vmem:[%s12294_s8 + $0x20] sm:$0xff] %v5911_v9  ;;  %v5974_v48 = vadd.f32 %v5973_v46, %v5911_v9  ;;  %v6013_v58 = vmul.f32 %v5911_v9, %v5911_v9  ;;  %v5845_v2 = vadd.f32 %v8777_v38, %v5564_v51  ;;  %v8700_v63 = vpop.f32.mrf.mxu0  ;;  %v5020_v44 = vadd.f32 %v13187_v47, %v13186_v3  ;;  %v8780_v49 = vpop.f32.mrf.mxu1 }
 0x304   : > { %5946 = vst [vmem:[%s12294_s8 + $0x38] sm:$0xff] %v5914_v45  ;;  %v5913_v13 = vadd.f32 %v12275_v21, %v5874_v39  ;;  %v5844_v41 = vadd.f32 %v5717_v18, %v5563_v59  ;;  %v5566_v40 = vadd.f32 %v8700_v63, %v12282_v8  ;;  %v5019_v1 = vadd.f32 %v13191_v60, %v13190_v43  ;;  %v13194_v59 = vld [vmem:[#allocation58_spill] sm:$0xff] }
 0x305   : > { %v6044_v7 = vadd.f32 %v6043_v11, %v6013_v58  ;;  %v5975_v10 = vadd.f32 %v5974_v48, %v5912_v42  ;;  %v5877_v30 = vadd.f32 %v5845_v2, %v13188_v14  ;;  %v5446_v50 = vpop.f32.mrf.mxu0  ;;  %v5727_v20 = vpop.f32.mrf.mxu1  ;;  %v6016_v9 = vmul.f32 %v5914_v45, %v5914_v45  ;;  %v13195_v58 = vld [vmem:[#allocation73_spill] sm:$0xff] }
 0x306   : > { %5945 = vst [vmem:[%s12294_s8 + $0x30] sm:$0xff] %v5913_v13  ;;  %v6015_v27 = vmul.f32 %v5913_v13, %v5913_v13  ;;  %v5876_v54 = vadd.f32 %v5844_v41, %v13189_v22  ;;  %v5847_v24 = vadd.f32 %v8780_v49, %v5566_v40  ;;  %v5565_v17 = vadd.f32 %v5446_v50, %v12285_v25  ;;  %v13198_v40 = vld [vmem:[#allocation14_spill] sm:$0xff] }
 0x307   : > { %v5976_v8 = vadd.f32 %v5975_v10, %v5913_v13  ;;  %v6045_v37 = vadd.f32 %v6044_v7, %v6014_v57  ;;  %v5916_v42 = vadd.f32 %v12275_v21, %v5877_v30  ;;  %v8703_v61 = vpop.f32.mrf.mxu0  ;;  %v8783_v36 = vpop.f32.mrf.mxu1  ;;  %v12377_v25 = vadd.f32 %v13193_v19, %v5020_v44  ;;  %v13197_v13 = vld [vmem:[#allocation25_spill] sm:$0xff] }
 0x308   : > { %v5915_v46 = vadd.f32 %v12275_v21, %v5876_v54  ;;  %v5879_v31 = vadd.f32 %v5847_v24, %v13192_v34  ;;  %v5846_v6 = vadd.f32 %v5727_v20, %v5565_v17  ;;  %v5568_v38 = vadd.f32 %v8703_v61, %v12299_v62  ;;  %v13196_v62 = vld [vmem:[#allocation26_spill] sm:$0xff]  ;;  %v13199_v20 = vld [vmem:[#allocation27_spill] sm:$0xff]  ;;  %v13201_v61 = vld [vmem:[#allocation21_spill] sm:$0xff] }
 0x309   : > { %v6046_v51 = vadd.f32 %v6045_v37, %v6015_v27  ;;  %5948 = vst [vmem:[%s12294_s8 + $0x48] sm:$0xff] %v5916_v42  ;;  %v5977_v12 = vadd.f32 %v5976_v8, %v5914_v45  ;;  %v5456_v11 = vpop.f32.mrf.mxu0  ;;  %v5737_v48 = vpop.f32.mrf.mxu1  ;;  %v5022_v2 = vadd.f32 %v13196_v62, %v13195_v58  ;;  %v12387_v45 = vadd.f32 %v13197_v13, %v5019_v1  ;;  %v13200_v1 = vld [vmem:[#allocation64_spill] sm:$0xff]  ;;  %v13203_v34 = vld [vmem:[#allocation13_spill] sm:$0xff]  ;;  %v13205_v58 = vld [vmem:[#allocation55_spill] sm:$0xff] }
 0x30a   : > { %5947 = vst [vmem:[%s12294_s8 + $0x40] sm:$0xff] %v5915_v46  ;;  %v6017_v5 = vmul.f32 %v5915_v46, %v5915_v46  ;;  %v5918_v39 = vadd.f32 %v12275_v21, %v5879_v31  ;;  %v5878_v18 = vadd.f32 %v5846_v6, %v13194_v59  ;;  %v5849_v15 = vadd.f32 %v8783_v36, %v5568_v38  ;;  %v13206_v62 = vld [vmem:[#allocation63_spill] sm:$0xff] }
 0x30b   : > { %v5978_v63 = vadd.f32 %v5977_v12, %v5915_v46  ;;  %v6047_v3 = vadd.f32 %v6046_v51, %v6016_v9  ;;  %v5567_v47 = vadd.f32 %v5456_v11, %v12302_v0  ;;  %v8706_v44 = vpop.f32.mrf.mxu0  ;;  %v8786_v7 = vpop.f32.mrf.mxu1  ;;  %v6018_v10 = vmul.f32 %v5916_v42, %v5916_v42 }
 0x30c   : > { %5950 = vst [vmem:[%s12294_s8 + $0x58] sm:$0xff] %v5918_v39  ;;  %v5917_v41 = vadd.f32 %v12275_v21, %v5878_v18  ;;  %v5881_v49 = vadd.f32 %v5849_v15, %v13198_v40  ;;  %v5570_v57 = vadd.f32 %v8706_v44, %v12314_v55  ;;  %v12397_v43 = vadd.f32 %v13199_v20, %v5022_v2  ;;  %v13207_v44 = vld [vmem:[#allocation29_spill] sm:$0xff]  ;;  %v13210_v20 = vld [vmem:[#allocation46_spill] sm:$0xff] }
 0x30d   : > { %v6048_v14 = vadd.f32 %v6047_v3, %v6017_v5  ;;  %v5979_v30 = vadd.f32 %v5978_v63, %v5916_v42  ;;  %v5848_v50 = vadd.f32 %v5737_v48, %v5567_v47  ;;  %v5466_v27 = vpop.f32.mrf.mxu0  ;;  %v5747_v17 = vpop.f32.mrf.mxu1  ;;  %v13202_v42 = vld [vmem:[#allocation28_spill] sm:$0xff]  ;;  %v6020_v36 = vmul.f32 %v5918_v39, %v5918_v39 }
 0x30e   : > { %5949 = vst [vmem:[%s12294_s8 + $0x50] sm:$0xff] %v5917_v41  ;;  %v6019_v0 = vmul.f32 %v5917_v41, %v5917_v41  ;;  %v5920_v22 = vadd.f32 %v12275_v21, %v5881_v49  ;;  %v5851_v54 = vadd.f32 %v8786_v7, %v5570_v57  ;;  %v5569_v24 = vadd.f32 %v5466_v27, %v12317_v32  ;;  %v13204_v5 = vld [vmem:[#allocation60_spill] sm:$0xff] }
 0x30f   : > { %v5980_v60 = vadd.f32 %v5979_v30, %v5917_v41  ;;  %v6049_v55 = vadd.f32 %v6048_v14, %v6018_v10  ;;  %v5880_v8 = vadd.f32 %v5848_v50, %v13200_v1  ;;  %v8709_v37 = vpop.f32.mrf.mxu0  ;;  %v5021_v46 = vadd.f32 %v13202_v42, %v13201_v61  ;;  %v8789_v32 = vpop.f32.mrf.mxu1  ;;  %v13208_v41 = vld [vmem:[#allocation15_spill] sm:$0xff] }
 0x310   : > { %5952 = vst [vmem:[%s12294_s8 + $0x68] sm:$0xff] %v5920_v22  ;;  %v5883_v31 = vadd.f32 %v5851_v54, %v13203_v34  ;;  %v5850_v6 = vadd.f32 %v5747_v17, %v5569_v24  ;;  %v5572_v38 = vadd.f32 %v8709_v37, %v12323_v56  ;;  %v5024_v2 = vadd.f32 %v13206_v62, %v13205_v58  ;;  %v13211_v37 = vld [vmem:[#allocation61_spill] sm:$0xff] }
 0x311   : > { %v6050_v19 = vadd.f32 %v6049_v55, %v6019_v0  ;;  %v5919_v9 = vadd.f32 %v12275_v21, %v5880_v8  ;;  %v5981_v51 = vadd.f32 %v5980_v60, %v5918_v39  ;;  %v5476_v12 = vpop.f32.mrf.mxu0  ;;  %v5757_v48 = vpop.f32.mrf.mxu1  ;;  %v12413_v39 = vadd.f32 %v13207_v44, %v5021_v46  ;;  %v13209_v0 = vld [vmem:[#allocation66_spill] sm:$0xff] }
 0x312   : > { %v5922_v11 = vadd.f32 %v12275_v21, %v5883_v31  ;;  %v5882_v59 = vadd.f32 %v5850_v6, %v13204_v5  ;;  %v5853_v18 = vadd.f32 %v8789_v32, %v5572_v38  ;;  %v5571_v15 = vadd.f32 %v5476_v12, %v12326_v53  ;;  %v13213_v32 = vld [vmem:[#allocation16_spill] sm:$0xff] }
 0x313   : > { %5951 = vst [vmem:[%s12294_s8 + $0x60] sm:$0xff] %v5919_v9  ;;  %v5982_v56 = vadd.f32 %v5981_v51, %v5919_v9  ;;  %v6021_v63 = vmul.f32 %v5919_v9, %v5919_v9  ;;  %v6051_v3 = vadd.f32 %v6050_v19, %v6020_v36  ;;  %v8712_v47 = vpop.f32.mrf.mxu0  ;;  %v8792_v53 = vpop.f32.mrf.mxu1  ;;  %v6022_v57 = vmul.f32 %v5920_v22, %v5920_v22  ;;  %v13214_v51 = vld [vmem:[#allocation62_spill] sm:$0xff] }
 0x314   : > { %5954 = vst [vmem:[%s12294_s8 + $0x78] sm:$0xff] %v5922_v11  ;;  %v5921_v13 = vadd.f32 %v12275_v21, %v5882_v59  ;;  %v5885_v40 = vadd.f32 %v5853_v18, %v13208_v41  ;;  %v5852_v49 = vadd.f32 %v5757_v48, %v5571_v15  ;;  %v5574_v14 = vadd.f32 %v8712_v47, %v12329_v26  ;;  %v13212_v26 = vld [vmem:[#allocation30_spill] sm:$0xff]  ;;  %v13216_v48 = vld [vmem:[#allocation69_spill] sm:$0xff] }
 0x315   : > { %v6052_v7 = vadd.f32 %v6051_v3, %v6021_v63  ;;  %v5983_v10 = vadd.f32 %v5982_v56, %v5920_v22  ;;  %v5486_v30 = vpop.f32.mrf.mxu0  ;;  %v5767_v17 = vpop.f32.mrf.mxu1  ;;  %v12424_v60 = vadd.f32 %v13210_v20, %v5024_v2  ;;  %v5023_v61 = vadd.f32 %v13212_v26, %v13211_v37  ;;  %v13215_v15 = vld [vmem:[#allocation22_spill] sm:$0xff]  ;;  %v13217_v63 = vld [vmem:[#allocation17_spill] sm:$0xff] }
 0x316   : > { %5953 = vst [vmem:[%s12294_s8 + $0x70] sm:$0xff] %v5921_v13  ;;  %v6023_v50 = vmul.f32 %v5921_v13, %v5921_v13  ;;  %v5924_v27 = vadd.f32 %v12275_v21, %v5885_v40  ;;  %v5884_v54 = vadd.f32 %v5852_v49, %v13209_v0  ;;  %v5573_v24 = vadd.f32 %v5486_v30, %v12346_v23  ;;  %v13218_v41 = vld [vmem:[#allocation49_spill] sm:$0xff] }
 0x317   : > { %v5984_v55 = vadd.f32 %v5983_v10, %v5921_v13  ;;  %v6053_v1 = vadd.f32 %v6052_v7, %v6022_v57  ;;  %v5855_v8 = vadd.f32 %v8792_v53, %v5574_v14  ;;  %v8715_v22 = vpop.f32.mrf.mxu0  ;;  %v8795_v31 = vpop.f32.mrf.mxu1  ;;  %v6024_v23 = vmul.f32 %v5922_v11, %v5922_v11  ;;  %v13219_v14 = vld [vmem:[#allocation18_spill] sm:$0xff] }
 0x318   : > { %5956 = vst [vmem:[%s12294_s8 + $0x88] sm:$0xff] %v5924_v27  ;;  %v5923_v42 = vadd.f32 %v12275_v21, %v5884_v54  ;;  %v5854_v46 = vadd.f32 %v5767_v17, %v5573_v24  ;;  %v5576_v34 = vadd.f32 %v8715_v22, %v12349_v16  ;;  %v5026_v58 = vadd.f32 %v13216_v48, %v13215_v15  ;;  %v13222_v22 = vld [vmem:[#allocation20_spill] sm:$0xff]  ;;  %v13226_v15 = vld [vmem:[#allocation34_spill] sm:$0xff] }
 0x319   : > { %v6054_v6 = vadd.f32 %v6053_v1, %v6023_v50  ;;  %v5985_v38 = vadd.f32 %v5984_v55, %v5922_v11  ;;  %v5887_v36 = vadd.f32 %v5855_v8, %v13213_v32  ;;  %v5496_v19 = vpop.f32.mrf.mxu0  ;;  %v5777_v18 = vpop.f32.mrf.mxu1  ;;  %v6026_v40 = vmul.f32 %v5924_v27, %v5924_v27  ;;  %v13220_v55 = vld [vmem:[#allocation24_spill] sm:$0xff]  ;;  %v13221_v1 = vld [vmem:[#allocation31_spill] sm:$0xff] }
 0x31a   : > { %5955 = vst [vmem:[%s12294_s8 + $0x80] sm:$0xff] %v5923_v42  ;;  %v6025_v9 = vmul.f32 %v5923_v42, %v5923_v42  ;;  %v5886_v12 = vadd.f32 %v5854_v46, %v13214_v51  ;;  %v5857_v5 = vadd.f32 %v8795_v31, %v5576_v34  ;;  %v5575_v59 = vadd.f32 %v5496_v19, %v12358_v29  ;;  %v13224_v51 = vld [vmem:[#allocation23_spill] sm:$0xff] }
 0x31b   : > { %v5986_v16 = vadd.f32 %v5985_v38, %v5923_v42  ;;  %v6055_v62 = vadd.f32 %v6054_v6, %v6024_v23  ;;  %v5926_v11 = vadd.f32 %v12275_v21, %v5887_v36  ;;  %v8718_v2 = vpop.f32.mrf.mxu0  ;;  %v8798_v13 = vpop.f32.mrf.mxu1  ;;  %v5297_v29 = vadd.f32 %v13218_v41, %v5023_v61  ;;  %v13223_v36 = vld [vmem:[#allocation33_spill] sm:$0xff] }
 0x31c   : > { %v5925_v56 = vadd.f32 %v12275_v21, %v5886_v12  ;;  %v5889_v3 = vadd.f32 %v5857_v5, %v13217_v63  ;;  %v5856_v47 = vadd.f32 %v5777_v18, %v5575_v59  ;;  %v5578_v44 = vadd.f32 %v8718_v2, %v12377_v25  ;;  %v13225_v59 = vld [vmem:[#allocation65_spill] sm:$0xff] }
 0x31d   : > { %v6056_v49 = vadd.f32 %v6055_v62, %v6025_v9  ;;  %5958 = vst [vmem:[%s12294_s8 + $0x98] sm:$0xff] %v5926_v11  ;;  %v5987_v53 = vadd.f32 %v5986_v16, %v5924_v27  ;;  %v5506_v57 = vpop.f32.mrf.mxu0  ;;  %v5787_v0 = vpop.f32.mrf.mxu1  ;;  %v5300_v54 = vadd.f32 %v12228_v35, %v5026_v58  ;;  %v5025_v27 = vadd.f32 %v13221_v1, %v13220_v55 }
 0x31e   : > { %5957 = vst [vmem:[%s12294_s8 + $0x90] sm:$0xff] %v5925_v56  ;;  %v6027_v7 = vmul.f32 %v5925_v56, %v5925_v56  ;;  %v5928_v10 = vadd.f32 %v12275_v21, %v5889_v3  ;;  %v5888_v30 = vadd.f32 %v5856_v47, %v13219_v14  ;;  %v5859_v50 = vadd.f32 %v8798_v13, %v5578_v44  ;;  %v13227_v3 = vld [vmem:[#allocation37_spill] sm:$0xff] }
 0x31f   : > { %v5988_v25 = vadd.f32 %v5987_v53, %v5925_v56  ;;  %v6057_v24 = vadd.f32 %v6056_v49, %v6026_v40  ;;  %v5577_v17 = vadd.f32 %v5506_v57, %v12387_v45  ;;  %v8721_v20 = vpop.f32.mrf.mxu0  ;;  %v8801_v61 = vpop.f32.mrf.mxu1  ;;  %v6028_v42 = vmul.f32 %v5926_v11, %v5926_v11 }
 0x320   : > { %5960 = vst [vmem:[%s12294_s8 + $0xa8] sm:$0xff] %v5928_v10  ;;  %v5927_v8 = vadd.f32 %v12275_v21, %v5888_v30  ;;  %v5891_v37 = vadd.f32 %v5859_v50, %v13222_v22  ;;  %v5580_v26 = vadd.f32 %v8721_v20, %v12397_v43  ;;  %v5028_v19 = vadd.f32 %v12235_v4, %v13223_v36  ;;  %v13229_v30 = vld [vmem:[#allocation40_spill] sm:$0xff] }
 0x321   : > { %v6058_v46 = vadd.f32 %v6057_v24, %v6027_v7  ;;  %v5989_v35 = vadd.f32 %v5988_v25, %v5926_v11  ;;  %v5858_v34 = vadd.f32 %v5787_v0, %v5577_v17  ;;  %v5516_v31 = vpop.f32.mrf.mxu0  ;;  %v5797_v32 = vpop.f32.mrf.mxu1  ;;  %v5299_v18 = vadd.f32 %v13225_v59, %v5025_v27  ;;  %v13228_v7 = vld [vmem:[#allocation35_spill] sm:$0xff]  ;;  %v13230_v27 = vld [vmem:[#allocation6_spill] sm:$0xff] }
 0x322   : > { %5959 = vst [vmem:[%s12294_s8 + $0xa0] sm:$0xff] %v5927_v8  ;;  %v6029_v45 = vmul.f32 %v5927_v8, %v5927_v8  ;;  %v5930_v23 = vadd.f32 %v12275_v21, %v5891_v37  ;;  %v5861_v6 = vadd.f32 %v8801_v61, %v5580_v26  ;;  %v5579_v38 = vadd.f32 %v5516_v31, %v12413_v39 }
 0x323   : > { %v5990_v9 = vadd.f32 %v5989_v35, %v5927_v8  ;;  %v6059_v43 = vadd.f32 %v6058_v46, %v6028_v42  ;;  %v5890_v12 = vadd.f32 %v5858_v34, %v13224_v51  ;;  %v8724_v5 = vpop.f32.mrf.mxu0  ;;  %v8804_v62 = vpop.f32.mrf.mxu1  ;;  %v6030_v39 = vmul.f32 %v5928_v10, %v5928_v10 }
 0x324   : > { %5962 = vst [vmem:[%s12294_s8 + $0xb8] sm:$0xff] %v5930_v23  ;;  %v5893_v48 = vadd.f32 %v5861_v6, %v13226_v15  ;;  %v5860_v58 = vadd.f32 %v5797_v32, %v5579_v38  ;;  %v5582_v16 = vadd.f32 %v8724_v5, %v12424_v60  ;;  %v5302_v40 = vadd.f32 %v12239_v28, %v5028_v19  ;;  %v13231_v38 = vld [vmem:[#allocation43_spill] sm:$0xff] }
 0x325   : > { %v6060_v11 = vadd.f32 %v6059_v43, %v6029_v45  ;;  %v5929_v4 = vadd.f32 %v12275_v21, %v5890_v12  ;;  %v5991_v2 = vadd.f32 %v5990_v9, %v5928_v10  ;;  %v5526_v56 = vpop.f32.mrf.mxu0  ;;  %v5807_v41 = vpop.f32.mrf.mxu1  ;;  %v5027_v14 = vadd.f32 %v12243_v33, %v13228_v7  ;;  %v13232_v9 = vld [vmem:[#allocation4_spill] sm:$0xff] }
 0x326   : > { %v5932_v63 = vadd.f32 %v12275_v21, %v5893_v48  ;;  %v5892_v47 = vadd.f32 %v5860_v58, %v13227_v3  ;;  %v5863_v44 = vadd.f32 %v8804_v62, %v5582_v16  ;;  %v5581_v13 = vadd.f32 %v5526_v56, %v5297_v29  ;;  %v13233_v48 = vld [vmem:[#allocation5_spill] sm:$0xff]  ;;  %v13234_v56 = vld [vmem:[#allocation8_spill] sm:$0xff] }
 0x327   : > { %5961 = vst [vmem:[%s12294_s8 + $0xb0] sm:$0xff] %v5929_v4  ;;  %v5992_v60 = vadd.f32 %v5991_v2, %v5929_v4  ;;  %v6031_v49 = vmul.f32 %v5929_v4, %v5929_v4  ;;  %v6061_v53 = vadd.f32 %v6060_v11, %v6030_v39  ;;  %v8727_v57 = vpop.f32.mrf.mxu0  ;;  %v8807_v25 = vpop.f32.mrf.mxu1  ;;  %v6032_v29 = vmul.f32 %v5930_v23, %v5930_v23 }
 0x328   : > { %5964 = vst [vmem:[%s12294_s8 + $0xc8] sm:$0xff] %v5932_v63  ;;  %v5931_v10 = vadd.f32 %v12275_v21, %v5892_v47  ;;  %v5895_v50 = vadd.f32 %v5863_v44, %v13229_v30  ;;  %v5862_v0 = vadd.f32 %v5807_v41, %v5581_v13  ;;  %v5584_v17 = vadd.f32 %v8727_v57, %v5300_v54 }
 0x329   : > { %v6062_v24 = vadd.f32 %v6061_v53, %v6031_v49  ;;  %v5993_v28 = vadd.f32 %v5992_v60, %v5930_v23  ;;  %v5536_v20 = vpop.f32.mrf.mxu0  ;;  %v5817_v22 = vpop.f32.mrf.mxu1  ;;  %v5301_v46 = vadd.f32 %v12248_v52, %v5027_v14  ;;  %v6034_v45 = vmul.f32 %v5932_v63, %v5932_v63 }
 0x32a   : > { %5963 = vst [vmem:[%s12294_s8 + $0xc0] sm:$0xff] %v5931_v10  ;;  %v6033_v55 = vmul.f32 %v5931_v10, %v5931_v10  ;;  %v5934_v1 = vadd.f32 %v12275_v21, %v5895_v50  ;;  %v5894_v8 = vadd.f32 %v5862_v0, %v13230_v27  ;;  %v5583_v33 = vadd.f32 %v5536_v20, %v5299_v18 }
 0x32b   : > { %v5994_v37 = vadd.f32 %v5993_v28, %v5931_v10  ;;  %v6063_v26 = vadd.f32 %v6062_v24, %v6032_v29  ;;  %v5865_v61 = vadd.f32 %v8807_v25, %v5584_v17  ;;  %v8730_v42 = vpop.f32.mrf.mxu0  ;;  %v8810_v31 = vpop.f32.mrf.mxu1 }
 0x32c   : > { %5966 = vst [vmem:[%s12294_s8 + $0xd8] sm:$0xff] %v5934_v1  ;;  %v5933_v35 = vadd.f32 %v12275_v21, %v5894_v8  ;;  %v5864_v54 = vadd.f32 %v5817_v22, %v5583_v33  ;;  %v5586_v34 = vadd.f32 %v8730_v42, %v5302_v40  ;;  %v6036_v62 = vmul.f32 %v5934_v1, %v5934_v1 }
 0x32d   : > { %v6064_v23 = vadd.f32 %v6063_v26, %v6033_v55  ;;  %v5995_v6 = vadd.f32 %v5994_v37, %v5932_v63  ;;  %v5897_v32 = vadd.f32 %v5865_v61, %v13231_v38  ;;  %v5546_v36 = vpop.f32.mrf.mxu0  ;;  %v5827_v18 = vpop.f32.mrf.mxu1 }
 0x32e   : > { %5965 = vst [vmem:[%s12294_s8 + $0xd0] sm:$0xff] %v5933_v35  ;;  %v6035_v19 = vmul.f32 %v5933_v35, %v5933_v35  ;;  %v5896_v43 = vadd.f32 %v5864_v54, %v13232_v9  ;;  %v5867_v51 = vadd.f32 %v8810_v31, %v5586_v34  ;;  %v5585_v52 = vadd.f32 %v5546_v36, %v5301_v46 }
 0x32f   : > { %v5996_v12 = vadd.f32 %v5995_v6, %v5933_v35  ;;  %v6065_v5 = vadd.f32 %v6064_v23, %v6034_v45  ;;  %v5936_v59 = vadd.f32 %v12275_v21, %v5897_v32 }
 0x330   : > { %v5935_v15 = vadd.f32 %v12275_v21, %v5896_v43  ;;  %v5899_v58 = vadd.f32 %v5867_v51, %v13233_v48  ;;  %v5866_v16 = vadd.f32 %v5827_v18, %v5585_v52 }
 0x331   : > { %v6066_v39 = vadd.f32 %v6065_v5, %v6035_v19  ;;  %5968 = vst [vmem:[%s12294_s8 + $0xe8] sm:$0xff] %v5936_v59  ;;  %v5997_v11 = vadd.f32 %v5996_v12, %v5934_v1  ;;  %v6038_v13 = vmul.f32 %v5936_v59, %v5936_v59 }
 0x332   : > { %5967 = vst [vmem:[%s12294_s8 + $0xe0] sm:$0xff] %v5935_v15  ;;  %v6037_v4 = vmul.f32 %v5935_v15, %v5935_v15  ;;  %v5938_v2 = vadd.f32 %v12275_v21, %v5899_v58  ;;  %v5898_v63 = vadd.f32 %v5866_v16, %v13234_v56 }
 0x333   : > { %v5998_v3 = vadd.f32 %v5997_v11, %v5935_v15  ;;  %v6067_v47 = vadd.f32 %v6066_v39, %v6036_v62 }
 0x334   : > { %5970 = vst [vmem:[%s12294_s8 + $0xf8] sm:$0xff] %v5938_v2  ;;  %v5937_v44 = vadd.f32 %v12275_v21, %v5898_v63  ;;  %v6040_v57 = vmul.f32 %v5938_v2, %v5938_v2 }
 0x335   : > { %v6068_v41 = vadd.f32 %v6067_v47, %v6037_v4  ;;  %v5999_v40 = vadd.f32 %v5998_v3, %v5936_v59 }
 0x336   : > { %5969 = vst [vmem:[%s12294_s8 + $0xf0] sm:$0xff] %v5937_v44  ;;  %v6039_v60 = vmul.f32 %v5937_v44, %v5937_v44 }
 0x337   : > { %v6000_v49 = vadd.f32 %v5999_v40, %v5937_v44  ;;  %v6069_v53 = vadd.f32 %v6068_v41, %v6038_v13 }
 0x339   : > { %v6001_v7 = vadd.f32 %v6000_v49, %v5938_v2  ;;  %v6070_v14 = vadd.f32 %v6069_v53, %v6039_v60 }
 0x33b   : > { %v6002_v10 = vrot.slane %v6001_v7, 4  ;;  %v6071_v30 = vadd.f32 %v6070_v14, %v6040_v57 }
 0x33d   : > { %v6003_v50 = vadd.f32 %v6002_v10, %v6001_v7  ;;  %v6072_v0 = vrot.slane %v6071_v30, 4 }
 0x33f   : > { %v6004_v25 = vrot.slane %v6003_v50, 2  ;;  %v6073_v29 = vadd.f32 %v6072_v0, %v6071_v30 }
 0x341   : > { %v6005_v24 = vadd.f32 %v6004_v25, %v6003_v50  ;;  %v6074_v21 = vrot.slane %v6073_v29, 2 }
 0x343   : > { %v6006_v28 = vrot.slane %v6005_v24, 1  ;;  %v6075_v17 = vadd.f32 %v6074_v21, %v6073_v29 }
 0x345   : > { %v6007_v20 = vadd.f32 %v6006_v28, %v6005_v24  ;;  %v6076_v55 = vrot.slane %v6075_v17, 1 }
 0x347   : > { %6008 = vst [vmem:[%s343_s16] sm:$0x1] %v6007_v20  ;;  %v6077_v1 = vadd.f32 %v6076_v55, %v6075_v17 }
 0x349   : > { %6078 = vst [vmem:[%s343_s16 + $0x1] sm:$0x1] %v6077_v1 }
 0x34a PF: > { %s17_s23 = sadd.s32 1, %s8916_s23   ;;  %s13235_s21 = smov %s8912_s22 }
 0x34b   : > { %p14_p5 = scmp.ge.s32.totalorder %s17_s23, 4   ;;  %s13236_s22 = smov %s13238_s24 }
 0x34d   :  { %16 = sbr.rel (!%p14_p5) target bundleno = 2 (0x2), region = 101 }

</bundles_post_ra>
